<compile_context>
chip_gen: v6e
topology: v6e:2x2x1
jax: 0.10.0
libtpu: 0.0.40
codegen_flags: <defaults>
</compile_context>

<pallas_src>
import functools

import jax
import jax.numpy as jnp
from jax.experimental import pallas as pl
from jax.experimental.pallas import tpu as pltpu

# ----------------------------- scaled-down DenseNet config -----------------------------
GROWTH = 8                   # densenet121: 32
BN_SIZE = 4                  # bottleneck width = BN_SIZE * GROWTH
BLOCK_CONFIG = (2, 2, 2, 2)  # densenet121: (6, 12, 24, 16)
INIT_FEATURES = 16           # densenet121: 64
NUM_DISEASE = 20
NUM_VIEW = 2
BN_EPS = 1e-5

# Matmul tiles: multiples of (8, 128) wherever a dim is actually tiled, sized so the
# double-buffered working set stays far below scoped VMEM on v5e/v6e/v7x.
TILE_M = 256
TILE_N = 128
TILE_K = 256
POOL_TILE_M = 512

_VMEM = pltpu.MemorySpace.VMEM
_MM_PARAMS = pltpu.CompilerParams(
    dimension_semantics=("parallel", "parallel", "arbitrary"),
    vmem_limit_bytes=32 * 1024 * 1024,
)


def _round_up(x, m):
    return ((x + m - 1) // m) * m


def _pad_axis(x, axis, new_size):
    pad = new_size - x.shape[axis]
    if pad == 0:
        return x
    widths = [(0, 0)] * x.ndim
    widths[axis] = (0, pad)
    return jnp.pad(x, widths)


# --------------------------- tiled matmul with fused BN+ReLU ---------------------------

def _matmul_kernel(*refs, fuse_in, fuse_out):
    o_ref, acc_ref = refs[-2], refs[-1]
    a_ref, b_ref = refs[0], refs[1]
    idx = 2
    if fuse_in:
        si_ref, bi_ref = refs[idx], refs[idx + 1]
        idx += 2
    if fuse_out:
        so_ref, bo_ref = refs[idx], refs[idx + 1]

    k = pl.program_id(2)

    @pl.when(k == 0)
    def _():
        acc_ref[...] = jnp.zeros_like(acc_ref)

    a = a_ref[...]
    if fuse_in:
        # fused BatchNorm (per input channel) + ReLU on the A tile
        a = jnp.maximum(a.astype(jnp.float32) * si_ref[...] + bi_ref[...], 0.0)
    a = a.astype(jnp.bfloat16)
    acc_ref[...] += jnp.dot(a, b_ref[...], preferred_element_type=jnp.float32)

    @pl.when(k == pl.num_programs(2) - 1)
    def _():
        out = acc_ref[...]
        if fuse_out:
            # fused BatchNorm (per output channel) + ReLU epilogue
            out = jnp.maximum(out * so_ref[...] + bo_ref[...], 0.0)
        o_ref[...] = out.astype(o_ref.dtype)


def pallas_matmul(a, b, in_bn=None, out_bn=None, out_dtype=jnp.bfloat16):
    """Tiled [M, K] @ [K, N] on the MXU with optional fused BN+ReLU.

    in_bn  = (scale, bias) over K, applied (then ReLU) to A before the dot.
    out_bn = (scale, bias) over N, applied (then ReLU) to the f32 accumulator.
    """
    m, k = a.shape
    k2, n = b.shape
    assert k == k2
    fuse_in = in_bn is not None
    fuse_out = out_bn is not None

    tm = min(_round_up(m, 8), TILE_M)
    tk = k if k <= TILE_K else TILE_K
    tn = n if n <= TILE_N else TILE_N
    mp, kp, np_ = _round_up(m, tm), _round_up(k, tk), _round_up(n, tn)

    a_p = _pad_axis(_pad_axis(a.astype(jnp.bfloat16), 0, mp), 1, kp)
    b_p = _pad_axis(_pad_axis(b.astype(jnp.bfloat16), 0, kp), 1, np_)

    operands = [a_p, b_p]
    in_specs = [pl.BlockSpec((tm, tk), lambda i, j, kk: (i, kk)),
                pl.BlockSpec((tk, tn), lambda i, j, kk: (kk, j))]
    if fuse_in:
        si = _pad_axis(in_bn[0].astype(jnp.float32), 0, kp).reshape(1, kp)
        bi = _pad_axis(in_bn[1].astype(jnp.float32), 0, kp).reshape(1, kp)
        operands += [si, bi]
        in_specs += [pl.BlockSpec((1, tk), lambda i, j, kk: (0, kk))] * 2
    if fuse_out:
        so = _pad_axis(out_bn[0].astype(jnp.float32), 0, np_).reshape(1, np_)
        bo = _pad_axis(out_bn[1].astype(jnp.float32), 0, np_).reshape(1, np_)
        operands += [so, bo]
        in_specs += [pl.BlockSpec((1, tn), lambda i, j, kk: (0, j))] * 2

    out = pl.pallas_call(
        functools.partial(_matmul_kernel, fuse_in=fuse_in, fuse_out=fuse_out),
        out_shape=jax.ShapeDtypeStruct((mp, np_), out_dtype),
        grid=(mp // tm, np_ // tn, kp // tk),
        in_specs=in_specs,
        out_specs=pl.BlockSpec((tm, tn), lambda i, j, kk: (i, j)),
        scratch_shapes=[pltpu.VMEM((tm, tn), jnp.float32)],
        compiler_params=_MM_PARAMS,
    )(*operands)
    return out[:m, :n]


# ----------------------------------- pooling kernels -----------------------------------

def _window_reduce_kernel(x_ref, o_ref, *, op, inv_k):
    x = x_ref[...].astype(jnp.float32)
    if op == "max":
        r = jnp.max(x, axis=0)
    else:  # mean
        r = jnp.sum(x, axis=0) * inv_k
    o_ref[...] = r.astype(o_ref.dtype)


def pallas_window_reduce(stacked, op):
    """Reduce stacked pooling windows [K, M, C] -> [M, C], gridded over M tiles."""
    kwin, m, c = stacked.shape
    tm = min(_round_up(m, 8), POOL_TILE_M)
    mp = _round_up(m, tm)
    stacked = _pad_axis(stacked, 1, mp)
    out = pl.pallas_call(
        functools.partial(_window_reduce_kernel, op=op, inv_k=1.0 / kwin),
        out_shape=jax.ShapeDtypeStruct((mp, c), jnp.bfloat16),
        grid=(mp // tm,),
        in_specs=[pl.BlockSpec((kwin, tm, c), lambda i: (0, i, 0))],
        out_specs=pl.BlockSpec((tm, c), lambda i: (i, 0)),
        compiler_params=pltpu.CompilerParams(dimension_semantics=("parallel",)),
    )(stacked)
    return out[:m]


def maxpool3x3s2p1(x):
    """3x3 / stride-2 / pad-1 max pool. Input is post-ReLU (>= 0), so zero padding is exact."""
    n, h, w, c = x.shape
    xp = jnp.pad(x, ((0, 0), (1, 1), (1, 1), (0, 0)))
    ho = (h + 2 - 3) // 2 + 1
    wo = (w + 2 - 3) // 2 + 1
    # TODO(synk): the 3x3 shifted windows are still materialized in HBM (runs once,
    #             ~2.25x input traffic); folding the window loop into the kernel's
    #             grid via element-offset index_maps would remove that copy.
    wins = [xp[:, i:i + 2 * (ho - 1) + 1:2, j:j + 2 * (wo - 1) + 1:2, :]
            for i in range(3) for j in range(3)]
    stacked = jnp.stack(wins, axis=0).reshape(9, n * ho * wo, c)
    return pallas_window_reduce(stacked, "max").reshape(n, ho, wo, c)


def avgpool2x2s2(x):
    """2x2 / stride-2 average pool via 4 non-overlapping parity planes (no HBM inflation)."""
    n, h, w, c = x.shape
    assert h % 2 == 0 and w % 2 == 0
    ho, wo = h // 2, w // 2
    xr = x.reshape(n, ho, 2, wo, 2, c)
    planes = jnp.stack([xr[:, :, i, :, j, :] for i in range(2) for j in range(2)], axis=0)
    return pallas_window_reduce(planes.reshape(4, n * ho * wo, c), "mean").reshape(n, ho, wo, c)


# ------------------------- fused classifier head (norm5+relu+pool) ---------------------

def _head_kernel(y_ref, s_ref, b_ref, w_ref, wb_ref, o_ref, *, inv_hw):
    f = y_ref[...].astype(jnp.float32)                      # (N, HW, C)
    f = jnp.maximum(f * s_ref[...] + b_ref[...], 0.0)       # fused norm5 + relu
    pooled = jnp.sum(f, axis=1) * inv_hw                    # AdaptiveAvgPool2d((1,1)) -> (N, C)
    o_ref[...] = (jnp.dot(pooled, w_ref[...], preferred_element_type=jnp.float32)
                  + wb_ref[...])


def pallas_head(feat_nlc, scale5, bias5, w1, b1, w2, b2):
    n, hw, c = feat_nlc.shape
    n1, n2 = w1.shape[1], w2.shape[1]
    ncat = n1 + n2
    npad = max(_round_up(ncat, 128), 128)   # lane-dense output stores
    wcat = _pad_axis(jnp.concatenate([w1, w2], axis=1).astype(jnp.float32), 1, npad)
    bcat = _pad_axis(jnp.concatenate([b1, b2], axis=0).astype(jnp.float32), 0, npad)
    out = pl.pallas_call(
        functools.partial(_head_kernel, inv_hw=1.0 / hw),
        out_shape=jax.ShapeDtypeStruct((n, npad), jnp.float32),
        in_specs=[pl.BlockSpec(memory_space=_VMEM)] * 5,
        out_specs=pl.BlockSpec(memory_space=_VMEM),
    )(feat_nlc, scale5.reshape(1, 1, c), bias5.reshape(1, 1, c), wcat, bcat.reshape(1, npad))
    return out[:, :n1], out[:, n1:ncat]


# ------------------------------------ conv wrappers ------------------------------------

def _im2col(x, kh, kw, stride, pad):
    """NHWC -> [N, Ho, Wo, kh*kw*C] patches (channel-minor, (kh, kw) major order)."""
    n, h, w, c = x.shape
    xp = jnp.pad(x, ((0, 0), (pad, pad), (pad, pad), (0, 0)))
    ho = (h + 2 * pad - kh) // stride + 1
    wo = (w + 2 * pad - kw) // stride + 1
    cols = [xp[:, i:i + stride * (ho - 1) + 1:stride,
               j:j + stride * (wo - 1) + 1:stride, :]
            for i in range(kh) for j in range(kw)]
    return jnp.concatenate(cols, axis=-1), ho, wo


def conv2d_fused(x, w_hwio, stride, pad, in_bn=None, out_bn=None):
    """Conv (no bias, like torchvision DenseNet convs) as a tiled Pallas matmul.

    in_bn : (scale, bias) over input channels, fused with ReLU before the conv
            (only legal with pad == 0, so zero padding is never mis-normalized).
    out_bn: (scale, bias) over output channels, fused with ReLU after the conv.
    """
    kh, kw, cin, cout = w_hwio.shape
    n, h, w, _ = x.shape
    assert in_bn is None or pad == 0, "input-BN fusion would mis-normalize zero padding"
    if kh == 1 and kw == 1 and stride == 1 and pad == 0:
        a, ho, wo = x.reshape(n * h * w, cin), h, w        # 1x1 conv: no im2col at all
    else:
        # TODO(synk): window extraction is still plain-JAX im2col materialized in HBM
        #             (kh*kw x traffic); folding it into the matmul's K grid axis via
        #             element-offset index_maps would remove that copy.
        patches, ho, wo = _im2col(x, kh, kw, stride, pad)
        a = patches.reshape(n * ho * wo, kh * kw * cin)
        if in_bn is not None:
            in_bn = (jnp.tile(in_bn[0], kh * kw), jnp.tile(in_bn[1], kh * kw))
    out = pallas_matmul(a, w_hwio.reshape(kh * kw * cin, cout), in_bn=in_bn, out_bn=out_bn)
    return out.reshape(n, ho, wo, cout)


def _bn_fold(bn):
    gamma, beta, mean, var = bn
    scale = gamma * jax.lax.rsqrt(var + BN_EPS)
    return scale, beta - mean * scale


# -------------------------------- parameter initialization -----------------------------

def _conv_init(key, kh, kw, cin, cout):
    fan_in = kh * kw * cin
    std = (2.0 / fan_in) ** 0.5  # kaiming-normal, like torchvision DenseNet
    return jax.random.normal(key, (kh, kw, cin, cout), jnp.float32) * std


def _bn_init(c):
    # (gamma, beta, running_mean, running_var) — PyTorch defaults
    return (jnp.ones((c,), jnp.float32), jnp.zeros((c,), jnp.float32),
            jnp.zeros((c,), jnp.float32), jnp.ones((c,), jnp.float32))


def _linear_init(key, cin, cout):
    kw_, kb = jax.random.split(key)
    bound = 1.0 / (cin ** 0.5)  # PyTorch nn.Linear default
    w = jax.random.uniform(kw_, (cin, cout), jnp.float32, -bound, bound)
    b = jax.random.uniform(kb, (cout,), jnp.float32, -bound, bound)
    return w, b


def init_params(key):
    keys = iter(jax.random.split(key, 256))
    params = {}
    params["conv0"] = _conv_init(next(keys), 7, 7, 3, INIT_FEATURES)
    params["norm0"] = _bn_init(INIT_FEATURES)
    c = INIT_FEATURES
    blocks = []
    for bi, nlayers in enumerate(BLOCK_CONFIG):
        layers = []
        for _ in range(nlayers):
            bottleneck = BN_SIZE * GROWTH
            layers.append(dict(
                norm1=_bn_init(c),
                conv1=_conv_init(next(keys), 1, 1, c, bottleneck),
                norm2=_bn_init(bottleneck),
                conv2=_conv_init(next(keys), 3, 3, bottleneck, GROWTH),
            ))
            c += GROWTH
        block = dict(layers=layers)
        if bi != len(BLOCK_CONFIG) - 1:
            cout = c // 2
            block["transition"] = dict(norm=_bn_init(c),
                                       conv=_conv_init(next(keys), 1, 1, c, cout))
            c = cout
        blocks.append(block)
    params["blocks"] = blocks
    params["norm5"] = _bn_init(c)
    params["classifier"] = _linear_init(next(keys), c, NUM_DISEASE)       # densenet.classifier
    params["view_classifier"] = _linear_init(next(keys), c, NUM_VIEW)     # view_classifier
    return params


# --------------------------------------- forward ---------------------------------------

def densenet_classifier_forward(params, x_nchw):
    x = jnp.transpose(x_nchw, (0, 2, 3, 1)).astype(jnp.bfloat16)  # NCHW -> NHWC, bf16 acts

    # stem: conv0 (7x7/s2/p3) with fused norm0+ReLU epilogue, then 3x3/s2/p1 max pool
    y = conv2d_fused(x, params["conv0"], stride=2, pad=3, out_bn=_bn_fold(params["norm0"]))
    y = maxpool3x3s2p1(y)

    c = INIT_FEATURES
    for block in params["blocks"]:
        n_, h_, w_, _ = y.shape
        c_final = c + GROWTH * len(block["layers"])
        # preallocated full-width buffer: each layer writes only its GROWTH channels
        # (no quadratic concat re-copies of the old channels).
        buf = jnp.zeros((n_, h_, w_, c_final), jnp.bfloat16).at[..., :c].set(y)
        off = c
        for layer in block["layers"]:
            cur = buf[..., :off]
            # norm1+ReLU fused into conv1's input; norm2+ReLU fused into conv1's epilogue
            h1 = conv2d_fused(cur, layer["conv1"], stride=1, pad=0,
                              in_bn=_bn_fold(layer["norm1"]), out_bn=_bn_fold(layer["norm2"]))
            # 3x3 conv on already-normalized activations (zero padding exact post-ReLU)
            h2 = conv2d_fused(h1, layer["conv2"], stride=1, pad=1)
            buf = buf.at[..., off:off + GROWTH].set(h2)
            off += GROWTH
        y, c = buf, c_final
        if "transition" in block:
            t = block["transition"]
            y = conv2d_fused(y, t["conv"], stride=1, pad=0, in_bn=_bn_fold(t["norm"]))
            y = avgpool2x2s2(y)
            c = c // 2

    # norm5 + relu + AdaptiveAvgPool2d((1,1)) + flatten + both linear heads (fused kernel)
    n_, hh, ww, _ = y.shape
    scale5, bias5 = _bn_fold(params["norm5"])
    w1, b1 = params["classifier"]
    w2, b2 = params["view_classifier"]
    return pallas_head(y.reshape(n_, hh * ww, c), scale5, bias5, w1, b1, w2, b2)


if __name__ == "__main__":
    key = jax.random.PRNGKey(0)
    pkey, xkey = jax.random.split(key)
    params = init_params(pkey)
    x = jax.random.normal(xkey, (2, 3, 32, 32), jnp.float32)  # NCHW, like PyTorch input

    fwd = jax.jit(densenet_classifier_forward)
    disease_out, view_out = fwd(params, x)
    jax.block_until_ready((disease_out, view_out))

    assert disease_out.shape == (2, NUM_DISEASE) and disease_out.dtype == jnp.float32
    assert view_out.shape == (2, NUM_VIEW) and view_out.dtype == jnp.float32
    assert bool(jnp.all(jnp.isfinite(disease_out))) and bool(jnp.all(jnp.isfinite(view_out)))
    print("KERNEL_OK")
</pallas_src>

<mosaic_0001>
module attributes {stable_mosaic.version = 11 : i64} {
  func.func @_matmul_kernel(%arg0: i32, %arg1: i32, %arg2: i32, %arg3: memref<256x147xbf16, #tpu.memory_space<vmem>>, %arg4: memref<147x16xbf16, #tpu.memory_space<vmem>>, %arg5: memref<1x16xf32, #tpu.memory_space<vmem>>, %arg6: memref<1x16xf32, #tpu.memory_space<vmem>>, %arg7: memref<256x16xbf16, #tpu.memory_space<vmem>>, %arg8: memref<256x16xf32, #tpu.memory_space<vmem>>) attributes {dimension_semantics = [#tpu.dimension_semantics<parallel>, #tpu.dimension_semantics<parallel>, #tpu.dimension_semantics<arbitrary>], iteration_bounds = array<i64: 2, 1, 1>, scalar_prefetch = 0 : i64, scratch_operands = 1 : i64, tpu.core_type = #tpu.core_type<tc>, window_params = [{transform_indices = @transform_0, window_bounds = array<i64: 256, 147>}, {transform_indices = @transform_1, window_bounds = array<i64: 147, 16>}, {transform_indices = @transform_2, window_bounds = array<i64: 1, 16>}, {transform_indices = @transform_3, window_bounds = array<i64: 1, 16>}, {transform_indices = @transform_4, window_bounds = array<i64: 256, 16>}]} {
    %c0_i32 = arith.constant 0 : i32
    %0 = arith.cmpi eq, %arg2, %c0_i32 : i32
    %1 = arith.extui %0 : i1 to i32
    %c0_i32_0 = arith.constant 0 : i32
    %2 = arith.cmpi ne, %1, %c0_i32_0 : i32
    scf.if %2 {
      %cst_10 = arith.constant 0.000000e+00 : f32
      %12 = vector.broadcast %cst_10 : f32 to vector<256x16xf32>
      %c0_11 = arith.constant 0 : index
      %c0_12 = arith.constant 0 : index
      %13 = vector.load %arg8[%c0_11, %c0_12] : memref<256x16xf32, #tpu.memory_space<vmem>>, vector<256x16xf32>
      tpu.vector_store %arg8[%c0_11, %c0_12], %12 {strides = array<i32>} : memref<256x16xf32, #tpu.memory_space<vmem>>, vector<256x16xf32>,
    } else {
    }
    %c0 = arith.constant 0 : index
    %c0_1 = arith.constant 0 : index
    %3 = vector.load %arg3[%c0, %c0_1] : memref<256x147xbf16, #tpu.memory_space<vmem>>, vector<256x147xbf16>
    %c0_2 = arith.constant 0 : index
    %c0_3 = arith.constant 0 : index
    %4 = vector.load %arg8[%c0_2, %c0_3] : memref<256x16xf32, #tpu.memory_space<vmem>>, vector<256x16xf32>
    %c0_4 = arith.constant 0 : index
    %c0_5 = arith.constant 0 : index
    %5 = vector.load %arg4[%c0_4, %c0_5] : memref<147x16xbf16, #tpu.memory_space<vmem>>, vector<147x16xbf16>
    %cst = arith.constant dense<0.000000e+00> : vector<256x16xf32>
    %6 = tpu.matmul %3, %5, %cst {dimension_numbers = #tpu.dot_dimension_numbers<[1], [0], [0], [1], [0, 0, 1, 1], [], []>} : vector<256x147xbf16>, vector<147x16xbf16>, vector<256x16xf32> -> vector<256x16xf32>
    %7 = arith.addf %4, %6 : vector<256x16xf32>
    %c0_6 = arith.constant 0 : index
    %c0_7 = arith.constant 0 : index
    %8 = vector.load %arg8[%c0_6, %c0_7] : memref<256x16xf32, #tpu.memory_space<vmem>>, vector<256x16xf32>
    tpu.vector_store %arg8[%c0_6, %c0_7], %7 {strides = array<i32>} : memref<256x16xf32, #tpu.memory_space<vmem>>, vector<256x16xf32>,
    %c0_i32_8 = arith.constant 0 : i32
    %9 = arith.cmpi eq, %arg2, %c0_i32_8 : i32
    %10 = arith.extui %9 : i1 to i32
    %c0_i32_9 = arith.constant 0 : i32
    %11 = arith.cmpi ne, %10, %c0_i32_9 : i32
    scf.if %11 {
      %c0_10 = arith.constant 0 : index
      %c0_11 = arith.constant 0 : index
      %12 = vector.load %arg8[%c0_10, %c0_11] : memref<256x16xf32, #tpu.memory_space<vmem>>, vector<256x16xf32>
      %c0_12 = arith.constant 0 : index
      %c0_13 = arith.constant 0 : index
      %13 = vector.load %arg5[%c0_12, %c0_13] : memref<1x16xf32, #tpu.memory_space<vmem>>, vector<1x16xf32>
      %14 = vector.broadcast %13 : vector<1x16xf32> to vector<256x16xf32>
      %15 = arith.mulf %12, %14 : vector<256x16xf32>
      %c0_14 = arith.constant 0 : index
      %c0_15 = arith.constant 0 : index
      %16 = vector.load %arg6[%c0_14, %c0_15] : memref<1x16xf32, #tpu.memory_space<vmem>>, vector<1x16xf32>
      %17 = vector.broadcast %16 : vector<1x16xf32> to vector<256x16xf32>
      %18 = arith.addf %15, %17 : vector<256x16xf32>
      %cst_16 = arith.constant 0.000000e+00 : f32
      %19 = vector.broadcast %cst_16 : f32 to vector<256x16xf32>
      %20 = arith.maximumf %18, %19 : vector<256x16xf32>
      %21 = arith.truncf %20 : vector<256x16xf32> to vector<256x16xbf16>
      %c0_17 = arith.constant 0 : index
      %c0_18 = arith.constant 0 : index
      %22 = vector.load %arg7[%c0_17, %c0_18] : memref<256x16xbf16, #tpu.memory_space<vmem>>, vector<256x16xbf16>
      tpu.vector_store %arg7[%c0_17, %c0_18], %21 {strides = array<i32>} : memref<256x16xbf16, #tpu.memory_space<vmem>>, vector<256x16xbf16>,
    } else {
    }
    return
  }
  func.func @transform_0(%arg0: i32, %arg1: i32, %arg2: i32) -> (i32, i32) {
    %c0_i32 = arith.constant 0 : i32
    return %arg0, %arg2 : i32, i32
  }
  func.func @transform_1(%arg0: i32, %arg1: i32, %arg2: i32) -> (i32, i32) {
    %c0_i32 = arith.constant 0 : i32
    return %arg2, %arg1 : i32, i32
  }
  func.func @transform_2(%arg0: i32, %arg1: i32, %arg2: i32) -> (i32, i32) {
    %c0_i32 = arith.constant 0 : i32
    %c0_i32_0 = arith.constant 0 : i32
    return %c0_i32, %arg1 : i32, i32
  }
  func.func @transform_3(%arg0: i32, %arg1: i32, %arg2: i32) -> (i32, i32) {
    %c0_i32 = arith.constant 0 : i32
    %c0_i32_0 = arith.constant 0 : i32
    return %c0_i32, %arg1 : i32, i32
  }
  func.func @transform_4(%arg0: i32, %arg1: i32, %arg2: i32) -> (i32, i32) {
    %c0_i32 = arith.constant 0 : i32
    return %arg0, %arg1 : i32, i32
  }
}

module attributes {stable_mosaic.version = 11 : i64} {
  func.func @_window_reduce_kernel(%arg0: i32, %arg1: memref<9x128x16xbf16, #tpu.memory_space<vmem>>, %arg2: memref<128x16xbf16, #tpu.memory_space<vmem>>) attributes {dimension_semantics = [#tpu.dimension_semantics<parallel>], iteration_bounds = array<i64: 1>, scalar_prefetch = 0 : i64, scratch_operands = 0 : i64, tpu.core_type = #tpu.core_type<tc>, window_params = [{transform_indices = @transform_0, window_bounds = array<i64: 9, 128, 16>}, {transform_indices = @transform_1, window_bounds = array<i64: 128, 16>}]} {
    %c0 = arith.constant 0 : index
    %c0_0 = arith.constant 0 : index
    %c0_1 = arith.constant 0 : index
    %0 = vector.load %arg1[%c0, %c0_0, %c0_1] : memref<9x128x16xbf16, #tpu.memory_space<vmem>>, vector<9x128x16xbf16>
    %1 = arith.extf %0 : vector<9x128x16xbf16> to vector<9x128x16xf32>
    %cst = arith.constant dense<0xFF800000> : vector<128x16xf32>
    %2 = vector.multi_reduction <maximumf>, %1, %cst [0] : vector<9x128x16xf32> to vector<128x16xf32>
    %3 = arith.truncf %2 : vector<128x16xf32> to vector<128x16xbf16>
    %c0_2 = arith.constant 0 : index
    %c0_3 = arith.constant 0 : index
    %4 = vector.load %arg2[%c0_2, %c0_3] : memref<128x16xbf16, #tpu.memory_space<vmem>>, vector<128x16xbf16>
    tpu.vector_store %arg2[%c0_2, %c0_3], %3 {strides = array<i32>} : memref<128x16xbf16, #tpu.memory_space<vmem>>, vector<128x16xbf16>,
    return
  }
  func.func @transform_0(%arg0: i32) -> (i32, i32, i32) {
    %c0_i32 = arith.constant 0 : i32
    %c0_i32_0 = arith.constant 0 : i32
    %c0_i32_1 = arith.constant 0 : i32
    return %c0_i32, %arg0, %c0_i32_0 : i32, i32, i32
  }
  func.func @transform_1(%arg0: i32) -> (i32, i32) {
    %c0_i32 = arith.constant 0 : i32
    %c0_i32_0 = arith.constant 0 : i32
    return %arg0, %c0_i32 : i32, i32
  }
}

module attributes {stable_mosaic.version = 11 : i64} {
  func.func @_matmul_kernel(%arg0: i32, %arg1: i32, %arg2: i32, %arg3: memref<128x16xbf16, #tpu.memory_space<vmem>>, %arg4: memref<16x32xbf16, #tpu.memory_space<vmem>>, %arg5: memref<1x16xf32, #tpu.memory_space<vmem>>, %arg6: memref<1x16xf32, #tpu.memory_space<vmem>>, %arg7: memref<1x32xf32, #tpu.memory_space<vmem>>, %arg8: memref<1x32xf32, #tpu.memory_space<vmem>>, %arg9: memref<128x32xbf16, #tpu.memory_space<vmem>>, %arg10: memref<128x32xf32, #tpu.memory_space<vmem>>) attributes {dimension_semantics = [#tpu.dimension_semantics<parallel>, #tpu.dimension_semantics<parallel>, #tpu.dimension_semantics<arbitrary>], iteration_bounds = array<i64: 1, 1, 1>, scalar_prefetch = 0 : i64, scratch_operands = 1 : i64, tpu.core_type = #tpu.core_type<tc>, window_params = [{transform_indices = @transform_0, window_bounds = array<i64: 128, 16>}, {transform_indices = @transform_1, window_bounds = array<i64: 16, 32>}, {transform_indices = @transform_2, window_bounds = array<i64: 1, 16>}, {transform_indices = @transform_3, window_bounds = array<i64: 1, 16>}, {transform_indices = @transform_4, window_bounds = array<i64: 1, 32>}, {transform_indices = @transform_5, window_bounds = array<i64: 1, 32>}, {transform_indices = @transform_6, window_bounds = array<i64: 128, 32>}]} {
    %c0_i32 = arith.constant 0 : i32
    %0 = arith.cmpi eq, %arg2, %c0_i32 : i32
    %1 = arith.extui %0 : i1 to i32
    %c0_i32_0 = arith.constant 0 : i32
    %2 = arith.cmpi ne, %1, %c0_i32_0 : i32
    scf.if %2 {
      %cst_15 = arith.constant 0.000000e+00 : f32
      %22 = vector.broadcast %cst_15 : f32 to vector<128x32xf32>
      %c0_16 = arith.constant 0 : index
      %c0_17 = arith.constant 0 : index
      %23 = vector.load %arg10[%c0_16, %c0_17] : memref<128x32xf32, #tpu.memory_space<vmem>>, vector<128x32xf32>
      tpu.vector_store %arg10[%c0_16, %c0_17], %22 {strides = array<i32>} : memref<128x32xf32, #tpu.memory_space<vmem>>, vector<128x32xf32>,
    } else {
    }
    %c0 = arith.constant 0 : index
    %c0_1 = arith.constant 0 : index
    %3 = vector.load %arg3[%c0, %c0_1] : memref<128x16xbf16, #tpu.memory_space<vmem>>, vector<128x16xbf16>
    %4 = arith.extf %3 : vector<128x16xbf16> to vector<128x16xf32>
    %c0_2 = arith.constant 0 : index
    %c0_3 = arith.constant 0 : index
    %5 = vector.load %arg5[%c0_2, %c0_3] : memref<1x16xf32, #tpu.memory_space<vmem>>, vector<1x16xf32>
    %6 = vector.broadcast %5 : vector<1x16xf32> to vector<128x16xf32>
    %7 = arith.mulf %4, %6 : vector<128x16xf32>
    %c0_4 = arith.constant 0 : index
    %c0_5 = arith.constant 0 : index
    %8 = vector.load %arg6[%c0_4, %c0_5] : memref<1x16xf32, #tpu.memory_space<vmem>>, vector<1x16xf32>
    %9 = vector.broadcast %8 : vector<1x16xf32> to vector<128x16xf32>
    %10 = arith.addf %7, %9 : vector<128x16xf32>
    %cst = arith.constant 0.000000e+00 : f32
    %11 = vector.broadcast %cst : f32 to vector<128x16xf32>
    %12 = arith.maximumf %10, %11 : vector<128x16xf32>
    %13 = arith.truncf %12 : vector<128x16xf32> to vector<128x16xbf16>
    %c0_6 = arith.constant 0 : index
    %c0_7 = arith.constant 0 : index
    %14 = vector.load %arg10[%c0_6, %c0_7] : memref<128x32xf32, #tpu.memory_space<vmem>>, vector<128x32xf32>
    %c0_8 = arith.constant 0 : index
    %c0_9 = arith.constant 0 : index
    %15 = vector.load %arg4[%c0_8, %c0_9] : memref<16x32xbf16, #tpu.memory_space<vmem>>, vector<16x32xbf16>
    %cst_10 = arith.constant dense<0.000000e+00> : vector<128x32xf32>
    %16 = tpu.matmul %13, %15, %cst_10 {dimension_numbers = #tpu.dot_dimension_numbers<[1], [0], [0], [1], [0, 0, 1, 1], [], []>} : vector<128x16xbf16>, vector<16x32xbf16>, vector<128x32xf32> -> vector<128x32xf32>
    %17 = arith.addf %14, %16 : vector<128x32xf32>
    %c0_11 = arith.constant 0 : index
    %c0_12 = arith.constant 0 : index
    %18 = vector.load %arg10[%c0_11, %c0_12] : memref<128x32xf32, #tpu.memory_space<vmem>>, vector<128x32xf32>
    tpu.vector_store %arg10[%c0_11, %c0_12], %17 {strides = array<i32>} : memref<128x32xf32, #tpu.memory_space<vmem>>, vector<128x32xf32>,
    %c0_i32_13 = arith.constant 0 : i32
    %19 = arith.cmpi eq, %arg2, %c0_i32_13 : i32
    %20 = arith.extui %19 : i1 to i32
    %c0_i32_14 = arith.constant 0 : i32
    %21 = arith.cmpi ne, %20, %c0_i32_14 : i32
    scf.if %21 {
      %c0_15 = arith.constant 0 : index
      %c0_16 = arith.constant 0 : index
      %22 = vector.load %arg10[%c0_15, %c0_16] : memref<128x32xf32, #tpu.memory_space<vmem>>, vector<128x32xf32>
      %c0_17 = arith.constant 0 : index
      %c0_18 = arith.constant 0 : index
      %23 = vector.load %arg7[%c0_17, %c0_18] : memref<1x32xf32, #tpu.memory_space<vmem>>, vector<1x32xf32>
      %24 = vector.broadcast %23 : vector<1x32xf32> to vector<128x32xf32>
      %25 = arith.mulf %22, %24 : vector<128x32xf32>
      %c0_19 = arith.constant 0 : index
      %c0_20 = arith.constant 0 : index
      %26 = vector.load %arg8[%c0_19, %c0_20] : memref<1x32xf32, #tpu.memory_space<vmem>>, vector<1x32xf32>
      %27 = vector.broadcast %26 : vector<1x32xf32> to vector<128x32xf32>
      %28 = arith.addf %25, %27 : vector<128x32xf32>
      %cst_21 = arith.constant 0.000000e+00 : f32
      %29 = vector.broadcast %cst_21 : f32 to vector<128x32xf32>
      %30 = arith.maximumf %28, %29 : vector<128x32xf32>
      %31 = arith.truncf %30 : vector<128x32xf32> to vector<128x32xbf16>
      %c0_22 = arith.constant 0 : index
      %c0_23 = arith.constant 0 : index
      %32 = vector.load %arg9[%c0_22, %c0_23] : memref<128x32xbf16, #tpu.memory_space<vmem>>, vector<128x32xbf16>
      tpu.vector_store %arg9[%c0_22, %c0_23], %31 {strides = array<i32>} : memref<128x32xbf16, #tpu.memory_space<vmem>>, vector<128x32xbf16>,
    } else {
    }
    return
  }
  func.func @transform_0(%arg0: i32, %arg1: i32, %arg2: i32) -> (i32, i32) {
    %c0_i32 = arith.constant 0 : i32
    return %arg0, %arg2 : i32, i32
  }
  func.func @transform_1(%arg0: i32, %arg1: i32, %arg2: i32) -> (i32, i32) {
    %c0_i32 = arith.constant 0 : i32
    return %arg2, %arg1 : i32, i32
  }
  func.func @transform_2(%arg0: i32, %arg1: i32, %arg2: i32) -> (i32, i32) {
    %c0_i32 = arith.constant 0 : i32
    %c0_i32_0 = arith.constant 0 : i32
    return %c0_i32, %arg2 : i32, i32
  }
  func.func @transform_3(%arg0: i32, %arg1: i32, %arg2: i32) -> (i32, i32) {
    %c0_i32 = arith.constant 0 : i32
    %c0_i32_0 = arith.constant 0 : i32
    return %c0_i32, %arg2 : i32, i32
  }
  func.func @transform_4(%arg0: i32, %arg1: i32, %arg2: i32) -> (i32, i32) {
    %c0_i32 = arith.constant 0 : i32
    %c0_i32_0 = arith.constant 0 : i32
    return %c0_i32, %arg1 : i32, i32
  }
  func.func @transform_5(%arg0: i32, %arg1: i32, %arg2: i32) -> (i32, i32) {
    %c0_i32 = arith.constant 0 : i32
    %c0_i32_0 = arith.constant 0 : i32
    return %c0_i32, %arg1 : i32, i32
  }
  func.func @transform_6(%arg0: i32, %arg1: i32, %arg2: i32) -> (i32, i32) {
    %c0_i32 = arith.constant 0 : i32
    return %arg0, %arg1 : i32, i32
  }
}

module attributes {stable_mosaic.version = 11 : i64} {
  func.func @_matmul_kernel(%arg0: i32, %arg1: i32, %arg2: i32, %arg3: memref<128x24xbf16, #tpu.memory_space<vmem>>, %arg4: memref<24x32xbf16, #tpu.memory_space<vmem>>, %arg5: memref<1x24xf32, #tpu.memory_space<vmem>>, %arg6: memref<1x24xf32, #tpu.memory_space<vmem>>, %arg7: memref<1x32xf32, #tpu.memory_space<vmem>>, %arg8: memref<1x32xf32, #tpu.memory_space<vmem>>, %arg9: memref<128x32xbf16, #tpu.memory_space<vmem>>, %arg10: memref<128x32xf32, #tpu.memory_space<vmem>>) attributes {dimension_semantics = [#tpu.dimension_semantics<parallel>, #tpu.dimension_semantics<parallel>, #tpu.dimension_semantics<arbitrary>], iteration_bounds = array<i64: 1, 1, 1>, scalar_prefetch = 0 : i64, scratch_operands = 1 : i64, tpu.core_type = #tpu.core_type<tc>, window_params = [{transform_indices = @transform_0, window_bounds = array<i64: 128, 24>}, {transform_indices = @transform_1, window_bounds = array<i64: 24, 32>}, {transform_indices = @transform_2, window_bounds = array<i64: 1, 24>}, {transform_indices = @transform_3, window_bounds = array<i64: 1, 24>}, {transform_indices = @transform_4, window_bounds = array<i64: 1, 32>}, {transform_indices = @transform_5, window_bounds = array<i64: 1, 32>}, {transform_indices = @transform_6, window_bounds = array<i64: 128, 32>}]} {
    %c0_i32 = arith.constant 0 : i32
    %0 = arith.cmpi eq, %arg2, %c0_i32 : i32
    %1 = arith.extui %0 : i1 to i32
    %c0_i32_0 = arith.constant 0 : i32
    %2 = arith.cmpi ne, %1, %c0_i32_0 : i32
    scf.if %2 {
      %cst_15 = arith.constant 0.000000e+00 : f32
      %22 = vector.broadcast %cst_15 : f32 to vector<128x32xf32>
      %c0_16 = arith.constant 0 : index
      %c0_17 = arith.constant 0 : index
      %23 = vector.load %arg10[%c0_16, %c0_17] : memref<128x32xf32, #tpu.memory_space<vmem>>, vector<128x32xf32>
      tpu.vector_store %arg10[%c0_16, %c0_17], %22 {strides = array<i32>} : memref<128x32xf32, #tpu.memory_space<vmem>>, vector<128x32xf32>,
    } else {
    }
    %c0 = arith.constant 0 : index
    %c0_1 = arith.constant 0 : index
    %3 = vector.load %arg3[%c0, %c0_1] : memref<128x24xbf16, #tpu.memory_space<vmem>>, vector<128x24xbf16>
    %4 = arith.extf %3 : vector<128x24xbf16> to vector<128x24xf32>
    %c0_2 = arith.constant 0 : index
    %c0_3 = arith.constant 0 : index
    %5 = vector.load %arg5[%c0_2, %c0_3] : memref<1x24xf32, #tpu.memory_space<vmem>>, vector<1x24xf32>
    %6 = vector.broadcast %5 : vector<1x24xf32> to vector<128x24xf32>
    %7 = arith.mulf %4, %6 : vector<128x24xf32>
    %c0_4 = arith.constant 0 : index
    %c0_5 = arith.constant 0 : index
    %8 = vector.load %arg6[%c0_4, %c0_5] : memref<1x24xf32, #tpu.memory_space<vmem>>, vector<1x24xf32>
    %9 = vector.broadcast %8 : vector<1x24xf32> to vector<128x24xf32>
    %10 = arith.addf %7, %9 : vector<128x24xf32>
    %cst = arith.constant 0.000000e+00 : f32
    %11 = vector.broadcast %cst : f32 to vector<128x24xf32>
    %12 = arith.maximumf %10, %11 : vector<128x24xf32>
    %13 = arith.truncf %12 : vector<128x24xf32> to vector<128x24xbf16>
    %c0_6 = arith.constant 0 : index
    %c0_7 = arith.constant 0 : index
    %14 = vector.load %arg10[%c0_6, %c0_7] : memref<128x32xf32, #tpu.memory_space<vmem>>, vector<128x32xf32>
    %c0_8 = arith.constant 0 : index
    %c0_9 = arith.constant 0 : index
    %15 = vector.load %arg4[%c0_8, %c0_9] : memref<24x32xbf16, #tpu.memory_space<vmem>>, vector<24x32xbf16>
    %cst_10 = arith.constant dense<0.000000e+00> : vector<128x32xf32>
    %16 = tpu.matmul %13, %15, %cst_10 {dimension_numbers = #tpu.dot_dimension_numbers<[1], [0], [0], [1], [0, 0, 1, 1], [], []>} : vector<128x24xbf16>, vector<24x32xbf16>, vector<128x32xf32> -> vector<128x32xf32>
    %17 = arith.addf %14, %16 : vector<128x32xf32>
    %c0_11 = arith.constant 0 : index
    %c0_12 = arith.constant 0 : index
    %18 = vector.load %arg10[%c0_11, %c0_12] : memref<128x32xf32, #tpu.memory_space<vmem>>, vector<128x32xf32>
    tpu.vector_store %arg10[%c0_11, %c0_12], %17 {strides = array<i32>} : memref<128x32xf32, #tpu.memory_space<vmem>>, vector<128x32xf32>,
    %c0_i32_13 = arith.constant 0 : i32
    %19 = arith.cmpi eq, %arg2, %c0_i32_13 : i32
    %20 = arith.extui %19 : i1 to i32
    %c0_i32_14 = arith.constant 0 : i32
    %21 = arith.cmpi ne, %20, %c0_i32_14 : i32
    scf.if %21 {
      %c0_15 = arith.constant 0 : index
      %c0_16 = arith.constant 0 : index
      %22 = vector.load %arg10[%c0_15, %c0_16] : memref<128x32xf32, #tpu.memory_space<vmem>>, vector<128x32xf32>
      %c0_17 = arith.constant 0 : index
      %c0_18 = arith.constant 0 : index
      %23 = vector.load %arg7[%c0_17, %c0_18] : memref<1x32xf32, #tpu.memory_space<vmem>>, vector<1x32xf32>
      %24 = vector.broadcast %23 : vector<1x32xf32> to vector<128x32xf32>
      %25 = arith.mulf %22, %24 : vector<128x32xf32>
      %c0_19 = arith.constant 0 : index
      %c0_20 = arith.constant 0 : index
      %26 = vector.load %arg8[%c0_19, %c0_20] : memref<1x32xf32, #tpu.memory_space<vmem>>, vector<1x32xf32>
      %27 = vector.broadcast %26 : vector<1x32xf32> to vector<128x32xf32>
      %28 = arith.addf %25, %27 : vector<128x32xf32>
      %cst_21 = arith.constant 0.000000e+00 : f32
      %29 = vector.broadcast %cst_21 : f32 to vector<128x32xf32>
      %30 = arith.maximumf %28, %29 : vector<128x32xf32>
      %31 = arith.truncf %30 : vector<128x32xf32> to vector<128x32xbf16>
      %c0_22 = arith.constant 0 : index
      %c0_23 = arith.constant 0 : index
      %32 = vector.load %arg9[%c0_22, %c0_23] : memref<128x32xbf16, #tpu.memory_space<vmem>>, vector<128x32xbf16>
      tpu.vector_store %arg9[%c0_22, %c0_23], %31 {strides = array<i32>} : memref<128x32xbf16, #tpu.memory_space<vmem>>, vector<128x32xbf16>,
    } else {
    }
    return
  }
  func.func @transform_0(%arg0: i32, %arg1: i32, %arg2: i32) -> (i32, i32) {
    %c0_i32 = arith.constant 0 : i32
    return %arg0, %arg2 : i32, i32
  }
  func.func @transform_1(%arg0: i32, %arg1: i32, %arg2: i32) -> (i32, i32) {
    %c0_i32 = arith.constant 0 : i32
    return %arg2, %arg1 : i32, i32
  }
  func.func @transform_2(%arg0: i32, %arg1: i32, %arg2: i32) -> (i32, i32) {
    %c0_i32 = arith.constant 0 : i32
    %c0_i32_0 = arith.constant 0 : i32
    return %c0_i32, %arg2 : i32, i32
  }
  func.func @transform_3(%arg0: i32, %arg1: i32, %arg2: i32) -> (i32, i32) {
    %c0_i32 = arith.constant 0 : i32
    %c0_i32_0 = arith.constant 0 : i32
    return %c0_i32, %arg2 : i32, i32
  }
  func.func @transform_4(%arg0: i32, %arg1: i32, %arg2: i32) -> (i32, i32) {
    %c0_i32 = arith.constant 0 : i32
    %c0_i32_0 = arith.constant 0 : i32
    return %c0_i32, %arg1 : i32, i32
  }
  func.func @transform_5(%arg0: i32, %arg1: i32, %arg2: i32) -> (i32, i32) {
    %c0_i32 = arith.constant 0 : i32
    %c0_i32_0 = arith.constant 0 : i32
    return %c0_i32, %arg1 : i32, i32
  }
  func.func @transform_6(%arg0: i32, %arg1: i32, %arg2: i32) -> (i32, i32) {
    %c0_i32 = arith.constant 0 : i32
    return %arg0, %arg1 : i32, i32
  }
}

module attributes {stable_mosaic.version = 11 : i64} {
  func.func @_matmul_kernel(%arg0: i32, %arg1: i32, %arg2: i32, %arg3: memref<128x256xbf16, #tpu.memory_space<vmem>>, %arg4: memref<256x8xbf16, #tpu.memory_space<vmem>>, %arg5: memref<128x8xbf16, #tpu.memory_space<vmem>>, %arg6: memref<128x8xf32, #tpu.memory_space<vmem>>) attributes {dimension_semantics = [#tpu.dimension_semantics<parallel>, #tpu.dimension_semantics<parallel>, #tpu.dimension_semantics<arbitrary>], iteration_bounds = array<i64: 1, 1, 2>, scalar_prefetch = 0 : i64, scratch_operands = 1 : i64, tpu.core_type = #tpu.core_type<tc>, window_params = [{transform_indices = @transform_0, window_bounds = array<i64: 128, 256>}, {transform_indices = @transform_1, window_bounds = array<i64: 256, 8>}, {transform_indices = @transform_2, window_bounds = array<i64: 128, 8>}]} {
    %c0_i32 = arith.constant 0 : i32
    %0 = arith.cmpi eq, %arg2, %c0_i32 : i32
    %1 = arith.extui %0 : i1 to i32
    %c0_i32_0 = arith.constant 0 : i32
    %2 = arith.cmpi ne, %1, %c0_i32_0 : i32
    scf.if %2 {
      %cst_9 = arith.constant 0.000000e+00 : f32
      %12 = vector.broadcast %cst_9 : f32 to vector<128x8xf32>
      %c0_10 = arith.constant 0 : index
      %c0_11 = arith.constant 0 : index
      %13 = vector.load %arg6[%c0_10, %c0_11] : memref<128x8xf32, #tpu.memory_space<vmem>>, vector<128x8xf32>
      tpu.vector_store %arg6[%c0_10, %c0_11], %12 {strides = array<i32>} : memref<128x8xf32, #tpu.memory_space<vmem>>, vector<128x8xf32>,
    } else {
    }
    %c0 = arith.constant 0 : index
    %c0_1 = arith.constant 0 : index
    %3 = vector.load %arg3[%c0, %c0_1] : memref<128x256xbf16, #tpu.memory_space<vmem>>, vector<128x256xbf16>
    %c0_2 = arith.constant 0 : index
    %c0_3 = arith.constant 0 : index
    %4 = vector.load %arg6[%c0_2, %c0_3] : memref<128x8xf32, #tpu.memory_space<vmem>>, vector<128x8xf32>
    %c0_4 = arith.constant 0 : index
    %c0_5 = arith.constant 0 : index
    %5 = vector.load %arg4[%c0_4, %c0_5] : memref<256x8xbf16, #tpu.memory_space<vmem>>, vector<256x8xbf16>
    %cst = arith.constant dense<0.000000e+00> : vector<128x8xf32>
    %6 = tpu.matmul %3, %5, %cst {dimension_numbers = #tpu.dot_dimension_numbers<[1], [0], [0], [1], [0, 0, 1, 1], [], []>} : vector<128x256xbf16>, vector<256x8xbf16>, vector<128x8xf32> -> vector<128x8xf32>
    %7 = arith.addf %4, %6 : vector<128x8xf32>
    %c0_6 = arith.constant 0 : index
    %c0_7 = arith.constant 0 : index
    %8 = vector.load %arg6[%c0_6, %c0_7] : memref<128x8xf32, #tpu.memory_space<vmem>>, vector<128x8xf32>
    tpu.vector_store %arg6[%c0_6, %c0_7], %7 {strides = array<i32>} : memref<128x8xf32, #tpu.memory_space<vmem>>, vector<128x8xf32>,
    %c1_i32 = arith.constant 1 : i32
    %9 = arith.cmpi eq, %arg2, %c1_i32 : i32
    %10 = arith.extui %9 : i1 to i32
    %c0_i32_8 = arith.constant 0 : i32
    %11 = arith.cmpi ne, %10, %c0_i32_8 : i32
    scf.if %11 {
      %c0_9 = arith.constant 0 : index
      %c0_10 = arith.constant 0 : index
      %12 = vector.load %arg6[%c0_9, %c0_10] : memref<128x8xf32, #tpu.memory_space<vmem>>, vector<128x8xf32>
      %13 = arith.truncf %12 : vector<128x8xf32> to vector<128x8xbf16>
      %c0_11 = arith.constant 0 : index
      %c0_12 = arith.constant 0 : index
      %14 = vector.load %arg5[%c0_11, %c0_12] : memref<128x8xbf16, #tpu.memory_space<vmem>>, vector<128x8xbf16>
      tpu.vector_store %arg5[%c0_11, %c0_12], %13 {strides = array<i32>} : memref<128x8xbf16, #tpu.memory_space<vmem>>, vector<128x8xbf16>,
    } else {
    }
    return
  }
  func.func @transform_0(%arg0: i32, %arg1: i32, %arg2: i32) -> (i32, i32) {
    %c0_i32 = arith.constant 0 : i32
    return %arg0, %arg2 : i32, i32
  }
  func.func @transform_1(%arg0: i32, %arg1: i32, %arg2: i32) -> (i32, i32) {
    %c0_i32 = arith.constant 0 : i32
    return %arg2, %arg1 : i32, i32
  }
  func.func @transform_2(%arg0: i32, %arg1: i32, %arg2: i32) -> (i32, i32) {
    %c0_i32 = arith.constant 0 : i32
    return %arg0, %arg1 : i32, i32
  }
}

module attributes {stable_mosaic.version = 11 : i64} {
  func.func @_matmul_kernel(%arg0: i32, %arg1: i32, %arg2: i32, %arg3: memref<128x32xbf16, #tpu.memory_space<vmem>>, %arg4: memref<32x16xbf16, #tpu.memory_space<vmem>>, %arg5: memref<1x32xf32, #tpu.memory_space<vmem>>, %arg6: memref<1x32xf32, #tpu.memory_space<vmem>>, %arg7: memref<128x16xbf16, #tpu.memory_space<vmem>>, %arg8: memref<128x16xf32, #tpu.memory_space<vmem>>) attributes {dimension_semantics = [#tpu.dimension_semantics<parallel>, #tpu.dimension_semantics<parallel>, #tpu.dimension_semantics<arbitrary>], iteration_bounds = array<i64: 1, 1, 1>, scalar_prefetch = 0 : i64, scratch_operands = 1 : i64, tpu.core_type = #tpu.core_type<tc>, window_params = [{transform_indices = @transform_0, window_bounds = array<i64: 128, 32>}, {transform_indices = @transform_1, window_bounds = array<i64: 32, 16>}, {transform_indices = @transform_2, window_bounds = array<i64: 1, 32>}, {transform_indices = @transform_3, window_bounds = array<i64: 1, 32>}, {transform_indices = @transform_4, window_bounds = array<i64: 128, 16>}]} {
    %c0_i32 = arith.constant 0 : i32
    %0 = arith.cmpi eq, %arg2, %c0_i32 : i32
    %1 = arith.extui %0 : i1 to i32
    %c0_i32_0 = arith.constant 0 : i32
    %2 = arith.cmpi ne, %1, %c0_i32_0 : i32
    scf.if %2 {
      %cst_15 = arith.constant 0.000000e+00 : f32
      %22 = vector.broadcast %cst_15 : f32 to vector<128x16xf32>
      %c0_16 = arith.constant 0 : index
      %c0_17 = arith.constant 0 : index
      %23 = vector.load %arg8[%c0_16, %c0_17] : memref<128x16xf32, #tpu.memory_space<vmem>>, vector<128x16xf32>
      tpu.vector_store %arg8[%c0_16, %c0_17], %22 {strides = array<i32>} : memref<128x16xf32, #tpu.memory_space<vmem>>, vector<128x16xf32>,
    } else {
    }
    %c0 = arith.constant 0 : index
    %c0_1 = arith.constant 0 : index
    %3 = vector.load %arg3[%c0, %c0_1] : memref<128x32xbf16, #tpu.memory_space<vmem>>, vector<128x32xbf16>
    %4 = arith.extf %3 : vector<128x32xbf16> to vector<128x32xf32>
    %c0_2 = arith.constant 0 : index
    %c0_3 = arith.constant 0 : index
    %5 = vector.load %arg5[%c0_2, %c0_3] : memref<1x32xf32, #tpu.memory_space<vmem>>, vector<1x32xf32>
    %6 = vector.broadcast %5 : vector<1x32xf32> to vector<128x32xf32>
    %7 = arith.mulf %4, %6 : vector<128x32xf32>
    %c0_4 = arith.constant 0 : index
    %c0_5 = arith.constant 0 : index
    %8 = vector.load %arg6[%c0_4, %c0_5] : memref<1x32xf32, #tpu.memory_space<vmem>>, vector<1x32xf32>
    %9 = vector.broadcast %8 : vector<1x32xf32> to vector<128x32xf32>
    %10 = arith.addf %7, %9 : vector<128x32xf32>
    %cst = arith.constant 0.000000e+00 : f32
    %11 = vector.broadcast %cst : f32 to vector<128x32xf32>
    %12 = arith.maximumf %10, %11 : vector<128x32xf32>
    %13 = arith.truncf %12 : vector<128x32xf32> to vector<128x32xbf16>
    %c0_6 = arith.constant 0 : index
    %c0_7 = arith.constant 0 : index
    %14 = vector.load %arg8[%c0_6, %c0_7] : memref<128x16xf32, #tpu.memory_space<vmem>>, vector<128x16xf32>
    %c0_8 = arith.constant 0 : index
    %c0_9 = arith.constant 0 : index
    %15 = vector.load %arg4[%c0_8, %c0_9] : memref<32x16xbf16, #tpu.memory_space<vmem>>, vector<32x16xbf16>
    %cst_10 = arith.constant dense<0.000000e+00> : vector<128x16xf32>
    %16 = tpu.matmul %13, %15, %cst_10 {dimension_numbers = #tpu.dot_dimension_numbers<[1], [0], [0], [1], [0, 0, 1, 1], [], []>} : vector<128x32xbf16>, vector<32x16xbf16>, vector<128x16xf32> -> vector<128x16xf32>
    %17 = arith.addf %14, %16 : vector<128x16xf32>
    %c0_11 = arith.constant 0 : index
    %c0_12 = arith.constant 0 : index
    %18 = vector.load %arg8[%c0_11, %c0_12] : memref<128x16xf32, #tpu.memory_space<vmem>>, vector<128x16xf32>
    tpu.vector_store %arg8[%c0_11, %c0_12], %17 {strides = array<i32>} : memref<128x16xf32, #tpu.memory_space<vmem>>, vector<128x16xf32>,
    %c0_i32_13 = arith.constant 0 : i32
    %19 = arith.cmpi eq, %arg2, %c0_i32_13 : i32
    %20 = arith.extui %19 : i1 to i32
    %c0_i32_14 = arith.constant 0 : i32
    %21 = arith.cmpi ne, %20, %c0_i32_14 : i32
    scf.if %21 {
      %c0_15 = arith.constant 0 : index
      %c0_16 = arith.constant 0 : index
      %22 = vector.load %arg8[%c0_15, %c0_16] : memref<128x16xf32, #tpu.memory_space<vmem>>, vector<128x16xf32>
      %23 = arith.truncf %22 : vector<128x16xf32> to vector<128x16xbf16>
      %c0_17 = arith.constant 0 : index
      %c0_18 = arith.constant 0 : index
      %24 = vector.load %arg7[%c0_17, %c0_18] : memref<128x16xbf16, #tpu.memory_space<vmem>>, vector<128x16xbf16>
      tpu.vector_store %arg7[%c0_17, %c0_18], %23 {strides = array<i32>} : memref<128x16xbf16, #tpu.memory_space<vmem>>, vector<128x16xbf16>,
    } else {
    }
    return
  }
  func.func @transform_0(%arg0: i32, %arg1: i32, %arg2: i32) -> (i32, i32) {
    %c0_i32 = arith.constant 0 : i32
    return %arg0, %arg2 : i32, i32
  }
  func.func @transform_1(%arg0: i32, %arg1: i32, %arg2: i32) -> (i32, i32) {
    %c0_i32 = arith.constant 0 : i32
    return %arg2, %arg1 : i32, i32
  }
  func.func @transform_2(%arg0: i32, %arg1: i32, %arg2: i32) -> (i32, i32) {
    %c0_i32 = arith.constant 0 : i32
    %c0_i32_0 = arith.constant 0 : i32
    return %c0_i32, %arg2 : i32, i32
  }
  func.func @transform_3(%arg0: i32, %arg1: i32, %arg2: i32) -> (i32, i32) {
    %c0_i32 = arith.constant 0 : i32
    %c0_i32_0 = arith.constant 0 : i32
    return %c0_i32, %arg2 : i32, i32
  }
  func.func @transform_4(%arg0: i32, %arg1: i32, %arg2: i32) -> (i32, i32) {
    %c0_i32 = arith.constant 0 : i32
    return %arg0, %arg1 : i32, i32
  }
}

module attributes {stable_mosaic.version = 11 : i64} {
  func.func @_window_reduce_kernel(%arg0: i32, %arg1: memref<4x32x16xbf16, #tpu.memory_space<vmem>>, %arg2: memref<32x16xbf16, #tpu.memory_space<vmem>>) attributes {dimension_semantics = [#tpu.dimension_semantics<parallel>], iteration_bounds = array<i64: 1>, scalar_prefetch = 0 : i64, scratch_operands = 0 : i64, tpu.core_type = #tpu.core_type<tc>, window_params = [{transform_indices = @transform_0, window_bounds = array<i64: 4, 32, 16>}, {transform_indices = @transform_1, window_bounds = array<i64: 32, 16>}]} {
    %c0 = arith.constant 0 : index
    %c0_0 = arith.constant 0 : index
    %c0_1 = arith.constant 0 : index
    %0 = vector.load %arg1[%c0, %c0_0, %c0_1] : memref<4x32x16xbf16, #tpu.memory_space<vmem>>, vector<4x32x16xbf16>
    %1 = arith.extf %0 : vector<4x32x16xbf16> to vector<4x32x16xf32>
    %cst = arith.constant dense<0.000000e+00> : vector<32x16xf32>
    %2 = vector.multi_reduction <add>, %1, %cst [0] : vector<4x32x16xf32> to vector<32x16xf32>
    %cst_2 = arith.constant 2.500000e-01 : f32
    %3 = vector.broadcast %cst_2 : f32 to vector<32x16xf32>
    %4 = arith.mulf %2, %3 : vector<32x16xf32>
    %5 = arith.truncf %4 : vector<32x16xf32> to vector<32x16xbf16>
    %c0_3 = arith.constant 0 : index
    %c0_4 = arith.constant 0 : index
    %6 = vector.load %arg2[%c0_3, %c0_4] : memref<32x16xbf16, #tpu.memory_space<vmem>>, vector<32x16xbf16>
    tpu.vector_store %arg2[%c0_3, %c0_4], %5 {strides = array<i32>} : memref<32x16xbf16, #tpu.memory_space<vmem>>, vector<32x16xbf16>,
    return
  }
  func.func @transform_0(%arg0: i32) -> (i32, i32, i32) {
    %c0_i32 = arith.constant 0 : i32
    %c0_i32_0 = arith.constant 0 : i32
    %c0_i32_1 = arith.constant 0 : i32
    return %c0_i32, %arg0, %c0_i32_0 : i32, i32, i32
  }
  func.func @transform_1(%arg0: i32) -> (i32, i32) {
    %c0_i32 = arith.constant 0 : i32
    %c0_i32_0 = arith.constant 0 : i32
    return %arg0, %c0_i32 : i32, i32
  }
}

module attributes {stable_mosaic.version = 11 : i64} {
  func.func @_matmul_kernel(%arg0: i32, %arg1: i32, %arg2: i32, %arg3: memref<32x16xbf16, #tpu.memory_space<vmem>>, %arg4: memref<16x32xbf16, #tpu.memory_space<vmem>>, %arg5: memref<1x16xf32, #tpu.memory_space<vmem>>, %arg6: memref<1x16xf32, #tpu.memory_space<vmem>>, %arg7: memref<1x32xf32, #tpu.memory_space<vmem>>, %arg8: memref<1x32xf32, #tpu.memory_space<vmem>>, %arg9: memref<32x32xbf16, #tpu.memory_space<vmem>>, %arg10: memref<32x32xf32, #tpu.memory_space<vmem>>) attributes {dimension_semantics = [#tpu.dimension_semantics<parallel>, #tpu.dimension_semantics<parallel>, #tpu.dimension_semantics<arbitrary>], iteration_bounds = array<i64: 1, 1, 1>, scalar_prefetch = 0 : i64, scratch_operands = 1 : i64, tpu.core_type = #tpu.core_type<tc>, window_params = [{transform_indices = @transform_0, window_bounds = array<i64: 32, 16>}, {transform_indices = @transform_1, window_bounds = array<i64: 16, 32>}, {transform_indices = @transform_2, window_bounds = array<i64: 1, 16>}, {transform_indices = @transform_3, window_bounds = array<i64: 1, 16>}, {transform_indices = @transform_4, window_bounds = array<i64: 1, 32>}, {transform_indices = @transform_5, window_bounds = array<i64: 1, 32>}, {transform_indices = @transform_6, window_bounds = array<i64: 32, 32>}]} {
    %c0_i32 = arith.constant 0 : i32
    %0 = arith.cmpi eq, %arg2, %c0_i32 : i32
    %1 = arith.extui %0 : i1 to i32
    %c0_i32_0 = arith.constant 0 : i32
    %2 = arith.cmpi ne, %1, %c0_i32_0 : i32
    scf.if %2 {
      %cst_15 = arith.constant 0.000000e+00 : f32
      %22 = vector.broadcast %cst_15 : f32 to vector<32x32xf32>
      %c0_16 = arith.constant 0 : index
      %c0_17 = arith.constant 0 : index
      %23 = vector.load %arg10[%c0_16, %c0_17] : memref<32x32xf32, #tpu.memory_space<vmem>>, vector<32x32xf32>
      tpu.vector_store %arg10[%c0_16, %c0_17], %22 {strides = array<i32>} : memref<32x32xf32, #tpu.memory_space<vmem>>, vector<32x32xf32>,
    } else {
    }
    %c0 = arith.constant 0 : index
    %c0_1 = arith.constant 0 : index
    %3 = vector.load %arg3[%c0, %c0_1] : memref<32x16xbf16, #tpu.memory_space<vmem>>, vector<32x16xbf16>
    %4 = arith.extf %3 : vector<32x16xbf16> to vector<32x16xf32>
    %c0_2 = arith.constant 0 : index
    %c0_3 = arith.constant 0 : index
    %5 = vector.load %arg5[%c0_2, %c0_3] : memref<1x16xf32, #tpu.memory_space<vmem>>, vector<1x16xf32>
    %6 = vector.broadcast %5 : vector<1x16xf32> to vector<32x16xf32>
    %7 = arith.mulf %4, %6 : vector<32x16xf32>
    %c0_4 = arith.constant 0 : index
    %c0_5 = arith.constant 0 : index
    %8 = vector.load %arg6[%c0_4, %c0_5] : memref<1x16xf32, #tpu.memory_space<vmem>>, vector<1x16xf32>
    %9 = vector.broadcast %8 : vector<1x16xf32> to vector<32x16xf32>
    %10 = arith.addf %7, %9 : vector<32x16xf32>
    %cst = arith.constant 0.000000e+00 : f32
    %11 = vector.broadcast %cst : f32 to vector<32x16xf32>
    %12 = arith.maximumf %10, %11 : vector<32x16xf32>
    %13 = arith.truncf %12 : vector<32x16xf32> to vector<32x16xbf16>
    %c0_6 = arith.constant 0 : index
    %c0_7 = arith.constant 0 : index
    %14 = vector.load %arg10[%c0_6, %c0_7] : memref<32x32xf32, #tpu.memory_space<vmem>>, vector<32x32xf32>
    %c0_8 = arith.constant 0 : index
    %c0_9 = arith.constant 0 : index
    %15 = vector.load %arg4[%c0_8, %c0_9] : memref<16x32xbf16, #tpu.memory_space<vmem>>, vector<16x32xbf16>
    %cst_10 = arith.constant dense<0.000000e+00> : vector<32x32xf32>
    %16 = tpu.matmul %13, %15, %cst_10 {dimension_numbers = #tpu.dot_dimension_numbers<[1], [0], [0], [1], [0, 0, 1, 1], [], []>} : vector<32x16xbf16>, vector<16x32xbf16>, vector<32x32xf32> -> vector<32x32xf32>
    %17 = arith.addf %14, %16 : vector<32x32xf32>
    %c0_11 = arith.constant 0 : index
    %c0_12 = arith.constant 0 : index
    %18 = vector.load %arg10[%c0_11, %c0_12] : memref<32x32xf32, #tpu.memory_space<vmem>>, vector<32x32xf32>
    tpu.vector_store %arg10[%c0_11, %c0_12], %17 {strides = array<i32>} : memref<32x32xf32, #tpu.memory_space<vmem>>, vector<32x32xf32>,
    %c0_i32_13 = arith.constant 0 : i32
    %19 = arith.cmpi eq, %arg2, %c0_i32_13 : i32
    %20 = arith.extui %19 : i1 to i32
    %c0_i32_14 = arith.constant 0 : i32
    %21 = arith.cmpi ne, %20, %c0_i32_14 : i32
    scf.if %21 {
      %c0_15 = arith.constant 0 : index
      %c0_16 = arith.constant 0 : index
      %22 = vector.load %arg10[%c0_15, %c0_16] : memref<32x32xf32, #tpu.memory_space<vmem>>, vector<32x32xf32>
      %c0_17 = arith.constant 0 : index
      %c0_18 = arith.constant 0 : index
      %23 = vector.load %arg7[%c0_17, %c0_18] : memref<1x32xf32, #tpu.memory_space<vmem>>, vector<1x32xf32>
      %24 = vector.broadcast %23 : vector<1x32xf32> to vector<32x32xf32>
      %25 = arith.mulf %22, %24 : vector<32x32xf32>
      %c0_19 = arith.constant 0 : index
      %c0_20 = arith.constant 0 : index
      %26 = vector.load %arg8[%c0_19, %c0_20] : memref<1x32xf32, #tpu.memory_space<vmem>>, vector<1x32xf32>
      %27 = vector.broadcast %26 : vector<1x32xf32> to vector<32x32xf32>
      %28 = arith.addf %25, %27 : vector<32x32xf32>
      %cst_21 = arith.constant 0.000000e+00 : f32
      %29 = vector.broadcast %cst_21 : f32 to vector<32x32xf32>
      %30 = arith.maximumf %28, %29 : vector<32x32xf32>
      %31 = arith.truncf %30 : vector<32x32xf32> to vector<32x32xbf16>
      %c0_22 = arith.constant 0 : index
      %c0_23 = arith.constant 0 : index
      %32 = vector.load %arg9[%c0_22, %c0_23] : memref<32x32xbf16, #tpu.memory_space<vmem>>, vector<32x32xbf16>
      tpu.vector_store %arg9[%c0_22, %c0_23], %31 {strides = array<i32>} : memref<32x32xbf16, #tpu.memory_space<vmem>>, vector<32x32xbf16>,
    } else {
    }
    return
  }
  func.func @transform_0(%arg0: i32, %arg1: i32, %arg2: i32) -> (i32, i32) {
    %c0_i32 = arith.constant 0 : i32
    return %arg0, %arg2 : i32, i32
  }
  func.func @transform_1(%arg0: i32, %arg1: i32, %arg2: i32) -> (i32, i32) {
    %c0_i32 = arith.constant 0 : i32
    return %arg2, %arg1 : i32, i32
  }
  func.func @transform_2(%arg0: i32, %arg1: i32, %arg2: i32) -> (i32, i32) {
    %c0_i32 = arith.constant 0 : i32
    %c0_i32_0 = arith.constant 0 : i32
    return %c0_i32, %arg2 : i32, i32
  }
  func.func @transform_3(%arg0: i32, %arg1: i32, %arg2: i32) -> (i32, i32) {
    %c0_i32 = arith.constant 0 : i32
    %c0_i32_0 = arith.constant 0 : i32
    return %c0_i32, %arg2 : i32, i32
  }
  func.func @transform_4(%arg0: i32, %arg1: i32, %arg2: i32) -> (i32, i32) {
    %c0_i32 = arith.constant 0 : i32
    %c0_i32_0 = arith.constant 0 : i32
    return %c0_i32, %arg1 : i32, i32
  }
  func.func @transform_5(%arg0: i32, %arg1: i32, %arg2: i32) -> (i32, i32) {
    %c0_i32 = arith.constant 0 : i32
    %c0_i32_0 = arith.constant 0 : i32
    return %c0_i32, %arg1 : i32, i32
  }
  func.func @transform_6(%arg0: i32, %arg1: i32, %arg2: i32) -> (i32, i32) {
    %c0_i32 = arith.constant 0 : i32
    return %arg0, %arg1 : i32, i32
  }
}

module attributes {stable_mosaic.version = 11 : i64} {
  func.func @_matmul_kernel(%arg0: i32, %arg1: i32, %arg2: i32, %arg3: memref<32x256xbf16, #tpu.memory_space<vmem>>, %arg4: memref<256x8xbf16, #tpu.memory_space<vmem>>, %arg5: memref<32x8xbf16, #tpu.memory_space<vmem>>, %arg6: memref<32x8xf32, #tpu.memory_space<vmem>>) attributes {dimension_semantics = [#tpu.dimension_semantics<parallel>, #tpu.dimension_semantics<parallel>, #tpu.dimension_semantics<arbitrary>], iteration_bounds = array<i64: 1, 1, 2>, scalar_prefetch = 0 : i64, scratch_operands = 1 : i64, tpu.core_type = #tpu.core_type<tc>, window_params = [{transform_indices = @transform_0, window_bounds = array<i64: 32, 256>}, {transform_indices = @transform_1, window_bounds = array<i64: 256, 8>}, {transform_indices = @transform_2, window_bounds = array<i64: 32, 8>}]} {
    %c0_i32 = arith.constant 0 : i32
    %0 = arith.cmpi eq, %arg2, %c0_i32 : i32
    %1 = arith.extui %0 : i1 to i32
    %c0_i32_0 = arith.constant 0 : i32
    %2 = arith.cmpi ne, %1, %c0_i32_0 : i32
    scf.if %2 {
      %cst_9 = arith.constant 0.000000e+00 : f32
      %12 = vector.broadcast %cst_9 : f32 to vector<32x8xf32>
      %c0_10 = arith.constant 0 : index
      %c0_11 = arith.constant 0 : index
      %13 = vector.load %arg6[%c0_10, %c0_11] : memref<32x8xf32, #tpu.memory_space<vmem>>, vector<32x8xf32>
      tpu.vector_store %arg6[%c0_10, %c0_11], %12 {strides = array<i32>} : memref<32x8xf32, #tpu.memory_space<vmem>>, vector<32x8xf32>,
    } else {
    }
    %c0 = arith.constant 0 : index
    %c0_1 = arith.constant 0 : index
    %3 = vector.load %arg3[%c0, %c0_1] : memref<32x256xbf16, #tpu.memory_space<vmem>>, vector<32x256xbf16>
    %c0_2 = arith.constant 0 : index
    %c0_3 = arith.constant 0 : index
    %4 = vector.load %arg6[%c0_2, %c0_3] : memref<32x8xf32, #tpu.memory_space<vmem>>, vector<32x8xf32>
    %c0_4 = arith.constant 0 : index
    %c0_5 = arith.constant 0 : index
    %5 = vector.load %arg4[%c0_4, %c0_5] : memref<256x8xbf16, #tpu.memory_space<vmem>>, vector<256x8xbf16>
    %cst = arith.constant dense<0.000000e+00> : vector<32x8xf32>
    %6 = tpu.matmul %3, %5, %cst {dimension_numbers = #tpu.dot_dimension_numbers<[1], [0], [0], [1], [0, 0, 1, 1], [], []>} : vector<32x256xbf16>, vector<256x8xbf16>, vector<32x8xf32> -> vector<32x8xf32>
    %7 = arith.addf %4, %6 : vector<32x8xf32>
    %c0_6 = arith.constant 0 : index
    %c0_7 = arith.constant 0 : index
    %8 = vector.load %arg6[%c0_6, %c0_7] : memref<32x8xf32, #tpu.memory_space<vmem>>, vector<32x8xf32>
    tpu.vector_store %arg6[%c0_6, %c0_7], %7 {strides = array<i32>} : memref<32x8xf32, #tpu.memory_space<vmem>>, vector<32x8xf32>,
    %c1_i32 = arith.constant 1 : i32
    %9 = arith.cmpi eq, %arg2, %c1_i32 : i32
    %10 = arith.extui %9 : i1 to i32
    %c0_i32_8 = arith.constant 0 : i32
    %11 = arith.cmpi ne, %10, %c0_i32_8 : i32
    scf.if %11 {
      %c0_9 = arith.constant 0 : index
      %c0_10 = arith.constant 0 : index
      %12 = vector.load %arg6[%c0_9, %c0_10] : memref<32x8xf32, #tpu.memory_space<vmem>>, vector<32x8xf32>
      %13 = arith.truncf %12 : vector<32x8xf32> to vector<32x8xbf16>
      %c0_11 = arith.constant 0 : index
      %c0_12 = arith.constant 0 : index
      %14 = vector.load %arg5[%c0_11, %c0_12] : memref<32x8xbf16, #tpu.memory_space<vmem>>, vector<32x8xbf16>
      tpu.vector_store %arg5[%c0_11, %c0_12], %13 {strides = array<i32>} : memref<32x8xbf16, #tpu.memory_space<vmem>>, vector<32x8xbf16>,
    } else {
    }
    return
  }
  func.func @transform_0(%arg0: i32, %arg1: i32, %arg2: i32) -> (i32, i32) {
    %c0_i32 = arith.constant 0 : i32
    return %arg0, %arg2 : i32, i32
  }
  func.func @transform_1(%arg0: i32, %arg1: i32, %arg2: i32) -> (i32, i32) {
    %c0_i32 = arith.constant 0 : i32
    return %arg2, %arg1 : i32, i32
  }
  func.func @transform_2(%arg0: i32, %arg1: i32, %arg2: i32) -> (i32, i32) {
    %c0_i32 = arith.constant 0 : i32
    return %arg0, %arg1 : i32, i32
  }
}

module attributes {stable_mosaic.version = 11 : i64} {
  func.func @_matmul_kernel(%arg0: i32, %arg1: i32, %arg2: i32, %arg3: memref<32x24xbf16, #tpu.memory_space<vmem>>, %arg4: memref<24x32xbf16, #tpu.memory_space<vmem>>, %arg5: memref<1x24xf32, #tpu.memory_space<vmem>>, %arg6: memref<1x24xf32, #tpu.memory_space<vmem>>, %arg7: memref<1x32xf32, #tpu.memory_space<vmem>>, %arg8: memref<1x32xf32, #tpu.memory_space<vmem>>, %arg9: memref<32x32xbf16, #tpu.memory_space<vmem>>, %arg10: memref<32x32xf32, #tpu.memory_space<vmem>>) attributes {dimension_semantics = [#tpu.dimension_semantics<parallel>, #tpu.dimension_semantics<parallel>, #tpu.dimension_semantics<arbitrary>], iteration_bounds = array<i64: 1, 1, 1>, scalar_prefetch = 0 : i64, scratch_operands = 1 : i64, tpu.core_type = #tpu.core_type<tc>, window_params = [{transform_indices = @transform_0, window_bounds = array<i64: 32, 24>}, {transform_indices = @transform_1, window_bounds = array<i64: 24, 32>}, {transform_indices = @transform_2, window_bounds = array<i64: 1, 24>}, {transform_indices = @transform_3, window_bounds = array<i64: 1, 24>}, {transform_indices = @transform_4, window_bounds = array<i64: 1, 32>}, {transform_indices = @transform_5, window_bounds = array<i64: 1, 32>}, {transform_indices = @transform_6, window_bounds = array<i64: 32, 32>}]} {
    %c0_i32 = arith.constant 0 : i32
    %0 = arith.cmpi eq, %arg2, %c0_i32 : i32
    %1 = arith.extui %0 : i1 to i32
    %c0_i32_0 = arith.constant 0 : i32
    %2 = arith.cmpi ne, %1, %c0_i32_0 : i32
    scf.if %2 {
      %cst_15 = arith.constant 0.000000e+00 : f32
      %22 = vector.broadcast %cst_15 : f32 to vector<32x32xf32>
      %c0_16 = arith.constant 0 : index
      %c0_17 = arith.constant 0 : index
      %23 = vector.load %arg10[%c0_16, %c0_17] : memref<32x32xf32, #tpu.memory_space<vmem>>, vector<32x32xf32>
      tpu.vector_store %arg10[%c0_16, %c0_17], %22 {strides = array<i32>} : memref<32x32xf32, #tpu.memory_space<vmem>>, vector<32x32xf32>,
    } else {
    }
    %c0 = arith.constant 0 : index
    %c0_1 = arith.constant 0 : index
    %3 = vector.load %arg3[%c0, %c0_1] : memref<32x24xbf16, #tpu.memory_space<vmem>>, vector<32x24xbf16>
    %4 = arith.extf %3 : vector<32x24xbf16> to vector<32x24xf32>
    %c0_2 = arith.constant 0 : index
    %c0_3 = arith.constant 0 : index
    %5 = vector.load %arg5[%c0_2, %c0_3] : memref<1x24xf32, #tpu.memory_space<vmem>>, vector<1x24xf32>
    %6 = vector.broadcast %5 : vector<1x24xf32> to vector<32x24xf32>
    %7 = arith.mulf %4, %6 : vector<32x24xf32>
    %c0_4 = arith.constant 0 : index
    %c0_5 = arith.constant 0 : index
    %8 = vector.load %arg6[%c0_4, %c0_5] : memref<1x24xf32, #tpu.memory_space<vmem>>, vector<1x24xf32>
    %9 = vector.broadcast %8 : vector<1x24xf32> to vector<32x24xf32>
    %10 = arith.addf %7, %9 : vector<32x24xf32>
    %cst = arith.constant 0.000000e+00 : f32
    %11 = vector.broadcast %cst : f32 to vector<32x24xf32>
    %12 = arith.maximumf %10, %11 : vector<32x24xf32>
    %13 = arith.truncf %12 : vector<32x24xf32> to vector<32x24xbf16>
    %c0_6 = arith.constant 0 : index
    %c0_7 = arith.constant 0 : index
    %14 = vector.load %arg10[%c0_6, %c0_7] : memref<32x32xf32, #tpu.memory_space<vmem>>, vector<32x32xf32>
    %c0_8 = arith.constant 0 : index
    %c0_9 = arith.constant 0 : index
    %15 = vector.load %arg4[%c0_8, %c0_9] : memref<24x32xbf16, #tpu.memory_space<vmem>>, vector<24x32xbf16>
    %cst_10 = arith.constant dense<0.000000e+00> : vector<32x32xf32>
    %16 = tpu.matmul %13, %15, %cst_10 {dimension_numbers = #tpu.dot_dimension_numbers<[1], [0], [0], [1], [0, 0, 1, 1], [], []>} : vector<32x24xbf16>, vector<24x32xbf16>, vector<32x32xf32> -> vector<32x32xf32>
    %17 = arith.addf %14, %16 : vector<32x32xf32>
    %c0_11 = arith.constant 0 : index
    %c0_12 = arith.constant 0 : index
    %18 = vector.load %arg10[%c0_11, %c0_12] : memref<32x32xf32, #tpu.memory_space<vmem>>, vector<32x32xf32>
    tpu.vector_store %arg10[%c0_11, %c0_12], %17 {strides = array<i32>} : memref<32x32xf32, #tpu.memory_space<vmem>>, vector<32x32xf32>,
    %c0_i32_13 = arith.constant 0 : i32
    %19 = arith.cmpi eq, %arg2, %c0_i32_13 : i32
    %20 = arith.extui %19 : i1 to i32
    %c0_i32_14 = arith.constant 0 : i32
    %21 = arith.cmpi ne, %20, %c0_i32_14 : i32
    scf.if %21 {
      %c0_15 = arith.constant 0 : index
      %c0_16 = arith.constant 0 : index
      %22 = vector.load %arg10[%c0_15, %c0_16] : memref<32x32xf32, #tpu.memory_space<vmem>>, vector<32x32xf32>
      %c0_17 = arith.constant 0 : index
      %c0_18 = arith.constant 0 : index
      %23 = vector.load %arg7[%c0_17, %c0_18] : memref<1x32xf32, #tpu.memory_space<vmem>>, vector<1x32xf32>
      %24 = vector.broadcast %23 : vector<1x32xf32> to vector<32x32xf32>
      %25 = arith.mulf %22, %24 : vector<32x32xf32>
      %c0_19 = arith.constant 0 : index
      %c0_20 = arith.constant 0 : index
      %26 = vector.load %arg8[%c0_19, %c0_20] : memref<1x32xf32, #tpu.memory_space<vmem>>, vector<1x32xf32>
      %27 = vector.broadcast %26 : vector<1x32xf32> to vector<32x32xf32>
      %28 = arith.addf %25, %27 : vector<32x32xf32>
      %cst_21 = arith.constant 0.000000e+00 : f32
      %29 = vector.broadcast %cst_21 : f32 to vector<32x32xf32>
      %30 = arith.maximumf %28, %29 : vector<32x32xf32>
      %31 = arith.truncf %30 : vector<32x32xf32> to vector<32x32xbf16>
      %c0_22 = arith.constant 0 : index
      %c0_23 = arith.constant 0 : index
      %32 = vector.load %arg9[%c0_22, %c0_23] : memref<32x32xbf16, #tpu.memory_space<vmem>>, vector<32x32xbf16>
      tpu.vector_store %arg9[%c0_22, %c0_23], %31 {strides = array<i32>} : memref<32x32xbf16, #tpu.memory_space<vmem>>, vector<32x32xbf16>,
    } else {
    }
    return
  }
  func.func @transform_0(%arg0: i32, %arg1: i32, %arg2: i32) -> (i32, i32) {
    %c0_i32 = arith.constant 0 : i32
    return %arg0, %arg2 : i32, i32
  }
  func.func @transform_1(%arg0: i32, %arg1: i32, %arg2: i32) -> (i32, i32) {
    %c0_i32 = arith.constant 0 : i32
    return %arg2, %arg1 : i32, i32
  }
  func.func @transform_2(%arg0: i32, %arg1: i32, %arg2: i32) -> (i32, i32) {
    %c0_i32 = arith.constant 0 : i32
    %c0_i32_0 = arith.constant 0 : i32
    return %c0_i32, %arg2 : i32, i32
  }
  func.func @transform_3(%arg0: i32, %arg1: i32, %arg2: i32) -> (i32, i32) {
    %c0_i32 = arith.constant 0 : i32
    %c0_i32_0 = arith.constant 0 : i32
    return %c0_i32, %arg2 : i32, i32
  }
  func.func @transform_4(%arg0: i32, %arg1: i32, %arg2: i32) -> (i32, i32) {
    %c0_i32 = arith.constant 0 : i32
    %c0_i32_0 = arith.constant 0 : i32
    return %c0_i32, %arg1 : i32, i32
  }
  func.func @transform_5(%arg0: i32, %arg1: i32, %arg2: i32) -> (i32, i32) {
    %c0_i32 = arith.constant 0 : i32
    %c0_i32_0 = arith.constant 0 : i32
    return %c0_i32, %arg1 : i32, i32
  }
  func.func @transform_6(%arg0: i32, %arg1: i32, %arg2: i32) -> (i32, i32) {
    %c0_i32 = arith.constant 0 : i32
    return %arg0, %arg1 : i32, i32
  }
}

module attributes {stable_mosaic.version = 11 : i64} {
  func.func @_matmul_kernel(%arg0: i32, %arg1: i32, %arg2: i32, %arg3: memref<32x32xbf16, #tpu.memory_space<vmem>>, %arg4: memref<32x16xbf16, #tpu.memory_space<vmem>>, %arg5: memref<1x32xf32, #tpu.memory_space<vmem>>, %arg6: memref<1x32xf32, #tpu.memory_space<vmem>>, %arg7: memref<32x16xbf16, #tpu.memory_space<vmem>>, %arg8: memref<32x16xf32, #tpu.memory_space<vmem>>) attributes {dimension_semantics = [#tpu.dimension_semantics<parallel>, #tpu.dimension_semantics<parallel>, #tpu.dimension_semantics<arbitrary>], iteration_bounds = array<i64: 1, 1, 1>, scalar_prefetch = 0 : i64, scratch_operands = 1 : i64, tpu.core_type = #tpu.core_type<tc>, window_params = [{transform_indices = @transform_0, window_bounds = array<i64: 32, 32>}, {transform_indices = @transform_1, window_bounds = array<i64: 32, 16>}, {transform_indices = @transform_2, window_bounds = array<i64: 1, 32>}, {transform_indices = @transform_3, window_bounds = array<i64: 1, 32>}, {transform_indices = @transform_4, window_bounds = array<i64: 32, 16>}]} {
    %c0_i32 = arith.constant 0 : i32
    %0 = arith.cmpi eq, %arg2, %c0_i32 : i32
    %1 = arith.extui %0 : i1 to i32
    %c0_i32_0 = arith.constant 0 : i32
    %2 = arith.cmpi ne, %1, %c0_i32_0 : i32
    scf.if %2 {
      %cst_15 = arith.constant 0.000000e+00 : f32
      %22 = vector.broadcast %cst_15 : f32 to vector<32x16xf32>
      %c0_16 = arith.constant 0 : index
      %c0_17 = arith.constant 0 : index
      %23 = vector.load %arg8[%c0_16, %c0_17] : memref<32x16xf32, #tpu.memory_space<vmem>>, vector<32x16xf32>
      tpu.vector_store %arg8[%c0_16, %c0_17], %22 {strides = array<i32>} : memref<32x16xf32, #tpu.memory_space<vmem>>, vector<32x16xf32>,
    } else {
    }
    %c0 = arith.constant 0 : index
    %c0_1 = arith.constant 0 : index
    %3 = vector.load %arg3[%c0, %c0_1] : memref<32x32xbf16, #tpu.memory_space<vmem>>, vector<32x32xbf16>
    %4 = arith.extf %3 : vector<32x32xbf16> to vector<32x32xf32>
    %c0_2 = arith.constant 0 : index
    %c0_3 = arith.constant 0 : index
    %5 = vector.load %arg5[%c0_2, %c0_3] : memref<1x32xf32, #tpu.memory_space<vmem>>, vector<1x32xf32>
    %6 = vector.broadcast %5 : vector<1x32xf32> to vector<32x32xf32>
    %7 = arith.mulf %4, %6 : vector<32x32xf32>
    %c0_4 = arith.constant 0 : index
    %c0_5 = arith.constant 0 : index
    %8 = vector.load %arg6[%c0_4, %c0_5] : memref<1x32xf32, #tpu.memory_space<vmem>>, vector<1x32xf32>
    %9 = vector.broadcast %8 : vector<1x32xf32> to vector<32x32xf32>
    %10 = arith.addf %7, %9 : vector<32x32xf32>
    %cst = arith.constant 0.000000e+00 : f32
    %11 = vector.broadcast %cst : f32 to vector<32x32xf32>
    %12 = arith.maximumf %10, %11 : vector<32x32xf32>
    %13 = arith.truncf %12 : vector<32x32xf32> to vector<32x32xbf16>
    %c0_6 = arith.constant 0 : index
    %c0_7 = arith.constant 0 : index
    %14 = vector.load %arg8[%c0_6, %c0_7] : memref<32x16xf32, #tpu.memory_space<vmem>>, vector<32x16xf32>
    %c0_8 = arith.constant 0 : index
    %c0_9 = arith.constant 0 : index
    %15 = vector.load %arg4[%c0_8, %c0_9] : memref<32x16xbf16, #tpu.memory_space<vmem>>, vector<32x16xbf16>
    %cst_10 = arith.constant dense<0.000000e+00> : vector<32x16xf32>
    %16 = tpu.matmul %13, %15, %cst_10 {dimension_numbers = #tpu.dot_dimension_numbers<[1], [0], [0], [1], [0, 0, 1, 1], [], []>} : vector<32x32xbf16>, vector<32x16xbf16>, vector<32x16xf32> -> vector<32x16xf32>
    %17 = arith.addf %14, %16 : vector<32x16xf32>
    %c0_11 = arith.constant 0 : index
    %c0_12 = arith.constant 0 : index
    %18 = vector.load %arg8[%c0_11, %c0_12] : memref<32x16xf32, #tpu.memory_space<vmem>>, vector<32x16xf32>
    tpu.vector_store %arg8[%c0_11, %c0_12], %17 {strides = array<i32>} : memref<32x16xf32, #tpu.memory_space<vmem>>, vector<32x16xf32>,
    %c0_i32_13 = arith.constant 0 : i32
    %19 = arith.cmpi eq, %arg2, %c0_i32_13 : i32
    %20 = arith.extui %19 : i1 to i32
    %c0_i32_14 = arith.constant 0 : i32
    %21 = arith.cmpi ne, %20, %c0_i32_14 : i32
    scf.if %21 {
      %c0_15 = arith.constant 0 : index
      %c0_16 = arith.constant 0 : index
      %22 = vector.load %arg8[%c0_15, %c0_16] : memref<32x16xf32, #tpu.memory_space<vmem>>, vector<32x16xf32>
      %23 = arith.truncf %22 : vector<32x16xf32> to vector<32x16xbf16>
      %c0_17 = arith.constant 0 : index
      %c0_18 = arith.constant 0 : index
      %24 = vector.load %arg7[%c0_17, %c0_18] : memref<32x16xbf16, #tpu.memory_space<vmem>>, vector<32x16xbf16>
      tpu.vector_store %arg7[%c0_17, %c0_18], %23 {strides = array<i32>} : memref<32x16xbf16, #tpu.memory_space<vmem>>, vector<32x16xbf16>,
    } else {
    }
    return
  }
  func.func @transform_0(%arg0: i32, %arg1: i32, %arg2: i32) -> (i32, i32) {
    %c0_i32 = arith.constant 0 : i32
    return %arg0, %arg2 : i32, i32
  }
  func.func @transform_1(%arg0: i32, %arg1: i32, %arg2: i32) -> (i32, i32) {
    %c0_i32 = arith.constant 0 : i32
    return %arg2, %arg1 : i32, i32
  }
  func.func @transform_2(%arg0: i32, %arg1: i32, %arg2: i32) -> (i32, i32) {
    %c0_i32 = arith.constant 0 : i32
    %c0_i32_0 = arith.constant 0 : i32
    return %c0_i32, %arg2 : i32, i32
  }
  func.func @transform_3(%arg0: i32, %arg1: i32, %arg2: i32) -> (i32, i32) {
    %c0_i32 = arith.constant 0 : i32
    %c0_i32_0 = arith.constant 0 : i32
    return %c0_i32, %arg2 : i32, i32
  }
  func.func @transform_4(%arg0: i32, %arg1: i32, %arg2: i32) -> (i32, i32) {
    %c0_i32 = arith.constant 0 : i32
    return %arg0, %arg1 : i32, i32
  }
}

module attributes {stable_mosaic.version = 11 : i64} {
  func.func @_window_reduce_kernel(%arg0: i32, %arg1: memref<4x8x16xbf16, #tpu.memory_space<vmem>>, %arg2: memref<8x16xbf16, #tpu.memory_space<vmem>>) attributes {dimension_semantics = [#tpu.dimension_semantics<parallel>], iteration_bounds = array<i64: 1>, scalar_prefetch = 0 : i64, scratch_operands = 0 : i64, tpu.core_type = #tpu.core_type<tc>, window_params = [{transform_indices = @transform_0, window_bounds = array<i64: 4, 8, 16>}, {transform_indices = @transform_1, window_bounds = array<i64: 8, 16>}]} {
    %c0 = arith.constant 0 : index
    %c0_0 = arith.constant 0 : index
    %c0_1 = arith.constant 0 : index
    %0 = vector.load %arg1[%c0, %c0_0, %c0_1] : memref<4x8x16xbf16, #tpu.memory_space<vmem>>, vector<4x8x16xbf16>
    %1 = arith.extf %0 : vector<4x8x16xbf16> to vector<4x8x16xf32>
    %cst = arith.constant dense<0.000000e+00> : vector<8x16xf32>
    %2 = vector.multi_reduction <add>, %1, %cst [0] : vector<4x8x16xf32> to vector<8x16xf32>
    %cst_2 = arith.constant 2.500000e-01 : f32
    %3 = vector.broadcast %cst_2 : f32 to vector<8x16xf32>
    %4 = arith.mulf %2, %3 : vector<8x16xf32>
    %5 = arith.truncf %4 : vector<8x16xf32> to vector<8x16xbf16>
    %c0_3 = arith.constant 0 : index
    %c0_4 = arith.constant 0 : index
    %6 = vector.load %arg2[%c0_3, %c0_4] : memref<8x16xbf16, #tpu.memory_space<vmem>>, vector<8x16xbf16>
    tpu.vector_store %arg2[%c0_3, %c0_4], %5 {strides = array<i32>} : memref<8x16xbf16, #tpu.memory_space<vmem>>, vector<8x16xbf16>,
    return
  }
  func.func @transform_0(%arg0: i32) -> (i32, i32, i32) {
    %c0_i32 = arith.constant 0 : i32
    %c0_i32_0 = arith.constant 0 : i32
    %c0_i32_1 = arith.constant 0 : i32
    return %c0_i32, %arg0, %c0_i32_0 : i32, i32, i32
  }
  func.func @transform_1(%arg0: i32) -> (i32, i32) {
    %c0_i32 = arith.constant 0 : i32
    %c0_i32_0 = arith.constant 0 : i32
    return %arg0, %c0_i32 : i32, i32
  }
}

module attributes {stable_mosaic.version = 11 : i64} {
  func.func @_matmul_kernel(%arg0: i32, %arg1: i32, %arg2: i32, %arg3: memref<8x16xbf16, #tpu.memory_space<vmem>>, %arg4: memref<16x32xbf16, #tpu.memory_space<vmem>>, %arg5: memref<1x16xf32, #tpu.memory_space<vmem>>, %arg6: memref<1x16xf32, #tpu.memory_space<vmem>>, %arg7: memref<1x32xf32, #tpu.memory_space<vmem>>, %arg8: memref<1x32xf32, #tpu.memory_space<vmem>>, %arg9: memref<8x32xbf16, #tpu.memory_space<vmem>>, %arg10: memref<8x32xf32, #tpu.memory_space<vmem>>) attributes {dimension_semantics = [#tpu.dimension_semantics<parallel>, #tpu.dimension_semantics<parallel>, #tpu.dimension_semantics<arbitrary>], iteration_bounds = array<i64: 1, 1, 1>, scalar_prefetch = 0 : i64, scratch_operands = 1 : i64, tpu.core_type = #tpu.core_type<tc>, window_params = [{transform_indices = @transform_0, window_bounds = array<i64: 8, 16>}, {transform_indices = @transform_1, window_bounds = array<i64: 16, 32>}, {transform_indices = @transform_2, window_bounds = array<i64: 1, 16>}, {transform_indices = @transform_3, window_bounds = array<i64: 1, 16>}, {transform_indices = @transform_4, window_bounds = array<i64: 1, 32>}, {transform_indices = @transform_5, window_bounds = array<i64: 1, 32>}, {transform_indices = @transform_6, window_bounds = array<i64: 8, 32>}]} {
    %c0_i32 = arith.constant 0 : i32
    %0 = arith.cmpi eq, %arg2, %c0_i32 : i32
    %1 = arith.extui %0 : i1 to i32
    %c0_i32_0 = arith.constant 0 : i32
    %2 = arith.cmpi ne, %1, %c0_i32_0 : i32
    scf.if %2 {
      %cst_15 = arith.constant 0.000000e+00 : f32
      %22 = vector.broadcast %cst_15 : f32 to vector<8x32xf32>
      %c0_16 = arith.constant 0 : index
      %c0_17 = arith.constant 0 : index
      %23 = vector.load %arg10[%c0_16, %c0_17] : memref<8x32xf32, #tpu.memory_space<vmem>>, vector<8x32xf32>
      tpu.vector_store %arg10[%c0_16, %c0_17], %22 {strides = array<i32>} : memref<8x32xf32, #tpu.memory_space<vmem>>, vector<8x32xf32>,
    } else {
    }
    %c0 = arith.constant 0 : index
    %c0_1 = arith.constant 0 : index
    %3 = vector.load %arg3[%c0, %c0_1] : memref<8x16xbf16, #tpu.memory_space<vmem>>, vector<8x16xbf16>
    %4 = arith.extf %3 : vector<8x16xbf16> to vector<8x16xf32>
    %c0_2 = arith.constant 0 : index
    %c0_3 = arith.constant 0 : index
    %5 = vector.load %arg5[%c0_2, %c0_3] : memref<1x16xf32, #tpu.memory_space<vmem>>, vector<1x16xf32>
    %6 = vector.broadcast %5 : vector<1x16xf32> to vector<8x16xf32>
    %7 = arith.mulf %4, %6 : vector<8x16xf32>
    %c0_4 = arith.constant 0 : index
    %c0_5 = arith.constant 0 : index
    %8 = vector.load %arg6[%c0_4, %c0_5] : memref<1x16xf32, #tpu.memory_space<vmem>>, vector<1x16xf32>
    %9 = vector.broadcast %8 : vector<1x16xf32> to vector<8x16xf32>
    %10 = arith.addf %7, %9 : vector<8x16xf32>
    %cst = arith.constant 0.000000e+00 : f32
    %11 = vector.broadcast %cst : f32 to vector<8x16xf32>
    %12 = arith.maximumf %10, %11 : vector<8x16xf32>
    %13 = arith.truncf %12 : vector<8x16xf32> to vector<8x16xbf16>
    %c0_6 = arith.constant 0 : index
    %c0_7 = arith.constant 0 : index
    %14 = vector.load %arg10[%c0_6, %c0_7] : memref<8x32xf32, #tpu.memory_space<vmem>>, vector<8x32xf32>
    %c0_8 = arith.constant 0 : index
    %c0_9 = arith.constant 0 : index
    %15 = vector.load %arg4[%c0_8, %c0_9] : memref<16x32xbf16, #tpu.memory_space<vmem>>, vector<16x32xbf16>
    %cst_10 = arith.constant dense<0.000000e+00> : vector<8x32xf32>
    %16 = tpu.matmul %13, %15, %cst_10 {dimension_numbers = #tpu.dot_dimension_numbers<[1], [0], [0], [1], [0, 0, 1, 1], [], []>} : vector<8x16xbf16>, vector<16x32xbf16>, vector<8x32xf32> -> vector<8x32xf32>
    %17 = arith.addf %14, %16 : vector<8x32xf32>
    %c0_11 = arith.constant 0 : index
    %c0_12 = arith.constant 0 : index
    %18 = vector.load %arg10[%c0_11, %c0_12] : memref<8x32xf32, #tpu.memory_space<vmem>>, vector<8x32xf32>
    tpu.vector_store %arg10[%c0_11, %c0_12], %17 {strides = array<i32>} : memref<8x32xf32, #tpu.memory_space<vmem>>, vector<8x32xf32>,
    %c0_i32_13 = arith.constant 0 : i32
    %19 = arith.cmpi eq, %arg2, %c0_i32_13 : i32
    %20 = arith.extui %19 : i1 to i32
    %c0_i32_14 = arith.constant 0 : i32
    %21 = arith.cmpi ne, %20, %c0_i32_14 : i32
    scf.if %21 {
      %c0_15 = arith.constant 0 : index
      %c0_16 = arith.constant 0 : index
      %22 = vector.load %arg10[%c0_15, %c0_16] : memref<8x32xf32, #tpu.memory_space<vmem>>, vector<8x32xf32>
      %c0_17 = arith.constant 0 : index
      %c0_18 = arith.constant 0 : index
      %23 = vector.load %arg7[%c0_17, %c0_18] : memref<1x32xf32, #tpu.memory_space<vmem>>, vector<1x32xf32>
      %24 = vector.broadcast %23 : vector<1x32xf32> to vector<8x32xf32>
      %25 = arith.mulf %22, %24 : vector<8x32xf32>
      %c0_19 = arith.constant 0 : index
      %c0_20 = arith.constant 0 : index
      %26 = vector.load %arg8[%c0_19, %c0_20] : memref<1x32xf32, #tpu.memory_space<vmem>>, vector<1x32xf32>
      %27 = vector.broadcast %26 : vector<1x32xf32> to vector<8x32xf32>
      %28 = arith.addf %25, %27 : vector<8x32xf32>
      %cst_21 = arith.constant 0.000000e+00 : f32
      %29 = vector.broadcast %cst_21 : f32 to vector<8x32xf32>
      %30 = arith.maximumf %28, %29 : vector<8x32xf32>
      %31 = arith.truncf %30 : vector<8x32xf32> to vector<8x32xbf16>
      %c0_22 = arith.constant 0 : index
      %c0_23 = arith.constant 0 : index
      %32 = vector.load %arg9[%c0_22, %c0_23] : memref<8x32xbf16, #tpu.memory_space<vmem>>, vector<8x32xbf16>
      tpu.vector_store %arg9[%c0_22, %c0_23], %31 {strides = array<i32>} : memref<8x32xbf16, #tpu.memory_space<vmem>>, vector<8x32xbf16>,
    } else {
    }
    return
  }
  func.func @transform_0(%arg0: i32, %arg1: i32, %arg2: i32) -> (i32, i32) {
    %c0_i32 = arith.constant 0 : i32
    return %arg0, %arg2 : i32, i32
  }
  func.func @transform_1(%arg0: i32, %arg1: i32, %arg2: i32) -> (i32, i32) {
    %c0_i32 = arith.constant 0 : i32
    return %arg2, %arg1 : i32, i32
  }
  func.func @transform_2(%arg0: i32, %arg1: i32, %arg2: i32) -> (i32, i32) {
    %c0_i32 = arith.constant 0 : i32
    %c0_i32_0 = arith.constant 0 : i32
    return %c0_i32, %arg2 : i32, i32
  }
  func.func @transform_3(%arg0: i32, %arg1: i32, %arg2: i32) -> (i32, i32) {
    %c0_i32 = arith.constant 0 : i32
    %c0_i32_0 = arith.constant 0 : i32
    return %c0_i32, %arg2 : i32, i32
  }
  func.func @transform_4(%arg0: i32, %arg1: i32, %arg2: i32) -> (i32, i32) {
    %c0_i32 = arith.constant 0 : i32
    %c0_i32_0 = arith.constant 0 : i32
    return %c0_i32, %arg1 : i32, i32
  }
  func.func @transform_5(%arg0: i32, %arg1: i32, %arg2: i32) -> (i32, i32) {
    %c0_i32 = arith.constant 0 : i32
    %c0_i32_0 = arith.constant 0 : i32
    return %c0_i32, %arg1 : i32, i32
  }
  func.func @transform_6(%arg0: i32, %arg1: i32, %arg2: i32) -> (i32, i32) {
    %c0_i32 = arith.constant 0 : i32
    return %arg0, %arg1 : i32, i32
  }
}

module attributes {stable_mosaic.version = 11 : i64} {
  func.func @_matmul_kernel(%arg0: i32, %arg1: i32, %arg2: i32, %arg3: memref<8x256xbf16, #tpu.memory_space<vmem>>, %arg4: memref<256x8xbf16, #tpu.memory_space<vmem>>, %arg5: memref<8x8xbf16, #tpu.memory_space<vmem>>, %arg6: memref<8x8xf32, #tpu.memory_space<vmem>>) attributes {dimension_semantics = [#tpu.dimension_semantics<parallel>, #tpu.dimension_semantics<parallel>, #tpu.dimension_semantics<arbitrary>], iteration_bounds = array<i64: 1, 1, 2>, scalar_prefetch = 0 : i64, scratch_operands = 1 : i64, tpu.core_type = #tpu.core_type<tc>, window_params = [{transform_indices = @transform_0, window_bounds = array<i64: 8, 256>}, {transform_indices = @transform_1, window_bounds = array<i64: 256, 8>}, {transform_indices = @transform_2, window_bounds = array<i64: 8, 8>}]} {
    %c0_i32 = arith.constant 0 : i32
    %0 = arith.cmpi eq, %arg2, %c0_i32 : i32
    %1 = arith.extui %0 : i1 to i32
    %c0_i32_0 = arith.constant 0 : i32
    %2 = arith.cmpi ne, %1, %c0_i32_0 : i32
    scf.if %2 {
      %cst_9 = arith.constant 0.000000e+00 : f32
      %12 = vector.broadcast %cst_9 : f32 to vector<8x8xf32>
      %c0_10 = arith.constant 0 : index
      %c0_11 = arith.constant 0 : index
      %13 = vector.load %arg6[%c0_10, %c0_11] : memref<8x8xf32, #tpu.memory_space<vmem>>, vector<8x8xf32>
      tpu.vector_store %arg6[%c0_10, %c0_11], %12 {strides = array<i32>} : memref<8x8xf32, #tpu.memory_space<vmem>>, vector<8x8xf32>,
    } else {
    }
    %c0 = arith.constant 0 : index
    %c0_1 = arith.constant 0 : index
    %3 = vector.load %arg3[%c0, %c0_1] : memref<8x256xbf16, #tpu.memory_space<vmem>>, vector<8x256xbf16>
    %c0_2 = arith.constant 0 : index
    %c0_3 = arith.constant 0 : index
    %4 = vector.load %arg6[%c0_2, %c0_3] : memref<8x8xf32, #tpu.memory_space<vmem>>, vector<8x8xf32>
    %c0_4 = arith.constant 0 : index
    %c0_5 = arith.constant 0 : index
    %5 = vector.load %arg4[%c0_4, %c0_5] : memref<256x8xbf16, #tpu.memory_space<vmem>>, vector<256x8xbf16>
    %cst = arith.constant dense<0.000000e+00> : vector<8x8xf32>
    %6 = tpu.matmul %3, %5, %cst {dimension_numbers = #tpu.dot_dimension_numbers<[1], [0], [0], [1], [0, 0, 1, 1], [], []>} : vector<8x256xbf16>, vector<256x8xbf16>, vector<8x8xf32> -> vector<8x8xf32>
    %7 = arith.addf %4, %6 : vector<8x8xf32>
    %c0_6 = arith.constant 0 : index
    %c0_7 = arith.constant 0 : index
    %8 = vector.load %arg6[%c0_6, %c0_7] : memref<8x8xf32, #tpu.memory_space<vmem>>, vector<8x8xf32>
    tpu.vector_store %arg6[%c0_6, %c0_7], %7 {strides = array<i32>} : memref<8x8xf32, #tpu.memory_space<vmem>>, vector<8x8xf32>,
    %c1_i32 = arith.constant 1 : i32
    %9 = arith.cmpi eq, %arg2, %c1_i32 : i32
    %10 = arith.extui %9 : i1 to i32
    %c0_i32_8 = arith.constant 0 : i32
    %11 = arith.cmpi ne, %10, %c0_i32_8 : i32
    scf.if %11 {
      %c0_9 = arith.constant 0 : index
      %c0_10 = arith.constant 0 : index
      %12 = vector.load %arg6[%c0_9, %c0_10] : memref<8x8xf32, #tpu.memory_space<vmem>>, vector<8x8xf32>
      %13 = arith.truncf %12 : vector<8x8xf32> to vector<8x8xbf16>
      %c0_11 = arith.constant 0 : index
      %c0_12 = arith.constant 0 : index
      %14 = vector.load %arg5[%c0_11, %c0_12] : memref<8x8xbf16, #tpu.memory_space<vmem>>, vector<8x8xbf16>
      tpu.vector_store %arg5[%c0_11, %c0_12], %13 {strides = array<i32>} : memref<8x8xbf16, #tpu.memory_space<vmem>>, vector<8x8xbf16>,
    } else {
    }
    return
  }
  func.func @transform_0(%arg0: i32, %arg1: i32, %arg2: i32) -> (i32, i32) {
    %c0_i32 = arith.constant 0 : i32
    return %arg0, %arg2 : i32, i32
  }
  func.func @transform_1(%arg0: i32, %arg1: i32, %arg2: i32) -> (i32, i32) {
    %c0_i32 = arith.constant 0 : i32
    return %arg2, %arg1 : i32, i32
  }
  func.func @transform_2(%arg0: i32, %arg1: i32, %arg2: i32) -> (i32, i32) {
    %c0_i32 = arith.constant 0 : i32
    return %arg0, %arg1 : i32, i32
  }
}

module attributes {stable_mosaic.version = 11 : i64} {
  func.func @_matmul_kernel(%arg0: i32, %arg1: i32, %arg2: i32, %arg3: memref<8x24xbf16, #tpu.memory_space<vmem>>, %arg4: memref<24x32xbf16, #tpu.memory_space<vmem>>, %arg5: memref<1x24xf32, #tpu.memory_space<vmem>>, %arg6: memref<1x24xf32, #tpu.memory_space<vmem>>, %arg7: memref<1x32xf32, #tpu.memory_space<vmem>>, %arg8: memref<1x32xf32, #tpu.memory_space<vmem>>, %arg9: memref<8x32xbf16, #tpu.memory_space<vmem>>, %arg10: memref<8x32xf32, #tpu.memory_space<vmem>>) attributes {dimension_semantics = [#tpu.dimension_semantics<parallel>, #tpu.dimension_semantics<parallel>, #tpu.dimension_semantics<arbitrary>], iteration_bounds = array<i64: 1, 1, 1>, scalar_prefetch = 0 : i64, scratch_operands = 1 : i64, tpu.core_type = #tpu.core_type<tc>, window_params = [{transform_indices = @transform_0, window_bounds = array<i64: 8, 24>}, {transform_indices = @transform_1, window_bounds = array<i64: 24, 32>}, {transform_indices = @transform_2, window_bounds = array<i64: 1, 24>}, {transform_indices = @transform_3, window_bounds = array<i64: 1, 24>}, {transform_indices = @transform_4, window_bounds = array<i64: 1, 32>}, {transform_indices = @transform_5, window_bounds = array<i64: 1, 32>}, {transform_indices = @transform_6, window_bounds = array<i64: 8, 32>}]} {
    %c0_i32 = arith.constant 0 : i32
    %0 = arith.cmpi eq, %arg2, %c0_i32 : i32
    %1 = arith.extui %0 : i1 to i32
    %c0_i32_0 = arith.constant 0 : i32
    %2 = arith.cmpi ne, %1, %c0_i32_0 : i32
    scf.if %2 {
      %cst_15 = arith.constant 0.000000e+00 : f32
      %22 = vector.broadcast %cst_15 : f32 to vector<8x32xf32>
      %c0_16 = arith.constant 0 : index
      %c0_17 = arith.constant 0 : index
      %23 = vector.load %arg10[%c0_16, %c0_17] : memref<8x32xf32, #tpu.memory_space<vmem>>, vector<8x32xf32>
      tpu.vector_store %arg10[%c0_16, %c0_17], %22 {strides = array<i32>} : memref<8x32xf32, #tpu.memory_space<vmem>>, vector<8x32xf32>,
    } else {
    }
    %c0 = arith.constant 0 : index
    %c0_1 = arith.constant 0 : index
    %3 = vector.load %arg3[%c0, %c0_1] : memref<8x24xbf16, #tpu.memory_space<vmem>>, vector<8x24xbf16>
    %4 = arith.extf %3 : vector<8x24xbf16> to vector<8x24xf32>
    %c0_2 = arith.constant 0 : index
    %c0_3 = arith.constant 0 : index
    %5 = vector.load %arg5[%c0_2, %c0_3] : memref<1x24xf32, #tpu.memory_space<vmem>>, vector<1x24xf32>
    %6 = vector.broadcast %5 : vector<1x24xf32> to vector<8x24xf32>
    %7 = arith.mulf %4, %6 : vector<8x24xf32>
    %c0_4 = arith.constant 0 : index
    %c0_5 = arith.constant 0 : index
    %8 = vector.load %arg6[%c0_4, %c0_5] : memref<1x24xf32, #tpu.memory_space<vmem>>, vector<1x24xf32>
    %9 = vector.broadcast %8 : vector<1x24xf32> to vector<8x24xf32>
    %10 = arith.addf %7, %9 : vector<8x24xf32>
    %cst = arith.constant 0.000000e+00 : f32
    %11 = vector.broadcast %cst : f32 to vector<8x24xf32>
    %12 = arith.maximumf %10, %11 : vector<8x24xf32>
    %13 = arith.truncf %12 : vector<8x24xf32> to vector<8x24xbf16>
    %c0_6 = arith.constant 0 : index
    %c0_7 = arith.constant 0 : index
    %14 = vector.load %arg10[%c0_6, %c0_7] : memref<8x32xf32, #tpu.memory_space<vmem>>, vector<8x32xf32>
    %c0_8 = arith.constant 0 : index
    %c0_9 = arith.constant 0 : index
    %15 = vector.load %arg4[%c0_8, %c0_9] : memref<24x32xbf16, #tpu.memory_space<vmem>>, vector<24x32xbf16>
    %cst_10 = arith.constant dense<0.000000e+00> : vector<8x32xf32>
    %16 = tpu.matmul %13, %15, %cst_10 {dimension_numbers = #tpu.dot_dimension_numbers<[1], [0], [0], [1], [0, 0, 1, 1], [], []>} : vector<8x24xbf16>, vector<24x32xbf16>, vector<8x32xf32> -> vector<8x32xf32>
    %17 = arith.addf %14, %16 : vector<8x32xf32>
    %c0_11 = arith.constant 0 : index
    %c0_12 = arith.constant 0 : index
    %18 = vector.load %arg10[%c0_11, %c0_12] : memref<8x32xf32, #tpu.memory_space<vmem>>, vector<8x32xf32>
    tpu.vector_store %arg10[%c0_11, %c0_12], %17 {strides = array<i32>} : memref<8x32xf32, #tpu.memory_space<vmem>>, vector<8x32xf32>,
    %c0_i32_13 = arith.constant 0 : i32
    %19 = arith.cmpi eq, %arg2, %c0_i32_13 : i32
    %20 = arith.extui %19 : i1 to i32
    %c0_i32_14 = arith.constant 0 : i32
    %21 = arith.cmpi ne, %20, %c0_i32_14 : i32
    scf.if %21 {
      %c0_15 = arith.constant 0 : index
      %c0_16 = arith.constant 0 : index
      %22 = vector.load %arg10[%c0_15, %c0_16] : memref<8x32xf32, #tpu.memory_space<vmem>>, vector<8x32xf32>
      %c0_17 = arith.constant 0 : index
      %c0_18 = arith.constant 0 : index
      %23 = vector.load %arg7[%c0_17, %c0_18] : memref<1x32xf32, #tpu.memory_space<vmem>>, vector<1x32xf32>
      %24 = vector.broadcast %23 : vector<1x32xf32> to vector<8x32xf32>
      %25 = arith.mulf %22, %24 : vector<8x32xf32>
      %c0_19 = arith.constant 0 : index
      %c0_20 = arith.constant 0 : index
      %26 = vector.load %arg8[%c0_19, %c0_20] : memref<1x32xf32, #tpu.memory_space<vmem>>, vector<1x32xf32>
      %27 = vector.broadcast %26 : vector<1x32xf32> to vector<8x32xf32>
      %28 = arith.addf %25, %27 : vector<8x32xf32>
      %cst_21 = arith.constant 0.000000e+00 : f32
      %29 = vector.broadcast %cst_21 : f32 to vector<8x32xf32>
      %30 = arith.maximumf %28, %29 : vector<8x32xf32>
      %31 = arith.truncf %30 : vector<8x32xf32> to vector<8x32xbf16>
      %c0_22 = arith.constant 0 : index
      %c0_23 = arith.constant 0 : index
      %32 = vector.load %arg9[%c0_22, %c0_23] : memref<8x32xbf16, #tpu.memory_space<vmem>>, vector<8x32xbf16>
      tpu.vector_store %arg9[%c0_22, %c0_23], %31 {strides = array<i32>} : memref<8x32xbf16, #tpu.memory_space<vmem>>, vector<8x32xbf16>,
    } else {
    }
    return
  }
  func.func @transform_0(%arg0: i32, %arg1: i32, %arg2: i32) -> (i32, i32) {
    %c0_i32 = arith.constant 0 : i32
    return %arg0, %arg2 : i32, i32
  }
  func.func @transform_1(%arg0: i32, %arg1: i32, %arg2: i32) -> (i32, i32) {
    %c0_i32 = arith.constant 0 : i32
    return %arg2, %arg1 : i32, i32
  }
  func.func @transform_2(%arg0: i32, %arg1: i32, %arg2: i32) -> (i32, i32) {
    %c0_i32 = arith.constant 0 : i32
    %c0_i32_0 = arith.constant 0 : i32
    return %c0_i32, %arg2 : i32, i32
  }
  func.func @transform_3(%arg0: i32, %arg1: i32, %arg2: i32) -> (i32, i32) {
    %c0_i32 = arith.constant 0 : i32
    %c0_i32_0 = arith.constant 0 : i32
    return %c0_i32, %arg2 : i32, i32
  }
  func.func @transform_4(%arg0: i32, %arg1: i32, %arg2: i32) -> (i32, i32) {
    %c0_i32 = arith.constant 0 : i32
    %c0_i32_0 = arith.constant 0 : i32
    return %c0_i32, %arg1 : i32, i32
  }
  func.func @transform_5(%arg0: i32, %arg1: i32, %arg2: i32) -> (i32, i32) {
    %c0_i32 = arith.constant 0 : i32
    %c0_i32_0 = arith.constant 0 : i32
    return %c0_i32, %arg1 : i32, i32
  }
  func.func @transform_6(%arg0: i32, %arg1: i32, %arg2: i32) -> (i32, i32) {
    %c0_i32 = arith.constant 0 : i32
    return %arg0, %arg1 : i32, i32
  }
}

module attributes {stable_mosaic.version = 11 : i64} {
  func.func @_matmul_kernel(%arg0: i32, %arg1: i32, %arg2: i32, %arg3: memref<8x32xbf16, #tpu.memory_space<vmem>>, %arg4: memref<32x16xbf16, #tpu.memory_space<vmem>>, %arg5: memref<1x32xf32, #tpu.memory_space<vmem>>, %arg6: memref<1x32xf32, #tpu.memory_space<vmem>>, %arg7: memref<8x16xbf16, #tpu.memory_space<vmem>>, %arg8: memref<8x16xf32, #tpu.memory_space<vmem>>) attributes {dimension_semantics = [#tpu.dimension_semantics<parallel>, #tpu.dimension_semantics<parallel>, #tpu.dimension_semantics<arbitrary>], iteration_bounds = array<i64: 1, 1, 1>, scalar_prefetch = 0 : i64, scratch_operands = 1 : i64, tpu.core_type = #tpu.core_type<tc>, window_params = [{transform_indices = @transform_0, window_bounds = array<i64: 8, 32>}, {transform_indices = @transform_1, window_bounds = array<i64: 32, 16>}, {transform_indices = @transform_2, window_bounds = array<i64: 1, 32>}, {transform_indices = @transform_3, window_bounds = array<i64: 1, 32>}, {transform_indices = @transform_4, window_bounds = array<i64: 8, 16>}]} {
    %c0_i32 = arith.constant 0 : i32
    %0 = arith.cmpi eq, %arg2, %c0_i32 : i32
    %1 = arith.extui %0 : i1 to i32
    %c0_i32_0 = arith.constant 0 : i32
    %2 = arith.cmpi ne, %1, %c0_i32_0 : i32
    scf.if %2 {
      %cst_15 = arith.constant 0.000000e+00 : f32
      %22 = vector.broadcast %cst_15 : f32 to vector<8x16xf32>
      %c0_16 = arith.constant 0 : index
      %c0_17 = arith.constant 0 : index
      %23 = vector.load %arg8[%c0_16, %c0_17] : memref<8x16xf32, #tpu.memory_space<vmem>>, vector<8x16xf32>
      tpu.vector_store %arg8[%c0_16, %c0_17], %22 {strides = array<i32>} : memref<8x16xf32, #tpu.memory_space<vmem>>, vector<8x16xf32>,
    } else {
    }
    %c0 = arith.constant 0 : index
    %c0_1 = arith.constant 0 : index
    %3 = vector.load %arg3[%c0, %c0_1] : memref<8x32xbf16, #tpu.memory_space<vmem>>, vector<8x32xbf16>
    %4 = arith.extf %3 : vector<8x32xbf16> to vector<8x32xf32>
    %c0_2 = arith.constant 0 : index
    %c0_3 = arith.constant 0 : index
    %5 = vector.load %arg5[%c0_2, %c0_3] : memref<1x32xf32, #tpu.memory_space<vmem>>, vector<1x32xf32>
    %6 = vector.broadcast %5 : vector<1x32xf32> to vector<8x32xf32>
    %7 = arith.mulf %4, %6 : vector<8x32xf32>
    %c0_4 = arith.constant 0 : index
    %c0_5 = arith.constant 0 : index
    %8 = vector.load %arg6[%c0_4, %c0_5] : memref<1x32xf32, #tpu.memory_space<vmem>>, vector<1x32xf32>
    %9 = vector.broadcast %8 : vector<1x32xf32> to vector<8x32xf32>
    %10 = arith.addf %7, %9 : vector<8x32xf32>
    %cst = arith.constant 0.000000e+00 : f32
    %11 = vector.broadcast %cst : f32 to vector<8x32xf32>
    %12 = arith.maximumf %10, %11 : vector<8x32xf32>
    %13 = arith.truncf %12 : vector<8x32xf32> to vector<8x32xbf16>
    %c0_6 = arith.constant 0 : index
    %c0_7 = arith.constant 0 : index
    %14 = vector.load %arg8[%c0_6, %c0_7] : memref<8x16xf32, #tpu.memory_space<vmem>>, vector<8x16xf32>
    %c0_8 = arith.constant 0 : index
    %c0_9 = arith.constant 0 : index
    %15 = vector.load %arg4[%c0_8, %c0_9] : memref<32x16xbf16, #tpu.memory_space<vmem>>, vector<32x16xbf16>
    %cst_10 = arith.constant dense<0.000000e+00> : vector<8x16xf32>
    %16 = tpu.matmul %13, %15, %cst_10 {dimension_numbers = #tpu.dot_dimension_numbers<[1], [0], [0], [1], [0, 0, 1, 1], [], []>} : vector<8x32xbf16>, vector<32x16xbf16>, vector<8x16xf32> -> vector<8x16xf32>
    %17 = arith.addf %14, %16 : vector<8x16xf32>
    %c0_11 = arith.constant 0 : index
    %c0_12 = arith.constant 0 : index
    %18 = vector.load %arg8[%c0_11, %c0_12] : memref<8x16xf32, #tpu.memory_space<vmem>>, vector<8x16xf32>
    tpu.vector_store %arg8[%c0_11, %c0_12], %17 {strides = array<i32>} : memref<8x16xf32, #tpu.memory_space<vmem>>, vector<8x16xf32>,
    %c0_i32_13 = arith.constant 0 : i32
    %19 = arith.cmpi eq, %arg2, %c0_i32_13 : i32
    %20 = arith.extui %19 : i1 to i32
    %c0_i32_14 = arith.constant 0 : i32
    %21 = arith.cmpi ne, %20, %c0_i32_14 : i32
    scf.if %21 {
      %c0_15 = arith.constant 0 : index
      %c0_16 = arith.constant 0 : index
      %22 = vector.load %arg8[%c0_15, %c0_16] : memref<8x16xf32, #tpu.memory_space<vmem>>, vector<8x16xf32>
      %23 = arith.truncf %22 : vector<8x16xf32> to vector<8x16xbf16>
      %c0_17 = arith.constant 0 : index
      %c0_18 = arith.constant 0 : index
      %24 = vector.load %arg7[%c0_17, %c0_18] : memref<8x16xbf16, #tpu.memory_space<vmem>>, vector<8x16xbf16>
      tpu.vector_store %arg7[%c0_17, %c0_18], %23 {strides = array<i32>} : memref<8x16xbf16, #tpu.memory_space<vmem>>, vector<8x16xbf16>,
    } else {
    }
    return
  }
  func.func @transform_0(%arg0: i32, %arg1: i32, %arg2: i32) -> (i32, i32) {
    %c0_i32 = arith.constant 0 : i32
    return %arg0, %arg2 : i32, i32
  }
  func.func @transform_1(%arg0: i32, %arg1: i32, %arg2: i32) -> (i32, i32) {
    %c0_i32 = arith.constant 0 : i32
    return %arg2, %arg1 : i32, i32
  }
  func.func @transform_2(%arg0: i32, %arg1: i32, %arg2: i32) -> (i32, i32) {
    %c0_i32 = arith.constant 0 : i32
    %c0_i32_0 = arith.constant 0 : i32
    return %c0_i32, %arg2 : i32, i32
  }
  func.func @transform_3(%arg0: i32, %arg1: i32, %arg2: i32) -> (i32, i32) {
    %c0_i32 = arith.constant 0 : i32
    %c0_i32_0 = arith.constant 0 : i32
    return %c0_i32, %arg2 : i32, i32
  }
  func.func @transform_4(%arg0: i32, %arg1: i32, %arg2: i32) -> (i32, i32) {
    %c0_i32 = arith.constant 0 : i32
    return %arg0, %arg1 : i32, i32
  }
}

module attributes {stable_mosaic.version = 11 : i64} {
  func.func @_head_kernel(%arg0: memref<2x1x32xbf16, #tpu.memory_space<vmem>>, %arg1: memref<1x1x32xf32, #tpu.memory_space<vmem>>, %arg2: memref<1x1x32xf32, #tpu.memory_space<vmem>>, %arg3: memref<32x128xf32, #tpu.memory_space<vmem>>, %arg4: memref<1x128xf32, #tpu.memory_space<vmem>>, %arg5: memref<2x128xf32, #tpu.memory_space<vmem>>) attributes {dimension_semantics = [], scalar_prefetch = 0 : i64, scratch_operands = 0 : i64, tpu.core_type = #tpu.core_type<tc>} {
    %c0 = arith.constant 0 : index
    %c0_0 = arith.constant 0 : index
    %c0_1 = arith.constant 0 : index
    %0 = vector.load %arg0[%c0, %c0_0, %c0_1] : memref<2x1x32xbf16, #tpu.memory_space<vmem>>, vector<2x1x32xbf16>
    %1 = arith.extf %0 : vector<2x1x32xbf16> to vector<2x1x32xf32>
    %c0_2 = arith.constant 0 : index
    %c0_3 = arith.constant 0 : index
    %c0_4 = arith.constant 0 : index
    %2 = vector.load %arg1[%c0_2, %c0_3, %c0_4] : memref<1x1x32xf32, #tpu.memory_space<vmem>>, vector<1x1x32xf32>
    %3 = vector.broadcast %2 : vector<1x1x32xf32> to vector<2x1x32xf32>
    %4 = arith.mulf %1, %3 : vector<2x1x32xf32>
    %c0_5 = arith.constant 0 : index
    %c0_6 = arith.constant 0 : index
    %c0_7 = arith.constant 0 : index
    %5 = vector.load %arg2[%c0_5, %c0_6, %c0_7] : memref<1x1x32xf32, #tpu.memory_space<vmem>>, vector<1x1x32xf32>
    %6 = vector.broadcast %5 : vector<1x1x32xf32> to vector<2x1x32xf32>
    %7 = arith.addf %4, %6 : vector<2x1x32xf32>
    %cst = arith.constant 0.000000e+00 : f32
    %8 = vector.broadcast %cst : f32 to vector<2x1x32xf32>
    %9 = arith.maximumf %7, %8 : vector<2x1x32xf32>
    %cst_8 = arith.constant dense<0.000000e+00> : vector<2x32xf32>
    %10 = vector.multi_reduction <add>, %9, %cst_8 [1] : vector<2x1x32xf32> to vector<2x32xf32>
    %cst_9 = arith.constant 1.000000e+00 : f32
    %11 = vector.broadcast %cst_9 : f32 to vector<2x32xf32>
    %12 = arith.mulf %10, %11 : vector<2x32xf32>
    %c0_10 = arith.constant 0 : index
    %c0_11 = arith.constant 0 : index
    %13 = vector.load %arg3[%c0_10, %c0_11] : memref<32x128xf32, #tpu.memory_space<vmem>>, vector<32x128xf32>
    %cst_12 = arith.constant dense<0.000000e+00> : vector<2x128xf32>
    %14 = tpu.matmul %12, %13, %cst_12 {dimension_numbers = #tpu.dot_dimension_numbers<[1], [0], [0], [1], [0, 0, 1, 1], [], []>} : vector<2x32xf32>, vector<32x128xf32>, vector<2x128xf32> -> vector<2x128xf32>
    %c0_13 = arith.constant 0 : index
    %c0_14 = arith.constant 0 : index
    %15 = vector.load %arg4[%c0_13, %c0_14] : memref<1x128xf32, #tpu.memory_space<vmem>>, vector<1x128xf32>
    %16 = vector.broadcast %15 : vector<1x128xf32> to vector<2x128xf32>
    %17 = arith.addf %14, %16 : vector<2x128xf32>
    %c0_15 = arith.constant 0 : index
    %c0_16 = arith.constant 0 : index
    %18 = vector.load %arg5[%c0_15, %c0_16] : memref<2x128xf32, #tpu.memory_space<vmem>>, vector<2x128xf32>
    tpu.vector_store %arg5[%c0_15, %c0_16], %17 {strides = array<i32>} : memref<2x128xf32, #tpu.memory_space<vmem>>, vector<2x128xf32>,
    return
  }
}

</mosaic_0001>

<bundles_post_ra>
// kernel: densenet_classifier_forward.26
= control target key start
LH: loop header
LB: loop body
LE: loop exit
PB: predicated region body
PF: predicated region fallthrough
CT: control target
= control target key end

     0   :  { %vm296_vm0 = vcmask 130048   ;;  %vm633_vm1 = vcmask 125952   ;;  %s1619_s0 = inlined_call_operand.vmem [shape: bf16[9,128,16], index: 0, kind: input, shape index: {}]   ;;  %s1620_s1 = inlined_call_operand.vmem [shape: bf16[128,16], index: 1, kind: output, shape index: {}]  }
   0x1   :  { %v687_v0 = vld [vmem:[%s1619_s0] sm:$0xff]   ;;  %v1098_v35 = vld [vmem:[%s1619_s0 + $0x8] sm:$0xff]  }
   0x2   :  { %v981_v1 = vld [vmem:[%s1619_s0 + $0x40] sm:$0xff]   ;;  %v688_v3 = vunpack.c.l.bf16 %v687_v0  ;;  %v689_v19 = vunpack.c.h.bf16 %v687_v0  ;;  %v1103_v36 = vld [vmem:[%s1619_s0 + $0x48] sm:$0xff]   ;;  %v692_v49 = vunpack.c.l.bf16 %v1098_v35 }
   0x3   :  { %v989_v2 = vld [vmem:[%s1619_s0 + $0x80] sm:$0xff]   ;;  %v720_v4 = vunpack.c.l.bf16 %v981_v1  ;;  %v721_v20 = vunpack.c.h.bf16 %v981_v1  ;;  %v990_v41 = vld [vmem:[%s1619_s0 + $0x88] sm:$0xff]   ;;  %v724_v50 = vunpack.c.l.bf16 %v1103_v36 }
   0x4   :  { %v752_v5 = vunpack.c.l.bf16 %v989_v2  ;;  %v997_v6 = vld [vmem:[%s1619_s0 + $0xc0] sm:$0xff]   ;;  %v297_v16 = vsel %vm296_vm0, %v688_v3, -inf  ;;  %v753_v25 = vunpack.c.h.bf16 %v989_v2  ;;  %v314_v32 = vsel %vm296_vm0, %v689_v19, -inf  ;;  %v1111_v42 = vld [vmem:[%s1619_s0 + $0xc8] sm:$0xff]  }
   0x5   :  { %v1005_v7 = vld [vmem:[%s1619_s0 + $0x100] sm:$0xff]   ;;  %v784_v9 = vunpack.c.l.bf16 %v997_v6  ;;  %v298_v17 = vsel %vm296_vm0, %v720_v4, -inf  ;;  %v785_v26 = vunpack.c.h.bf16 %v997_v6  ;;  %v315_v33 = vsel %vm296_vm0, %v721_v20, -inf  ;;  %v1121_v51 = vld [vmem:[%s1619_s0 + $0x108] sm:$0xff]  }
   0x6   :  { %v1013_v8 = vld [vmem:[%s1619_s0 + $0x140] sm:$0xff]   ;;  %v816_v12 = vunpack.c.l.bf16 %v1005_v7  ;;  %v300_v18 = vsel %vm296_vm0, %v752_v5, -inf  ;;  %v299_v22 = vmax.f32 %v297_v16, %v298_v17  ;;  %v817_v31 = vunpack.c.h.bf16 %v1005_v7  ;;  %v1131_v60 = vld [vmem:[%s1619_s0 + $0x148] sm:$0xff]  }
   0x7   :  { %v1021_v10 = vld [vmem:[%s1619_s0 + $0x180] sm:$0xff]   ;;  %v848_v13 = vunpack.c.l.bf16 %v1013_v8  ;;  %v302_v24 = vsel %vm296_vm0, %v784_v9, -inf  ;;  %v317_v34 = vsel %vm296_vm0, %v753_v25, -inf  ;;  %v849_v38 = vunpack.c.h.bf16 %v1013_v8  ;;  %v1136_v61 = vld [vmem:[%s1619_s0 + $0x188] sm:$0xff]  }
   0x8   :  { %v1029_v11 = vld [vmem:[%s1619_s0 + $0x1c0] sm:$0xff]   ;;  %v880_v14 = vunpack.c.l.bf16 %v1021_v10  ;;  %v301_v27 = vmax.f32 %v299_v22, %v300_v18  ;;  %v304_v28 = vsel %vm296_vm0, %v816_v12, -inf  ;;  %v881_v39 = vunpack.c.h.bf16 %v1021_v10  ;;  %v1141_v62 = vld [vmem:[%s1619_s0 + $0x1c8] sm:$0xff]  }
   0x9   :  { %v1082_v15 = vld [vmem:[%s1619_s0 + $0x200] sm:$0xff]   ;;  %v912_v21 = vunpack.c.l.bf16 %v1029_v11  ;;  %v306_v29 = vsel %vm296_vm0, %v848_v13, -inf  ;;  %v316_v40 = vmax.f32 %v314_v32, %v315_v33  ;;  %v913_v45 = vunpack.c.h.bf16 %v1029_v11  ;;  %v1154_v10 = vld [vmem:[%s1619_s0 + $0x208] sm:$0xff]   ;;  %v1170_v32 = vld [vmem:[%s1619_s0 + $0x10] sm:$0xff]  }
   0xa   :  { %v944_v23 = vunpack.c.l.bf16 %v1082_v15  ;;  %v308_v30 = vsel %vm296_vm0, %v880_v14, -inf  ;;  %v303_v37 = vmax.f32 %v301_v27, %v302_v24  ;;  %v319_v46 = vsel %vm296_vm0, %v785_v26, -inf }
   0xb   :  { %v310_v43 = vsel %vm296_vm0, %v912_v21, -inf  ;;  %v318_v48 = vmax.f32 %v316_v40, %v317_v34  ;;  %v945_v52 = vunpack.c.h.bf16 %v1082_v15  ;;  %v321_v53 = vsel %vm296_vm0, %v817_v31, -inf }
   0xc   :  { %v312_v44 = vsel %vm296_vm0, %v944_v23, -inf  ;;  %v305_v47 = vmax.f32 %v303_v37, %v304_v28  ;;  %v756_v54 = vunpack.c.l.bf16 %v990_v41  ;;  %v788_v55 = vunpack.c.l.bf16 %v1111_v42  ;;  %v983_v37 = vld [vmem:[%s1619_s0 + $0x50] sm:$0xff]  }
   0xd   :  { %v320_v57 = vmax.f32 %v318_v48, %v319_v46  ;;  %v323_v58 = vsel %vm296_vm0, %v849_v38, -inf  ;;  %v325_v59 = vsel %vm296_vm0, %v881_v39, -inf  ;;  %v820_v63 = vunpack.c.l.bf16 %v1121_v51 }
   0xe   :  { %v307_v56 = vmax.f32 %v305_v47, %v306_v29  ;;  %v331_v0 = vsel %vm296_vm0, %v692_v49, -inf  ;;  %v332_v1 = vsel %vm296_vm0, %v724_v50, -inf  ;;  %v334_v2 = vsel %vm296_vm0, %v756_v54, -inf }
   0xf   :  { %v322_v4 = vmax.f32 %v320_v57, %v321_v53  ;;  %v327_v5 = vsel %vm296_vm0, %v913_v45, -inf  ;;  %v333_v6 = vmax.f32 %v331_v0, %v332_v1  ;;  %v852_v7 = vunpack.c.l.bf16 %v1131_v60  ;;  %v1222_v0 = vld [vmem:[%s1619_s0 + $0x1d0] sm:$0xff]  }
  0x10   :  { %v309_v3 = vmax.f32 %v307_v56, %v308_v30  ;;  %v884_v8 = vunpack.c.l.bf16 %v1136_v61  ;;  %v916_v9 = vunpack.c.l.bf16 %v1141_v62  ;;  %v336_v11 = vsel %vm296_vm0, %v788_v55, -inf }
  0x11   :  { %v324_v13 = vmax.f32 %v322_v4, %v323_v58  ;;  %v329_v14 = vsel %vm296_vm0, %v945_v52, -inf  ;;  %v335_v15 = vmax.f32 %v333_v6, %v334_v2  ;;  %v338_v16 = vsel %vm296_vm0, %v820_v63, -inf  ;;  %v1199_v52 = vld [vmem:[%s1619_s0 + $0x110] sm:$0xff]  }
  0x12   :  { %v311_v12 = vmax.f32 %v309_v3, %v310_v43  ;;  %v693_v17 = vunpack.c.h.bf16 %v1098_v35  ;;  %v725_v18 = vunpack.c.h.bf16 %v1103_v36  ;;  %v757_v19 = vunpack.c.h.bf16 %v990_v41  ;;  %v1190_v43 = vld [vmem:[%s1619_s0 + $0xd0] sm:$0xff]  }
  0x13   :  { %v326_v21 = vmax.f32 %v324_v13, %v325_v59  ;;  %v948_v22 = vunpack.c.l.bf16 %v1154_v10  ;;  %v337_v23 = vmax.f32 %v335_v15, %v336_v11  ;;  %v340_v24 = vsel %vm296_vm0, %v852_v7, -inf  ;;  %v1039_v11 = vld [vmem:[%s1619_s0 + $0x210] sm:$0xff]  }
  0x14   :  { %v313_v20 = vmax.f32 %v311_v12, %v312_v44  ;;  %v342_v25 = vsel %vm296_vm0, %v884_v8, -inf  ;;  %v344_v26 = vsel %vm296_vm0, %v916_v9, -inf  ;;  %v789_v27 = vunpack.c.h.bf16 %v1111_v42  ;;  %v991_v42 = vld [vmem:[%s1619_s0 + $0x90] sm:$0xff]  }
  0x15   :  { %v328_v29 = vmax.f32 %v326_v21, %v327_v5  ;;  %v339_v30 = vmax.f32 %v337_v23, %v338_v16  ;;  %v348_v31 = vsel %vm296_vm0, %v693_v17, -inf  ;;  %v821_v33 = vunpack.c.h.bf16 %v1121_v51 }
  0x16   :  { %v670_v28 = vpack.c.bf16 %v313_v20, %v313_v20  ;;  %v853_v34 = vunpack.c.h.bf16 %v1131_v60  ;;  %v349_v35 = vsel %vm296_vm0, %v725_v18, -inf  ;;  %v351_v36 = vsel %vm296_vm0, %v757_v19, -inf }
  0x17   :  { %v330_v38 = vmax.f32 %v328_v29, %v329_v14  ;;  %v341_v39 = vmax.f32 %v339_v30, %v340_v24  ;;  %v885_v40 = vunpack.c.h.bf16 %v1136_v61  ;;  %v350_v41 = vmax.f32 %v348_v31, %v349_v35  ;;  %v1015_v61 = vld [vmem:[%s1619_s0 + $0x150] sm:$0xff]  }
  0x18   :  { %634 = vst.msk [vmem:[%s1620_s1] sm:$0xf] %vm633_vm1, %v670_v28  ;;  %v346_v44 = vsel %vm296_vm0, %v948_v22, -inf  ;;  %v917_v45 = vunpack.c.h.bf16 %v1141_v62  ;;  %v353_v46 = vsel %vm296_vm0, %v789_v27, -inf  ;;  %v696_v47 = vunpack.c.l.bf16 %v1170_v32  ;;  %v1216_v62 = vld [vmem:[%s1619_s0 + $0x190] sm:$0xff]  }
  0x19   :  { %v671_v48 = vpack.c.bf16 %v330_v38, %v330_v38  ;;  %v343_v49 = vmax.f32 %v341_v39, %v342_v25  ;;  %v352_v50 = vmax.f32 %v350_v41, %v351_v36  ;;  %v728_v51 = vunpack.c.l.bf16 %v983_v37  ;;  %v992_v39 = vld [vmem:[%s1619_s0 + $0x98] sm:$0xff]  }
  0x1a   :  { %v949_v53 = vunpack.c.h.bf16 %v1154_v10  ;;  %v355_v54 = vsel %vm296_vm0, %v821_v33, -inf  ;;  %v760_v55 = vunpack.c.l.bf16 %v991_v42  ;;  %v792_v56 = vunpack.c.l.bf16 %v1190_v43  ;;  %v976_v33 = vld [vmem:[%s1619_s0 + $0x18] sm:$0xff]  }
  0x1b   :  { %635 = vst.msk [vmem:[%s1620_s1 + $0x4] sm:$0xf] %vm633_vm1, %v671_v48  ;;  %v345_v57 = vmax.f32 %v343_v49, %v344_v26  ;;  %v354_v58 = vmax.f32 %v352_v50, %v353_v46  ;;  %v357_v59 = vsel %vm296_vm0, %v853_v34, -inf  ;;  %v359_v60 = vsel %vm296_vm0, %v885_v40, -inf  ;;  %v984_v34 = vld [vmem:[%s1619_s0 + $0x58] sm:$0xff]  }
  0x1c   :  { %v824_v63 = vunpack.c.l.bf16 %v1199_v52  ;;  %v365_v1 = vsel %vm296_vm0, %v696_v47, -inf  ;;  %v366_v2 = vsel %vm296_vm0, %v728_v51, -inf  ;;  %v368_v3 = vsel %vm296_vm0, %v760_v55, -inf }
  0x1d   :  { %v347_v4 = vmax.f32 %v345_v57, %v346_v44  ;;  %v356_v5 = vmax.f32 %v354_v58, %v355_v54  ;;  %v361_v6 = vsel %vm296_vm0, %v917_v45, -inf  ;;  %v367_v7 = vmax.f32 %v365_v1, %v366_v2  ;;  %v1264_v44 = vld [vmem:[%s1619_s0 + $0xd8] sm:$0xff]  }
  0x1e   :  { %v363_v8 = vsel %vm296_vm0, %v949_v53, -inf  ;;  %v856_v9 = vunpack.c.l.bf16 %v1015_v61  ;;  %v888_v10 = vunpack.c.l.bf16 %v1216_v62  ;;  %v370_v12 = vsel %vm296_vm0, %v792_v56, -inf  ;;  %v1008_v53 = vld [vmem:[%s1619_s0 + $0x118] sm:$0xff]  }
  0x1f   :  { %v672_v13 = vpack.c.bf16 %v347_v4, %v347_v4  ;;  %v358_v14 = vmax.f32 %v356_v5, %v357_v59  ;;  %v920_v15 = vunpack.c.l.bf16 %v1222_v0  ;;  %v369_v16 = vmax.f32 %v367_v7, %v368_v3  ;;  %v1276_v58 = vld [vmem:[%s1619_s0 + $0x158] sm:$0xff]  }
  0x20   :  { %v372_v17 = vsel %vm296_vm0, %v824_v63, -inf  ;;  %v697_v18 = vunpack.c.h.bf16 %v1170_v32  ;;  %v729_v19 = vunpack.c.h.bf16 %v983_v37  ;;  %v761_v20 = vunpack.c.h.bf16 %v991_v42  ;;  %v1292_v63 = vld [vmem:[%s1619_s0 + $0x1d8] sm:$0xff]  }
  0x21   :  { %636 = vst.msk [vmem:[%s1620_s1 + $0x8] sm:$0xf] %vm633_vm1, %v672_v13  ;;  %v360_v21 = vmax.f32 %v358_v14, %v359_v60  ;;  %v952_v22 = vunpack.c.l.bf16 %v1039_v11  ;;  %v371_v23 = vmax.f32 %v369_v16, %v370_v12  ;;  %v793_v24 = vunpack.c.h.bf16 %v1190_v43  ;;  %v1304_v12 = vld [vmem:[%s1619_s0 + $0x218] sm:$0xff]  }
  0x22   :  { %v374_v25 = vsel %vm296_vm0, %v856_v9, -inf  ;;  %v376_v26 = vsel %vm296_vm0, %v888_v10, -inf  ;;  %v825_v27 = vunpack.c.h.bf16 %v1199_v52  ;;  %v382_v28 = vsel %vm296_vm0, %v697_v18, -inf }
  0x23   :  { %v362_v29 = vmax.f32 %v360_v21, %v361_v6  ;;  %v373_v30 = vmax.f32 %v371_v23, %v372_v17  ;;  %v383_v31 = vsel %vm296_vm0, %v729_v19, -inf  ;;  %v385_v32 = vsel %vm296_vm0, %v761_v20, -inf }
  0x24   :  { %v378_v35 = vsel %vm296_vm0, %v920_v15, -inf  ;;  %v857_v36 = vunpack.c.h.bf16 %v1015_v61  ;;  %v889_v37 = vunpack.c.h.bf16 %v1216_v62  ;;  %v384_v38 = vmax.f32 %v382_v28, %v383_v31  ;;  %v1287_v62 = vld [vmem:[%s1619_s0 + $0x198] sm:$0xff]  }
  0x25   :  { %v364_v40 = vmax.f32 %v362_v29, %v363_v8  ;;  %v375_v41 = vmax.f32 %v373_v30, %v374_v25  ;;  %v921_v42 = vunpack.c.h.bf16 %v1222_v0  ;;  %v387_v43 = vsel %vm296_vm0, %v793_v24, -inf }
  0x26   :  { %v953_v45 = vunpack.c.h.bf16 %v1039_v11  ;;  %v386_v46 = vmax.f32 %v384_v38, %v385_v32  ;;  %v700_v47 = vunpack.c.l.bf16 %v976_v33  ;;  %v732_v48 = vunpack.c.l.bf16 %v984_v34 }
  0x27   :  { %v673_v49 = vpack.c.bf16 %v364_v40, %v364_v40  ;;  %v377_v50 = vmax.f32 %v375_v41, %v376_v26  ;;  %v389_v51 = vsel %vm296_vm0, %v825_v27, -inf  ;;  %v764_v52 = vunpack.c.l.bf16 %v992_v39  ;;  %v1335_v41 = vld [vmem:[%s1619_s0 + $0xe0] sm:$0xff]  }
  0x28   :  { %v380_v54 = vsel %vm296_vm0, %v952_v22, -inf  ;;  %v388_v55 = vmax.f32 %v386_v46, %v387_v43  ;;  %v391_v56 = vsel %vm296_vm0, %v857_v36, -inf  ;;  %v796_v57 = vunpack.c.l.bf16 %v1264_v44  ;;  %v993_v36 = vld [vmem:[%s1619_s0 + $0xa0] sm:$0xff]  }
  0x29   :  { %637 = vst.msk [vmem:[%s1620_s1 + $0xc] sm:$0xf] %vm633_vm1, %v673_v49  ;;  %v379_v59 = vmax.f32 %v377_v50, %v378_v35  ;;  %v393_v60 = vsel %vm296_vm0, %v889_v37, -inf  ;;  %v395_v61 = vsel %vm296_vm0, %v921_v42, -inf  ;;  %v399_v0 = vsel %vm296_vm0, %v700_v47, -inf  ;;  %v985_v35 = vld [vmem:[%s1619_s0 + $0x60] sm:$0xff]  }
  0x2a   :  { %v390_v1 = vmax.f32 %v388_v55, %v389_v51  ;;  %v828_v2 = vunpack.c.l.bf16 %v1008_v53  ;;  %v400_v3 = vsel %vm296_vm0, %v732_v48, -inf  ;;  %v402_v4 = vsel %vm296_vm0, %v764_v52, -inf  ;;  %v1342_v46 = vld [vmem:[%s1619_s0 + $0x120] sm:$0xff]  }
  0x2b   :  { %v381_v5 = vmax.f32 %v379_v59, %v380_v54  ;;  %v397_v6 = vsel %vm296_vm0, %v953_v45, -inf  ;;  %v860_v7 = vunpack.c.l.bf16 %v1276_v58  ;;  %v401_v8 = vmax.f32 %v399_v0, %v400_v3  ;;  %v1349_v55 = vld [vmem:[%s1619_s0 + $0x160] sm:$0xff]  }
  0x2c   :  { %v392_v9 = vmax.f32 %v390_v1, %v391_v56  ;;  %v892_v10 = vunpack.c.l.bf16 %v1287_v62  ;;  %v924_v11 = vunpack.c.l.bf16 %v1292_v63  ;;  %v404_v13 = vsel %vm296_vm0, %v796_v57, -inf }
  0x2d   :  { %v674_v14 = vpack.c.bf16 %v381_v5, %v381_v5  ;;  %v403_v15 = vmax.f32 %v401_v8, %v402_v4  ;;  %v701_v16 = vunpack.c.h.bf16 %v976_v33  ;;  %v733_v17 = vunpack.c.h.bf16 %v984_v34  ;;  %v977_v34 = vld [vmem:[%s1619_s0 + $0x20] sm:$0xff]  }
  0x2e   :  { %v394_v18 = vmax.f32 %v392_v9, %v393_v60  ;;  %v406_v19 = vsel %vm296_vm0, %v828_v2, -inf  ;;  %v765_v20 = vunpack.c.h.bf16 %v992_v39  ;;  %v797_v21 = vunpack.c.h.bf16 %v1264_v44  ;;  %v1362_v60 = vld [vmem:[%s1619_s0 + $0x1a0] sm:$0xff]  }
  0x2f   :  { %638 = vst.msk [vmem:[%s1620_s1 + $0x10] sm:$0xf] %vm633_vm1, %v674_v14  ;;  %v956_v22 = vunpack.c.l.bf16 %v1304_v12  ;;  %v405_v23 = vmax.f32 %v403_v15, %v404_v13  ;;  %v408_v24 = vsel %vm296_vm0, %v860_v7, -inf  ;;  %v829_v25 = vunpack.c.h.bf16 %v1008_v53  ;;  %v1041_v9 = vld [vmem:[%s1619_s0 + $0x220] sm:$0xff]  }
  0x30   :  { %v396_v26 = vmax.f32 %v394_v18, %v395_v61  ;;  %v410_v27 = vsel %vm296_vm0, %v892_v10, -inf  ;;  %v416_v28 = vsel %vm296_vm0, %v701_v16, -inf  ;;  %v417_v29 = vsel %vm296_vm0, %v733_v17, -inf }
  0x31   :  { %v407_v30 = vmax.f32 %v405_v23, %v406_v19  ;;  %v412_v31 = vsel %vm296_vm0, %v924_v11, -inf  ;;  %v418_v32 = vmax.f32 %v416_v28, %v417_v29  ;;  %v419_v33 = vsel %vm296_vm0, %v765_v20, -inf }
  0x32   :  { %v398_v37 = vmax.f32 %v396_v26, %v397_v6  ;;  %v861_v38 = vunpack.c.h.bf16 %v1276_v58  ;;  %v893_v39 = vunpack.c.h.bf16 %v1287_v62  ;;  %v421_v40 = vsel %vm296_vm0, %v797_v21, -inf }
  0x33   :  { %v409_v42 = vmax.f32 %v407_v30, %v408_v24  ;;  %v925_v43 = vunpack.c.h.bf16 %v1292_v63  ;;  %v420_v44 = vmax.f32 %v418_v32, %v419_v33  ;;  %v423_v45 = vsel %vm296_vm0, %v829_v25, -inf  ;;  %v1367_v63 = vld [vmem:[%s1619_s0 + $0x1e0] sm:$0xff]  }
  0x34   :  { %v675_v47 = vpack.c.bf16 %v398_v37, %v398_v37  ;;  %v704_v48 = vunpack.c.l.bf16 %v977_v34  ;;  %v736_v49 = vunpack.c.l.bf16 %v985_v35  ;;  %v768_v50 = vunpack.c.l.bf16 %v993_v36  ;;  %v994_v37 = vld [vmem:[%s1619_s0 + $0xa8] sm:$0xff]  }
  0x35   :  { %v411_v51 = vmax.f32 %v409_v42, %v410_v27  ;;  %v414_v52 = vsel %vm296_vm0, %v956_v22, -inf  ;;  %v422_v53 = vmax.f32 %v420_v44, %v421_v40  ;;  %v800_v54 = vunpack.c.l.bf16 %v1335_v41  ;;  %v1410_v42 = vld [vmem:[%s1619_s0 + $0xe8] sm:$0xff]  }
  0x36   :  { %639 = vst.msk [vmem:[%s1620_s1 + $0x14] sm:$0xf] %vm633_vm1, %v675_v47  ;;  %v957_v56 = vunpack.c.h.bf16 %v1304_v12  ;;  %v425_v57 = vsel %vm296_vm0, %v861_v38, -inf  ;;  %v427_v58 = vsel %vm296_vm0, %v893_v39, -inf  ;;  %v832_v59 = vunpack.c.l.bf16 %v1342_v46 }
  0x37   :  { %v413_v61 = vmax.f32 %v411_v51, %v412_v31  ;;  %v424_v62 = vmax.f32 %v422_v53, %v423_v45  ;;  %v433_v0 = vsel %vm296_vm0, %v704_v48, -inf  ;;  %v434_v1 = vsel %vm296_vm0, %v736_v49, -inf  ;;  %v978_v31 = vld [vmem:[%s1619_s0 + $0x28] sm:$0xff]  }
  0x38   :  { %v429_v2 = vsel %vm296_vm0, %v925_v43, -inf  ;;  %v864_v3 = vunpack.c.l.bf16 %v1349_v55  ;;  %v435_v4 = vmax.f32 %v433_v0, %v434_v1  ;;  %v436_v5 = vsel %vm296_vm0, %v768_v50, -inf  ;;  %v1010_v51 = vld [vmem:[%s1619_s0 + $0x128] sm:$0xff]  }
  0x39   :  { %v415_v6 = vmax.f32 %v413_v61, %v414_v52  ;;  %v426_v7 = vmax.f32 %v424_v62, %v425_v57  ;;  %v896_v8 = vunpack.c.l.bf16 %v1362_v60  ;;  %v438_v10 = vsel %vm296_vm0, %v800_v54, -inf  ;;  %v1438_v61 = vld [vmem:[%s1619_s0 + $0x1e8] sm:$0xff]  }
  0x3a   :  { %v928_v11 = vunpack.c.l.bf16 %v1367_v63  ;;  %v437_v12 = vmax.f32 %v435_v4, %v436_v5  ;;  %v440_v13 = vsel %vm296_vm0, %v832_v59, -inf  ;;  %v705_v14 = vunpack.c.h.bf16 %v977_v34 }
  0x3b   :  { %v676_v15 = vpack.c.bf16 %v415_v6, %v415_v6  ;;  %v428_v16 = vmax.f32 %v426_v7, %v427_v58  ;;  %v737_v17 = vunpack.c.h.bf16 %v985_v35  ;;  %v769_v18 = vunpack.c.h.bf16 %v993_v36  ;;  %v986_v36 = vld [vmem:[%s1619_s0 + $0x68] sm:$0xff]  }
  0x3c   :  { %v431_v19 = vsel %vm296_vm0, %v957_v56, -inf  ;;  %v960_v20 = vunpack.c.l.bf16 %v1041_v9  ;;  %v439_v21 = vmax.f32 %v437_v12, %v438_v10  ;;  %v801_v22 = vunpack.c.h.bf16 %v1335_v41  ;;  %v1426_v56 = vld [vmem:[%s1619_s0 + $0x168] sm:$0xff]  }
  0x3d   :  { %640 = vst.msk [vmem:[%s1620_s1 + $0x18] sm:$0xf] %vm633_vm1, %v676_v15  ;;  %v430_v23 = vmax.f32 %v428_v16, %v429_v2  ;;  %v442_v24 = vsel %vm296_vm0, %v864_v3, -inf  ;;  %v444_v25 = vsel %vm296_vm0, %v896_v8, -inf  ;;  %v833_v26 = vunpack.c.h.bf16 %v1342_v46  ;;  %v1450_v10 = vld [vmem:[%s1619_s0 + $0x228] sm:$0xff]  }
  0x3e   :  { %v441_v27 = vmax.f32 %v439_v21, %v440_v13  ;;  %v450_v28 = vsel %vm296_vm0, %v705_v14, -inf  ;;  %v451_v29 = vsel %vm296_vm0, %v737_v17, -inf  ;;  %v453_v30 = vsel %vm296_vm0, %v769_v18, -inf }
  0x3f   :  { %v432_v32 = vmax.f32 %v430_v23, %v431_v19  ;;  %v446_v33 = vsel %vm296_vm0, %v928_v11, -inf  ;;  %v865_v34 = vunpack.c.h.bf16 %v1349_v55  ;;  %v452_v35 = vmax.f32 %v450_v28, %v451_v29 }
  0x40   :  { %v443_v38 = vmax.f32 %v441_v27, %v442_v24  ;;  %v897_v39 = vunpack.c.h.bf16 %v1362_v60  ;;  %v929_v40 = vunpack.c.h.bf16 %v1367_v63  ;;  %v455_v41 = vsel %vm296_vm0, %v801_v22, -inf  ;;  %v1433_v60 = vld [vmem:[%s1619_s0 + $0x1a8] sm:$0xff]  }
  0x41   :  { %v677_v43 = vpack.c.bf16 %v432_v32, %v432_v32  ;;  %v961_v44 = vunpack.c.h.bf16 %v1041_v9  ;;  %v454_v45 = vmax.f32 %v452_v35, %v453_v30  ;;  %v708_v46 = vunpack.c.l.bf16 %v978_v31  ;;  %v979_v32 = vld [vmem:[%s1619_s0 + $0x30] sm:$0xff]  }
  0x42   :  { %v445_v47 = vmax.f32 %v443_v38, %v444_v25  ;;  %v457_v48 = vsel %vm296_vm0, %v833_v26, -inf  ;;  %v740_v49 = vunpack.c.l.bf16 %v986_v36  ;;  %v772_v50 = vunpack.c.l.bf16 %v994_v37 }
  0x43   :  { %641 = vst.msk [vmem:[%s1620_s1 + $0x1c] sm:$0xf] %vm633_vm1, %v677_v43  ;;  %v448_v52 = vsel %vm296_vm0, %v960_v20, -inf  ;;  %v456_v53 = vmax.f32 %v454_v45, %v455_v41  ;;  %v459_v54 = vsel %vm296_vm0, %v865_v34, -inf  ;;  %v804_v55 = vunpack.c.l.bf16 %v1410_v42  ;;  %v995_v34 = vld [vmem:[%s1619_s0 + $0xb0] sm:$0xff]  }
  0x44   :  { %v447_v57 = vmax.f32 %v445_v47, %v446_v33  ;;  %v461_v58 = vsel %vm296_vm0, %v897_v39, -inf  ;;  %v463_v59 = vsel %vm296_vm0, %v929_v40, -inf  ;;  %v467_v62 = vsel %vm296_vm0, %v708_v46, -inf  ;;  %v987_v33 = vld [vmem:[%s1619_s0 + $0x70] sm:$0xff]  }
  0x45   :  { %v458_v63 = vmax.f32 %v456_v53, %v457_v48  ;;  %v836_v0 = vunpack.c.l.bf16 %v1010_v51  ;;  %v468_v1 = vsel %vm296_vm0, %v740_v49, -inf  ;;  %v470_v2 = vsel %vm296_vm0, %v772_v50, -inf  ;;  %v1481_v39 = vld [vmem:[%s1619_s0 + $0xf0] sm:$0xff]  }
  0x46   :  { %v449_v3 = vmax.f32 %v447_v57, %v448_v52  ;;  %v465_v4 = vsel %vm296_vm0, %v961_v44, -inf  ;;  %v868_v5 = vunpack.c.l.bf16 %v1426_v56  ;;  %v469_v6 = vmax.f32 %v467_v62, %v468_v1  ;;  %v1488_v44 = vld [vmem:[%s1619_s0 + $0x130] sm:$0xff]  }
  0x47   :  { %v460_v7 = vmax.f32 %v458_v63, %v459_v54  ;;  %v900_v8 = vunpack.c.l.bf16 %v1433_v60  ;;  %v932_v9 = vunpack.c.l.bf16 %v1438_v61  ;;  %v472_v11 = vsel %vm296_vm0, %v804_v55, -inf }
  0x48   :  { %v678_v12 = vpack.c.bf16 %v449_v3, %v449_v3  ;;  %v471_v13 = vmax.f32 %v469_v6, %v470_v2  ;;  %v709_v14 = vunpack.c.h.bf16 %v978_v31  ;;  %v741_v15 = vunpack.c.h.bf16 %v986_v36 }
  0x49   :  { %v462_v16 = vmax.f32 %v460_v7, %v461_v58  ;;  %v474_v17 = vsel %vm296_vm0, %v836_v0, -inf  ;;  %v773_v18 = vunpack.c.h.bf16 %v994_v37  ;;  %v805_v19 = vunpack.c.h.bf16 %v1410_v42 }
  0x4a   :  { %642 = vst.msk [vmem:[%s1620_s1 + $0x20] sm:$0xf] %vm633_vm1, %v678_v12  ;;  %v964_v20 = vunpack.c.l.bf16 %v1450_v10  ;;  %v473_v21 = vmax.f32 %v471_v13, %v472_v11  ;;  %v476_v22 = vsel %vm296_vm0, %v868_v5, -inf  ;;  %v837_v23 = vunpack.c.h.bf16 %v1010_v51  ;;  %v1518_v5 = vld [vmem:[%s1619_s0 + $0x1f0] sm:$0xff]  }
  0x4b   :  { %v464_v24 = vmax.f32 %v462_v16, %v463_v59  ;;  %v478_v25 = vsel %vm296_vm0, %v900_v8, -inf  ;;  %v484_v26 = vsel %vm296_vm0, %v709_v14, -inf  ;;  %v485_v27 = vsel %vm296_vm0, %v741_v15, -inf  ;;  %v1507_v59 = vld [vmem:[%s1619_s0 + $0x1b0] sm:$0xff]  }
  0x4c   :  { %v475_v28 = vmax.f32 %v473_v21, %v474_v17  ;;  %v480_v29 = vsel %vm296_vm0, %v932_v9, -inf  ;;  %v486_v30 = vmax.f32 %v484_v26, %v485_v27  ;;  %v487_v31 = vsel %vm296_vm0, %v773_v18, -inf  ;;  %v1528_v17 = vld [vmem:[%s1619_s0 + $0x230] sm:$0xff]   ;;  %v980_v27 = vld [vmem:[%s1619_s0 + $0x38] sm:$0xff]  }
  0x4d   :  { %v466_v35 = vmax.f32 %v464_v24, %v465_v4  ;;  %v869_v36 = vunpack.c.h.bf16 %v1426_v56  ;;  %v901_v37 = vunpack.c.h.bf16 %v1433_v60  ;;  %v489_v38 = vsel %vm296_vm0, %v805_v19, -inf  ;;  %v1502_v56 = vld [vmem:[%s1619_s0 + $0x170] sm:$0xff]  }
  0x4e   :  { %v477_v40 = vmax.f32 %v475_v28, %v476_v22  ;;  %v933_v41 = vunpack.c.h.bf16 %v1438_v61  ;;  %v488_v42 = vmax.f32 %v486_v30, %v487_v31  ;;  %v491_v43 = vsel %vm296_vm0, %v837_v23, -inf }
  0x4f   :  { %v679_v45 = vpack.c.bf16 %v466_v35, %v466_v35  ;;  %v712_v46 = vunpack.c.l.bf16 %v979_v32  ;;  %v744_v47 = vunpack.c.l.bf16 %v987_v33  ;;  %v776_v48 = vunpack.c.l.bf16 %v995_v34 }
  0x50   :  { %v479_v49 = vmax.f32 %v477_v40, %v478_v25  ;;  %v490_v50 = vmax.f32 %v488_v42, %v489_v38  ;;  %v808_v51 = vunpack.c.l.bf16 %v1481_v39  ;;  %v482_v52 = vsel %vm296_vm0, %v964_v20, -inf  ;;  %v1004_v38 = vld [vmem:[%s1619_s0 + $0xf8] sm:$0xff]  }
  0x51   :  { %643 = vst.msk [vmem:[%s1620_s1 + $0x24] sm:$0xf] %vm633_vm1, %v679_v45  ;;  %v965_v53 = vunpack.c.h.bf16 %v1450_v10  ;;  %v493_v54 = vsel %vm296_vm0, %v869_v36, -inf  ;;  %v840_v55 = vunpack.c.l.bf16 %v1488_v44  ;;  %v501_v60 = vsel %vm296_vm0, %v712_v46, -inf }
  0x52   :  { %v481_v57 = vmax.f32 %v479_v49, %v480_v29  ;;  %v492_v58 = vmax.f32 %v490_v50, %v491_v43  ;;  %v502_v61 = vsel %vm296_vm0, %v744_v47, -inf  ;;  %v495_v62 = vsel %vm296_vm0, %v901_v37, -inf  ;;  %v1012_v47 = vld [vmem:[%s1619_s0 + $0x138] sm:$0xff]  }
  0x53   :  { %v497_v63 = vsel %vm296_vm0, %v933_v41, -inf  ;;  %v503_v0 = vmax.f32 %v501_v60, %v502_v61  ;;  %v504_v1 = vsel %vm296_vm0, %v776_v48, -inf  ;;  %v872_v4 = vunpack.c.l.bf16 %v1502_v56 }
  0x54   :  { %v483_v2 = vmax.f32 %v481_v57, %v482_v52  ;;  %v494_v3 = vmax.f32 %v492_v58, %v493_v54  ;;  %v506_v6 = vsel %vm296_vm0, %v808_v51, -inf  ;;  %v904_v7 = vunpack.c.l.bf16 %v1507_v59  ;;  %v1020_v52 = vld [vmem:[%s1619_s0 + $0x178] sm:$0xff]  }
  0x55   :  { %v505_v8 = vmax.f32 %v503_v0, %v504_v1  ;;  %v508_v9 = vsel %vm296_vm0, %v840_v55, -inf  ;;  %v713_v10 = vunpack.c.h.bf16 %v979_v32  ;;  %v745_v13 = vunpack.c.h.bf16 %v987_v33  ;;  %v988_v32 = vld [vmem:[%s1619_s0 + $0x78] sm:$0xff]  }
  0x56   :  { %v680_v11 = vpack.c.bf16 %v483_v2, %v483_v2  ;;  %v496_v12 = vmax.f32 %v494_v3, %v495_v62  ;;  %v777_v14 = vunpack.c.h.bf16 %v995_v34  ;;  %v499_v15 = vsel %vm296_vm0, %v965_v53, -inf  ;;  %v996_v33 = vld [vmem:[%s1619_s0 + $0xb8] sm:$0xff]  }
  0x57   :  { %v936_v16 = vunpack.c.l.bf16 %v1518_v5  ;;  %v507_v18 = vmax.f32 %v505_v8, %v506_v6  ;;  %v809_v19 = vunpack.c.h.bf16 %v1481_v39  ;;  %v510_v21 = vsel %vm296_vm0, %v872_v4, -inf }
  0x58   :  { %644 = vst.msk [vmem:[%s1620_s1 + $0x28] sm:$0xf] %vm633_vm1, %v680_v11  ;;  %v498_v20 = vmax.f32 %v496_v12, %v497_v63  ;;  %v841_v22 = vunpack.c.h.bf16 %v1488_v44  ;;  %v518_v24 = vsel %vm296_vm0, %v713_v10, -inf  ;;  %v519_v25 = vsel %vm296_vm0, %v745_v13, -inf  ;;  %v1044_v12 = vld [vmem:[%s1619_s0 + $0x238] sm:$0xff]  }
  0x59   :  { %v509_v23 = vmax.f32 %v507_v18, %v508_v9  ;;  %v521_v26 = vsel %vm296_vm0, %v777_v14, -inf  ;;  %v968_v29 = vunpack.c.l.bf16 %v1528_v17  ;;  %v512_v30 = vsel %vm296_vm0, %v904_v7, -inf }
  0x5a   :  { %v500_v28 = vmax.f32 %v498_v20, %v499_v15  ;;  %v520_v31 = vmax.f32 %v518_v24, %v519_v25  ;;  %v514_v35 = vsel %vm296_vm0, %v936_v16, -inf  ;;  %v873_v36 = vunpack.c.h.bf16 %v1502_v56  ;;  %v1028_v56 = vld [vmem:[%s1619_s0 + $0x1b8] sm:$0xff]  }
  0x5b   :  { %v511_v34 = vmax.f32 %v509_v23, %v510_v21  ;;  %v523_v37 = vsel %vm296_vm0, %v809_v19, -inf  ;;  %v905_v40 = vunpack.c.h.bf16 %v1507_v59  ;;  %v716_v42 = vunpack.c.l.bf16 %v980_v27 }
  0x5c   :  { %v681_v39 = vpack.c.bf16 %v500_v28, %v500_v28  ;;  %v522_v41 = vmax.f32 %v520_v31, %v521_v26  ;;  %v525_v44 = vsel %vm296_vm0, %v841_v22, -inf  ;;  %v748_v45 = vunpack.c.l.bf16 %v988_v32 }
  0x5d   :  { %v513_v43 = vmax.f32 %v511_v34, %v512_v30  ;;  %v780_v46 = vunpack.c.l.bf16 %v996_v33  ;;  %v516_v48 = vsel %vm296_vm0, %v968_v29, -inf  ;;  %v937_v49 = vunpack.c.h.bf16 %v1518_v5  ;;  %v1036_v5 = vld [vmem:[%s1619_s0 + $0x1f8] sm:$0xff]  }
  0x5e   :  { %645 = vst.msk [vmem:[%s1620_s1 + $0x2c] sm:$0xf] %vm633_vm1, %v681_v39  ;;  %v524_v50 = vmax.f32 %v522_v41, %v523_v37  ;;  %v812_v51 = vunpack.c.l.bf16 %v1004_v38  ;;  %v969_v54 = vunpack.c.h.bf16 %v1528_v17  ;;  %v527_v55 = vsel %vm296_vm0, %v873_v36, -inf }
  0x5f   :  { %v515_v53 = vmax.f32 %v513_v43, %v514_v35  ;;  %v535_v57 = vsel %vm296_vm0, %v716_v42, -inf  ;;  %v844_v59 = vunpack.c.l.bf16 %v1012_v47  ;;  %v536_v60 = vsel %vm296_vm0, %v748_v45, -inf }
  0x60   :  { %v526_v58 = vmax.f32 %v524_v50, %v525_v44  ;;  %v538_v61 = vsel %vm296_vm0, %v780_v46, -inf  ;;  %v529_v63 = vsel %vm296_vm0, %v905_v40, -inf  ;;  %v876_v0 = vunpack.c.l.bf16 %v1020_v52 }
  0x61   :  { %v517_v62 = vmax.f32 %v515_v53, %v516_v48  ;;  %v537_v1 = vmax.f32 %v535_v57, %v536_v60  ;;  %v531_v3 = vsel %vm296_vm0, %v937_v49, -inf  ;;  %v908_v4 = vunpack.c.l.bf16 %v1028_v56 }
  0x62   :  { %v528_v2 = vmax.f32 %v526_v58, %v527_v55  ;;  %v540_v6 = vsel %vm296_vm0, %v812_v51, -inf  ;;  %v717_v9 = vunpack.c.h.bf16 %v980_v27  ;;  %v749_v10 = vunpack.c.h.bf16 %v988_v32 }
  0x63   :  { %v682_v7 = vpack.c.bf16 %v517_v62, %v517_v62  ;;  %v539_v8 = vmax.f32 %v537_v1, %v538_v61  ;;  %v542_v13 = vsel %vm296_vm0, %v844_v59, -inf  ;;  %v781_v14 = vunpack.c.h.bf16 %v996_v33 }
  0x64   :  { %v530_v11 = vmax.f32 %v528_v2, %v529_v63  ;;  %v813_v15 = vunpack.c.h.bf16 %v1004_v38  ;;  %v533_v16 = vsel %vm296_vm0, %v969_v54, -inf  ;;  %v940_v17 = vunpack.c.l.bf16 %v1036_v5 }
  0x65   :  { %646 = vst.msk [vmem:[%s1620_s1 + $0x30] sm:$0xf] %vm633_vm1, %v682_v7  ;;  %v541_v18 = vmax.f32 %v539_v8, %v540_v6  ;;  %v544_v19 = vsel %vm296_vm0, %v876_v0, -inf  ;;  %v845_v21 = vunpack.c.h.bf16 %v1012_v47  ;;  %v552_v22 = vsel %vm296_vm0, %v717_v9, -inf }
  0x66   :  { %v532_v20 = vmax.f32 %v530_v11, %v531_v3  ;;  %v553_v23 = vsel %vm296_vm0, %v749_v10, -inf  ;;  %v972_v24 = vunpack.c.l.bf16 %v1044_v12  ;;  %v555_v27 = vsel %vm296_vm0, %v781_v14, -inf }
  0x67   :  { %v543_v25 = vmax.f32 %v541_v18, %v542_v13  ;;  %v554_v26 = vmax.f32 %v552_v22, %v553_v23  ;;  %v546_v29 = vsel %vm296_vm0, %v908_v4, -inf  ;;  %v877_v30 = vunpack.c.h.bf16 %v1020_v52 }
  0x68   :  { %v534_v28 = vmax.f32 %v532_v20, %v533_v16  ;;  %v557_v31 = vsel %vm296_vm0, %v813_v15, -inf  ;;  %v548_v35 = vsel %vm296_vm0, %v940_v17, -inf  ;;  %v909_v36 = vunpack.c.h.bf16 %v1028_v56 }
  0x69   :  { %v545_v32 = vmax.f32 %v543_v25, %v544_v19  ;;  %v556_v33 = vmax.f32 %v554_v26, %v555_v27  ;;  %v559_v37 = vsel %vm296_vm0, %v845_v21, -inf  ;;  %v550_v40 = vsel %vm296_vm0, %v972_v24, -inf }
  0x6a   :  { %v683_v34 = vpack.c.bf16 %v534_v28, %v534_v28  ;;  %v941_v41 = vunpack.c.h.bf16 %v1036_v5  ;;  %v561_v42 = vsel %vm296_vm0, %v877_v30, -inf  ;;  %v973_v45 = vunpack.c.h.bf16 %v1044_v12 }
  0x6b   :  { %v547_v38 = vmax.f32 %v545_v32, %v546_v29  ;;  %v558_v39 = vmax.f32 %v556_v33, %v557_v31  ;;  %v563_v46 = vsel %vm296_vm0, %v909_v36, -inf }
  0x6c   :  { %647 = vst.msk [vmem:[%s1620_s1 + $0x34] sm:$0xf] %vm633_vm1, %v683_v34  ;;  %v565_v49 = vsel %vm296_vm0, %v941_v41, -inf  ;;  %v567_v52 = vsel %vm296_vm0, %v973_v45, -inf }
  0x6d   :  { %v549_v43 = vmax.f32 %v547_v38, %v548_v35  ;;  %v560_v44 = vmax.f32 %v558_v39, %v559_v37 }
  0x6f   :  { %v551_v47 = vmax.f32 %v549_v43, %v550_v40  ;;  %v562_v48 = vmax.f32 %v560_v44, %v561_v42 }
  0x71   :  { %v684_v50 = vpack.c.bf16 %v551_v47, %v551_v47  ;;  %v564_v51 = vmax.f32 %v562_v48, %v563_v46 }
  0x73   :  { %648 = vst.msk [vmem:[%s1620_s1 + $0x38] sm:$0xf] %vm633_vm1, %v684_v50  ;;  %v566_v53 = vmax.f32 %v564_v51, %v565_v49 }
  0x75   :  { %v568_v54 = vmax.f32 %v566_v53, %v567_v52 }
  0x77   :  { %v685_v55 = vpack.c.bf16 %v568_v54, %v568_v54 }
  0x79   :  { %649 = vst.msk [vmem:[%s1620_s1 + $0x3c] sm:$0xf] %vm633_vm1, %v685_v55 }

// kernel: densenet_classifier_forward.27
= control target key start
LH: loop header
LB: loop body
LE: loop exit
PB: predicated region body
PF: predicated region fallthrough
CT: control target
= control target key end

     0   :  { %vm28_vm0 = vcmask 261120   ;;  %v607_v1 = vmov 0.0   ;;  %vm171_vm1 = vcmask 130048   ;;  %vm471_vm2 = vcmask 257024   ;;  %s858_s1 = inlined_call_operand.vmem [shape: bf16[16,32], index: 1, kind: input, shape index: {}]   ;;  %s859_s0 = inlined_call_operand.vmem [shape: bf16[128,16], index: 0, kind: input, shape index: {}]   ;;  %s860_s2 = inlined_call_operand.vmem [shape: f32[1,16], index: 2, kind: input, shape index: {}]   ;;  %s861_s3 = inlined_call_operand.vmem [shape: f32[1,16], index: 3, kind: input, shape index: {}]   ;;  %s862_s4 = inlined_call_operand.vmem [shape: f32[1,32], index: 4, kind: input, shape index: {}]   ;;  %s863_s5 = inlined_call_operand.vmem [shape: f32[1,32], index: 5, kind: input, shape index: {}]   ;;  %s864_s6 = inlined_call_operand.vmem [shape: bf16[128,32], index: 6, kind: output, shape index: {}]  }
   0x1   :  { %v606_v0 = vld [vmem:[%s858_s1] sm:$0xff]   ;;  %31 = vst.msk [vmem:[#allocation2 + $0x10] sm:$0xff] %vm28_vm0, %v607_v1  ;;  %29 = vst.msk [vmem:[#allocation2] sm:$0xff] %vm28_vm0, %v607_v1  ;;  %v569_v7 = vld [vmem:[%s859_s0 + $0x8] sm:$0xff]  }
   0x2   :  { %30 = vst.msk [vmem:[#allocation2 + $0x8] sm:$0xff] %vm28_vm0, %v607_v1  ;;  %32 = vst.msk [vmem:[#allocation2 + $0x18] sm:$0xff] %vm28_vm0, %v607_v1  ;;  %v538_v2 = vld [vmem:[%s859_s0] sm:$0xff]   ;;  %585 = vmatprep.subr.bf16.mxu0 %v606_v0  ;;  %603 = vmatprep.subr.bf16.mxu1 %v606_v0  ;;  %v573_v8 = vld [vmem:[%s859_s0 + $0x28] sm:$0xff]   ;;  %v543_v12 = vunpack.c.l.bf16 %v569_v7  ;;  %v544_v13 = vunpack.c.h.bf16 %v569_v7 }
   0x3   :  { %33 = vst.msk [vmem:[#allocation2 + $0x20] sm:$0xff] %vm28_vm0, %v607_v1  ;;  %34 = vst.msk [vmem:[#allocation2 + $0x28] sm:$0xff] %vm28_vm0, %v607_v1  ;;  %v668_v3 = vld [vmem:[%s860_s2] ss:$0 sm:$0xff]  ;;  %v539_v4 = vunpack.c.l.bf16 %v538_v2  ;;  %v540_v5 = vunpack.c.h.bf16 %v538_v2  ;;  %586 = vmatpush3.bf16.msra.mxu0 %v606_v0  ;;  %604 = vmatpush3.bf16.msra.mxu1 %v606_v0  ;;  %v559_v16 = vunpack.c.l.bf16 %v573_v8  ;;  %v560_v17 = vunpack.c.h.bf16 %v573_v8  ;;  %v570_v30 = vld [vmem:[%s859_s0 + $0x10] sm:$0xff]  }
   0x4   :  { %35 = vst.msk [vmem:[#allocation2 + $0x30] sm:$0xff] %vm28_vm0, %v607_v1  ;;  %36 = vst.msk [vmem:[#allocation2 + $0x38] sm:$0xff] %vm28_vm0, %v607_v1  ;;  %v572_v6 = vld [vmem:[%s859_s0 + $0x20] sm:$0xff]   ;;  %v86_v20 = vmul.f32 %v543_v12, %v668_v3  ;;  %v87_v21 = vmul.f32 %v544_v13, %v668_v3  ;;  %v574_v35 = vld [vmem:[%s859_s0 + $0x30] sm:$0xff]   ;;  %v547_v44 = vunpack.c.l.bf16 %v570_v30  ;;  %v548_v48 = vunpack.c.h.bf16 %v570_v30 }
   0x5   :  { %37 = vst.msk [vmem:[#allocation2 + $0x40] sm:$0xff] %vm28_vm0, %v607_v1  ;;  %38 = vst.msk [vmem:[#allocation2 + $0x48] sm:$0xff] %vm28_vm0, %v607_v1  ;;  %v682_v9 = vld [vmem:[%s861_s3] ss:$0 sm:$0xff]  ;;  %v555_v10 = vunpack.c.l.bf16 %v572_v6  ;;  %v556_v11 = vunpack.c.h.bf16 %v572_v6  ;;  %v84_v14 = vmul.f32 %v539_v4, %v668_v3  ;;  %v85_v15 = vmul.f32 %v540_v5, %v668_v3  ;;  %v571_v40 = vld [vmem:[%s859_s0 + $0x18] sm:$0xff]  }
   0x6   :  { %39 = vst.msk [vmem:[#allocation2 + $0x50] sm:$0xff] %vm28_vm0, %v607_v1  ;;  %40 = vst.msk [vmem:[#allocation2 + $0x58] sm:$0xff] %vm28_vm0, %v607_v1  ;;  %v94_v24 = vmul.f32 %v559_v16, %v668_v3  ;;  %v95_v25 = vmul.f32 %v560_v17, %v668_v3  ;;  %v109_v28 = vadd.f32 %v682_v9, %v86_v20  ;;  %v575_v45 = vld [vmem:[%s859_s0 + $0x38] sm:$0xff]   ;;  %v563_v49 = vunpack.c.l.bf16 %v574_v35 }
   0x7   :  { %41 = vst.msk [vmem:[#allocation2 + $0x60] sm:$0xff] %vm28_vm0, %v607_v1  ;;  %42 = vst.msk [vmem:[#allocation2 + $0x68] sm:$0xff] %vm28_vm0, %v607_v1  ;;  %v92_v18 = vmul.f32 %v555_v10, %v668_v3  ;;  %v93_v19 = vmul.f32 %v556_v11, %v668_v3  ;;  %v107_v22 = vadd.f32 %v682_v9, %v84_v14  ;;  %v564_v52 = vunpack.c.h.bf16 %v574_v35 }
   0x8   :  { %43 = vst.msk [vmem:[#allocation2 + $0x70] sm:$0xff] %vm28_vm0, %v607_v1  ;;  %44 = vst.msk [vmem:[#allocation2 + $0x78] sm:$0xff] %vm28_vm0, %v607_v1  ;;  %v108_v23 = vadd.f32 %v682_v9, %v85_v15  ;;  %v110_v29 = vadd.f32 %v682_v9, %v87_v21  ;;  %v117_v33 = vadd.f32 %v682_v9, %v94_v24  ;;  %v125_v38 = vmax.f32 %v109_v28, 0.0  ;;  %v149_v21 = vld [vmem:[#allocation2 + $0x10] sm:$0xff]  ;;  %v147_v24 = vld [vmem:[#allocation2] sm:$0xff] }
   0x9   :  { %v115_v26 = vadd.f32 %v682_v9, %v92_v18  ;;  %v116_v27 = vadd.f32 %v682_v9, %v93_v19  ;;  %v123_v31 = vmax.f32 %v107_v22, 0.0  ;;  %v118_v34 = vadd.f32 %v682_v9, %v95_v25  ;;  %v148_v35 = vld [vmem:[#allocation2 + $0x8] sm:$0xff] }
   0xa   :  { %v124_v32 = vmax.f32 %v108_v23, 0.0  ;;  %v126_v39 = vmax.f32 %v110_v29, 0.0  ;;  %v133_v42 = vmax.f32 %v117_v33, 0.0  ;;  %v88_v51 = vmul.f32 %v547_v44, %v668_v3  ;;  %v150_v29 = vld [vmem:[#allocation2 + $0x18] sm:$0xff] }
   0xb   :  { %v131_v36 = vmax.f32 %v115_v26, 0.0  ;;  %v132_v37 = vmax.f32 %v116_v27, 0.0  ;;  %v134_v43 = vmax.f32 %v118_v34, 0.0  ;;  %v551_v53 = vunpack.c.l.bf16 %v571_v40 }
   0xc   :  { %v139_v41 = vpack.c.bf16 %v124_v32, %v123_v31  ;;  %v140_v47 = vpack.c.bf16 %v126_v39, %v125_v38  ;;  %v89_v54 = vmul.f32 %v548_v48, %v668_v3  ;;  %v96_v55 = vmul.f32 %v563_v49, %v668_v3  ;;  %v155_v26 = vld [vmem:[#allocation2 + $0x40] sm:$0xff]  ;;  %v156_v38 = vld [vmem:[#allocation2 + $0x48] sm:$0xff] }
   0xd   :  { %v143_v46 = vpack.c.bf16 %v132_v37, %v131_v36  ;;  %v144_v50 = vpack.c.bf16 %v134_v43, %v133_v42  ;;  %v552_v56 = vunpack.c.h.bf16 %v571_v40  ;;  %v567_v57 = vunpack.c.l.bf16 %v575_v45  ;;  %v157_v22 = vld [vmem:[#allocation2 + $0x50] sm:$0xff]  ;;  %v158_v32 = vld [vmem:[#allocation2 + $0x58] sm:$0xff]  ;;  %v744_v43 = vld [vmem:[%s862_s4] ss:$0 sm:$0xff] }
   0xe   :  { %587 = vmatprep.mubr.msk.bf16.mxu0 %vm171_vm1, %v139_v41  ;;  %v111_v58 = vadd.f32 %v682_v9, %v88_v51  ;;  %v97_v59 = vmul.f32 %v564_v52, %v668_v3  ;;  %v90_v60 = vmul.f32 %v551_v53, %v668_v3  ;;  %v568_v61 = vunpack.c.h.bf16 %v575_v45  ;;  %v153_v45 = vld [vmem:[#allocation2 + $0x30] sm:$0xff]  ;;  %v751_v48 = vld [vmem:[%s863_s5] ss:$0 sm:$0xff] }
   0xf   :  { %595 = vmatprep.mubr.msk.bf16.mxu1 %vm171_vm1, %v143_v46  ;;  %588 = vmatmul.mubr.msk.bf16.vlgmr.msra.gmra.mxu0 %vm171_vm1, %v140_v47  ;;  %v112_v62 = vadd.f32 %v682_v9, %v89_v54  ;;  %v119_v63 = vadd.f32 %v682_v9, %v96_v55  ;;  %v91_v0 = vmul.f32 %v552_v56, %v668_v3  ;;  %v161_v46 = vld [vmem:[#allocation2 + $0x70] sm:$0xff]  ;;  %v159_v55 = vld [vmem:[#allocation2 + $0x60] sm:$0xff] }
  0x10   :  { %596 = vmatmul.mubr.msk.bf16.vlgmr.msra.gmra.mxu1 %vm171_vm1, %v144_v50  ;;  %v98_v1 = vmul.f32 %v567_v57, %v668_v3  ;;  %v127_v2 = vmax.f32 %v111_v58, 0.0  ;;  %v120_v4 = vadd.f32 %v682_v9, %v97_v59  ;;  %v113_v5 = vadd.f32 %v682_v9, %v90_v60  ;;  %v151_v50 = vld [vmem:[#allocation2 + $0x20] sm:$0xff]  ;;  %v154_v60 = vld [vmem:[#allocation2 + $0x38] sm:$0xff] }
  0x11   :  { %v99_v6 = vmul.f32 %v568_v61, %v668_v3  ;;  %v128_v7 = vmax.f32 %v112_v62, 0.0  ;;  %v135_v8 = vmax.f32 %v119_v63, 0.0  ;;  %v114_v10 = vadd.f32 %v682_v9, %v91_v0 }
  0x12   :  { %v121_v11 = vadd.f32 %v682_v9, %v98_v1  ;;  %v136_v12 = vmax.f32 %v120_v4, 0.0  ;;  %v129_v13 = vmax.f32 %v113_v5, 0.0 }
  0x13   :  { %v122_v14 = vadd.f32 %v682_v9, %v99_v6  ;;  %v141_v15 = vpack.c.bf16 %v128_v7, %v127_v2  ;;  %v130_v16 = vmax.f32 %v114_v10, 0.0  ;;  %v162_v2 = vld [vmem:[#allocation2 + $0x78] sm:$0xff] }
  0x14   :  { %v137_v17 = vmax.f32 %v121_v11, 0.0  ;;  %v145_v18 = vpack.c.bf16 %v136_v12, %v135_v8 }
  0x15   :  { %v138_v19 = vmax.f32 %v122_v14, 0.0  ;;  %591 = vmatprep.mubr.msk.bf16.mxu0 %vm171_vm1, %v141_v15  ;;  %v142_v20 = vpack.c.bf16 %v130_v16, %v129_v13 }
  0x16   :  { %599 = vmatprep.mubr.msk.bf16.mxu1 %vm171_vm1, %v145_v18 }
  0x17   :  { %v146_v3 = vpack.c.bf16 %v138_v19, %v137_v17  ;;  %592 = vmatmul.mubr.msk.bf16.gmra.mxu0 %vm171_vm1, %v142_v20 }
  0x19   :  { %600 = vmatmul.mubr.msk.bf16.gmra.mxu1 %vm171_vm1, %v146_v3  ;;  %v152_v3 = vld [vmem:[#allocation2 + $0x28] sm:$0xff] }
  0xcf   :  { %v589_v23 = vpop.f32.mrf.mxu0 }
  0xd0   :  { %v295_v9 = vadd.f32 %v589_v23, %v149_v21  ;;  %v597_v25 = vpop.f32.mrf.mxu1 }
  0xd1   :  { %v303_v27 = vadd.f32 %v597_v25, %v157_v22  ;;  %v230_v28 = vpop.f32.mrf.mxu0 }
  0xd2   :  { %312 = vst.msk [vmem:[#allocation2 + $0x10] sm:$0xff] %vm28_vm0, %v295_v9  ;;  %v293_v30 = vadd.f32 %v230_v28, %v147_v24  ;;  %v262_v31 = vpop.f32.mrf.mxu1 }
  0xd3   :  { %320 = vst.msk [vmem:[#allocation2 + $0x50] sm:$0xff] %vm28_vm0, %v303_v27  ;;  %v301_v33 = vadd.f32 %v262_v31, %v155_v26  ;;  %v590_v34 = vpop.f32.mrf.mxu0  ;;  %v160_v26 = vld [vmem:[#allocation2 + $0x68] sm:$0xff] }
  0xd4   :  { %310 = vst.msk [vmem:[#allocation2] sm:$0xff] %vm28_vm0, %v293_v30  ;;  %v296_v36 = vadd.f32 %v590_v34, %v150_v29  ;;  %v598_v37 = vpop.f32.mrf.mxu1 }
  0xd5   :  { %318 = vst.msk [vmem:[#allocation2 + $0x40] sm:$0xff] %vm28_vm0, %v301_v33  ;;  %v304_v39 = vadd.f32 %v598_v37, %v158_v32  ;;  %v233_v40 = vpop.f32.mrf.mxu0 }
  0xd6   :  { %313 = vst.msk [vmem:[#allocation2 + $0x18] sm:$0xff] %vm28_vm0, %v296_v36  ;;  %v294_v41 = vadd.f32 %v233_v40, %v148_v35  ;;  %v265_v42 = vpop.f32.mrf.mxu1 }
  0xd7   :  { %321 = vst.msk [vmem:[#allocation2 + $0x58] sm:$0xff] %vm28_vm0, %v304_v39  ;;  %v302_v44 = vadd.f32 %v265_v42, %v156_v38  ;;  %v593_v49 = vpop.f32.mrf.mxu0 }
  0xd8   :  { %311 = vst.msk [vmem:[#allocation2 + $0x8] sm:$0xff] %vm28_vm0, %v294_v41  ;;  %v299_v53 = vadd.f32 %v593_v49, %v153_v45 }
  0xd9   :  { %v331_v47 = vld [vmem:[#allocation2 + $0x10] sm:$0xff]  ;;  %319 = vst.msk [vmem:[#allocation2 + $0x48] sm:$0xff] %vm28_vm0, %v302_v44  ;;  %v601_v54 = vpop.f32.mrf.mxu1  ;;  %v246_v59 = vpop.f32.mrf.mxu0 }
  0xda   :  { %v354_v51 = vmul.f32 %v744_v43, %v331_v47  ;;  %v339_v52 = vld [vmem:[#allocation2 + $0x50] sm:$0xff]  ;;  %v307_v58 = vadd.f32 %v601_v54, %v161_v46  ;;  %316 = vst.msk [vmem:[#allocation2 + $0x30] sm:$0xff] %vm28_vm0, %v299_v53  ;;  %v297_v0 = vadd.f32 %v246_v59, %v151_v50 }
  0xdb   :  { %v362_v56 = vmul.f32 %v744_v43, %v339_v52  ;;  %v329_v57 = vld [vmem:[#allocation2] sm:$0xff]  ;;  %v278_v1 = vpop.f32.mrf.mxu1  ;;  %v594_v8 = vpop.f32.mrf.mxu0 }
  0xdc   :  { %v377_v61 = vadd.f32 %v751_v48, %v354_v51  ;;  %v352_v62 = vmul.f32 %v744_v43, %v329_v57  ;;  %v337_v63 = vld [vmem:[#allocation2 + $0x40] sm:$0xff]  ;;  %324 = vst.msk [vmem:[#allocation2 + $0x70] sm:$0xff] %vm28_vm0, %v307_v58  ;;  %v305_v7 = vadd.f32 %v278_v1, %v159_v55  ;;  %314 = vst.msk [vmem:[#allocation2 + $0x20] sm:$0xff] %vm28_vm0, %v297_v0 }
  0xdd   :  { %v385_v4 = vadd.f32 %v751_v48, %v362_v56  ;;  %v360_v5 = vmul.f32 %v744_v43, %v337_v63  ;;  %v332_v6 = vld [vmem:[#allocation2 + $0x18] sm:$0xff]  ;;  %v300_v14 = vadd.f32 %v594_v8, %v154_v60  ;;  %v602_v15 = vpop.f32.mrf.mxu1  ;;  %v249_v21 = vpop.f32.mrf.mxu0 }
  0xde   :  { %v393_v10 = vmax.f32 %v377_v61, 0.0  ;;  %v375_v11 = vadd.f32 %v751_v48, %v352_v62  ;;  %v355_v12 = vmul.f32 %v744_v43, %v332_v6  ;;  %v340_v13 = vld [vmem:[#allocation2 + $0x58] sm:$0xff]  ;;  %322 = vst.msk [vmem:[#allocation2 + $0x60] sm:$0xff] %vm28_vm0, %v305_v7  ;;  %v308_v20 = vadd.f32 %v602_v15, %v162_v2 }
  0xdf   :  { %v401_v16 = vmax.f32 %v385_v4, 0.0  ;;  %v383_v17 = vadd.f32 %v751_v48, %v360_v5  ;;  %v363_v18 = vmul.f32 %v744_v43, %v340_v13  ;;  %v330_v19 = vld [vmem:[#allocation2 + $0x8] sm:$0xff]  ;;  %317 = vst.msk [vmem:[#allocation2 + $0x38] sm:$0xff] %vm28_vm0, %v300_v14  ;;  %v281_v27 = vpop.f32.mrf.mxu1  ;;  %v298_v35 = vadd.f32 %v249_v21, %v152_v3 }
  0xe0   :  { %v523_v22 = vpack.c.bf16 %v393_v10, %v393_v10  ;;  %v391_v23 = vmax.f32 %v375_v11, 0.0  ;;  %v378_v24 = vadd.f32 %v751_v48, %v355_v12  ;;  %v353_v9 = vmul.f32 %v744_v43, %v330_v19  ;;  %v338_v25 = vld [vmem:[#allocation2 + $0x48] sm:$0xff]  ;;  %325 = vst.msk [vmem:[#allocation2 + $0x78] sm:$0xff] %vm28_vm0, %v308_v20 }
  0xe1   :  { %v531_v28 = vpack.c.bf16 %v401_v16, %v401_v16  ;;  %v399_v29 = vmax.f32 %v383_v17, 0.0  ;;  %v386_v30 = vadd.f32 %v751_v48, %v363_v18  ;;  %v361_v31 = vmul.f32 %v744_v43, %v338_v25  ;;  %v335_v39 = vld [vmem:[#allocation2 + $0x30] sm:$0xff]  ;;  %315 = vst.msk [vmem:[#allocation2 + $0x28] sm:$0xff] %vm28_vm0, %v298_v35 }
  0xe2   :  { %474 = vst.msk [vmem:[%s864_s6 + $0x8] sm:$0xf] %vm471_vm2, %v523_v22  ;;  %v521_v32 = vpack.c.bf16 %v391_v23, %v391_v23  ;;  %v394_v33 = vmax.f32 %v378_v24, 0.0  ;;  %v376_v34 = vadd.f32 %v751_v48, %v353_v9  ;;  %v306_v40 = vadd.f32 %v281_v27, %v160_v26 }
  0xe3   :  { %482 = vst.msk [vmem:[%s864_s6 + $0x28] sm:$0xf] %vm471_vm2, %v531_v28  ;;  %v529_v36 = vpack.c.bf16 %v399_v29, %v399_v29  ;;  %v402_v37 = vmax.f32 %v386_v30, 0.0  ;;  %v384_v38 = vadd.f32 %v751_v48, %v361_v31  ;;  %v358_v44 = vmul.f32 %v744_v43, %v335_v39  ;;  %v343_v45 = vld [vmem:[#allocation2 + $0x70] sm:$0xff]  ;;  %v333_v50 = vld [vmem:[#allocation2 + $0x20] sm:$0xff] }
  0xe4   :  { %472 = vst.msk [vmem:[%s864_s6] sm:$0xf] %vm471_vm2, %v521_v32  ;;  %v524_v41 = vpack.c.bf16 %v394_v33, %v394_v33  ;;  %v392_v42 = vmax.f32 %v376_v34, 0.0  ;;  %v366_v49 = vmul.f32 %v744_v43, %v343_v45  ;;  %v356_v53 = vmul.f32 %v744_v43, %v333_v50 }
  0xe5   :  { %480 = vst.msk [vmem:[%s864_s6 + $0x20] sm:$0xf] %vm471_vm2, %v529_v36  ;;  %v532_v46 = vpack.c.bf16 %v402_v37, %v402_v37  ;;  %v400_v47 = vmax.f32 %v384_v38, 0.0  ;;  %v381_v52 = vadd.f32 %v751_v48, %v358_v44  ;;  %v341_v54 = vld [vmem:[#allocation2 + $0x60] sm:$0xff] }
  0xe6   :  { %323 = vst.msk [vmem:[#allocation2 + $0x68] sm:$0xff] %vm28_vm0, %v306_v40  ;;  %v522_v51 = vpack.c.bf16 %v392_v42, %v392_v42  ;;  %v389_v56 = vadd.f32 %v751_v48, %v366_v49  ;;  %v364_v57 = vmul.f32 %v744_v43, %v341_v54  ;;  %v336_v58 = vld [vmem:[#allocation2 + $0x38] sm:$0xff]  ;;  %v379_v60 = vadd.f32 %v751_v48, %v356_v53 }
  0xe7   :  { %475 = vst.msk [vmem:[%s864_s6 + $0xc] sm:$0xf] %vm471_vm2, %v524_v41  ;;  %483 = vst.msk [vmem:[%s864_s6 + $0x2c] sm:$0xf] %vm471_vm2, %v532_v46  ;;  %v530_v55 = vpack.c.bf16 %v400_v47, %v400_v47  ;;  %v397_v59 = vmax.f32 %v381_v52, 0.0  ;;  %v359_v61 = vmul.f32 %v744_v43, %v336_v58  ;;  %v344_v62 = vld [vmem:[#allocation2 + $0x78] sm:$0xff] }
  0xe8   :  { %473 = vst.msk [vmem:[%s864_s6 + $0x4] sm:$0xf] %vm471_vm2, %v522_v51  ;;  %v405_v63 = vmax.f32 %v389_v56, 0.0  ;;  %v387_v0 = vadd.f32 %v751_v48, %v364_v57  ;;  %v367_v1 = vmul.f32 %v744_v43, %v344_v62  ;;  %v395_v4 = vmax.f32 %v379_v60, 0.0  ;;  %v334_v10 = vld [vmem:[#allocation2 + $0x28] sm:$0xff] }
  0xe9   :  { %481 = vst.msk [vmem:[%s864_s6 + $0x24] sm:$0xf] %vm471_vm2, %v530_v55  ;;  %v527_v2 = vpack.c.bf16 %v397_v59, %v397_v59  ;;  %v382_v5 = vadd.f32 %v751_v48, %v359_v61  ;;  %v357_v13 = vmul.f32 %v744_v43, %v334_v10 }
  0xea   :  { %v535_v6 = vpack.c.bf16 %v405_v63, %v405_v63  ;;  %v403_v7 = vmax.f32 %v387_v0, 0.0  ;;  %v390_v8 = vadd.f32 %v751_v48, %v367_v1  ;;  %v525_v11 = vpack.c.bf16 %v395_v4, %v395_v4 }
  0xeb   :  { %478 = vst.msk [vmem:[%s864_s6 + $0x18] sm:$0xf] %vm471_vm2, %v527_v2  ;;  %v398_v12 = vmax.f32 %v382_v5, 0.0  ;;  %v380_v19 = vadd.f32 %v751_v48, %v357_v13 }
  0xec   :  { %486 = vst.msk [vmem:[%s864_s6 + $0x38] sm:$0xf] %vm471_vm2, %v535_v6  ;;  %v533_v15 = vpack.c.bf16 %v403_v7, %v403_v7  ;;  %v406_v16 = vmax.f32 %v390_v8, 0.0  ;;  %476 = vst.msk [vmem:[%s864_s6 + $0x10] sm:$0xf] %vm471_vm2, %v525_v11 }
  0xed   :  { %v342_v14 = vld [vmem:[#allocation2 + $0x68] sm:$0xff]  ;;  %v528_v18 = vpack.c.bf16 %v398_v12, %v398_v12 }
  0xee   :  { %v365_v17 = vmul.f32 %v744_v43, %v342_v14  ;;  %484 = vst.msk [vmem:[%s864_s6 + $0x30] sm:$0xf] %vm471_vm2, %v533_v15  ;;  %v536_v20 = vpack.c.bf16 %v406_v16, %v406_v16  ;;  %v396_v43 = vmax.f32 %v380_v19, 0.0 }
  0xef   :  { %479 = vst.msk [vmem:[%s864_s6 + $0x1c] sm:$0xf] %vm471_vm2, %v528_v18 }
  0xf0   :  { %v388_v3 = vadd.f32 %v751_v48, %v365_v17  ;;  %487 = vst.msk [vmem:[%s864_s6 + $0x3c] sm:$0xf] %vm471_vm2, %v536_v20  ;;  %v526_v22 = vpack.c.bf16 %v396_v43, %v396_v43 }
  0xf2   :  { %v404_v21 = vmax.f32 %v388_v3, 0.0  ;;  %477 = vst.msk [vmem:[%s864_s6 + $0x14] sm:$0xf] %vm471_vm2, %v526_v22 }
  0xf4   :  { %v534_v23 = vpack.c.bf16 %v404_v21, %v404_v21 }
  0xf6   :  { %485 = vst.msk [vmem:[%s864_s6 + $0x34] sm:$0xf] %vm471_vm2, %v534_v23 }

// kernel: densenet_classifier_forward.25
= control target key start
LH: loop header
LB: loop body
LE: loop exit
PB: predicated region body
PF: predicated region fallthrough
CT: control target
= control target key end

     0   :  { %s1641_s15 = smov 0   ;;  %s1643_s16 = smov 0   ;;  %s1984_s0 = inlined_call_operand.vmem [shape: bf16[512,147], index: 0, kind: input, shape index: {}]   ;;  %s1985_s1 = inlined_call_operand.vmem [shape: bf16[147,16], index: 1, kind: input, shape index: {}]   ;;  %s1986_s2 = inlined_call_operand.vmem [shape: f32[1,16], index: 2, kind: input, shape index: {}]   ;;  %s1987_s3 = inlined_call_operand.vmem [shape: f32[1,16], index: 3, kind: input, shape index: {}]   ;;  %s1988_s4 = inlined_call_operand.vmem [shape: bf16[512,16], index: 4, kind: output, shape index: {}]  }
   0x1   :  { %s1645_s17 = smov 0  }
   0x2 LB: > { %s33_s18 = sadd.s32 1, %s1607_s16  ;;  %p1351_p0 = scmp.ge.s32.totalorder %s1611_s17, 1  ;;  %s1611_s17 = sphi %s1645_s17, %s14_s17   ;;  %s1607_s16 = sphi %s1643_s16, %s1990_s16   ;;  %s1603_s15 = sphi %s1641_s15, %s1989_s15  }
   0x3   : > { %p35_p1 = scmp.ge.s32.totalorder %s33_s18, 2  ;;  %p224_p2 = scmp.lt.s32.totalorder %s1611_s17, 3 }
   0x5   : > { %s1992_s18 = smov (%p35_p1, %s33_s18), 0  ;;  %p225_p3 = pnand %p1351_p0, %p224_p2 }
   0x6   : > { %s1352_s25 = sshll.u32 (!%p225_p3), %s1603_s15, 5 }
   0x7   : > { %228 = sbr.rel (%p225_p3) target bundleno = 326 (0x146), region = 36  ;;  %p274_p4 = scmp.lt.s32.totalorder (!%p225_p3), %s1352_s25, 63 }
   0xc   : > { %v1531_v0 = vld [vmem:[%s1985_s1 + $0x38] sm:$0xff]   ;;  %v1613_v1 = vmov 0   ;;  %v1532_v2 = vld [vmem:[%s1985_s1 + $0x30] sm:$0xff]   ;;  %v1533_v3 = vld [vmem:[%s1985_s1 + $0x28] sm:$0xff]   ;;  %s1994_s25 = smov (!%p274_p4, %s1352_s25), 63  ;;  %vm313_vm0 = vcmask 130048  }
   0xd   : > { %686 = vmatprep.subr.bf16.mxu0 %v1613_v1  ;;  %1484 = vmatprep.subr.bf16.mxu1 %v1613_v1  ;;  %v1534_v4 = vld [vmem:[%s1985_s1 + $0x20] sm:$0xff]   ;;  %s1451_s28 = sshll.u32 %s1994_s25, 3  ;;  %v1614_v5 = vmov 0.0   ;;  %v1535_v6 = vld [vmem:[%s1985_s1 + $0x18] sm:$0xff]   ;;  %vm630_vm1 = vcmask 154624   ;;  %v1536_v9 = vld [vmem:[%s1985_s1 + $0x10] sm:$0xff]  }
   0xe   : > { %687 = vmatpush1.bf16.msra.mxu0 %v1531_v0  ;;  %1494 = vmatpush1.bf16.msra.mxu1 %v1531_v0  ;;  %314 = vst.msk [vmem:[#allocation2] sm:$0xff] %vm313_vm0, %v1614_v5  ;;  %315 = vst.msk [vmem:[#allocation2 + $0x8] sm:$0xff] %vm313_vm0, %v1614_v5  ;;  %s1719_s5 = scalar_lea.vmem %s1984_s0, %s1451_s28  ;;  %vm679_vm2 = vcmask 1040384   ;;  %v1537_v10 = vld [vmem:[%s1985_s1 + $0x8] sm:$0xff]   ;;  %vm680_vm3 = vcmask 1041408   ;;  %v1615_v11 = vmov 65535  }
   0xf   : > { %688 = vmatprep.subr.bf16.mxu0 %v1613_v1  ;;  %1485 = vmatprep.subr.bf16.mxu1 %v1613_v1  ;;  %316 = vst.msk [vmem:[#allocation2 + $0x10] sm:$0xff] %vm313_vm0, %v1614_v5  ;;  %317 = vst.msk [vmem:[#allocation2 + $0x18] sm:$0xff] %vm313_vm0, %v1614_v5  ;;  %v1543_v7 = vld [vmem:[%s1719_s5 + $0x4] ss:$8 sps:$4 sm:$0xff]   ;;  %v681_v12 = vsel %vm679_vm2, 4294967295, %v1615_v11  ;;  %s1356_s26 = sshll.u32 %s1994_s25, 2 }
  0x10   : > { %318 = vst.msk [vmem:[#allocation2 + $0x20] sm:$0xff] %vm313_vm0, %v1614_v5  ;;  %319 = vst.msk [vmem:[#allocation2 + $0x28] sm:$0xff] %vm313_vm0, %v1614_v5  ;;  %v1546_v8 = vld [vmem:[%s1719_s5 + $0x84] ss:$8 sps:$4 sm:$0xff]   ;;  %1399 = vmatprep.mubr.msk.bf16.mxu0 %vm630_vm1, %v1543_v7  ;;  %v682_v15 = vsel %vm680_vm3, %v681_v12, 0  ;;  %s1827_s28 = scalar_lea.vmem %s1988_s4, %s1356_s26  ;;  %vm1185_vm4 = vcmask 125952  }
  0x11   : > { %320 = vst.msk [vmem:[#allocation2 + $0x30] sm:$0xff] %vm313_vm0, %v1614_v5  ;;  %321 = vst.msk [vmem:[#allocation2 + $0x38] sm:$0xff] %vm313_vm0, %v1614_v5  ;;  %1407 = vmatprep.mubr.msk.bf16.mxu1 %vm630_vm1, %v1546_v8  ;;  %v1538_v13 = vld [vmem:[%s1985_s1] sm:$0xff]   ;;  %v1539_v14 = vld [vmem:[%s1985_s1 + $0x48] ss:$0 sps:$4 sm:$0x33]  }
  0x12   : > { %689 = vmatpush1.bf16.msra.mxu0 %v1532_v2  ;;  %1495 = vmatpush1.bf16.msra.mxu1 %v1532_v2  ;;  %322 = vst.msk [vmem:[#allocation2 + $0x40] sm:$0xff] %vm313_vm0, %v1614_v5  ;;  %323 = vst.msk [vmem:[#allocation2 + $0x48] sm:$0xff] %vm313_vm0, %v1614_v5  ;;  %v684_v16 = vand.u32 %v1539_v14, %v682_v15  ;;  %v1540_v17 = vld [vmem:[%s1985_s1 + $0x40] sm:$0xff]   ;;  %v1547_v20 = vld [vmem:[%s1719_s5 + $0x14] ss:$8 sps:$4 sm:$0xff]  }
  0x13   : > { %690 = vmatprep.subr.bf16.mxu0 %v1613_v1  ;;  %1486 = vmatprep.subr.bf16.mxu1 %v1613_v1  ;;  %324 = vst.msk [vmem:[#allocation2 + $0x50] sm:$0xff] %vm313_vm0, %v1614_v5  ;;  %325 = vst.msk [vmem:[#allocation2 + $0x58] sm:$0xff] %vm313_vm0, %v1614_v5  ;;  %v1541_v18 = vld [vmem:[%s1719_s5] ss:$8 sps:$4 sm:$0xff]   ;;  %v1549_v21 = vld [vmem:[%s1719_s5 + $0x94] ss:$8 sps:$4 sm:$0xff]  }
  0x14   : > { %326 = vst.msk [vmem:[#allocation2 + $0x60] sm:$0xff] %vm313_vm0, %v1614_v5  ;;  %327 = vst.msk [vmem:[#allocation2 + $0x68] sm:$0xff] %vm313_vm0, %v1614_v5  ;;  %v1544_v19 = vld [vmem:[%s1719_s5 + $0x80] ss:$8 sps:$4 sm:$0xff]   ;;  %v1551_v22 = vld [vmem:[%s1719_s5 + $0x10] ss:$8 sps:$4 sm:$0xff]  }
  0x15   : > { %328 = vst.msk [vmem:[#allocation2 + $0x70] sm:$0xff] %vm313_vm0, %v1614_v5  ;;  %329 = vst.msk [vmem:[#allocation2 + $0x78] sm:$0xff] %vm313_vm0, %v1614_v5  ;;  %v1552_v23 = vld [vmem:[%s1719_s5 + $0x90] ss:$8 sps:$4 sm:$0xff]   ;;  %v1553_v24 = vld [vmem:[%s1719_s5 + $0x24] ss:$8 sps:$4 sm:$0xff]  }
  0x16   : > { %691 = vmatpush1.bf16.msra.mxu0 %v1533_v3  ;;  %1496 = vmatpush1.bf16.msra.mxu1 %v1533_v3  ;;  %330 = vst.msk [vmem:[#allocation2 + $0x80] sm:$0xff] %vm313_vm0, %v1614_v5  ;;  %331 = vst.msk [vmem:[#allocation2 + $0x88] sm:$0xff] %vm313_vm0, %v1614_v5  ;;  %v1555_v25 = vld [vmem:[%s1719_s5 + $0xa4] ss:$8 sps:$4 sm:$0xff]   ;;  %v1557_v26 = vld [vmem:[%s1719_s5 + $0x20] ss:$8 sps:$4 sm:$0xff]  }
  0x17   : > { %692 = vmatprep.subr.bf16.mxu0 %v1613_v1  ;;  %1487 = vmatprep.subr.bf16.mxu1 %v1613_v1  ;;  %332 = vst.msk [vmem:[#allocation2 + $0x90] sm:$0xff] %vm313_vm0, %v1614_v5  ;;  %333 = vst.msk [vmem:[#allocation2 + $0x98] sm:$0xff] %vm313_vm0, %v1614_v5  ;;  %v1558_v27 = vld [vmem:[%s1719_s5 + $0xa0] ss:$8 sps:$4 sm:$0xff]   ;;  %v1559_v28 = vld [vmem:[%s1719_s5 + $0x34] ss:$8 sps:$4 sm:$0xff]  }
  0x18   : > { %334 = vst.msk [vmem:[#allocation2 + $0xa0] sm:$0xff] %vm313_vm0, %v1614_v5  ;;  %335 = vst.msk [vmem:[#allocation2 + $0xa8] sm:$0xff] %vm313_vm0, %v1614_v5  ;;  %v1561_v29 = vld [vmem:[%s1719_s5 + $0xb4] ss:$8 sps:$4 sm:$0xff]   ;;  %v1563_v30 = vld [vmem:[%s1719_s5 + $0x30] ss:$8 sps:$4 sm:$0xff]  }
  0x19   : > { %336 = vst.msk [vmem:[#allocation2 + $0xb0] sm:$0xff] %vm313_vm0, %v1614_v5  ;;  %337 = vst.msk [vmem:[#allocation2 + $0xb8] sm:$0xff] %vm313_vm0, %v1614_v5  ;;  %v1564_v31 = vld [vmem:[%s1719_s5 + $0xb0] ss:$8 sps:$4 sm:$0xff]   ;;  %v1565_v32 = vld [vmem:[%s1719_s5 + $0x44] ss:$8 sps:$4 sm:$0xff]  }
  0x1a   : > { %338 = vst.msk [vmem:[#allocation2 + $0xc0] sm:$0xff] %vm313_vm0, %v1614_v5  ;;  %339 = vst.msk [vmem:[#allocation2 + $0xc8] sm:$0xff] %vm313_vm0, %v1614_v5  ;;  %693 = vmatpush1.bf16.msra.mxu0 %v1534_v4  ;;  %1497 = vmatpush1.bf16.msra.mxu1 %v1534_v4  ;;  %v1567_v33 = vld [vmem:[%s1719_s5 + $0xc4] ss:$8 sps:$4 sm:$0xff]   ;;  %v1569_v34 = vld [vmem:[%s1719_s5 + $0x40] ss:$8 sps:$4 sm:$0xff]  }
  0x1b   : > { %340 = vst.msk [vmem:[#allocation2 + $0xd0] sm:$0xff] %vm313_vm0, %v1614_v5  ;;  %341 = vst.msk [vmem:[#allocation2 + $0xd8] sm:$0xff] %vm313_vm0, %v1614_v5  ;;  %694 = vmatprep.subr.bf16.mxu0 %v1613_v1  ;;  %1488 = vmatprep.subr.bf16.mxu1 %v1613_v1  ;;  %v1570_v35 = vld [vmem:[%s1719_s5 + $0xc0] ss:$8 sps:$4 sm:$0xff]   ;;  %v1571_v36 = vld [vmem:[%s1719_s5 + $0x54] ss:$8 sps:$4 sm:$0xff]  }
  0x1c   : > { %342 = vst.msk [vmem:[#allocation2 + $0xe0] sm:$0xff] %vm313_vm0, %v1614_v5  ;;  %343 = vst.msk [vmem:[#allocation2 + $0xe8] sm:$0xff] %vm313_vm0, %v1614_v5  ;;  %v1573_v37 = vld [vmem:[%s1719_s5 + $0xd4] ss:$8 sps:$4 sm:$0xff]   ;;  %v1575_v38 = vld [vmem:[%s1719_s5 + $0x50] ss:$8 sps:$4 sm:$0xff]  }
  0x1d   : > { %344 = vst.msk [vmem:[#allocation2 + $0xf0] sm:$0xff] %vm313_vm0, %v1614_v5  ;;  %345 = vst.msk [vmem:[#allocation2 + $0xf8] sm:$0xff] %vm313_vm0, %v1614_v5  ;;  %v1576_v39 = vld [vmem:[%s1719_s5 + $0xd0] ss:$8 sps:$4 sm:$0xff]   ;;  %v1577_v40 = vld [vmem:[%s1719_s5 + $0x64] ss:$8 sps:$4 sm:$0xff]  }
  0x1e   : > { %695 = vmatpush1.bf16.msra.mxu0 %v1535_v6  ;;  %1498 = vmatpush1.bf16.msra.mxu1 %v1535_v6  ;;  %v1579_v41 = vld [vmem:[%s1719_s5 + $0xe4] ss:$8 sps:$4 sm:$0xff]   ;;  %v1581_v42 = vld [vmem:[%s1719_s5 + $0x60] ss:$8 sps:$4 sm:$0xff]   ;;  %v1583_v44 = vld [vmem:[%s1719_s5 + $0x74] ss:$8 sps:$4 sm:$0xff]  }
  0x1f   : > { %696 = vmatprep.subr.bf16.mxu0 %v1613_v1  ;;  %1489 = vmatprep.subr.bf16.mxu1 %v1613_v1  ;;  %v1582_v43 = vld [vmem:[%s1719_s5 + $0xe0] ss:$8 sps:$4 sm:$0xff]   ;;  %v1585_v45 = vld [vmem:[%s1719_s5 + $0xf4] ss:$8 sps:$4 sm:$0xff]   ;;  %v1587_v46 = vld [vmem:[%s1719_s5 + $0x70] ss:$8 sps:$4 sm:$0xff]  }
  0x20   : > { %v1588_v47 = vld [vmem:[%s1719_s5 + $0xf0] ss:$8 sps:$4 sm:$0xff]   ;;  %v378_v48 = vld [vmem:[#allocation2] sm:$0xff]  ;;  %v379_v56 = vld [vmem:[#allocation2 + $0x8] sm:$0xff] }
  0x21   : > { %v394_v49 = vld [vmem:[#allocation2 + $0x80] sm:$0xff]  ;;  %v395_v57 = vld [vmem:[#allocation2 + $0x88] sm:$0xff]  ;;  %v380_v0 = vld [vmem:[#allocation2 + $0x10] sm:$0xff] }
  0x22   : > { %697 = vmatpush1.bf16.msra.mxu0 %v1536_v9  ;;  %1499 = vmatpush1.bf16.msra.mxu1 %v1536_v9  ;;  %v1806_v2 = vld [vmem:[%s1986_s2] ss:$0 sm:$0xff]  ;;  %v381_v8 = vld [vmem:[#allocation2 + $0x18] sm:$0xff] }
  0x23   : > { %698 = vmatprep.subr.bf16.mxu0 %v1613_v1  ;;  %1490 = vmatprep.subr.bf16.mxu1 %v1613_v1  ;;  %v1811_v5 = vld [vmem:[%s1987_s3] ss:$0 sm:$0xff] }
  0x26   : > { %699 = vmatpush1.bf16.msra.mxu0 %v1537_v10  ;;  %1500 = vmatpush1.bf16.msra.mxu1 %v1537_v10 }
  0x27   : > { %700 = vmatprep.subr.bf16.mxu0 %v1613_v1  ;;  %1491 = vmatprep.subr.bf16.mxu1 %v1613_v1 }
  0x2a   : > { %701 = vmatpush1.bf16.msra.mxu0 %v1538_v13  ;;  %1501 = vmatpush1.bf16.msra.mxu1 %v1538_v13  ;;  %v397_v13 = vld [vmem:[#allocation2 + $0x98] sm:$0xff] }
  0x2b   : > { %714 = vmatprep.subr.bf16.mxu0 %v1613_v1  ;;  %1492 = vmatprep.subr.bf16.mxu1 %v1613_v1 }
  0x2e   : > { %715 = vmatpush2.bf16.msra.mxu0 %v684_v16  ;;  %1502 = vmatpush2.bf16.msra.mxu1 %v684_v16 }
  0x2f   : > { %716 = vmatprep.subr.bf16.mxu0 %v1613_v1  ;;  %1493 = vmatprep.subr.bf16.mxu1 %v1613_v1  ;;  %v396_v1 = vld [vmem:[#allocation2 + $0x90] sm:$0xff] }
  0x32   : > { %717 = vmatpush2.bf16.msra.mxu0 %v1540_v17  ;;  %1503 = vmatpush2.bf16.msra.mxu1 %v1540_v17 }
  0x35   : > { %719 = vmatmul.mubr.bf16.vlgmr.msra.gmra.mxu0 %v1541_v18  ;;  %783 = vmatmul.mubr.bf16.vlgmr.msra.gmra.mxu1 %v1544_v19 }
  0x36   : > { %1400 = vmatprep.mubr.msk.bf16.mxu0 %vm630_vm1, %v1547_v20  ;;  %1408 = vmatprep.mubr.msk.bf16.mxu1 %vm630_vm1, %v1549_v21 }
  0x3d   : > { %727 = vmatmul.mubr.bf16.gmra.mxu0 %v1551_v22  ;;  %791 = vmatmul.mubr.bf16.gmra.mxu1 %v1552_v23 }
  0x3e   : > { %1401 = vmatprep.mubr.msk.bf16.mxu0 %vm630_vm1, %v1553_v24  ;;  %1409 = vmatprep.mubr.msk.bf16.mxu1 %vm630_vm1, %v1555_v25 }
  0x45   : > { %735 = vmatmul.mubr.bf16.gmra.mxu0 %v1557_v26  ;;  %799 = vmatmul.mubr.bf16.gmra.mxu1 %v1558_v27 }
  0x46   : > { %1402 = vmatprep.mubr.msk.bf16.mxu0 %vm630_vm1, %v1559_v28  ;;  %1410 = vmatprep.mubr.msk.bf16.mxu1 %vm630_vm1, %v1561_v29 }
  0x4d   : > { %743 = vmatmul.mubr.bf16.gmra.mxu0 %v1563_v30  ;;  %807 = vmatmul.mubr.bf16.gmra.mxu1 %v1564_v31  ;;  %v382_v30 = vld [vmem:[#allocation2 + $0x20] sm:$0xff] }
  0x4e   : > { %1403 = vmatprep.mubr.msk.bf16.mxu0 %vm630_vm1, %v1565_v32  ;;  %1411 = vmatprep.mubr.msk.bf16.mxu1 %vm630_vm1, %v1567_v33  ;;  %v398_v31 = vld [vmem:[#allocation2 + $0xa0] sm:$0xff] }
  0x55   : > { %751 = vmatmul.mubr.bf16.gmra.mxu0 %v1569_v34  ;;  %815 = vmatmul.mubr.bf16.gmra.mxu1 %v1570_v35 }
  0x56   : > { %1404 = vmatprep.mubr.msk.bf16.mxu0 %vm630_vm1, %v1571_v36  ;;  %1412 = vmatprep.mubr.msk.bf16.mxu1 %vm630_vm1, %v1573_v37 }
  0x5d   : > { %759 = vmatmul.mubr.bf16.gmra.mxu0 %v1575_v38  ;;  %823 = vmatmul.mubr.bf16.gmra.mxu1 %v1576_v39 }
  0x5e   : > { %1405 = vmatprep.mubr.msk.bf16.mxu0 %vm630_vm1, %v1577_v40  ;;  %1413 = vmatprep.mubr.msk.bf16.mxu1 %vm630_vm1, %v1579_v41 }
  0x65   : > { %767 = vmatmul.mubr.bf16.gmra.mxu0 %v1581_v42  ;;  %831 = vmatmul.mubr.bf16.gmra.mxu1 %v1582_v43 }
  0x66   : > { %1406 = vmatprep.mubr.msk.bf16.mxu0 %vm630_vm1, %v1583_v44  ;;  %1414 = vmatprep.mubr.msk.bf16.mxu1 %vm630_vm1, %v1585_v45 }
  0x6d   : > { %775 = vmatmul.mubr.bf16.gmra.mxu0 %v1587_v46  ;;  %839 = vmatmul.mubr.bf16.gmra.mxu1 %v1588_v47 }
  0xf5   : > { %v720_v50 = vpop.f32.mrf.mxu0  ;;  %v784_v51 = vpop.f32.mrf.mxu1 }
  0xf6   : > { %v847_v52 = vadd.f32 %v720_v50, %v378_v48  ;;  %v863_v53 = vadd.f32 %v784_v51, %v394_v49  ;;  %v383_v48 = vld [vmem:[#allocation2 + $0x28] sm:$0xff] }
  0xf7   : > { %v722_v54 = vpop.f32.mrf.mxu0  ;;  %v786_v55 = vpop.f32.mrf.mxu1  ;;  %v399_v49 = vld [vmem:[#allocation2 + $0xa8] sm:$0xff] }
  0xf8   : > { %880 = vst.msk [vmem:[#allocation2] sm:$0xff] %vm313_vm0, %v847_v52  ;;  %896 = vst.msk [vmem:[#allocation2 + $0x80] sm:$0xff] %vm313_vm0, %v863_v53 }
  0xf9   : > { %v723_v58 = vpop.f32.mrf.mxu0  ;;  %v787_v59 = vpop.f32.mrf.mxu1 }
  0xfa   : > { %v848_v60 = vadd.f32 %v723_v58, %v379_v56  ;;  %v864_v61 = vadd.f32 %v787_v59, %v395_v57 }
  0xfb   : > { %v725_v62 = vpop.f32.mrf.mxu0  ;;  %v789_v63 = vpop.f32.mrf.mxu1 }
  0xfc   : > { %881 = vst.msk [vmem:[#allocation2 + $0x8] sm:$0xff] %vm313_vm0, %v848_v60  ;;  %897 = vst.msk [vmem:[#allocation2 + $0x88] sm:$0xff] %vm313_vm0, %v864_v61 }
  0xfd   : > { %v728_v3 = vpop.f32.mrf.mxu0  ;;  %v792_v4 = vpop.f32.mrf.mxu1 }
  0xfe   : > { %v849_v6 = vadd.f32 %v728_v3, %v380_v0  ;;  %v865_v7 = vadd.f32 %v792_v4, %v396_v1  ;;  %v384_v3 = vld [vmem:[#allocation2 + $0x30] sm:$0xff] }
  0xff   : > { %v915_v9 = vld [vmem:[#allocation2] sm:$0xff]  ;;  %v730_v11 = vpop.f32.mrf.mxu0  ;;  %v794_v12 = vpop.f32.mrf.mxu1  ;;  %v400_v4 = vld [vmem:[#allocation2 + $0xb0] sm:$0xff] }
 0x100   : > { %v931_v10 = vld [vmem:[#allocation2 + $0x80] sm:$0xff]  ;;  %v954_v14 = vmul.f32 %v1806_v2, %v915_v9  ;;  %882 = vst.msk [vmem:[#allocation2 + $0x10] sm:$0xff] %vm313_vm0, %v849_v6  ;;  %898 = vst.msk [vmem:[#allocation2 + $0x90] sm:$0xff] %vm313_vm0, %v865_v7 }
 0x101   : > { %v970_v15 = vmul.f32 %v1806_v2, %v931_v10  ;;  %v731_v16 = vpop.f32.mrf.mxu0  ;;  %v795_v17 = vpop.f32.mrf.mxu1 }
 0x102   : > { %v993_v18 = vadd.f32 %v1811_v5, %v954_v14  ;;  %v850_v20 = vadd.f32 %v731_v16, %v381_v8  ;;  %v866_v21 = vadd.f32 %v795_v17, %v397_v13  ;;  %v385_v16 = vld [vmem:[#allocation2 + $0x38] sm:$0xff] }
 0x103   : > { %v1009_v19 = vadd.f32 %v1811_v5, %v970_v15  ;;  %v916_v22 = vld [vmem:[#allocation2 + $0x8] sm:$0xff]  ;;  %v733_v24 = vpop.f32.mrf.mxu0  ;;  %v797_v25 = vpop.f32.mrf.mxu1  ;;  %v401_v17 = vld [vmem:[#allocation2 + $0xb8] sm:$0xff] }
 0x104   : > { %v932_v23 = vld [vmem:[#allocation2 + $0x88] sm:$0xff]  ;;  %v1025_v26 = vmax.f32 %v993_v18, 0.0  ;;  %v955_v28 = vmul.f32 %v1806_v2, %v916_v22  ;;  %883 = vst.msk [vmem:[#allocation2 + $0x18] sm:$0xff] %vm313_vm0, %v850_v20  ;;  %899 = vst.msk [vmem:[#allocation2 + $0x98] sm:$0xff] %vm313_vm0, %v866_v21 }
 0x105   : > { %v1041_v27 = vmax.f32 %v1009_v19, 0.0  ;;  %v971_v29 = vmul.f32 %v1806_v2, %v932_v23  ;;  %v736_v32 = vpop.f32.mrf.mxu0  ;;  %v800_v33 = vpop.f32.mrf.mxu1 }
 0x106   : > { %v1452_v34 = vpack.c.bf16 %v1025_v26, %v1025_v26  ;;  %v994_v36 = vadd.f32 %v1811_v5, %v955_v28  ;;  %v851_v40 = vadd.f32 %v736_v32, %v382_v30  ;;  %v867_v41 = vadd.f32 %v800_v33, %v398_v31 }
 0x107   : > { %v1468_v35 = vpack.c.bf16 %v1041_v27, %v1041_v27  ;;  %v1010_v37 = vadd.f32 %v1811_v5, %v971_v29  ;;  %v917_v38 = vld [vmem:[#allocation2 + $0x10] sm:$0xff]  ;;  %v738_v42 = vpop.f32.mrf.mxu0  ;;  %v802_v43 = vpop.f32.mrf.mxu1 }
 0x108   : > { %v933_v39 = vld [vmem:[#allocation2 + $0x90] sm:$0xff]  ;;  %1186 = vst.msk [vmem:[%s1827_s28] sm:$0xf] %vm1185_vm4, %v1452_v34  ;;  %v1026_v44 = vmax.f32 %v994_v36, 0.0  ;;  %v956_v46 = vmul.f32 %v1806_v2, %v917_v38  ;;  %v386_v34 = vld [vmem:[#allocation2 + $0x40] sm:$0xff] }
 0x109   : > { %1202 = vst.msk [vmem:[%s1827_s28 + $0x40] sm:$0xf] %vm1185_vm4, %v1468_v35  ;;  %v1042_v45 = vmax.f32 %v1010_v37, 0.0  ;;  %v972_v47 = vmul.f32 %v1806_v2, %v933_v39  ;;  %v739_v50 = vpop.f32.mrf.mxu0  ;;  %v803_v51 = vpop.f32.mrf.mxu1  ;;  %v402_v35 = vld [vmem:[#allocation2 + $0xc0] sm:$0xff] }
 0x10a   : > { %884 = vst.msk [vmem:[#allocation2 + $0x20] sm:$0xff] %vm313_vm0, %v851_v40  ;;  %900 = vst.msk [vmem:[#allocation2 + $0xa0] sm:$0xff] %vm313_vm0, %v867_v41  ;;  %v1453_v52 = vpack.c.bf16 %v1026_v44, %v1026_v44  ;;  %v995_v54 = vadd.f32 %v1811_v5, %v956_v46  ;;  %v852_v58 = vadd.f32 %v739_v50, %v383_v48 }
 0x10b   : > { %v1469_v53 = vpack.c.bf16 %v1042_v45, %v1042_v45  ;;  %v1011_v55 = vadd.f32 %v1811_v5, %v972_v47  ;;  %v918_v56 = vld [vmem:[#allocation2 + $0x18] sm:$0xff]  ;;  %v868_v59 = vadd.f32 %v803_v51, %v399_v49  ;;  %v741_v60 = vpop.f32.mrf.mxu0  ;;  %v805_v61 = vpop.f32.mrf.mxu1 }
 0x10c   : > { %v934_v57 = vld [vmem:[#allocation2 + $0x98] sm:$0xff]  ;;  %1187 = vst.msk [vmem:[%s1827_s28 + $0x4] sm:$0xf] %vm1185_vm4, %v1453_v52  ;;  %v1027_v62 = vmax.f32 %v995_v54, 0.0  ;;  %v957_v0 = vmul.f32 %v1806_v2, %v918_v56  ;;  %v387_v52 = vld [vmem:[#allocation2 + $0x48] sm:$0xff] }
 0x10d   : > { %1203 = vst.msk [vmem:[%s1827_s28 + $0x44] sm:$0xf] %vm1185_vm4, %v1469_v53  ;;  %v1043_v63 = vmax.f32 %v1011_v55, 0.0  ;;  %v973_v1 = vmul.f32 %v1806_v2, %v934_v57  ;;  %v744_v6 = vpop.f32.mrf.mxu0  ;;  %v808_v7 = vpop.f32.mrf.mxu1  ;;  %v403_v53 = vld [vmem:[#allocation2 + $0xc8] sm:$0xff] }
 0x10e   : > { %885 = vst.msk [vmem:[#allocation2 + $0x28] sm:$0xff] %vm313_vm0, %v852_v58  ;;  %901 = vst.msk [vmem:[#allocation2 + $0xa8] sm:$0xff] %vm313_vm0, %v868_v59  ;;  %v1454_v8 = vpack.c.bf16 %v1027_v62, %v1027_v62  ;;  %v996_v10 = vadd.f32 %v1811_v5, %v957_v0  ;;  %v853_v12 = vadd.f32 %v744_v6, %v384_v3  ;;  %v388_v0 = vld [vmem:[#allocation2 + $0x50] sm:$0xff] }
 0x10f   : > { %v1470_v9 = vpack.c.bf16 %v1043_v63, %v1043_v63  ;;  %v1012_v11 = vadd.f32 %v1811_v5, %v973_v1  ;;  %v869_v13 = vadd.f32 %v808_v7, %v400_v4  ;;  %v746_v14 = vpop.f32.mrf.mxu0  ;;  %v810_v15 = vpop.f32.mrf.mxu1 }
 0x110   : > { %1188 = vst.msk [vmem:[%s1827_s28 + $0x8] sm:$0xf] %vm1185_vm4, %v1454_v8  ;;  %v1028_v18 = vmax.f32 %v996_v10, 0.0 }
 0x111   : > { %1204 = vst.msk [vmem:[%s1827_s28 + $0x48] sm:$0xf] %vm1185_vm4, %v1470_v9  ;;  %v1044_v19 = vmax.f32 %v1012_v11, 0.0  ;;  %v919_v20 = vld [vmem:[#allocation2 + $0x20] sm:$0xff]  ;;  %v747_v24 = vpop.f32.mrf.mxu0  ;;  %v811_v25 = vpop.f32.mrf.mxu1  ;;  %v404_v11 = vld [vmem:[#allocation2 + $0xd0] sm:$0xff] }
 0x112   : > { %v935_v21 = vld [vmem:[#allocation2 + $0xa0] sm:$0xff]  ;;  %v958_v22 = vmul.f32 %v1806_v2, %v919_v20  ;;  %886 = vst.msk [vmem:[#allocation2 + $0x30] sm:$0xff] %vm313_vm0, %v853_v12  ;;  %902 = vst.msk [vmem:[#allocation2 + $0xb0] sm:$0xff] %vm313_vm0, %v869_v13  ;;  %v1455_v26 = vpack.c.bf16 %v1028_v18, %v1028_v18  ;;  %v854_v28 = vadd.f32 %v747_v24, %v385_v16 }
 0x113   : > { %v974_v23 = vmul.f32 %v1806_v2, %v935_v21  ;;  %v1471_v27 = vpack.c.bf16 %v1044_v19, %v1044_v19  ;;  %v870_v29 = vadd.f32 %v811_v25, %v401_v17  ;;  %v749_v32 = vpop.f32.mrf.mxu0  ;;  %v813_v33 = vpop.f32.mrf.mxu1 }
 0x114   : > { %v997_v30 = vadd.f32 %v1811_v5, %v958_v22  ;;  %1189 = vst.msk [vmem:[%s1827_s28 + $0xc] sm:$0xf] %vm1185_vm4, %v1455_v26  ;;  %v389_v32 = vld [vmem:[#allocation2 + $0x58] sm:$0xff] }
 0x115   : > { %v1013_v31 = vadd.f32 %v1811_v5, %v974_v23  ;;  %1205 = vst.msk [vmem:[%s1827_s28 + $0x4c] sm:$0xf] %vm1185_vm4, %v1471_v27  ;;  %v920_v36 = vld [vmem:[#allocation2 + $0x28] sm:$0xff]  ;;  %v752_v42 = vpop.f32.mrf.mxu0  ;;  %v816_v43 = vpop.f32.mrf.mxu1  ;;  %v405_v33 = vld [vmem:[#allocation2 + $0xd8] sm:$0xff] }
 0x116   : > { %v936_v37 = vld [vmem:[#allocation2 + $0xa8] sm:$0xff]  ;;  %887 = vst.msk [vmem:[#allocation2 + $0x38] sm:$0xff] %vm313_vm0, %v854_v28  ;;  %903 = vst.msk [vmem:[#allocation2 + $0xb8] sm:$0xff] %vm313_vm0, %v870_v29  ;;  %v1029_v38 = vmax.f32 %v997_v30, 0.0  ;;  %v959_v40 = vmul.f32 %v1806_v2, %v920_v36  ;;  %v855_v44 = vadd.f32 %v752_v42, %v386_v34  ;;  %v871_v45 = vadd.f32 %v816_v43, %v402_v35 }
 0x117   : > { %v1045_v39 = vmax.f32 %v1013_v31, 0.0  ;;  %v975_v41 = vmul.f32 %v1806_v2, %v936_v37  ;;  %v754_v50 = vpop.f32.mrf.mxu0  ;;  %v818_v51 = vpop.f32.mrf.mxu1 }
 0x118   : > { %v1456_v46 = vpack.c.bf16 %v1029_v38, %v1029_v38  ;;  %v998_v48 = vadd.f32 %v1811_v5, %v959_v40  ;;  %888 = vst.msk [vmem:[#allocation2 + $0x40] sm:$0xff] %vm313_vm0, %v855_v44  ;;  %904 = vst.msk [vmem:[#allocation2 + $0xc0] sm:$0xff] %vm313_vm0, %v871_v45  ;;  %v390_v50 = vld [vmem:[#allocation2 + $0x60] sm:$0xff] }
 0x119   : > { %v1472_v47 = vpack.c.bf16 %v1045_v39, %v1045_v39  ;;  %v1014_v49 = vadd.f32 %v1811_v5, %v975_v41  ;;  %v921_v54 = vld [vmem:[#allocation2 + $0x30] sm:$0xff]  ;;  %v755_v60 = vpop.f32.mrf.mxu0  ;;  %v819_v61 = vpop.f32.mrf.mxu1  ;;  %v406_v51 = vld [vmem:[#allocation2 + $0xe0] sm:$0xff] }
 0x11a   : > { %v937_v55 = vld [vmem:[#allocation2 + $0xb0] sm:$0xff]  ;;  %1190 = vst.msk [vmem:[%s1827_s28 + $0x10] sm:$0xf] %vm1185_vm4, %v1456_v46  ;;  %v1030_v56 = vmax.f32 %v998_v48, 0.0  ;;  %v960_v58 = vmul.f32 %v1806_v2, %v921_v54  ;;  %v856_v62 = vadd.f32 %v755_v60, %v387_v52  ;;  %v872_v63 = vadd.f32 %v819_v61, %v403_v53 }
 0x11b   : > { %1206 = vst.msk [vmem:[%s1827_s28 + $0x50] sm:$0xf] %vm1185_vm4, %v1472_v47  ;;  %v1046_v57 = vmax.f32 %v1014_v49, 0.0  ;;  %v976_v59 = vmul.f32 %v1806_v2, %v937_v55  ;;  %v757_v9 = vpop.f32.mrf.mxu0  ;;  %v821_v10 = vpop.f32.mrf.mxu1 }
 0x11c   : > { %v1457_v1 = vpack.c.bf16 %v1030_v56, %v1030_v56  ;;  %v999_v4 = vadd.f32 %v1811_v5, %v960_v58  ;;  %889 = vst.msk [vmem:[#allocation2 + $0x48] sm:$0xff] %vm313_vm0, %v856_v62  ;;  %905 = vst.msk [vmem:[#allocation2 + $0xc8] sm:$0xff] %vm313_vm0, %v872_v63 }
 0x11d   : > { %v1473_v3 = vpack.c.bf16 %v1046_v57, %v1046_v57  ;;  %v1015_v6 = vadd.f32 %v1811_v5, %v976_v59  ;;  %v922_v7 = vld [vmem:[#allocation2 + $0x38] sm:$0xff]  ;;  %v760_v16 = vpop.f32.mrf.mxu0  ;;  %v824_v17 = vpop.f32.mrf.mxu1 }
 0x11e   : > { %v938_v8 = vld [vmem:[#allocation2 + $0xb8] sm:$0xff]  ;;  %v961_v12 = vmul.f32 %v1806_v2, %v922_v7  ;;  %1191 = vst.msk [vmem:[%s1827_s28 + $0x14] sm:$0xf] %vm1185_vm4, %v1457_v1  ;;  %v1031_v14 = vmax.f32 %v999_v4, 0.0  ;;  %v857_v20 = vadd.f32 %v760_v16, %v388_v0  ;;  %v873_v21 = vadd.f32 %v824_v17, %v404_v11  ;;  %v407_v7 = vld [vmem:[#allocation2 + $0xe8] sm:$0xff] }
 0x11f   : > { %v977_v13 = vmul.f32 %v1806_v2, %v938_v8  ;;  %1207 = vst.msk [vmem:[%s1827_s28 + $0x54] sm:$0xf] %vm1185_vm4, %v1473_v3  ;;  %v1047_v15 = vmax.f32 %v1015_v6, 0.0  ;;  %v923_v24 = vld [vmem:[#allocation2 + $0x40] sm:$0xff]  ;;  %v762_v26 = vpop.f32.mrf.mxu0  ;;  %v826_v27 = vpop.f32.mrf.mxu1  ;;  %v391_v6 = vld [vmem:[#allocation2 + $0x68] sm:$0xff] }
 0x120   : > { %v1000_v18 = vadd.f32 %v1811_v5, %v961_v12  ;;  %v1458_v22 = vpack.c.bf16 %v1031_v14, %v1031_v14  ;;  %v939_v25 = vld [vmem:[#allocation2 + $0xc0] sm:$0xff]  ;;  %v962_v30 = vmul.f32 %v1806_v2, %v923_v24  ;;  %890 = vst.msk [vmem:[#allocation2 + $0x50] sm:$0xff] %vm313_vm0, %v857_v20  ;;  %906 = vst.msk [vmem:[#allocation2 + $0xd0] sm:$0xff] %vm313_vm0, %v873_v21 }
 0x121   : > { %v1016_v19 = vadd.f32 %v1811_v5, %v977_v13  ;;  %v1474_v23 = vpack.c.bf16 %v1047_v15, %v1047_v15  ;;  %v978_v31 = vmul.f32 %v1806_v2, %v939_v25  ;;  %v763_v34 = vpop.f32.mrf.mxu0  ;;  %v827_v35 = vpop.f32.mrf.mxu1 }
 0x122   : > { %v1032_v28 = vmax.f32 %v1000_v18, 0.0  ;;  %1192 = vst.msk [vmem:[%s1827_s28 + $0x18] sm:$0xf] %vm1185_vm4, %v1458_v22  ;;  %v1001_v38 = vadd.f32 %v1811_v5, %v962_v30  ;;  %v858_v42 = vadd.f32 %v763_v34, %v389_v32  ;;  %v874_v43 = vadd.f32 %v827_v35, %v405_v33  ;;  %v392_v18 = vld [vmem:[#allocation2 + $0x70] sm:$0xff] }
 0x123   : > { %v1048_v29 = vmax.f32 %v1016_v19, 0.0  ;;  %1208 = vst.msk [vmem:[%s1827_s28 + $0x58] sm:$0xf] %vm1185_vm4, %v1474_v23  ;;  %v1017_v39 = vadd.f32 %v1811_v5, %v978_v31  ;;  %v924_v40 = vld [vmem:[#allocation2 + $0x48] sm:$0xff]  ;;  %v765_v44 = vpop.f32.mrf.mxu0  ;;  %v829_v45 = vpop.f32.mrf.mxu1  ;;  %v408_v19 = vld [vmem:[#allocation2 + $0xf0] sm:$0xff] }
 0x124   : > { %v1459_v36 = vpack.c.bf16 %v1032_v28, %v1032_v28  ;;  %v940_v41 = vld [vmem:[#allocation2 + $0xc8] sm:$0xff]  ;;  %v1033_v46 = vmax.f32 %v1001_v38, 0.0  ;;  %v963_v48 = vmul.f32 %v1806_v2, %v924_v40  ;;  %891 = vst.msk [vmem:[#allocation2 + $0x58] sm:$0xff] %vm313_vm0, %v858_v42  ;;  %907 = vst.msk [vmem:[#allocation2 + $0xd8] sm:$0xff] %vm313_vm0, %v874_v43 }
 0x125   : > { %v1475_v37 = vpack.c.bf16 %v1048_v29, %v1048_v29  ;;  %v1049_v47 = vmax.f32 %v1017_v39, 0.0  ;;  %v979_v49 = vmul.f32 %v1806_v2, %v940_v41  ;;  %v768_v52 = vpop.f32.mrf.mxu0  ;;  %v832_v53 = vpop.f32.mrf.mxu1 }
 0x126   : > { %1193 = vst.msk [vmem:[%s1827_s28 + $0x1c] sm:$0xf] %vm1185_vm4, %v1459_v36  ;;  %v1460_v54 = vpack.c.bf16 %v1033_v46, %v1033_v46  ;;  %v1002_v56 = vadd.f32 %v1811_v5, %v963_v48  ;;  %v859_v60 = vadd.f32 %v768_v52, %v390_v50  ;;  %v875_v61 = vadd.f32 %v832_v53, %v406_v51  ;;  %v393_v36 = vld [vmem:[#allocation2 + $0x78] sm:$0xff] }
 0x127   : > { %1209 = vst.msk [vmem:[%s1827_s28 + $0x5c] sm:$0xf] %vm1185_vm4, %v1475_v37  ;;  %v1476_v55 = vpack.c.bf16 %v1049_v47, %v1049_v47  ;;  %v1018_v57 = vadd.f32 %v1811_v5, %v979_v49  ;;  %v925_v58 = vld [vmem:[#allocation2 + $0x50] sm:$0xff]  ;;  %v770_v62 = vpop.f32.mrf.mxu0  ;;  %v834_v63 = vpop.f32.mrf.mxu1  ;;  %v409_v37 = vld [vmem:[#allocation2 + $0xf8] sm:$0xff] }
 0x128   : > { %v941_v59 = vld [vmem:[#allocation2 + $0xd0] sm:$0xff]  ;;  %1194 = vst.msk [vmem:[%s1827_s28 + $0x20] sm:$0xf] %vm1185_vm4, %v1460_v54  ;;  %v1034_v0 = vmax.f32 %v1002_v56, 0.0  ;;  %v964_v3 = vmul.f32 %v1806_v2, %v925_v58 }
 0x129   : > { %1210 = vst.msk [vmem:[%s1827_s28 + $0x60] sm:$0xf] %vm1185_vm4, %v1476_v55  ;;  %v1050_v1 = vmax.f32 %v1018_v57, 0.0  ;;  %v980_v4 = vmul.f32 %v1806_v2, %v941_v59  ;;  %v771_v8 = vpop.f32.mrf.mxu0  ;;  %v835_v9 = vpop.f32.mrf.mxu1 }
 0x12a   : > { %892 = vst.msk [vmem:[#allocation2 + $0x60] sm:$0xff] %vm313_vm0, %v859_v60  ;;  %908 = vst.msk [vmem:[#allocation2 + $0xe0] sm:$0xff] %vm313_vm0, %v875_v61  ;;  %v1461_v10 = vpack.c.bf16 %v1034_v0, %v1034_v0  ;;  %v1003_v12 = vadd.f32 %v1811_v5, %v964_v3  ;;  %v860_v14 = vadd.f32 %v771_v8, %v391_v6 }
 0x12b   : > { %v1477_v11 = vpack.c.bf16 %v1050_v1, %v1050_v1  ;;  %v1019_v13 = vadd.f32 %v1811_v5, %v980_v4  ;;  %v876_v15 = vadd.f32 %v835_v9, %v407_v7  ;;  %v773_v16 = vpop.f32.mrf.mxu0  ;;  %v837_v17 = vpop.f32.mrf.mxu1  ;;  %v926_v22 = vld [vmem:[#allocation2 + $0x58] sm:$0xff] }
 0x12c   : > { %1195 = vst.msk [vmem:[%s1827_s28 + $0x24] sm:$0xf] %vm1185_vm4, %v1461_v10  ;;  %v1035_v20 = vmax.f32 %v1003_v12, 0.0  ;;  %v942_v23 = vld [vmem:[#allocation2 + $0xd8] sm:$0xff]  ;;  %v965_v24 = vmul.f32 %v1806_v2, %v926_v22 }
 0x12d   : > { %1211 = vst.msk [vmem:[%s1827_s28 + $0x64] sm:$0xf] %vm1185_vm4, %v1477_v11  ;;  %v1051_v21 = vmax.f32 %v1019_v13, 0.0  ;;  %v981_v25 = vmul.f32 %v1806_v2, %v942_v23  ;;  %v776_v26 = vpop.f32.mrf.mxu0  ;;  %v840_v27 = vpop.f32.mrf.mxu1 }
 0x12e   : > { %893 = vst.msk [vmem:[#allocation2 + $0x68] sm:$0xff] %vm313_vm0, %v860_v14  ;;  %909 = vst.msk [vmem:[#allocation2 + $0xe8] sm:$0xff] %vm313_vm0, %v876_v15  ;;  %v1462_v28 = vpack.c.bf16 %v1035_v20, %v1035_v20  ;;  %v861_v30 = vadd.f32 %v776_v26, %v392_v18  ;;  %v877_v31 = vadd.f32 %v840_v27, %v408_v19 }
 0x12f   : > { %v1478_v29 = vpack.c.bf16 %v1051_v21, %v1051_v21  ;;  %v1004_v32 = vadd.f32 %v1811_v5, %v965_v24  ;;  %v1020_v33 = vadd.f32 %v1811_v5, %v981_v25  ;;  %v778_v34 = vpop.f32.mrf.mxu0  ;;  %v842_v35 = vpop.f32.mrf.mxu1 }
 0x130   : > { %1196 = vst.msk [vmem:[%s1827_s28 + $0x28] sm:$0xf] %vm1185_vm4, %v1462_v28 }
 0x131   : > { %1212 = vst.msk [vmem:[%s1827_s28 + $0x68] sm:$0xf] %vm1185_vm4, %v1478_v29  ;;  %v927_v38 = vld [vmem:[#allocation2 + $0x60] sm:$0xff]  ;;  %v1036_v40 = vmax.f32 %v1004_v32, 0.0  ;;  %v1052_v41 = vmax.f32 %v1020_v33, 0.0  ;;  %v779_v44 = vpop.f32.mrf.mxu0  ;;  %v843_v45 = vpop.f32.mrf.mxu1 }
 0x132   : > { %v943_v39 = vld [vmem:[#allocation2 + $0xe0] sm:$0xff]  ;;  %894 = vst.msk [vmem:[#allocation2 + $0x70] sm:$0xff] %vm313_vm0, %v861_v30  ;;  %910 = vst.msk [vmem:[#allocation2 + $0xf0] sm:$0xff] %vm313_vm0, %v877_v31  ;;  %v966_v42 = vmul.f32 %v1806_v2, %v927_v38  ;;  %v862_v46 = vadd.f32 %v779_v44, %v393_v36  ;;  %v878_v47 = vadd.f32 %v843_v45, %v409_v37 }
 0x133   : > { %v982_v43 = vmul.f32 %v1806_v2, %v943_v39  ;;  %v1463_v48 = vpack.c.bf16 %v1036_v40, %v1036_v40  ;;  %v1479_v49 = vpack.c.bf16 %v1052_v41, %v1052_v41  ;;  %v781_v52 = vpop.f32.mrf.mxu0  ;;  %v845_v53 = vpop.f32.mrf.mxu1 }
 0x134   : > { %v1005_v50 = vadd.f32 %v1811_v5, %v966_v42  ;;  %895 = vst.msk [vmem:[#allocation2 + $0x78] sm:$0xff] %vm313_vm0, %v862_v46  ;;  %911 = vst.msk [vmem:[#allocation2 + $0xf8] sm:$0xff] %vm313_vm0, %v878_v47 }
 0x135   : > { %v1021_v51 = vadd.f32 %v1811_v5, %v982_v43  ;;  %v928_v54 = vld [vmem:[#allocation2 + $0x68] sm:$0xff]  ;;  %1197 = vst.msk [vmem:[%s1827_s28 + $0x2c] sm:$0xf] %vm1185_vm4, %v1463_v48  ;;  %1213 = vst.msk [vmem:[%s1827_s28 + $0x6c] sm:$0xf] %vm1185_vm4, %v1479_v49 }
 0x136   : > { %v944_v55 = vld [vmem:[#allocation2 + $0xe8] sm:$0xff]  ;;  %v1037_v56 = vmax.f32 %v1005_v50, 0.0  ;;  %v967_v58 = vmul.f32 %v1806_v2, %v928_v54 }
 0x137   : > { %v1053_v57 = vmax.f32 %v1021_v51, 0.0  ;;  %v983_v59 = vmul.f32 %v1806_v2, %v944_v55 }
 0x138   : > { %v1464_v60 = vpack.c.bf16 %v1037_v56, %v1037_v56  ;;  %v1006_v62 = vadd.f32 %v1811_v5, %v967_v58 }
 0x139   : > { %v1480_v61 = vpack.c.bf16 %v1053_v57, %v1053_v57  ;;  %v1022_v63 = vadd.f32 %v1811_v5, %v983_v59  ;;  %v929_v0 = vld [vmem:[#allocation2 + $0x70] sm:$0xff] }
 0x13a   : > { %v945_v1 = vld [vmem:[#allocation2 + $0xf0] sm:$0xff]  ;;  %v968_v3 = vmul.f32 %v1806_v2, %v929_v0  ;;  %1198 = vst.msk [vmem:[%s1827_s28 + $0x30] sm:$0xf] %vm1185_vm4, %v1464_v60  ;;  %v1038_v6 = vmax.f32 %v1006_v62, 0.0 }
 0x13b   : > { %v984_v4 = vmul.f32 %v1806_v2, %v945_v1  ;;  %1214 = vst.msk [vmem:[%s1827_s28 + $0x70] sm:$0xf] %vm1185_vm4, %v1480_v61  ;;  %v1054_v7 = vmax.f32 %v1022_v63, 0.0  ;;  %v930_v12 = vld [vmem:[#allocation2 + $0x78] sm:$0xff] }
 0x13c   : > { %v1007_v8 = vadd.f32 %v1811_v5, %v968_v3  ;;  %v1465_v10 = vpack.c.bf16 %v1038_v6, %v1038_v6  ;;  %v946_v13 = vld [vmem:[#allocation2 + $0xf8] sm:$0xff]  ;;  %v969_v16 = vmul.f32 %v1806_v2, %v930_v12 }
 0x13d   : > { %v1023_v9 = vadd.f32 %v1811_v5, %v984_v4  ;;  %v1481_v11 = vpack.c.bf16 %v1054_v7, %v1054_v7  ;;  %v985_v17 = vmul.f32 %v1806_v2, %v946_v13 }
 0x13e   : > { %v1039_v14 = vmax.f32 %v1007_v8, 0.0  ;;  %1199 = vst.msk [vmem:[%s1827_s28 + $0x34] sm:$0xf] %vm1185_vm4, %v1465_v10  ;;  %v1008_v20 = vadd.f32 %v1811_v5, %v969_v16 }
 0x13f   : > { %v1055_v15 = vmax.f32 %v1023_v9, 0.0  ;;  %1215 = vst.msk [vmem:[%s1827_s28 + $0x74] sm:$0xf] %vm1185_vm4, %v1481_v11  ;;  %v1024_v21 = vadd.f32 %v1811_v5, %v985_v17 }
 0x140   : > { %v1466_v18 = vpack.c.bf16 %v1039_v14, %v1039_v14  ;;  %v1040_v22 = vmax.f32 %v1008_v20, 0.0 }
 0x141   : > { %v1482_v19 = vpack.c.bf16 %v1055_v15, %v1055_v15  ;;  %v1056_v23 = vmax.f32 %v1024_v21, 0.0 }
 0x142   : > { %1200 = vst.msk [vmem:[%s1827_s28 + $0x38] sm:$0xf] %vm1185_vm4, %v1466_v18  ;;  %v1467_v24 = vpack.c.bf16 %v1040_v22, %v1040_v22 }
 0x143   : > { %1216 = vst.msk [vmem:[%s1827_s28 + $0x78] sm:$0xf] %vm1185_vm4, %v1482_v19  ;;  %v1483_v25 = vpack.c.bf16 %v1056_v23, %v1056_v23 }
 0x144   : > { %1201 = vst.msk [vmem:[%s1827_s28 + $0x3c] sm:$0xf] %vm1185_vm4, %v1467_v24 }
 0x145   : > { %1217 = vst.msk [vmem:[%s1827_s28 + $0x7c] sm:$0xf] %vm1185_vm4, %v1483_v25 }
 0x146 PF: > { %s14_s17 = sadd.s32 1, %s1611_s17   ;;  %s1989_s15 = smov %s1607_s16 }
 0x147   : > { %p11_p5 = scmp.ge.s32.totalorder %s14_s17, 4   ;;  %s1990_s16 = smov %s1992_s18 }
 0x149   :  { %13 = sbr.rel (!%p11_p5) target bundleno = 2 (0x2), region = 83 }

// kernel: densenet_classifier_forward.29
= control target key start
LH: loop header
LB: loop body
LE: loop exit
PB: predicated region body
PF: predicated region fallthrough
CT: control target
= control target key end

     0   :  { %vm200_vm0 = vcmask 1043456   ;;  %vm28_vm1 = vcmask 261120   ;;  %v624_v1 = vmov 0.0   ;;  %vm175_vm2 = vcmask 195584   ;;  %s881_s1 = inlined_call_operand.vmem [shape: bf16[24,32], index: 1, kind: input, shape index: {}]   ;;  %s882_s0 = inlined_call_operand.vmem [shape: bf16[128,24], index: 0, kind: input, shape index: {}]   ;;  %s883_s2 = inlined_call_operand.vmem [shape: f32[1,24], index: 2, kind: input, shape index: {}]   ;;  %s884_s3 = inlined_call_operand.vmem [shape: f32[1,24], index: 3, kind: input, shape index: {}]   ;;  %s885_s4 = inlined_call_operand.vmem [shape: f32[1,32], index: 4, kind: input, shape index: {}]   ;;  %s886_s5 = inlined_call_operand.vmem [shape: f32[1,32], index: 5, kind: input, shape index: {}]   ;;  %s887_s6 = inlined_call_operand.vmem [shape: bf16[128,32], index: 6, kind: output, shape index: {}]  }
   0x1   :  { %v622_v0 = vld [vmem:[%s881_s1 + $0x8] ss:$0 sps:$4 sm:$0xff]   ;;  %31 = vst.msk [vmem:[#allocation2 + $0x10] sm:$0xff] %vm28_vm1, %v624_v1  ;;  %29 = vst.msk [vmem:[#allocation2] sm:$0xff] %vm28_vm1, %v624_v1  ;;  %v623_v2 = vld [vmem:[%s881_s1] sm:$0xff]   ;;  %vm479_vm3 = vcmask 257024  }
   0x2   :  { %30 = vst.msk [vmem:[#allocation2 + $0x8] sm:$0xff] %vm28_vm1, %v624_v1  ;;  %32 = vst.msk [vmem:[#allocation2 + $0x18] sm:$0xff] %vm28_vm1, %v624_v1  ;;  %v547_v3 = vld [vmem:[%s882_s0] sm:$0xff]   ;;  %619 = vmatprep.subr.msk.bf16.mxu0 %vm200_vm0, %v622_v0  ;;  %620 = vmatprep.subr.msk.bf16.mxu1 %vm200_vm0, %v622_v0  ;;  %v202_v4 = vsel %vm200_vm0, %v622_v0, 0  ;;  %v578_v12 = vld [vmem:[%s882_s0 + $0x8] sm:$0xff]  }
   0x3   :  { %33 = vst.msk [vmem:[#allocation2 + $0x20] sm:$0xff] %vm28_vm1, %v624_v1  ;;  %34 = vst.msk [vmem:[#allocation2 + $0x28] sm:$0xff] %vm28_vm1, %v624_v1  ;;  %v548_v5 = vunpack.c.l.bf16 %v547_v3  ;;  %v549_v6 = vunpack.c.h.bf16 %v547_v3  ;;  %v691_v7 = vld [vmem:[%s883_s2] ss:$0 sm:$0xff]  ;;  %596 = vmatpush3.bf16.msra.mxu0 %v202_v4  ;;  %617 = vmatpush3.bf16.msra.mxu1 %v202_v4  ;;  %v582_v13 = vld [vmem:[%s882_s0 + $0x28] sm:$0xff]   ;;  %v552_v16 = vunpack.c.l.bf16 %v578_v12  ;;  %v553_v17 = vunpack.c.h.bf16 %v578_v12 }
   0x4   :  { %35 = vst.msk [vmem:[#allocation2 + $0x30] sm:$0xff] %vm28_vm1, %v624_v1  ;;  %36 = vst.msk [vmem:[#allocation2 + $0x38] sm:$0xff] %vm28_vm1, %v624_v1  ;;  %v581_v8 = vld [vmem:[%s882_s0 + $0x20] sm:$0xff]   ;;  %597 = vmatprep.subr.bf16.mxu0 %v623_v2  ;;  %616 = vmatprep.subr.bf16.mxu1 %v623_v2  ;;  %v579_v18 = vld [vmem:[%s882_s0 + $0x10] sm:$0xff]   ;;  %v568_v21 = vunpack.c.l.bf16 %v582_v13  ;;  %v569_v22 = vunpack.c.h.bf16 %v582_v13 }
   0x5   :  { %37 = vst.msk [vmem:[#allocation2 + $0x40] sm:$0xff] %vm28_vm1, %v624_v1  ;;  %38 = vst.msk [vmem:[#allocation2 + $0x48] sm:$0xff] %vm28_vm1, %v624_v1  ;;  %v699_v9 = vld [vmem:[%s884_s3] ss:$0 sm:$0xff]  ;;  %v564_v10 = vunpack.c.l.bf16 %v581_v8  ;;  %v565_v11 = vunpack.c.h.bf16 %v581_v8  ;;  %v84_v14 = vmul.f32 %v548_v5, %v691_v7  ;;  %v85_v15 = vmul.f32 %v549_v6, %v691_v7  ;;  %v583_v39 = vld [vmem:[%s882_s0 + $0x30] sm:$0xff]  }
   0x6   :  { %39 = vst.msk [vmem:[#allocation2 + $0x50] sm:$0xff] %vm28_vm1, %v624_v1  ;;  %40 = vst.msk [vmem:[#allocation2 + $0x58] sm:$0xff] %vm28_vm1, %v624_v1  ;;  %v86_v25 = vmul.f32 %v552_v16, %v691_v7  ;;  %v87_v26 = vmul.f32 %v553_v17, %v691_v7  ;;  %v94_v29 = vmul.f32 %v568_v21, %v691_v7  ;;  %v556_v30 = vunpack.c.l.bf16 %v579_v18  ;;  %v580_v44 = vld [vmem:[%s882_s0 + $0x18] sm:$0xff]  }
   0x7   :  { %41 = vst.msk [vmem:[#allocation2 + $0x60] sm:$0xff] %vm28_vm1, %v624_v1  ;;  %42 = vst.msk [vmem:[#allocation2 + $0x68] sm:$0xff] %vm28_vm1, %v624_v1  ;;  %v92_v19 = vmul.f32 %v564_v10, %v691_v7  ;;  %v93_v20 = vmul.f32 %v565_v11, %v691_v7  ;;  %v107_v23 = vadd.f32 %v699_v9, %v84_v14  ;;  %598 = vmatpush3.bf16.msra.mxu0 %v623_v2  ;;  %v584_v49 = vld [vmem:[%s882_s0 + $0x38] sm:$0xff]  }
   0x8   :  { %43 = vst.msk [vmem:[#allocation2 + $0x70] sm:$0xff] %vm28_vm1, %v624_v1  ;;  %44 = vst.msk [vmem:[#allocation2 + $0x78] sm:$0xff] %vm28_vm1, %v624_v1  ;;  %v108_v24 = vadd.f32 %v699_v9, %v85_v15  ;;  %618 = vmatpush3.bf16.msra.mxu1 %v623_v2  ;;  %v109_v33 = vadd.f32 %v699_v9, %v86_v25  ;;  %v110_v34 = vadd.f32 %v699_v9, %v87_v26  ;;  %v147_v25 = vld [vmem:[#allocation2] sm:$0xff] }
   0x9   :  { %v115_v27 = vadd.f32 %v699_v9, %v92_v19  ;;  %v116_v28 = vadd.f32 %v699_v9, %v93_v20  ;;  %v123_v31 = vmax.f32 %v107_v23, 0.0  ;;  %v95_v37 = vmul.f32 %v569_v22, %v691_v7 }
   0xa   :  { %v124_v32 = vmax.f32 %v108_v24, 0.0  ;;  %v117_v38 = vadd.f32 %v699_v9, %v94_v29  ;;  %v125_v41 = vmax.f32 %v109_v33, 0.0  ;;  %v126_v42 = vmax.f32 %v110_v34, 0.0  ;;  %v150_v29 = vld [vmem:[#allocation2 + $0x18] sm:$0xff]  ;;  %v148_v34 = vld [vmem:[#allocation2 + $0x8] sm:$0xff] }
   0xb   :  { %v131_v35 = vmax.f32 %v115_v27, 0.0  ;;  %v132_v36 = vmax.f32 %v116_v28, 0.0  ;;  %v557_v43 = vunpack.c.h.bf16 %v579_v18  ;;  %v118_v46 = vadd.f32 %v699_v9, %v95_v37 }
   0xc   :  { %v139_v40 = vpack.c.bf16 %v124_v32, %v123_v31  ;;  %v133_v47 = vmax.f32 %v117_v38, 0.0  ;;  %v88_v48 = vmul.f32 %v556_v30, %v691_v7  ;;  %v140_v50 = vpack.c.bf16 %v126_v42, %v125_v41  ;;  %v155_v31 = vld [vmem:[#allocation2 + $0x40] sm:$0xff]  ;;  %v156_v42 = vld [vmem:[#allocation2 + $0x48] sm:$0xff] }
   0xd   :  { %v143_v45 = vpack.c.bf16 %v132_v36, %v131_v35  ;;  %v89_v51 = vmul.f32 %v557_v43, %v691_v7  ;;  %v572_v52 = vunpack.c.l.bf16 %v583_v39  ;;  %v573_v53 = vunpack.c.h.bf16 %v583_v39  ;;  %v157_v27 = vld [vmem:[#allocation2 + $0x50] sm:$0xff]  ;;  %v158_v37 = vld [vmem:[#allocation2 + $0x58] sm:$0xff] }
   0xe   :  { %599 = vmatprep.mubr.msk.bf16.mxu0 %vm175_vm2, %v139_v40  ;;  %v134_v54 = vmax.f32 %v118_v46, 0.0  ;;  %v111_v55 = vadd.f32 %v699_v9, %v88_v48  ;;  %v560_v56 = vunpack.c.l.bf16 %v580_v44  ;;  %v561_v57 = vunpack.c.h.bf16 %v580_v44  ;;  %v153_v43 = vld [vmem:[#allocation2 + $0x30] sm:$0xff]  ;;  %v766_v44 = vld [vmem:[%s885_s4] ss:$0 sm:$0xff] }
   0xf   :  { %607 = vmatprep.mubr.msk.bf16.mxu1 %vm175_vm2, %v143_v45  ;;  %600 = vmatmul.mubr.msk.bf16.vlgmr.msra.gmra.mxu0 %vm175_vm2, %v140_v50  ;;  %v112_v58 = vadd.f32 %v699_v9, %v89_v51  ;;  %v96_v59 = vmul.f32 %v572_v52, %v691_v7  ;;  %v97_v60 = vmul.f32 %v573_v53, %v691_v7  ;;  %v576_v61 = vunpack.c.l.bf16 %v584_v49  ;;  %v151_v48 = vld [vmem:[#allocation2 + $0x20] sm:$0xff]  ;;  %v161_v53 = vld [vmem:[#allocation2 + $0x70] sm:$0xff] }
  0x10   :  { %v144_v62 = vpack.c.bf16 %v134_v54, %v133_v47  ;;  %v127_v63 = vmax.f32 %v111_v55, 0.0  ;;  %v90_v0 = vmul.f32 %v560_v56, %v691_v7  ;;  %v91_v1 = vmul.f32 %v561_v57, %v691_v7  ;;  %v773_v50 = vld [vmem:[%s886_s5] ss:$0 sm:$0xff]  ;;  %v154_v56 = vld [vmem:[#allocation2 + $0x38] sm:$0xff] }
  0x11   :  { %v128_v2 = vmax.f32 %v112_v58, 0.0  ;;  %v119_v3 = vadd.f32 %v699_v9, %v96_v59  ;;  %v120_v4 = vadd.f32 %v699_v9, %v97_v60  ;;  %v577_v5 = vunpack.c.h.bf16 %v584_v49  ;;  %v159_v60 = vld [vmem:[#allocation2 + $0x60] sm:$0xff] }
  0x12   :  { %608 = vmatmul.mubr.msk.bf16.vlgmr.msra.gmra.mxu1 %vm175_vm2, %v144_v62  ;;  %v113_v6 = vadd.f32 %v699_v9, %v90_v0  ;;  %v114_v8 = vadd.f32 %v699_v9, %v91_v1  ;;  %v98_v10 = vmul.f32 %v576_v61, %v691_v7 }
  0x13   :  { %v141_v11 = vpack.c.bf16 %v128_v2, %v127_v63  ;;  %v135_v12 = vmax.f32 %v119_v3, 0.0  ;;  %v136_v13 = vmax.f32 %v120_v4, 0.0  ;;  %v99_v14 = vmul.f32 %v577_v5, %v691_v7  ;;  %v149_v7 = vld [vmem:[#allocation2 + $0x10] sm:$0xff]  ;;  %v152_v2 = vld [vmem:[#allocation2 + $0x28] sm:$0xff] }
  0x14   :  { %v129_v15 = vmax.f32 %v113_v6, 0.0  ;;  %v130_v16 = vmax.f32 %v114_v8, 0.0  ;;  %v121_v17 = vadd.f32 %v699_v9, %v98_v10 }
  0x15   :  { %603 = vmatprep.mubr.msk.bf16.mxu0 %vm175_vm2, %v141_v11  ;;  %v145_v18 = vpack.c.bf16 %v136_v13, %v135_v12  ;;  %v122_v19 = vadd.f32 %v699_v9, %v99_v14  ;;  %v162_v14 = vld [vmem:[#allocation2 + $0x78] sm:$0xff] }
  0x16   :  { %v142_v20 = vpack.c.bf16 %v130_v16, %v129_v15  ;;  %v137_v21 = vmax.f32 %v121_v17, 0.0 }
  0x17   :  { %611 = vmatprep.mubr.msk.bf16.mxu1 %vm175_vm2, %v145_v18  ;;  %v138_v22 = vmax.f32 %v122_v19, 0.0 }
  0x18   :  { %604 = vmatmul.mubr.msk.bf16.gmra.mxu0 %vm175_vm2, %v142_v20 }
  0x19   :  { %v146_v23 = vpack.c.bf16 %v138_v22, %v137_v21  ;;  %v160_v21 = vld [vmem:[#allocation2 + $0x68] sm:$0xff] }
  0x1b   :  { %612 = vmatmul.mubr.msk.bf16.gmra.mxu1 %vm175_vm2, %v146_v23 }
  0xcf   :  { %v601_v24 = vpop.f32.mrf.mxu0 }
  0xd0   :  { %v303_v26 = vadd.f32 %v601_v24, %v149_v7 }
  0xd1   :  { %v238_v28 = vpop.f32.mrf.mxu0 }
  0xd2   :  { %320 = vst.msk [vmem:[#allocation2 + $0x10] sm:$0xff] %vm28_vm1, %v303_v26  ;;  %v609_v9 = vpop.f32.mrf.mxu1  ;;  %v301_v30 = vadd.f32 %v238_v28, %v147_v25 }
  0xd3   :  { %v311_v32 = vadd.f32 %v609_v9, %v157_v27  ;;  %v602_v33 = vpop.f32.mrf.mxu0 }
  0xd4   :  { %318 = vst.msk [vmem:[#allocation2] sm:$0xff] %vm28_vm1, %v301_v30  ;;  %v270_v35 = vpop.f32.mrf.mxu1  ;;  %v304_v36 = vadd.f32 %v602_v33, %v150_v29 }
  0xd5   :  { %328 = vst.msk [vmem:[#allocation2 + $0x50] sm:$0xff] %vm28_vm1, %v311_v32  ;;  %v309_v38 = vadd.f32 %v270_v35, %v155_v31  ;;  %v241_v39 = vpop.f32.mrf.mxu0 }
  0xd6   :  { %321 = vst.msk [vmem:[#allocation2 + $0x18] sm:$0xff] %vm28_vm1, %v304_v36  ;;  %v610_v40 = vpop.f32.mrf.mxu1  ;;  %v302_v41 = vadd.f32 %v241_v39, %v148_v34 }
  0xd7   :  { %326 = vst.msk [vmem:[#allocation2 + $0x40] sm:$0xff] %vm28_vm1, %v309_v38  ;;  %v312_v45 = vadd.f32 %v610_v40, %v158_v37 }
  0xd8   :  { %319 = vst.msk [vmem:[#allocation2 + $0x8] sm:$0xff] %vm28_vm1, %v302_v41  ;;  %v273_v46 = vpop.f32.mrf.mxu1  ;;  %v605_v47 = vpop.f32.mrf.mxu0 }
  0xd9   :  { %v339_v49 = vld [vmem:[#allocation2 + $0x10] sm:$0xff]  ;;  %329 = vst.msk [vmem:[#allocation2 + $0x58] sm:$0xff] %vm28_vm1, %v312_v45  ;;  %v310_v51 = vadd.f32 %v273_v46, %v156_v42  ;;  %v307_v52 = vadd.f32 %v605_v47, %v153_v43 }
  0xda   :  { %v362_v54 = vmul.f32 %v766_v44, %v339_v49  ;;  %v254_v55 = vpop.f32.mrf.mxu0 }
  0xdb   :  { %v337_v57 = vld [vmem:[#allocation2] sm:$0xff]  ;;  %327 = vst.msk [vmem:[#allocation2 + $0x48] sm:$0xff] %vm28_vm1, %v310_v51  ;;  %324 = vst.msk [vmem:[#allocation2 + $0x30] sm:$0xff] %vm28_vm1, %v307_v52  ;;  %v613_v58 = vpop.f32.mrf.mxu1  ;;  %v305_v59 = vadd.f32 %v254_v55, %v151_v48 }
  0xdc   :  { %v385_v61 = vadd.f32 %v773_v50, %v362_v54  ;;  %v347_v62 = vld [vmem:[#allocation2 + $0x50] sm:$0xff]  ;;  %v360_v63 = vmul.f32 %v766_v44, %v337_v57  ;;  %v315_v0 = vadd.f32 %v613_v58, %v161_v53  ;;  %v606_v1 = vpop.f32.mrf.mxu0 }
  0xdd   :  { %v370_v3 = vmul.f32 %v766_v44, %v347_v62  ;;  %v340_v4 = vld [vmem:[#allocation2 + $0x18] sm:$0xff]  ;;  %322 = vst.msk [vmem:[#allocation2 + $0x20] sm:$0xff] %vm28_vm1, %v305_v59  ;;  %v286_v5 = vpop.f32.mrf.mxu1  ;;  %v308_v6 = vadd.f32 %v606_v1, %v154_v56 }
  0xde   :  { %v401_v8 = vmax.f32 %v385_v61, 0.0  ;;  %v383_v10 = vadd.f32 %v773_v50, %v360_v63  ;;  %v345_v11 = vld [vmem:[#allocation2 + $0x40] sm:$0xff]  ;;  %v363_v12 = vmul.f32 %v766_v44, %v340_v4  ;;  %332 = vst.msk [vmem:[#allocation2 + $0x70] sm:$0xff] %vm28_vm1, %v315_v0  ;;  %v313_v13 = vadd.f32 %v286_v5, %v159_v60  ;;  %v257_v15 = vpop.f32.mrf.mxu0 }
  0xdf   :  { %v393_v16 = vadd.f32 %v773_v50, %v370_v3  ;;  %v368_v17 = vmul.f32 %v766_v44, %v345_v11  ;;  %v338_v18 = vld [vmem:[#allocation2 + $0x8] sm:$0xff]  ;;  %325 = vst.msk [vmem:[#allocation2 + $0x38] sm:$0xff] %vm28_vm1, %v308_v6  ;;  %v614_v19 = vpop.f32.mrf.mxu1  ;;  %v306_v20 = vadd.f32 %v257_v15, %v152_v2 }
  0xe0   :  { %v532_v22 = vpack.c.bf16 %v401_v8, %v401_v8  ;;  %v399_v23 = vmax.f32 %v383_v10, 0.0  ;;  %v386_v7 = vadd.f32 %v773_v50, %v363_v12  ;;  %v348_v24 = vld [vmem:[#allocation2 + $0x58] sm:$0xff]  ;;  %v361_v25 = vmul.f32 %v766_v44, %v338_v18  ;;  %330 = vst.msk [vmem:[#allocation2 + $0x60] sm:$0xff] %vm28_vm1, %v313_v13 }
  0xe1   :  { %v409_v26 = vmax.f32 %v393_v16, 0.0  ;;  %v391_v27 = vadd.f32 %v773_v50, %v368_v17  ;;  %v371_v28 = vmul.f32 %v766_v44, %v348_v24  ;;  %v316_v29 = vadd.f32 %v614_v19, %v162_v14  ;;  %323 = vst.msk [vmem:[#allocation2 + $0x28] sm:$0xff] %vm28_vm1, %v306_v20  ;;  %v289_v9 = vpop.f32.mrf.mxu1 }
  0xe2   :  { %482 = vst.msk [vmem:[%s887_s6 + $0x8] sm:$0xf] %vm479_vm3, %v532_v22  ;;  %v530_v30 = vpack.c.bf16 %v399_v23, %v399_v23  ;;  %v402_v31 = vmax.f32 %v386_v7, 0.0  ;;  %v384_v32 = vadd.f32 %v773_v50, %v361_v25  ;;  %v346_v33 = vld [vmem:[#allocation2 + $0x48] sm:$0xff]  ;;  %v343_v34 = vld [vmem:[#allocation2 + $0x30] sm:$0xff]  ;;  %v314_v35 = vadd.f32 %v289_v9, %v160_v21 }
  0xe3   :  { %v540_v36 = vpack.c.bf16 %v409_v26, %v409_v26  ;;  %v407_v37 = vmax.f32 %v391_v27, 0.0  ;;  %v394_v38 = vadd.f32 %v773_v50, %v371_v28  ;;  %v369_v39 = vmul.f32 %v766_v44, %v346_v33  ;;  %333 = vst.msk [vmem:[#allocation2 + $0x78] sm:$0xff] %vm28_vm1, %v316_v29 }
  0xe4   :  { %480 = vst.msk [vmem:[%s887_s6] sm:$0xf] %vm479_vm3, %v530_v30  ;;  %v533_v40 = vpack.c.bf16 %v402_v31, %v402_v31  ;;  %v400_v41 = vmax.f32 %v384_v32, 0.0  ;;  %v366_v42 = vmul.f32 %v766_v44, %v343_v34  ;;  %v341_v43 = vld [vmem:[#allocation2 + $0x20] sm:$0xff] }
  0xe5   :  { %331 = vst.msk [vmem:[#allocation2 + $0x68] sm:$0xff] %vm28_vm1, %v314_v35  ;;  %v538_v45 = vpack.c.bf16 %v407_v37, %v407_v37  ;;  %v410_v46 = vmax.f32 %v394_v38, 0.0  ;;  %v392_v47 = vadd.f32 %v773_v50, %v369_v39  ;;  %v351_v48 = vld [vmem:[#allocation2 + $0x70] sm:$0xff]  ;;  %v364_v49 = vmul.f32 %v766_v44, %v341_v43 }
  0xe6   :  { %490 = vst.msk [vmem:[%s887_s6 + $0x28] sm:$0xf] %vm479_vm3, %v540_v36  ;;  %483 = vst.msk [vmem:[%s887_s6 + $0xc] sm:$0xf] %vm479_vm3, %v533_v40  ;;  %v531_v51 = vpack.c.bf16 %v400_v41, %v400_v41  ;;  %v389_v52 = vadd.f32 %v773_v50, %v366_v42  ;;  %v374_v53 = vmul.f32 %v766_v44, %v351_v48  ;;  %v344_v54 = vld [vmem:[#allocation2 + $0x38] sm:$0xff] }
  0xe7   :  { %488 = vst.msk [vmem:[%s887_s6 + $0x20] sm:$0xf] %vm479_vm3, %v538_v45  ;;  %v541_v55 = vpack.c.bf16 %v410_v46, %v410_v46  ;;  %v408_v56 = vmax.f32 %v392_v47, 0.0  ;;  %v387_v57 = vadd.f32 %v773_v50, %v364_v49  ;;  %v349_v58 = vld [vmem:[#allocation2 + $0x60] sm:$0xff]  ;;  %v367_v59 = vmul.f32 %v766_v44, %v344_v54 }
  0xe8   :  { %481 = vst.msk [vmem:[%s887_s6 + $0x4] sm:$0xf] %vm479_vm3, %v531_v51  ;;  %v405_v60 = vmax.f32 %v389_v52, 0.0  ;;  %v397_v61 = vadd.f32 %v773_v50, %v374_v53  ;;  %v372_v62 = vmul.f32 %v766_v44, %v349_v58  ;;  %v342_v63 = vld [vmem:[#allocation2 + $0x28] sm:$0xff] }
  0xe9   :  { %491 = vst.msk [vmem:[%s887_s6 + $0x2c] sm:$0xf] %vm479_vm3, %v541_v55  ;;  %v539_v0 = vpack.c.bf16 %v408_v56, %v408_v56  ;;  %v403_v1 = vmax.f32 %v387_v57, 0.0  ;;  %v390_v2 = vadd.f32 %v773_v50, %v367_v59  ;;  %v365_v3 = vmul.f32 %v766_v44, %v342_v63 }
  0xea   :  { %v536_v4 = vpack.c.bf16 %v405_v60, %v405_v60  ;;  %v413_v5 = vmax.f32 %v397_v61, 0.0  ;;  %v395_v6 = vadd.f32 %v773_v50, %v372_v62  ;;  %v352_v8 = vld [vmem:[#allocation2 + $0x78] sm:$0xff] }
  0xeb   :  { %489 = vst.msk [vmem:[%s887_s6 + $0x24] sm:$0xf] %vm479_vm3, %v539_v0  ;;  %v534_v10 = vpack.c.bf16 %v403_v1, %v403_v1  ;;  %v406_v11 = vmax.f32 %v390_v2, 0.0  ;;  %v375_v12 = vmul.f32 %v766_v44, %v352_v8  ;;  %v388_v13 = vadd.f32 %v773_v50, %v365_v3 }
  0xec   :  { %v350_v14 = vld [vmem:[#allocation2 + $0x68] sm:$0xff]  ;;  %486 = vst.msk [vmem:[%s887_s6 + $0x18] sm:$0xf] %vm479_vm3, %v536_v4  ;;  %v544_v15 = vpack.c.bf16 %v413_v5, %v413_v5  ;;  %v411_v16 = vmax.f32 %v395_v6, 0.0 }
  0xed   :  { %v373_v17 = vmul.f32 %v766_v44, %v350_v14  ;;  %484 = vst.msk [vmem:[%s887_s6 + $0x10] sm:$0xf] %vm479_vm3, %v534_v10  ;;  %v537_v18 = vpack.c.bf16 %v406_v11, %v406_v11  ;;  %v398_v19 = vadd.f32 %v773_v50, %v375_v12  ;;  %v404_v20 = vmax.f32 %v388_v13, 0.0 }
  0xee   :  { %494 = vst.msk [vmem:[%s887_s6 + $0x38] sm:$0xf] %vm479_vm3, %v544_v15  ;;  %v542_v21 = vpack.c.bf16 %v411_v16, %v411_v16 }
  0xef   :  { %v396_v22 = vadd.f32 %v773_v50, %v373_v17  ;;  %487 = vst.msk [vmem:[%s887_s6 + $0x1c] sm:$0xf] %vm479_vm3, %v537_v18  ;;  %v414_v44 = vmax.f32 %v398_v19, 0.0  ;;  %v535_v23 = vpack.c.bf16 %v404_v20, %v404_v20 }
  0xf0   :  { %492 = vst.msk [vmem:[%s887_s6 + $0x30] sm:$0xf] %vm479_vm3, %v542_v21 }
  0xf1   :  { %v412_v7 = vmax.f32 %v396_v22, 0.0  ;;  %v545_v24 = vpack.c.bf16 %v414_v44, %v414_v44  ;;  %485 = vst.msk [vmem:[%s887_s6 + $0x14] sm:$0xf] %vm479_vm3, %v535_v23 }
  0xf3   :  { %v543_v50 = vpack.c.bf16 %v412_v7, %v412_v7  ;;  %495 = vst.msk [vmem:[%s887_s6 + $0x3c] sm:$0xf] %vm479_vm3, %v545_v24 }
  0xf5   :  { %493 = vst.msk [vmem:[%s887_s6 + $0x34] sm:$0xf] %vm479_vm3, %v543_v50 }

// kernel: densenet_classifier_forward.28
= control target key start
LH: loop header
LB: loop body
LE: loop exit
PB: predicated region body
PF: predicated region fallthrough
CT: control target
= control target key end

     0   :  { %s1198_s9 = smov 0   ;;  %s1200_s10 = smov 0   ;;  %s1415_s0 = inlined_call_operand.vmem [shape: bf16[128,512], index: 0, kind: input, shape index: {}]   ;;  %s1416_s1 = inlined_call_operand.vmem [shape: bf16[512,8], index: 1, kind: input, shape index: {}]   ;;  %s1417_s2 = inlined_call_operand.vmem [shape: bf16[128,8], index: 2, kind: output, shape index: {}]  }
   0x1   :  { %s1202_s11 = smov 0   ;;  %s1204_s12 = smov 0  }
   0x2   :  { %s1206_s13 = smov 0  }
   0x3 LB: > { %s24_s14 = sadd.s32 1, %s1176_s12  ;;  %p47_p1 = scmp.ne.s32.totalorder %s1168_s10, %s1164_s9  ;;  %s1180_s13 = sphi %s1206_s13, %s12_s13   ;;  %s1176_s12 = sphi %s1204_s12, %s1421_s12   ;;  %s1172_s11 = sphi %s1202_s11, %s1420_s11   ;;  %s1168_s10 = sphi %s1200_s10, %s1419_s10   ;;  %s1164_s9 = sphi %s1198_s9, %s1418_s9  }
   0x4   : > { %p25_p0 = scmp.ge.s32.totalorder %s24_s14, 2  ;;  %p48_p2 = scmp.eq.s32.totalorder %s1180_s13, 0 }
   0x5   : > { %s40_s16 = sadd.s32 1, %s1168_s10  ;;  %p902_p5 = scmp.ge.s32.totalorder %s1180_s13, 2 }
   0x6   : > { %s1423_s14 = smov (%p25_p0, %s24_s14), 0  ;;  %p49_p3 = por %p48_p2, %p47_p1 }
   0x7   : > { %s36_s15 = ssub.s32 %s1176_s12, %s1423_s14  ;;  %129 = sbr.rel (%p902_p5) target bundleno = 24 (0x18), region = 16 }
   0x8   : > { %p38_p4 = scmp.eq.s32.totalorder %s36_s15, 0 }
   0xa   : > { %s1233_s17 = scalar_select %p38_p4, %s1168_s10, %s40_s16  }
   0xc   : > { %132 = sbr.rel (!%p49_p3) target bundleno = 24 (0x18), region = 20  ;;  %s134_s18 = sand.u32 (%p49_p3), 1, %s1168_s10  }
   0xd   : > { %s964_s19 = sshll.u32 (%p49_p3), %s1176_s12, 3  ;;  %s903_s20 = sshll.u32 (%p49_p3), %s134_s18, 7 }
   0xe   : > { %s1241_s23 = scalar_lea.vmem (%p49_p3), %s1415_s0, %s964_s19  ;;  %s136_s24 = scalar_lea.vmem (%p49_p3), [#allocation3], %s903_s20 }
   0xf   : > { %v201_v0 = vld [vmem:[%s1241_s23] sm:$0xff] (%p49_p3)  ;;  %v203_v1 = vld [vmem:[%s1241_s23 + $0x10] sm:$0xff] (%p49_p3) }
  0x10   : > { %v205_v2 = vld [vmem:[%s1241_s23 + $0x20] sm:$0xff] (%p49_p3)  ;;  %202 = vst [vmem:[%s136_s24] sm:$0xff] (%p49_p3), %v201_v0  ;;  %204 = vst [vmem:[%s136_s24 + $0x8] sm:$0xff] (%p49_p3), %v203_v1  ;;  %v207_v3 = vld [vmem:[%s1241_s23 + $0x30] sm:$0xff] (%p49_p3) }
  0x11   : > { %206 = vst [vmem:[%s136_s24 + $0x10] sm:$0xff] %v205_v2  ;;  %v209_v4 = vld [vmem:[%s1241_s23 + $0x40] sm:$0xff]  ;;  %v211_v5 = vld [vmem:[%s1241_s23 + $0x50] sm:$0xff]  ;;  %208 = vst [vmem:[%s136_s24 + $0x18] sm:$0xff] %v207_v3 }
  0x12   : > { %210 = vst [vmem:[%s136_s24 + $0x20] sm:$0xff] %v209_v4  ;;  %212 = vst [vmem:[%s136_s24 + $0x28] sm:$0xff] %v211_v5  ;;  %v213_v6 = vld [vmem:[%s1241_s23 + $0x60] sm:$0xff]  ;;  %v215_v7 = vld [vmem:[%s1241_s23 + $0x70] sm:$0xff] }
  0x13   : > { %v217_v8 = vld [vmem:[%s1241_s23 + $0x80] sm:$0xff]  ;;  %214 = vst [vmem:[%s136_s24 + $0x30] sm:$0xff] %v213_v6  ;;  %216 = vst [vmem:[%s136_s24 + $0x38] sm:$0xff] %v215_v7  ;;  %v219_v9 = vld [vmem:[%s1241_s23 + $0x90] sm:$0xff] }
  0x14   : > { %218 = vst [vmem:[%s136_s24 + $0x40] sm:$0xff] %v217_v8  ;;  %v221_v10 = vld [vmem:[%s1241_s23 + $0xa0] sm:$0xff]  ;;  %v223_v11 = vld [vmem:[%s1241_s23 + $0xb0] sm:$0xff]  ;;  %220 = vst [vmem:[%s136_s24 + $0x48] sm:$0xff] %v219_v9 }
  0x15   : > { %222 = vst [vmem:[%s136_s24 + $0x50] sm:$0xff] %v221_v10  ;;  %224 = vst [vmem:[%s136_s24 + $0x58] sm:$0xff] %v223_v11  ;;  %v225_v12 = vld [vmem:[%s1241_s23 + $0xc0] sm:$0xff]  ;;  %v227_v13 = vld [vmem:[%s1241_s23 + $0xd0] sm:$0xff] }
  0x16   : > { %v229_v14 = vld [vmem:[%s1241_s23 + $0xe0] sm:$0xff]  ;;  %226 = vst [vmem:[%s136_s24 + $0x60] sm:$0xff] %v225_v12  ;;  %228 = vst [vmem:[%s136_s24 + $0x68] sm:$0xff] %v227_v13  ;;  %v231_v15 = vld [vmem:[%s1241_s23 + $0xf0] sm:$0xff] }
  0x17   : > { %230 = vst [vmem:[%s136_s24 + $0x70] sm:$0xff] %v229_v14  ;;  %232 = vst [vmem:[%s136_s24 + $0x78] sm:$0xff] %v231_v15 }
  0x18 PF: > { %p906_p6 = scmp.ge.s32.totalorder %s1180_s13, 1  ;;  %p249_p7 = scmp.lt.s32.totalorder %s1180_s13, 3 }
  0x1a   : > { %p250_p8 = pnand %p906_p6, %p249_p7 }
  0x1b   : > { %s256_s25 = sand.u32 (!%p250_p8), 1, %s1164_s9   ;;  %s908_s26 = sshll.u32 (!%p250_p8), %s1172_s11, 5 }
  0x1c   : > { %253 = sbr.rel (%p250_p8) target bundleno = 319 (0x13f), region = 62  ;;  %s907_s27 = sshll.u32 (!%p250_p8), %s256_s25, 7 }
  0x1d   : > { %p291_p9 = scmp.lt.s32.totalorder (!%p250_p8), %s908_s26, 63  ;;  %s1268_s4 = scalar_lea.vmem (!%p250_p8), [#allocation3], %s907_s27 }
  0x1e   : > { %p910_p10 = scmp.ne.s32.totalorder (!%p250_p8), %s1172_s11, 0 }
  0x21   : > { %s1425_s26 = smov (!%p291_p9, %s908_s26), 63  ;;  %312 = sbr.rel (%p910_p10) target bundleno = 47 (0x2f), region = 70 }
  0x22   : > { %s909_s28 = sshll.u32 %s1425_s26, 2 }
  0x23   : > { %s1266_s3 = scalar_lea.vmem %s1416_s1, %s909_s28 }
  0x26   : > { %vm313_vm0 = vcmask 64512   ;;  %v1182_v16 = vmov 0.0  }
  0x27   : > { %314 = vst.msk [vmem:[#allocation2] sm:$0xff] %vm313_vm0, %v1182_v16  ;;  %315 = vst.msk [vmem:[#allocation2 + $0x8] sm:$0xff] %vm313_vm0, %v1182_v16 }
  0x28   : > { %316 = vst.msk [vmem:[#allocation2 + $0x10] sm:$0xff] %vm313_vm0, %v1182_v16  ;;  %317 = vst.msk [vmem:[#allocation2 + $0x18] sm:$0xff] %vm313_vm0, %v1182_v16 }
  0x29   : > { %318 = vst.msk [vmem:[#allocation2 + $0x20] sm:$0xff] %vm313_vm0, %v1182_v16  ;;  %319 = vst.msk [vmem:[#allocation2 + $0x28] sm:$0xff] %vm313_vm0, %v1182_v16 }
  0x2a   : > { %320 = vst.msk [vmem:[#allocation2 + $0x30] sm:$0xff] %vm313_vm0, %v1182_v16  ;;  %321 = vst.msk [vmem:[#allocation2 + $0x38] sm:$0xff] %vm313_vm0, %v1182_v16 }
  0x2b   : > { %322 = vst.msk [vmem:[#allocation2 + $0x40] sm:$0xff] %vm313_vm0, %v1182_v16  ;;  %323 = vst.msk [vmem:[#allocation2 + $0x48] sm:$0xff] %vm313_vm0, %v1182_v16 }
  0x2c   : > { %324 = vst.msk [vmem:[#allocation2 + $0x50] sm:$0xff] %vm313_vm0, %v1182_v16  ;;  %325 = vst.msk [vmem:[#allocation2 + $0x58] sm:$0xff] %vm313_vm0, %v1182_v16 }
  0x2d   : > { %326 = vst.msk [vmem:[#allocation2 + $0x60] sm:$0xff] %vm313_vm0, %v1182_v16  ;;  %327 = vst.msk [vmem:[#allocation2 + $0x68] sm:$0xff] %vm313_vm0, %v1182_v16 }
  0x2e   : > { %328 = vst.msk [vmem:[#allocation2 + $0x70] sm:$0xff] %vm313_vm0, %v1182_v16  ;;  %329 = vst.msk [vmem:[#allocation2 + $0x78] sm:$0xff] %vm313_vm0, %v1182_v16 }
  0x2f PF: > { %v1102_v17 = vld [vmem:[%s1266_s3 + $0x78] sm:$0xff]   ;;  %v1104_v19 = vld [vmem:[%s1266_s3 + $0x70] sm:$0xff]   ;;  %v1106_v21 = vld [vmem:[%s1266_s3 + $0x68] sm:$0xff]   ;;  %vm683_vm1 = vcmask 64512   ;;  %p943_p11 = scmp.ne.s32.totalorder %s1172_s11, 1 }
  0x30   : > { %v1103_v18 = vld [vmem:[%s1266_s3 + $0x38] sm:$0xff]   ;;  %981 = vmatprep.subr.bf16.mxu0 %v1102_v17  ;;  %1045 = vmatprep.subr.bf16.mxu1 %v1102_v17  ;;  %v1105_v20 = vld [vmem:[%s1266_s3 + $0x30] sm:$0xff]   ;;  %v1107_v22 = vld [vmem:[%s1266_s3 + $0x28] sm:$0xff]  }
  0x31   : > { %982 = vmatpush3.bf16.msra.mxu0 %v1103_v18  ;;  %1053 = vmatpush3.bf16.msra.mxu1 %v1103_v18  ;;  %v1108_v23 = vld [vmem:[%s1266_s3 + $0x60] sm:$0xff]   ;;  %v1110_v25 = vld [vmem:[%s1266_s3 + $0x58] sm:$0xff]   ;;  %v1112_v27 = vld [vmem:[%s1266_s3 + $0x50] sm:$0xff]  }
  0x32   : > { %983 = vmatprep.subr.bf16.mxu0 %v1104_v19  ;;  %1046 = vmatprep.subr.bf16.mxu1 %v1104_v19  ;;  %v1109_v24 = vld [vmem:[%s1266_s3 + $0x20] sm:$0xff]   ;;  %v1111_v26 = vld [vmem:[%s1266_s3 + $0x18] sm:$0xff]   ;;  %v1113_v30 = vld [vmem:[%s1266_s3 + $0x10] sm:$0xff]  }
  0x33   : > { %v1120_v28 = vld [vmem:[%s1268_s4 + $0x4] ss:$8 sps:$4 sm:$0xff]   ;;  %v1118_v35 = vld [vmem:[%s1268_s4] ss:$8 sps:$4 sm:$0xff]   ;;  %v1124_v37 = vld [vmem:[%s1268_s4 + $0x14] ss:$8 sps:$4 sm:$0xff]  }
  0x34   : > { %v1123_v29 = vld [vmem:[%s1268_s4 + $0x44] ss:$8 sps:$4 sm:$0xff]   ;;  %602 = vmatprep.mubr.bf16.mxu0 %v1120_v28  ;;  %v1121_v36 = vld [vmem:[%s1268_s4 + $0x40] ss:$8 sps:$4 sm:$0xff]   ;;  %v1126_v38 = vld [vmem:[%s1268_s4 + $0x54] ss:$8 sps:$4 sm:$0xff]  }
  0x35   : > { %984 = vmatpush3.bf16.msra.mxu0 %v1105_v20  ;;  %1054 = vmatpush3.bf16.msra.mxu1 %v1105_v20  ;;  %v1114_v31 = vld [vmem:[%s1266_s3 + $0x48] sm:$0xff]   ;;  %v1116_v33 = vld [vmem:[%s1266_s3 + $0x40] sm:$0xff]   ;;  %v1128_v39 = vld [vmem:[%s1268_s4 + $0x10] ss:$8 sps:$4 sm:$0xff]  }
  0x36   : > { %985 = vmatprep.subr.bf16.mxu0 %v1106_v21  ;;  %1047 = vmatprep.subr.bf16.mxu1 %v1106_v21  ;;  %v1115_v32 = vld [vmem:[%s1266_s3 + $0x8] sm:$0xff]   ;;  %v1117_v34 = vld [vmem:[%s1266_s3] sm:$0xff]   ;;  %v1129_v40 = vld [vmem:[%s1268_s4 + $0x50] ss:$8 sps:$4 sm:$0xff]  }
  0x37   : > { %634 = vmatprep.mubr.bf16.mxu1 %v1123_v29  ;;  %v1130_v41 = vld [vmem:[%s1268_s4 + $0x24] ss:$8 sps:$4 sm:$0xff]   ;;  %v1134_v43 = vld [vmem:[%s1268_s4 + $0x20] ss:$8 sps:$4 sm:$0xff]   ;;  %v1136_v45 = vld [vmem:[%s1268_s4 + $0x34] ss:$8 sps:$4 sm:$0xff]  }
  0x38   : > { %v1132_v42 = vld [vmem:[%s1268_s4 + $0x64] ss:$8 sps:$4 sm:$0xff]   ;;  %v1135_v44 = vld [vmem:[%s1268_s4 + $0x60] ss:$8 sps:$4 sm:$0xff]   ;;  %v1138_v46 = vld [vmem:[%s1268_s4 + $0x74] ss:$8 sps:$4 sm:$0xff]  }
  0x39   : > { %986 = vmatpush3.bf16.msra.mxu0 %v1107_v22  ;;  %1055 = vmatpush3.bf16.msra.mxu1 %v1107_v22  ;;  %v1140_v47 = vld [vmem:[%s1268_s4 + $0x30] ss:$8 sps:$4 sm:$0xff]   ;;  %v346_v51 = vld [vmem:[#allocation2] sm:$0xff]  ;;  %v347_v61 = vld [vmem:[#allocation2 + $0x8] sm:$0xff] }
  0x3a   : > { %987 = vmatprep.subr.bf16.mxu0 %v1108_v23  ;;  %1048 = vmatprep.subr.bf16.mxu1 %v1108_v23  ;;  %v1141_v48 = vld [vmem:[%s1268_s4 + $0x70] ss:$8 sps:$4 sm:$0xff]   ;;  %v354_v53 = vld [vmem:[#allocation2 + $0x40] sm:$0xff]  ;;  %v355_v63 = vld [vmem:[#allocation2 + $0x48] sm:$0xff] }
  0x3b   : > { %v348_v7 = vld [vmem:[#allocation2 + $0x10] sm:$0xff]  ;;  %v349_v17 = vld [vmem:[#allocation2 + $0x18] sm:$0xff]  ;;  %v358_v29 = vld [vmem:[#allocation2 + $0x60] sm:$0xff] }
  0x3c   : > { %v356_v9 = vld [vmem:[#allocation2 + $0x50] sm:$0xff]  ;;  %v357_v19 = vld [vmem:[#allocation2 + $0x58] sm:$0xff] }
  0x3d   : > { %988 = vmatpush3.bf16.msra.mxu0 %v1109_v24  ;;  %1056 = vmatpush3.bf16.msra.mxu1 %v1109_v24 }
  0x3e   : > { %989 = vmatprep.subr.bf16.mxu0 %v1110_v25  ;;  %1049 = vmatprep.subr.bf16.mxu1 %v1110_v25 }
  0x41   : > { %990 = vmatpush3.bf16.msra.mxu0 %v1111_v26  ;;  %1057 = vmatpush3.bf16.msra.mxu1 %v1111_v26 }
  0x42   : > { %991 = vmatprep.subr.bf16.mxu0 %v1112_v27  ;;  %1050 = vmatprep.subr.bf16.mxu1 %v1112_v27  ;;  %v350_v27 = vld [vmem:[#allocation2 + $0x20] sm:$0xff] }
  0x45   : > { %992 = vmatpush3.bf16.msra.mxu0 %v1113_v30  ;;  %1058 = vmatpush3.bf16.msra.mxu1 %v1113_v30 }
  0x46   : > { %993 = vmatprep.subr.bf16.mxu0 %v1114_v31  ;;  %1051 = vmatprep.subr.bf16.mxu1 %v1114_v31 }
  0x49   : > { %994 = vmatpush3.bf16.msra.mxu0 %v1115_v32  ;;  %1059 = vmatpush3.bf16.msra.mxu1 %v1115_v32 }
  0x4a   : > { %995 = vmatprep.subr.bf16.mxu0 %v1116_v33  ;;  %1052 = vmatprep.subr.bf16.mxu1 %v1116_v33 }
  0x4d   : > { %996 = vmatpush3.bf16.msra.mxu0 %v1117_v34  ;;  %1060 = vmatpush3.bf16.msra.mxu1 %v1117_v34 }
  0x50   : > { %603 = vmatmul.mubr.bf16.vlgmr.msra.gmra.mxu0 %v1118_v35  ;;  %635 = vmatmul.mubr.bf16.vlgmr.msra.gmra.mxu1 %v1121_v36 }
  0x51   : > { %610 = vmatprep.mubr.bf16.mxu0 %v1124_v37  ;;  %642 = vmatprep.mubr.bf16.mxu1 %v1126_v38  ;;  %v351_v37 = vld [vmem:[#allocation2 + $0x28] sm:$0xff] }
  0x58   : > { %611 = vmatmul.mubr.bf16.gmra.mxu0 %v1128_v39  ;;  %643 = vmatmul.mubr.bf16.gmra.mxu1 %v1129_v40  ;;  %v359_v39 = vld [vmem:[#allocation2 + $0x68] sm:$0xff] }
  0x59   : > { %618 = vmatprep.mubr.bf16.mxu0 %v1130_v41  ;;  %650 = vmatprep.mubr.bf16.mxu1 %v1132_v42 }
  0x60   : > { %619 = vmatmul.mubr.bf16.gmra.mxu0 %v1134_v43  ;;  %651 = vmatmul.mubr.bf16.gmra.mxu1 %v1135_v44 }
  0x61   : > { %626 = vmatprep.mubr.bf16.mxu0 %v1136_v45  ;;  %658 = vmatprep.mubr.bf16.mxu1 %v1138_v46 }
  0x68   : > { %627 = vmatmul.mubr.bf16.gmra.mxu0 %v1140_v47  ;;  %659 = vmatmul.mubr.bf16.gmra.mxu1 %v1141_v48  ;;  %v352_v47 = vld [vmem:[#allocation2 + $0x30] sm:$0xff] }
 0x110   : > { %v997_v49 = vpop.f32.mrf.mxu0  ;;  %v1021_v50 = vpop.f32.mrf.mxu1 }
 0x112   : > { %v998_v52 = vpop.f32.mrf.mxu0  ;;  %v1022_v54 = vpop.f32.mrf.mxu1 }
 0x113   : > { %v999_v55 = vadd.f32 %v998_v52, %v997_v49  ;;  %v1023_v56 = vadd.f32 %v1022_v54, %v1021_v50  ;;  %v360_v49 = vld [vmem:[#allocation2 + $0x70] sm:$0xff] }
 0x114   : > { %v1000_v57 = vpop.f32.mrf.mxu0  ;;  %v1024_v58 = vpop.f32.mrf.mxu1 }
 0x115   : > { %v667_v59 = vadd.f32 %v999_v55, %v346_v51  ;;  %v675_v60 = vadd.f32 %v1023_v56, %v354_v53 }
 0x116   : > { %v1001_v62 = vpop.f32.mrf.mxu0  ;;  %v1025_v0 = vpop.f32.mrf.mxu1 }
 0x117   : > { %684 = vst.msk [vmem:[#allocation2] sm:$0xff] %vm683_vm1, %v667_v59  ;;  %692 = vst.msk [vmem:[#allocation2 + $0x40] sm:$0xff] %vm683_vm1, %v675_v60  ;;  %v1002_v1 = vadd.f32 %v1001_v62, %v1000_v57  ;;  %v1026_v2 = vadd.f32 %v1025_v0, %v1024_v58  ;;  %v353_v57 = vld [vmem:[#allocation2 + $0x38] sm:$0xff] }
 0x118   : > { %v1003_v3 = vpop.f32.mrf.mxu0  ;;  %v1027_v4 = vpop.f32.mrf.mxu1  ;;  %v361_v59 = vld [vmem:[#allocation2 + $0x78] sm:$0xff] }
 0x119   : > { %v668_v5 = vadd.f32 %v1002_v1, %v347_v61  ;;  %v676_v6 = vadd.f32 %v1026_v2, %v355_v63 }
 0x11a   : > { %v1004_v8 = vpop.f32.mrf.mxu0  ;;  %v1028_v10 = vpop.f32.mrf.mxu1 }
 0x11b   : > { %685 = vst.msk [vmem:[#allocation2 + $0x8] sm:$0xff] %vm683_vm1, %v668_v5  ;;  %693 = vst.msk [vmem:[#allocation2 + $0x48] sm:$0xff] %vm683_vm1, %v676_v6  ;;  %v1005_v11 = vadd.f32 %v1004_v8, %v1003_v3  ;;  %v1029_v12 = vadd.f32 %v1028_v10, %v1027_v4 }
 0x11c   : > { %v1006_v13 = vpop.f32.mrf.mxu0  ;;  %v1030_v14 = vpop.f32.mrf.mxu1 }
 0x11d   : > { %v669_v15 = vadd.f32 %v1005_v11, %v348_v7  ;;  %v677_v16 = vadd.f32 %v1029_v12, %v356_v9 }
 0x11e   : > { %v1007_v18 = vpop.f32.mrf.mxu0  ;;  %v1031_v20 = vpop.f32.mrf.mxu1 }
 0x11f   : > { %686 = vst.msk [vmem:[#allocation2 + $0x10] sm:$0xff] %vm683_vm1, %v669_v15  ;;  %694 = vst.msk [vmem:[#allocation2 + $0x50] sm:$0xff] %vm683_vm1, %v677_v16  ;;  %v1008_v21 = vadd.f32 %v1007_v18, %v1006_v13  ;;  %v1032_v22 = vadd.f32 %v1031_v20, %v1030_v14 }
 0x120   : > { %v1009_v23 = vpop.f32.mrf.mxu0  ;;  %v1033_v24 = vpop.f32.mrf.mxu1 }
 0x121   : > { %v670_v25 = vadd.f32 %v1008_v21, %v349_v17  ;;  %v678_v26 = vadd.f32 %v1032_v22, %v357_v19 }
 0x122   : > { %v1010_v28 = vpop.f32.mrf.mxu0  ;;  %v1034_v30 = vpop.f32.mrf.mxu1 }
 0x123   : > { %687 = vst.msk [vmem:[#allocation2 + $0x18] sm:$0xff] %vm683_vm1, %v670_v25  ;;  %695 = vst.msk [vmem:[#allocation2 + $0x58] sm:$0xff] %vm683_vm1, %v678_v26  ;;  %v1011_v31 = vadd.f32 %v1010_v28, %v1009_v23  ;;  %v1035_v32 = vadd.f32 %v1034_v30, %v1033_v24 }
 0x124   : > { %v1012_v33 = vpop.f32.mrf.mxu0  ;;  %v1036_v34 = vpop.f32.mrf.mxu1 }
 0x125   : > { %v671_v35 = vadd.f32 %v1011_v31, %v350_v27  ;;  %v679_v36 = vadd.f32 %v1035_v32, %v358_v29 }
 0x126   : > { %v1013_v38 = vpop.f32.mrf.mxu0  ;;  %v1037_v40 = vpop.f32.mrf.mxu1 }
 0x127   : > { %688 = vst.msk [vmem:[#allocation2 + $0x20] sm:$0xff] %vm683_vm1, %v671_v35  ;;  %696 = vst.msk [vmem:[#allocation2 + $0x60] sm:$0xff] %vm683_vm1, %v679_v36  ;;  %v1014_v41 = vadd.f32 %v1013_v38, %v1012_v33  ;;  %v1038_v42 = vadd.f32 %v1037_v40, %v1036_v34 }
 0x128   : > { %v1015_v43 = vpop.f32.mrf.mxu0  ;;  %v1039_v44 = vpop.f32.mrf.mxu1 }
 0x129   : > { %v672_v45 = vadd.f32 %v1014_v41, %v351_v37  ;;  %v680_v46 = vadd.f32 %v1038_v42, %v359_v39 }
 0x12a   : > { %v1016_v48 = vpop.f32.mrf.mxu0  ;;  %v1040_v50 = vpop.f32.mrf.mxu1 }
 0x12b   : > { %689 = vst.msk [vmem:[#allocation2 + $0x28] sm:$0xff] %vm683_vm1, %v672_v45  ;;  %697 = vst.msk [vmem:[#allocation2 + $0x68] sm:$0xff] %vm683_vm1, %v680_v46  ;;  %v1017_v51 = vadd.f32 %v1016_v48, %v1015_v43  ;;  %v1041_v52 = vadd.f32 %v1040_v50, %v1039_v44 }
 0x12c   : > { %v1018_v53 = vpop.f32.mrf.mxu0  ;;  %v1042_v54 = vpop.f32.mrf.mxu1 }
 0x12d   : > { %v673_v55 = vadd.f32 %v1017_v51, %v352_v47  ;;  %v681_v56 = vadd.f32 %v1041_v52, %v360_v49 }
 0x12e   : > { %v1019_v58 = vpop.f32.mrf.mxu0  ;;  %v1043_v60 = vpop.f32.mrf.mxu1 }
 0x12f   : > { %690 = vst.msk [vmem:[#allocation2 + $0x30] sm:$0xff] %vm683_vm1, %v673_v55  ;;  %698 = vst.msk [vmem:[#allocation2 + $0x70] sm:$0xff] %vm683_vm1, %v681_v56  ;;  %v1020_v61 = vadd.f32 %v1019_v58, %v1018_v53  ;;  %v1044_v62 = vadd.f32 %v1043_v60, %v1042_v54  ;;  %703 = sbr.rel (%p943_p11) target bundleno = 319 (0x13f), region = 74 }
 0x131   : > { %v674_v63 = vadd.f32 %v1020_v61, %v353_v57  ;;  %v682_v0 = vadd.f32 %v1044_v62, %v361_v59 }
 0x133   : > { %691 = vst.msk [vmem:[#allocation2 + $0x38] sm:$0xff] %vm683_vm1, %v674_v63  ;;  %699 = vst.msk [vmem:[#allocation2 + $0x78] sm:$0xff] %vm683_vm1, %v682_v0 }
 0x134   : > { %v704_v1 = vld [vmem:[#allocation2] sm:$0xff]  ;;  %vm784_vm2 = vcmask 60416   ;;  %v705_v2 = vld [vmem:[#allocation2 + $0x8] sm:$0xff]  ;;  %v706_v3 = vld [vmem:[#allocation2 + $0x10] sm:$0xff] }
 0x135   : > { %v965_v4 = vpack.c.bf16 %v704_v1, %v704_v1  ;;  %v966_v5 = vpack.c.bf16 %v705_v2, %v705_v2  ;;  %v967_v6 = vpack.c.bf16 %v706_v3, %v706_v3  ;;  %v707_v7 = vld [vmem:[#allocation2 + $0x18] sm:$0xff]  ;;  %v708_v8 = vld [vmem:[#allocation2 + $0x20] sm:$0xff]  ;;  %v709_v9 = vld [vmem:[#allocation2 + $0x28] sm:$0xff] }
 0x136   : > { %v968_v10 = vpack.c.bf16 %v707_v7, %v707_v7  ;;  %v969_v11 = vpack.c.bf16 %v708_v8, %v708_v8  ;;  %v970_v12 = vpack.c.bf16 %v709_v9, %v709_v9  ;;  %v710_v13 = vld [vmem:[#allocation2 + $0x30] sm:$0xff]  ;;  %v712_v15 = vld [vmem:[#allocation2 + $0x40] sm:$0xff]  ;;  %v713_v19 = vld [vmem:[#allocation2 + $0x48] sm:$0xff] }
 0x137   : > { %785 = vst.msk [vmem:[%s1417_s2] sm:$0xf] %vm784_vm2, %v965_v4  ;;  %786 = vst.msk [vmem:[%s1417_s2 + $0x4] sm:$0xf] %vm784_vm2, %v966_v5  ;;  %v971_v16 = vpack.c.bf16 %v710_v13, %v710_v13  ;;  %v973_v18 = vpack.c.bf16 %v712_v15, %v712_v15  ;;  %v714_v20 = vld [vmem:[#allocation2 + $0x50] sm:$0xff]  ;;  %v715_v21 = vld [vmem:[#allocation2 + $0x58] sm:$0xff]  ;;  %v974_v22 = vpack.c.bf16 %v713_v19, %v713_v19 }
 0x138   : > { %787 = vst.msk [vmem:[%s1417_s2 + $0x8] sm:$0xf] %vm784_vm2, %v967_v6  ;;  %788 = vst.msk [vmem:[%s1417_s2 + $0xc] sm:$0xf] %vm784_vm2, %v968_v10  ;;  %v975_v23 = vpack.c.bf16 %v714_v20, %v714_v20  ;;  %v976_v24 = vpack.c.bf16 %v715_v21, %v715_v21  ;;  %v716_v25 = vld [vmem:[#allocation2 + $0x60] sm:$0xff]  ;;  %v717_v26 = vld [vmem:[#allocation2 + $0x68] sm:$0xff] }
 0x139   : > { %789 = vst.msk [vmem:[%s1417_s2 + $0x10] sm:$0xf] %vm784_vm2, %v969_v11  ;;  %790 = vst.msk [vmem:[%s1417_s2 + $0x14] sm:$0xf] %vm784_vm2, %v970_v12  ;;  %v718_v27 = vld [vmem:[#allocation2 + $0x70] sm:$0xff]  ;;  %v977_v28 = vpack.c.bf16 %v716_v25, %v716_v25  ;;  %v978_v29 = vpack.c.bf16 %v717_v26, %v717_v26 }
 0x13a   : > { %v711_v14 = vld [vmem:[#allocation2 + $0x38] sm:$0xff]  ;;  %791 = vst.msk [vmem:[%s1417_s2 + $0x18] sm:$0xf] %vm784_vm2, %v971_v16  ;;  %793 = vst.msk [vmem:[%s1417_s2 + $0x20] sm:$0xf] %vm784_vm2, %v973_v18  ;;  %v979_v30 = vpack.c.bf16 %v718_v27, %v718_v27 }
 0x13b   : > { %v972_v17 = vpack.c.bf16 %v711_v14, %v711_v14  ;;  %v719_v31 = vld [vmem:[#allocation2 + $0x78] sm:$0xff]  ;;  %794 = vst.msk [vmem:[%s1417_s2 + $0x24] sm:$0xf] %vm784_vm2, %v974_v22  ;;  %795 = vst.msk [vmem:[%s1417_s2 + $0x28] sm:$0xf] %vm784_vm2, %v975_v23 }
 0x13c   : > { %796 = vst.msk [vmem:[%s1417_s2 + $0x2c] sm:$0xf] %vm784_vm2, %v976_v24  ;;  %v980_v32 = vpack.c.bf16 %v719_v31, %v719_v31  ;;  %797 = vst.msk [vmem:[%s1417_s2 + $0x30] sm:$0xf] %vm784_vm2, %v977_v28 }
 0x13d   : > { %792 = vst.msk [vmem:[%s1417_s2 + $0x1c] sm:$0xf] %vm784_vm2, %v972_v17  ;;  %798 = vst.msk [vmem:[%s1417_s2 + $0x34] sm:$0xf] %vm784_vm2, %v978_v29 }
 0x13e   : > { %799 = vst.msk [vmem:[%s1417_s2 + $0x38] sm:$0xf] %vm784_vm2, %v979_v30  ;;  %800 = vst.msk [vmem:[%s1417_s2 + $0x3c] sm:$0xf] %vm784_vm2, %v980_v32 }
 0x13f PF: > { %s12_s13 = sadd.s32 1, %s1180_s13   ;;  %s1418_s9 = smov %s1168_s10 }
 0x140   : > { %p9_p12 = scmp.ge.s32.totalorder %s12_s13, 4   ;;  %s1419_s10 = smov %s1233_s17 }
 0x141   : > { %s1420_s11 = smov %s1176_s12  ;;  %s1421_s12 = smov %s1423_s14 }
 0x142   :  { %11 = sbr.rel (!%p9_p12) target bundleno = 3 (0x3), region = 112 }

// kernel: densenet_classifier_forward.32
= control target key start
LH: loop header
LB: loop body
LE: loop exit
PB: predicated region body
PF: predicated region fallthrough
CT: control target
= control target key end

     0   :  { %vm40_vm0 = vcmask 130048   ;;  %vm89_vm1 = vcmask 125952   ;;  %s211_s0 = inlined_call_operand.vmem [shape: bf16[4,32,16], index: 0, kind: input, shape index: {}]   ;;  %s212_s1 = inlined_call_operand.vmem [shape: bf16[32,16], index: 1, kind: output, shape index: {}]  }
   0x1   :  { %v107_v0 = vld [vmem:[%s211_s0] sm:$0xff]   ;;  %v139_v1 = vld [vmem:[%s211_s0 + $0x10] sm:$0xff]   ;;  %v138_v12 = vld [vmem:[%s211_s0 + $0x8] sm:$0xff]  }
   0x2   :  { %v141_v2 = vld [vmem:[%s211_s0 + $0x20] sm:$0xff]   ;;  %v108_v3 = vunpack.c.l.bf16 %v107_v0  ;;  %v116_v4 = vunpack.c.l.bf16 %v139_v1  ;;  %v143_v6 = vld [vmem:[%s211_s0 + $0x30] sm:$0xff]   ;;  %v109_v7 = vunpack.c.h.bf16 %v107_v0  ;;  %v117_v9 = vunpack.c.h.bf16 %v139_v1  ;;  %v140_v13 = vld [vmem:[%s211_s0 + $0x18] sm:$0xff]  }
   0x3   :  { %v124_v5 = vunpack.c.l.bf16 %v141_v2  ;;  %v132_v8 = vunpack.c.l.bf16 %v143_v6  ;;  %v125_v10 = vunpack.c.h.bf16 %v141_v2  ;;  %v133_v11 = vunpack.c.h.bf16 %v143_v6  ;;  %v142_v18 = vld [vmem:[%s211_s0 + $0x28] sm:$0xff]   ;;  %v144_v19 = vld [vmem:[%s211_s0 + $0x38] sm:$0xff]  }
   0x4   :  { %v41_v14 = vsel %vm40_vm0, %v108_v3, 0.0  ;;  %v42_v15 = vsel %vm40_vm0, %v116_v4, 0.0  ;;  %v48_v17 = vsel %vm40_vm0, %v109_v7, 0.0  ;;  %v49_v22 = vsel %vm40_vm0, %v117_v9, 0.0 }
   0x5   :  { %v44_v16 = vsel %vm40_vm0, %v124_v5, 0.0  ;;  %v43_v20 = vadd.f32 %v42_v15, %v41_v14  ;;  %v46_v21 = vsel %vm40_vm0, %v132_v8, 0.0  ;;  %v51_v23 = vsel %vm40_vm0, %v125_v10, 0.0 }
   0x6   :  { %v50_v24 = vadd.f32 %v49_v22, %v48_v17  ;;  %v53_v25 = vsel %vm40_vm0, %v133_v11, 0.0  ;;  %v112_v26 = vunpack.c.l.bf16 %v138_v12  ;;  %v120_v27 = vunpack.c.l.bf16 %v140_v13 }
   0x7   :  { %v45_v28 = vadd.f32 %v44_v16, %v43_v20  ;;  %v128_v29 = vunpack.c.l.bf16 %v142_v18  ;;  %v136_v30 = vunpack.c.l.bf16 %v144_v19  ;;  %v113_v31 = vunpack.c.h.bf16 %v138_v12 }
   0x8   :  { %v52_v32 = vadd.f32 %v51_v23, %v50_v24  ;;  %v55_v33 = vsel %vm40_vm0, %v112_v26, 0.0  ;;  %v56_v34 = vsel %vm40_vm0, %v120_v27, 0.0  ;;  %v121_v35 = vunpack.c.h.bf16 %v140_v13 }
   0x9   :  { %v47_v36 = vadd.f32 %v46_v21, %v45_v28  ;;  %v57_v37 = vadd.f32 %v56_v34, %v55_v33  ;;  %v58_v38 = vsel %vm40_vm0, %v128_v29, 0.0  ;;  %v60_v39 = vsel %vm40_vm0, %v136_v30, 0.0 }
   0xa   :  { %v54_v40 = vadd.f32 %v53_v25, %v52_v32  ;;  %v129_v41 = vunpack.c.h.bf16 %v142_v18  ;;  %v137_v42 = vunpack.c.h.bf16 %v144_v19  ;;  %v62_v43 = vsel %vm40_vm0, %v113_v31, 0.0 }
   0xb   :  { %v69_v44 = vmul.f32 0.25, %v47_v36  ;;  %v59_v45 = vadd.f32 %v58_v38, %v57_v37  ;;  %v63_v46 = vsel %vm40_vm0, %v121_v35, 0.0 }
   0xc   :  { %v70_v47 = vmul.f32 0.25, %v54_v40  ;;  %v64_v48 = vadd.f32 %v63_v46, %v62_v43  ;;  %v65_v49 = vsel %vm40_vm0, %v129_v41, 0.0  ;;  %v67_v52 = vsel %vm40_vm0, %v137_v42, 0.0 }
   0xd   :  { %v102_v50 = vpack.c.bf16 %v69_v44, %v69_v44  ;;  %v61_v51 = vadd.f32 %v60_v39, %v59_v45 }
   0xe   :  { %v103_v53 = vpack.c.bf16 %v70_v47, %v70_v47  ;;  %v66_v54 = vadd.f32 %v65_v49, %v64_v48 }
   0xf   :  { %90 = vst.msk [vmem:[%s212_s1] sm:$0xf] %vm89_vm1, %v102_v50  ;;  %v71_v55 = vmul.f32 0.25, %v61_v51 }
  0x10   :  { %91 = vst.msk [vmem:[%s212_s1 + $0x4] sm:$0xf] %vm89_vm1, %v103_v53  ;;  %v68_v56 = vadd.f32 %v67_v52, %v66_v54 }
  0x11   :  { %v104_v57 = vpack.c.bf16 %v71_v55, %v71_v55 }
  0x12   :  { %v72_v58 = vmul.f32 0.25, %v68_v56 }
  0x13   :  { %92 = vst.msk [vmem:[%s212_s1 + $0x8] sm:$0xf] %vm89_vm1, %v104_v57 }
  0x14   :  { %v105_v59 = vpack.c.bf16 %v72_v58, %v72_v58 }
  0x16   :  { %93 = vst.msk [vmem:[%s212_s1 + $0xc] sm:$0xf] %vm89_vm1, %v105_v59 }

// kernel: densenet_classifier_forward.31
= control target key start
LH: loop header
LB: loop body
LE: loop exit
PB: predicated region body
PF: predicated region fallthrough
CT: control target
= control target key end

     0   :  { %vm22_vm0 = vcmask 130048   ;;  %v552_v1 = vmov 0.0   ;;  %vm173_vm1 = vcmask 261120   ;;  %vm411_vm2 = vcmask 125952   ;;  %s754_s1 = inlined_call_operand.vmem [shape: bf16[32,16], index: 1, kind: input, shape index: {}]   ;;  %s755_s0 = inlined_call_operand.vmem [shape: bf16[128,32], index: 0, kind: input, shape index: {}]   ;;  %s756_s2 = inlined_call_operand.vmem [shape: f32[1,32], index: 2, kind: input, shape index: {}]   ;;  %s757_s3 = inlined_call_operand.vmem [shape: f32[1,32], index: 3, kind: input, shape index: {}]   ;;  %s758_s4 = inlined_call_operand.vmem [shape: bf16[128,16], index: 4, kind: output, shape index: {}]  }
   0x1   :  { %v550_v0 = vld [vmem:[%s754_s1 + $0x8] sm:$0xff]   ;;  %25 = vst.msk [vmem:[#allocation2 + $0x10] sm:$0xff] %vm22_vm0, %v552_v1  ;;  %23 = vst.msk [vmem:[#allocation2] sm:$0xff] %vm22_vm0, %v552_v1  ;;  %v551_v2 = vld [vmem:[%s754_s1] sm:$0xff]  }
   0x2   :  { %24 = vst.msk [vmem:[#allocation2 + $0x8] sm:$0xff] %vm22_vm0, %v552_v1  ;;  %26 = vst.msk [vmem:[#allocation2 + $0x18] sm:$0xff] %vm22_vm0, %v552_v1  ;;  %525 = vmatprep.subr.bf16.mxu0 %v550_v0  ;;  %545 = vmatprep.subr.bf16.mxu1 %v550_v0  ;;  %v477_v3 = vld [vmem:[%s755_s0] sm:$0xff]   ;;  %v508_v8 = vld [vmem:[%s755_s0 + $0x8] sm:$0xff]  }
   0x3   :  { %27 = vst.msk [vmem:[#allocation2 + $0x20] sm:$0xff] %vm22_vm0, %v552_v1  ;;  %28 = vst.msk [vmem:[#allocation2 + $0x28] sm:$0xff] %vm22_vm0, %v552_v1  ;;  %v606_v4 = vld [vmem:[%s756_s2] ss:$0 sm:$0xff]  ;;  %526 = vmatpush3.bf16.msra.mxu0 %v550_v0  ;;  %547 = vmatpush3.bf16.msra.mxu1 %v550_v0  ;;  %v478_v5 = vunpack.c.l.bf16 %v477_v3  ;;  %v479_v6 = vunpack.c.h.bf16 %v477_v3  ;;  %v512_v9 = vld [vmem:[%s755_s0 + $0x28] sm:$0xff]   ;;  %v482_v13 = vunpack.c.l.bf16 %v508_v8  ;;  %v483_v14 = vunpack.c.h.bf16 %v508_v8 }
   0x4   :  { %29 = vst.msk [vmem:[#allocation2 + $0x30] sm:$0xff] %vm22_vm0, %v552_v1  ;;  %30 = vst.msk [vmem:[#allocation2 + $0x38] sm:$0xff] %vm22_vm0, %v552_v1  ;;  %v511_v7 = vld [vmem:[%s755_s0 + $0x20] sm:$0xff]   ;;  %527 = vmatprep.subr.bf16.mxu0 %v551_v2  ;;  %546 = vmatprep.subr.bf16.mxu1 %v551_v2  ;;  %v509_v15 = vld [vmem:[%s755_s0 + $0x10] sm:$0xff]   ;;  %v498_v18 = vunpack.c.l.bf16 %v512_v9  ;;  %v499_v19 = vunpack.c.h.bf16 %v512_v9 }
   0x5   :  { %31 = vst.msk [vmem:[#allocation2 + $0x40] sm:$0xff] %vm22_vm0, %v552_v1  ;;  %32 = vst.msk [vmem:[#allocation2 + $0x48] sm:$0xff] %vm22_vm0, %v552_v1  ;;  %v620_v10 = vld [vmem:[%s757_s3] ss:$0 sm:$0xff]  ;;  %v494_v11 = vunpack.c.l.bf16 %v511_v7  ;;  %v495_v12 = vunpack.c.h.bf16 %v511_v7  ;;  %v78_v16 = vmul.f32 %v478_v5, %v606_v4  ;;  %v79_v17 = vmul.f32 %v479_v6, %v606_v4  ;;  %v513_v36 = vld [vmem:[%s755_s0 + $0x30] sm:$0xff]  }
   0x6   :  { %33 = vst.msk [vmem:[#allocation2 + $0x50] sm:$0xff] %vm22_vm0, %v552_v1  ;;  %34 = vst.msk [vmem:[#allocation2 + $0x58] sm:$0xff] %vm22_vm0, %v552_v1  ;;  %v80_v22 = vmul.f32 %v482_v13, %v606_v4  ;;  %v81_v23 = vmul.f32 %v483_v14, %v606_v4  ;;  %v88_v26 = vmul.f32 %v498_v18, %v606_v4  ;;  %v486_v27 = vunpack.c.l.bf16 %v509_v15  ;;  %v510_v41 = vld [vmem:[%s755_s0 + $0x18] sm:$0xff]  }
   0x7   :  { %35 = vst.msk [vmem:[#allocation2 + $0x60] sm:$0xff] %vm22_vm0, %v552_v1  ;;  %36 = vst.msk [vmem:[#allocation2 + $0x68] sm:$0xff] %vm22_vm0, %v552_v1  ;;  %v86_v20 = vmul.f32 %v494_v11, %v606_v4  ;;  %v87_v21 = vmul.f32 %v495_v12, %v606_v4  ;;  %528 = vmatpush3.bf16.msra.mxu0 %v551_v2  ;;  %548 = vmatpush3.bf16.msra.mxu1 %v551_v2  ;;  %v487_v45 = vunpack.c.h.bf16 %v509_v15  ;;  %v514_v46 = vld [vmem:[%s755_s0 + $0x38] sm:$0xff]  }
   0x8   :  { %37 = vst.msk [vmem:[#allocation2 + $0x70] sm:$0xff] %vm22_vm0, %v552_v1  ;;  %38 = vst.msk [vmem:[#allocation2 + $0x78] sm:$0xff] %vm22_vm0, %v552_v1  ;;  %v101_v24 = vadd.f32 %v620_v10, %v78_v16  ;;  %v102_v25 = vadd.f32 %v620_v10, %v79_v17  ;;  %v103_v30 = vadd.f32 %v620_v10, %v80_v22  ;;  %v502_v50 = vunpack.c.l.bf16 %v513_v36 }
   0x9   :  { %v109_v28 = vadd.f32 %v620_v10, %v86_v20  ;;  %v110_v29 = vadd.f32 %v620_v10, %v87_v21  ;;  %v104_v31 = vadd.f32 %v620_v10, %v81_v23  ;;  %v89_v34 = vmul.f32 %v499_v19, %v606_v4 }
   0xa   :  { %v117_v32 = vmax.f32 %v101_v24, 0.0  ;;  %v118_v33 = vmax.f32 %v102_v25, 0.0  ;;  %v111_v35 = vadd.f32 %v620_v10, %v88_v26  ;;  %v119_v39 = vmax.f32 %v103_v30, 0.0  ;;  %v141_v24 = vld [vmem:[#allocation2] sm:$0xff] }
   0xb   :  { %v125_v37 = vmax.f32 %v109_v28, 0.0  ;;  %v126_v38 = vmax.f32 %v110_v29, 0.0  ;;  %v120_v40 = vmax.f32 %v104_v31, 0.0  ;;  %v112_v43 = vadd.f32 %v620_v10, %v89_v34 }
   0xc   :  { %v133_v42 = vpack.c.bf16 %v118_v33, %v117_v32  ;;  %v127_v44 = vmax.f32 %v111_v35, 0.0  ;;  %v82_v49 = vmul.f32 %v486_v27, %v606_v4  ;;  %v83_v52 = vmul.f32 %v487_v45, %v606_v4  ;;  %v149_v30 = vld [vmem:[#allocation2 + $0x40] sm:$0xff]  ;;  %v142_v33 = vld [vmem:[#allocation2 + $0x8] sm:$0xff] }
   0xd   :  { %v137_v47 = vpack.c.bf16 %v126_v38, %v125_v37  ;;  %v134_v48 = vpack.c.bf16 %v120_v40, %v119_v39  ;;  %v128_v51 = vmax.f32 %v112_v43, 0.0  ;;  %v503_v53 = vunpack.c.h.bf16 %v513_v36  ;;  %v151_v26 = vld [vmem:[#allocation2 + $0x50] sm:$0xff]  ;;  %v152_v36 = vld [vmem:[#allocation2 + $0x58] sm:$0xff] }
   0xe   :  { %529 = vmatprep.mubr.msk.bf16.mxu0 %vm173_vm1, %v133_v42  ;;  %v490_v54 = vunpack.c.l.bf16 %v510_v41  ;;  %v105_v55 = vadd.f32 %v620_v10, %v82_v49  ;;  %v90_v56 = vmul.f32 %v502_v50, %v606_v4  ;;  %v491_v57 = vunpack.c.h.bf16 %v510_v41  ;;  %v150_v41 = vld [vmem:[#allocation2 + $0x48] sm:$0xff]  ;;  %v147_v43 = vld [vmem:[#allocation2 + $0x30] sm:$0xff]  ;;  %v145_v49 = vld [vmem:[#allocation2 + $0x20] sm:$0xff] }
   0xf   :  { %537 = vmatprep.mubr.msk.bf16.mxu1 %vm173_vm1, %v137_v47  ;;  %530 = vmatmul.mubr.msk.bf16.vlgmr.msra.gmra.mxu0 %vm173_vm1, %v134_v48  ;;  %v506_v58 = vunpack.c.l.bf16 %v514_v46  ;;  %v138_v59 = vpack.c.bf16 %v128_v51, %v127_v44  ;;  %v106_v60 = vadd.f32 %v620_v10, %v83_v52  ;;  %v91_v61 = vmul.f32 %v503_v53, %v606_v4  ;;  %v155_v48 = vld [vmem:[#allocation2 + $0x70] sm:$0xff] }
  0x10   :  { %v84_v62 = vmul.f32 %v490_v54, %v606_v4  ;;  %v121_v63 = vmax.f32 %v105_v55, 0.0  ;;  %v113_v0 = vadd.f32 %v620_v10, %v90_v56  ;;  %v85_v1 = vmul.f32 %v491_v57, %v606_v4  ;;  %v153_v55 = vld [vmem:[#allocation2 + $0x60] sm:$0xff]  ;;  %v148_v56 = vld [vmem:[#allocation2 + $0x38] sm:$0xff] }
  0x11   :  { %v507_v2 = vunpack.c.h.bf16 %v514_v46  ;;  %538 = vmatmul.mubr.msk.bf16.vlgmr.msra.gmra.mxu1 %vm173_vm1, %v138_v59  ;;  %v122_v3 = vmax.f32 %v106_v60, 0.0  ;;  %v114_v5 = vadd.f32 %v620_v10, %v91_v61  ;;  %v92_v7 = vmul.f32 %v506_v58, %v606_v4 }
  0x12   :  { %v107_v6 = vadd.f32 %v620_v10, %v84_v62  ;;  %v129_v8 = vmax.f32 %v113_v0, 0.0  ;;  %v108_v9 = vadd.f32 %v620_v10, %v85_v1  ;;  %v156_v1 = vld [vmem:[#allocation2 + $0x78] sm:$0xff] }
  0x13   :  { %v93_v11 = vmul.f32 %v507_v2, %v606_v4  ;;  %v135_v12 = vpack.c.bf16 %v122_v3, %v121_v63  ;;  %v130_v13 = vmax.f32 %v114_v5, 0.0  ;;  %v115_v15 = vadd.f32 %v620_v10, %v92_v7  ;;  %v143_v4 = vld [vmem:[#allocation2 + $0x10] sm:$0xff]  ;;  %v146_v2 = vld [vmem:[#allocation2 + $0x28] sm:$0xff] }
  0x14   :  { %v123_v14 = vmax.f32 %v107_v6, 0.0  ;;  %v124_v16 = vmax.f32 %v108_v9, 0.0 }
  0x15   :  { %v116_v17 = vadd.f32 %v620_v10, %v93_v11  ;;  %533 = vmatprep.mubr.msk.bf16.mxu0 %vm173_vm1, %v135_v12  ;;  %v139_v18 = vpack.c.bf16 %v130_v13, %v129_v8  ;;  %v131_v19 = vmax.f32 %v115_v15, 0.0  ;;  %v144_v10 = vld [vmem:[#allocation2 + $0x18] sm:$0xff]  ;;  %v154_v13 = vld [vmem:[#allocation2 + $0x68] sm:$0xff] }
  0x16   :  { %v136_v20 = vpack.c.bf16 %v124_v16, %v123_v14 }
  0x17   :  { %v132_v21 = vmax.f32 %v116_v17, 0.0  ;;  %541 = vmatprep.mubr.msk.bf16.mxu1 %vm173_vm1, %v139_v18 }
  0x18   :  { %534 = vmatmul.mubr.msk.bf16.gmra.mxu0 %vm173_vm1, %v136_v20 }
  0x19   :  { %v140_v22 = vpack.c.bf16 %v132_v21, %v131_v19 }
  0x1b   :  { %542 = vmatmul.mubr.msk.bf16.gmra.mxu1 %vm173_vm1, %v140_v22 }
  0xcf   :  { %v531_v23 = vpop.f32.mrf.mxu0 }
  0xd0   :  { %v297_v25 = vadd.f32 %v531_v23, %v143_v4 }
  0xd1   :  { %v232_v27 = vpop.f32.mrf.mxu0  ;;  %v539_v28 = vpop.f32.mrf.mxu1 }
  0xd2   :  { %314 = vst.msk [vmem:[#allocation2 + $0x10] sm:$0xff] %vm22_vm0, %v297_v25  ;;  %v295_v29 = vadd.f32 %v232_v27, %v141_v24  ;;  %v305_v31 = vadd.f32 %v539_v28, %v151_v26 }
  0xd3   :  { %v532_v32 = vpop.f32.mrf.mxu0  ;;  %v264_v34 = vpop.f32.mrf.mxu1 }
  0xd4   :  { %312 = vst.msk [vmem:[#allocation2] sm:$0xff] %vm22_vm0, %v295_v29  ;;  %v298_v35 = vadd.f32 %v532_v32, %v144_v10  ;;  %322 = vst.msk [vmem:[#allocation2 + $0x50] sm:$0xff] %vm22_vm0, %v305_v31  ;;  %v303_v37 = vadd.f32 %v264_v34, %v149_v30 }
  0xd5   :  { %v235_v38 = vpop.f32.mrf.mxu0  ;;  %v540_v39 = vpop.f32.mrf.mxu1 }
  0xd6   :  { %315 = vst.msk [vmem:[#allocation2 + $0x18] sm:$0xff] %vm22_vm0, %v298_v35  ;;  %v296_v40 = vadd.f32 %v235_v38, %v142_v33  ;;  %320 = vst.msk [vmem:[#allocation2 + $0x40] sm:$0xff] %vm22_vm0, %v303_v37  ;;  %v306_v42 = vadd.f32 %v540_v39, %v152_v36 }
  0xd7   :  { %v267_v44 = vpop.f32.mrf.mxu1 }
  0xd8   :  { %313 = vst.msk [vmem:[#allocation2 + $0x8] sm:$0xff] %vm22_vm0, %v296_v40  ;;  %323 = vst.msk [vmem:[#allocation2 + $0x58] sm:$0xff] %vm22_vm0, %v306_v42  ;;  %v304_v46 = vadd.f32 %v267_v44, %v150_v41  ;;  %v535_v47 = vpop.f32.mrf.mxu0 }
  0xd9   :  { %v333_v45 = vld [vmem:[#allocation2 + $0x10] sm:$0xff]  ;;  %v301_v51 = vadd.f32 %v535_v47, %v147_v43 }
  0xda   :  { %v462_v50 = vpack.c.bf16 %v333_v45, %v333_v45  ;;  %321 = vst.msk [vmem:[#allocation2 + $0x48] sm:$0xff] %vm22_vm0, %v304_v46  ;;  %v248_v54 = vpop.f32.mrf.mxu0 }
  0xdb   :  { %v331_v52 = vld [vmem:[#allocation2] sm:$0xff]  ;;  %v543_v53 = vpop.f32.mrf.mxu1  ;;  %v341_v57 = vld [vmem:[#allocation2 + $0x50] sm:$0xff]  ;;  %318 = vst.msk [vmem:[#allocation2 + $0x30] sm:$0xff] %vm22_vm0, %v301_v51  ;;  %v299_v60 = vadd.f32 %v248_v54, %v145_v49 }
  0xdc   :  { %414 = vst.msk [vmem:[%s758_s4 + $0x8] sm:$0xf] %vm411_vm2, %v462_v50  ;;  %v460_v58 = vpack.c.bf16 %v331_v52, %v331_v52  ;;  %v309_v59 = vadd.f32 %v543_v53, %v155_v48  ;;  %v470_v61 = vpack.c.bf16 %v341_v57, %v341_v57  ;;  %v536_v0 = vpop.f32.mrf.mxu0 }
  0xdd   :  { %v334_v62 = vld [vmem:[#allocation2 + $0x18] sm:$0xff]  ;;  %v280_v63 = vpop.f32.mrf.mxu1  ;;  %v339_v3 = vld [vmem:[#allocation2 + $0x40] sm:$0xff]  ;;  %316 = vst.msk [vmem:[#allocation2 + $0x20] sm:$0xff] %vm22_vm0, %v299_v60  ;;  %v302_v7 = vadd.f32 %v536_v0, %v148_v56 }
  0xde   :  { %412 = vst.msk [vmem:[%s758_s4] sm:$0xf] %vm411_vm2, %v460_v58  ;;  %v463_v5 = vpack.c.bf16 %v334_v62, %v334_v62  ;;  %v307_v6 = vadd.f32 %v280_v63, %v153_v55  ;;  %422 = vst.msk [vmem:[%s758_s4 + $0x28] sm:$0xf] %vm411_vm2, %v470_v61  ;;  %v468_v8 = vpack.c.bf16 %v339_v3, %v339_v3  ;;  %v251_v12 = vpop.f32.mrf.mxu0 }
  0xdf   :  { %326 = vst.msk [vmem:[#allocation2 + $0x70] sm:$0xff] %vm22_vm0, %v309_v59  ;;  %v332_v9 = vld [vmem:[#allocation2 + $0x8] sm:$0xff]  ;;  %v544_v11 = vpop.f32.mrf.mxu1  ;;  %v342_v14 = vld [vmem:[#allocation2 + $0x58] sm:$0xff]  ;;  %319 = vst.msk [vmem:[#allocation2 + $0x38] sm:$0xff] %vm22_vm0, %v302_v7  ;;  %v300_v17 = vadd.f32 %v251_v12, %v146_v2 }
  0xe0   :  { %415 = vst.msk [vmem:[%s758_s4 + $0xc] sm:$0xf] %vm411_vm2, %v463_v5  ;;  %v461_v15 = vpack.c.bf16 %v332_v9, %v332_v9  ;;  %v310_v16 = vadd.f32 %v544_v11, %v156_v1  ;;  %420 = vst.msk [vmem:[%s758_s4 + $0x20] sm:$0xf] %vm411_vm2, %v468_v8  ;;  %v471_v18 = vpack.c.bf16 %v342_v14, %v342_v14 }
  0xe1   :  { %324 = vst.msk [vmem:[#allocation2 + $0x60] sm:$0xff] %vm22_vm0, %v307_v6  ;;  %v283_v19 = vpop.f32.mrf.mxu1  ;;  %v340_v20 = vld [vmem:[#allocation2 + $0x48] sm:$0xff]  ;;  %317 = vst.msk [vmem:[#allocation2 + $0x28] sm:$0xff] %vm22_vm0, %v300_v17 }
  0xe2   :  { %413 = vst.msk [vmem:[%s758_s4 + $0x4] sm:$0xf] %vm411_vm2, %v461_v15  ;;  %v308_v21 = vadd.f32 %v283_v19, %v154_v13  ;;  %423 = vst.msk [vmem:[%s758_s4 + $0x2c] sm:$0xf] %vm411_vm2, %v471_v18  ;;  %v469_v22 = vpack.c.bf16 %v340_v20, %v340_v20  ;;  %v337_v4 = vld [vmem:[#allocation2 + $0x30] sm:$0xff] }
  0xe3   :  { %327 = vst.msk [vmem:[#allocation2 + $0x78] sm:$0xff] %vm22_vm0, %v310_v16  ;;  %v466_v23 = vpack.c.bf16 %v337_v4, %v337_v4 }
  0xe4   :  { %325 = vst.msk [vmem:[#allocation2 + $0x68] sm:$0xff] %vm22_vm0, %v308_v21  ;;  %v335_v25 = vld [vmem:[#allocation2 + $0x20] sm:$0xff] }
  0xe5   :  { %421 = vst.msk [vmem:[%s758_s4 + $0x24] sm:$0xf] %vm411_vm2, %v469_v22  ;;  %418 = vst.msk [vmem:[%s758_s4 + $0x18] sm:$0xf] %vm411_vm2, %v466_v23  ;;  %v464_v27 = vpack.c.bf16 %v335_v25, %v335_v25 }
  0xe6   :  { %v345_v24 = vld [vmem:[#allocation2 + $0x70] sm:$0xff]  ;;  %v338_v28 = vld [vmem:[#allocation2 + $0x38] sm:$0xff] }
  0xe7   :  { %v474_v26 = vpack.c.bf16 %v345_v24, %v345_v24  ;;  %416 = vst.msk [vmem:[%s758_s4 + $0x10] sm:$0xf] %vm411_vm2, %v464_v27  ;;  %v467_v30 = vpack.c.bf16 %v338_v28, %v338_v28 }
  0xe8   :  { %v343_v10 = vld [vmem:[#allocation2 + $0x60] sm:$0xff]  ;;  %v336_v32 = vld [vmem:[#allocation2 + $0x28] sm:$0xff] }
  0xe9   :  { %426 = vst.msk [vmem:[%s758_s4 + $0x38] sm:$0xf] %vm411_vm2, %v474_v26  ;;  %v472_v29 = vpack.c.bf16 %v343_v10, %v343_v10  ;;  %419 = vst.msk [vmem:[%s758_s4 + $0x1c] sm:$0xf] %vm411_vm2, %v467_v30  ;;  %v465_v34 = vpack.c.bf16 %v336_v32, %v336_v32 }
  0xea   :  { %v346_v31 = vld [vmem:[#allocation2 + $0x78] sm:$0xff] }
  0xeb   :  { %424 = vst.msk [vmem:[%s758_s4 + $0x30] sm:$0xf] %vm411_vm2, %v472_v29  ;;  %v475_v33 = vpack.c.bf16 %v346_v31, %v346_v31  ;;  %v344_v35 = vld [vmem:[#allocation2 + $0x68] sm:$0xff]  ;;  %417 = vst.msk [vmem:[%s758_s4 + $0x14] sm:$0xf] %vm411_vm2, %v465_v34 }
  0xec   :  { %v473_v36 = vpack.c.bf16 %v344_v35, %v344_v35 }
  0xed   :  { %427 = vst.msk [vmem:[%s758_s4 + $0x3c] sm:$0xf] %vm411_vm2, %v475_v33 }
  0xee   :  { %425 = vst.msk [vmem:[%s758_s4 + $0x34] sm:$0xf] %vm411_vm2, %v473_v36 }

// kernel: densenet_classifier_forward.33
= control target key start
LH: loop header
LB: loop body
LE: loop exit
PB: predicated region body
PF: predicated region fallthrough
CT: control target
= control target key end

     0   :  { %vm28_vm0 = vcmask 261120   ;;  %v239_v1 = vmov 0.0   ;;  %vm81_vm1 = vcmask 130048   ;;  %vm195_vm2 = vcmask 257024   ;;  %s316_s1 = inlined_call_operand.vmem [shape: bf16[16,32], index: 1, kind: input, shape index: {}]   ;;  %s317_s0 = inlined_call_operand.vmem [shape: bf16[32,16], index: 0, kind: input, shape index: {}]   ;;  %s318_s2 = inlined_call_operand.vmem [shape: f32[1,16], index: 2, kind: input, shape index: {}]   ;;  %s319_s3 = inlined_call_operand.vmem [shape: f32[1,16], index: 3, kind: input, shape index: {}]   ;;  %s320_s4 = inlined_call_operand.vmem [shape: f32[1,32], index: 4, kind: input, shape index: {}]   ;;  %s321_s5 = inlined_call_operand.vmem [shape: f32[1,32], index: 5, kind: input, shape index: {}]   ;;  %s322_s6 = inlined_call_operand.vmem [shape: bf16[32,32], index: 6, kind: output, shape index: {}]  }
   0x1   :  { %v238_v0 = vld [vmem:[%s316_s1] sm:$0xff]   ;;  %31 = vst.msk [vmem:[#allocation2 + $0x10] sm:$0xff] %vm28_vm0, %v239_v1  ;;  %29 = vst.msk [vmem:[#allocation2] sm:$0xff] %vm28_vm0, %v239_v1  ;;  %v227_v3 = vld [vmem:[%s317_s0 + $0x8] sm:$0xff]  }
   0x2   :  { %30 = vst.msk [vmem:[#allocation2 + $0x8] sm:$0xff] %vm28_vm0, %v239_v1  ;;  %32 = vst.msk [vmem:[#allocation2 + $0x18] sm:$0xff] %vm28_vm0, %v239_v1  ;;  %v220_v2 = vld [vmem:[%s317_s0] sm:$0xff]   ;;  %231 = vmatprep.subr.bf16.mxu0 %v238_v0  ;;  %v225_v7 = vunpack.c.l.bf16 %v227_v3  ;;  %v226_v8 = vunpack.c.h.bf16 %v227_v3 }
   0x3   :  { %v204_v4 = vld [vmem:[%s318_s2] ss:$0 sm:$0xff]  ;;  %v221_v5 = vunpack.c.l.bf16 %v220_v2  ;;  %v222_v6 = vunpack.c.h.bf16 %v220_v2  ;;  %232 = vmatpush3.bf16.msra.mxu0 %v238_v0 }
   0x4   :  { %v205_v9 = vld [vmem:[%s319_s3] ss:$0 sm:$0xff]  ;;  %v50_v12 = vmul.f32 %v225_v7, %v204_v4  ;;  %v51_v13 = vmul.f32 %v226_v8, %v204_v4 }
   0x5   :  { %v48_v10 = vmul.f32 %v221_v5, %v204_v4  ;;  %v49_v11 = vmul.f32 %v222_v6, %v204_v4  ;;  %v209_v36 = vld [vmem:[%s320_s4] ss:$0 sm:$0xff] }
   0x6   :  { %v61_v16 = vadd.f32 %v205_v9, %v50_v12  ;;  %v62_v17 = vadd.f32 %v205_v9, %v51_v13  ;;  %v210_v38 = vld [vmem:[%s321_s5] ss:$0 sm:$0xff] }
   0x7   :  { %v59_v14 = vadd.f32 %v205_v9, %v48_v10  ;;  %v60_v15 = vadd.f32 %v205_v9, %v49_v11 }
   0x8   :  { %v65_v20 = vmax.f32 %v61_v16, 0.0  ;;  %v66_v21 = vmax.f32 %v62_v17, 0.0  ;;  %v71_v24 = vld [vmem:[#allocation2 + $0x10] sm:$0xff]  ;;  %v69_v26 = vld [vmem:[#allocation2] sm:$0xff] }
   0x9   :  { %v63_v18 = vmax.f32 %v59_v14, 0.0  ;;  %v64_v19 = vmax.f32 %v60_v15, 0.0  ;;  %v72_v29 = vld [vmem:[#allocation2 + $0x18] sm:$0xff]  ;;  %v70_v32 = vld [vmem:[#allocation2 + $0x8] sm:$0xff] }
   0xa   :  { %v68_v23 = vpack.c.bf16 %v66_v21, %v65_v20 }
   0xb   :  { %v67_v22 = vpack.c.bf16 %v64_v19, %v63_v18 }
   0xd   :  { %233 = vmatprep.mubr.msk.bf16.mxu0 %vm81_vm1, %v67_v22 }
   0xe   :  { %234 = vmatmul.mubr.msk.bf16.vlgmr.msra.gmra.mxu0 %vm81_vm1, %v68_v23 }
  0xce   :  { %v235_v25 = vpop.f32.mrf.mxu0 }
  0xcf   :  { %v139_v27 = vadd.f32 %v235_v25, %v71_v24 }
  0xd0   :  { %v122_v28 = vpop.f32.mrf.mxu0 }
  0xd1   :  { %144 = vst.msk [vmem:[#allocation2 + $0x10] sm:$0xff] %vm28_vm0, %v139_v27  ;;  %v137_v30 = vadd.f32 %v122_v28, %v69_v26 }
  0xd2   :  { %v236_v31 = vpop.f32.mrf.mxu0 }
  0xd3   :  { %142 = vst.msk [vmem:[#allocation2] sm:$0xff] %vm28_vm0, %v137_v30  ;;  %v140_v33 = vadd.f32 %v236_v31, %v72_v29 }
  0xd4   :  { %v125_v34 = vpop.f32.mrf.mxu0 }
  0xd5   :  { %145 = vst.msk [vmem:[#allocation2 + $0x18] sm:$0xff] %vm28_vm0, %v140_v33  ;;  %v138_v35 = vadd.f32 %v125_v34, %v70_v32 }
  0xd7   :  { %143 = vst.msk [vmem:[#allocation2 + $0x8] sm:$0xff] %vm28_vm0, %v138_v35 }
  0xd8   :  { %v151_v37 = vld [vmem:[#allocation2 + $0x10] sm:$0xff] }
  0xd9   :  { %v162_v39 = vmul.f32 %v209_v36, %v151_v37 }
  0xda   :  { %v149_v40 = vld [vmem:[#allocation2] sm:$0xff] }
  0xdb   :  { %v173_v41 = vadd.f32 %v210_v38, %v162_v39  ;;  %v160_v42 = vmul.f32 %v209_v36, %v149_v40 }
  0xdc   :  { %v152_v43 = vld [vmem:[#allocation2 + $0x18] sm:$0xff] }
  0xdd   :  { %v177_v44 = vmax.f32 %v173_v41, 0.0  ;;  %v171_v45 = vadd.f32 %v210_v38, %v160_v42  ;;  %v163_v46 = vmul.f32 %v209_v36, %v152_v43 }
  0xde   :  { %v150_v47 = vld [vmem:[#allocation2 + $0x8] sm:$0xff] }
  0xdf   :  { %v217_v48 = vpack.c.bf16 %v177_v44, %v177_v44  ;;  %v175_v49 = vmax.f32 %v171_v45, 0.0  ;;  %v174_v50 = vadd.f32 %v210_v38, %v163_v46  ;;  %v161_v51 = vmul.f32 %v209_v36, %v150_v47 }
  0xe1   :  { %198 = vst.msk [vmem:[%s322_s6 + $0x8] sm:$0xf] %vm195_vm2, %v217_v48  ;;  %v215_v52 = vpack.c.bf16 %v175_v49, %v175_v49  ;;  %v178_v53 = vmax.f32 %v174_v50, 0.0  ;;  %v172_v54 = vadd.f32 %v210_v38, %v161_v51 }
  0xe3   :  { %196 = vst.msk [vmem:[%s322_s6] sm:$0xf] %vm195_vm2, %v215_v52  ;;  %v218_v55 = vpack.c.bf16 %v178_v53, %v178_v53  ;;  %v176_v56 = vmax.f32 %v172_v54, 0.0 }
  0xe5   :  { %199 = vst.msk [vmem:[%s322_s6 + $0xc] sm:$0xf] %vm195_vm2, %v218_v55  ;;  %v216_v57 = vpack.c.bf16 %v176_v56, %v176_v56 }
  0xe7   :  { %197 = vst.msk [vmem:[%s322_s6 + $0x4] sm:$0xf] %vm195_vm2, %v216_v57 }

// kernel: densenet_classifier_forward.35
= control target key start
LH: loop header
LB: loop body
LE: loop exit
PB: predicated region body
PF: predicated region fallthrough
CT: control target
= control target key end

     0   :  { %vm92_vm0 = vcmask 1043456   ;;  %vm28_vm1 = vcmask 261120   ;;  %v253_v1 = vmov 0.0   ;;  %vm85_vm2 = vcmask 195584   ;;  %s333_s1 = inlined_call_operand.vmem [shape: bf16[24,32], index: 1, kind: input, shape index: {}]   ;;  %s334_s0 = inlined_call_operand.vmem [shape: bf16[32,24], index: 0, kind: input, shape index: {}]   ;;  %s335_s2 = inlined_call_operand.vmem [shape: f32[1,24], index: 2, kind: input, shape index: {}]   ;;  %s336_s3 = inlined_call_operand.vmem [shape: f32[1,24], index: 3, kind: input, shape index: {}]   ;;  %s337_s4 = inlined_call_operand.vmem [shape: f32[1,32], index: 4, kind: input, shape index: {}]   ;;  %s338_s5 = inlined_call_operand.vmem [shape: f32[1,32], index: 5, kind: input, shape index: {}]   ;;  %s339_s6 = inlined_call_operand.vmem [shape: bf16[32,32], index: 6, kind: output, shape index: {}]  }
   0x1   :  { %v251_v0 = vld [vmem:[%s333_s1 + $0x8] ss:$0 sps:$4 sm:$0xff]   ;;  %31 = vst.msk [vmem:[#allocation2 + $0x10] sm:$0xff] %vm28_vm1, %v253_v1  ;;  %29 = vst.msk [vmem:[#allocation2] sm:$0xff] %vm28_vm1, %v253_v1  ;;  %v252_v2 = vld [vmem:[%s333_s1] sm:$0xff]   ;;  %vm203_vm3 = vcmask 257024  }
   0x2   :  { %30 = vst.msk [vmem:[#allocation2 + $0x8] sm:$0xff] %vm28_vm1, %v253_v1  ;;  %32 = vst.msk [vmem:[#allocation2 + $0x18] sm:$0xff] %vm28_vm1, %v253_v1  ;;  %v229_v3 = vld [vmem:[%s334_s0] sm:$0xff]   ;;  %249 = vmatprep.subr.msk.bf16.mxu0 %vm92_vm0, %v251_v0  ;;  %v94_v4 = vsel %vm92_vm0, %v251_v0, 0  ;;  %v236_v7 = vld [vmem:[%s334_s0 + $0x8] sm:$0xff]  }
   0x3   :  { %v230_v5 = vunpack.c.l.bf16 %v229_v3  ;;  %v231_v6 = vunpack.c.h.bf16 %v229_v3  ;;  %v212_v8 = vld [vmem:[%s335_s2] ss:$0 sm:$0xff]  ;;  %242 = vmatpush3.bf16.msra.mxu0 %v94_v4  ;;  %v234_v9 = vunpack.c.l.bf16 %v236_v7  ;;  %v235_v10 = vunpack.c.h.bf16 %v236_v7 }
   0x4   :  { %v213_v11 = vld [vmem:[%s336_s3] ss:$0 sm:$0xff]  ;;  %243 = vmatprep.subr.bf16.mxu0 %v252_v2 }
   0x5   :  { %v48_v12 = vmul.f32 %v230_v5, %v212_v8  ;;  %v49_v13 = vmul.f32 %v231_v6, %v212_v8  ;;  %v50_v14 = vmul.f32 %v234_v9, %v212_v8  ;;  %v51_v15 = vmul.f32 %v235_v10, %v212_v8  ;;  %v218_v38 = vld [vmem:[%s337_s4] ss:$0 sm:$0xff] }
   0x6   :  { %v219_v40 = vld [vmem:[%s338_s5] ss:$0 sm:$0xff] }
   0x7   :  { %v59_v16 = vadd.f32 %v213_v11, %v48_v12  ;;  %v60_v17 = vadd.f32 %v213_v11, %v49_v13  ;;  %244 = vmatpush3.bf16.msra.mxu0 %v252_v2  ;;  %v61_v18 = vadd.f32 %v213_v11, %v50_v14  ;;  %v62_v19 = vadd.f32 %v213_v11, %v51_v15 }
   0x8   :  { %v71_v26 = vld [vmem:[#allocation2 + $0x10] sm:$0xff]  ;;  %v69_v28 = vld [vmem:[#allocation2] sm:$0xff] }
   0x9   :  { %v63_v20 = vmax.f32 %v59_v16, 0.0  ;;  %v64_v21 = vmax.f32 %v60_v17, 0.0  ;;  %v65_v22 = vmax.f32 %v61_v18, 0.0  ;;  %v66_v23 = vmax.f32 %v62_v19, 0.0  ;;  %v72_v31 = vld [vmem:[#allocation2 + $0x18] sm:$0xff]  ;;  %v70_v34 = vld [vmem:[#allocation2 + $0x8] sm:$0xff] }
   0xb   :  { %v67_v24 = vpack.c.bf16 %v64_v21, %v63_v20  ;;  %v68_v25 = vpack.c.bf16 %v66_v23, %v65_v22 }
   0xd   :  { %245 = vmatprep.mubr.msk.bf16.mxu0 %vm85_vm2, %v67_v24 }
   0xe   :  { %246 = vmatmul.mubr.msk.bf16.vlgmr.msra.gmra.mxu0 %vm85_vm2, %v68_v25 }
  0xce   :  { %v247_v27 = vpop.f32.mrf.mxu0 }
  0xcf   :  { %v147_v29 = vadd.f32 %v247_v27, %v71_v26 }
  0xd0   :  { %v130_v30 = vpop.f32.mrf.mxu0 }
  0xd1   :  { %152 = vst.msk [vmem:[#allocation2 + $0x10] sm:$0xff] %vm28_vm1, %v147_v29  ;;  %v145_v32 = vadd.f32 %v130_v30, %v69_v28 }
  0xd2   :  { %v248_v33 = vpop.f32.mrf.mxu0 }
  0xd3   :  { %150 = vst.msk [vmem:[#allocation2] sm:$0xff] %vm28_vm1, %v145_v32  ;;  %v148_v35 = vadd.f32 %v248_v33, %v72_v31 }
  0xd4   :  { %v133_v36 = vpop.f32.mrf.mxu0 }
  0xd5   :  { %153 = vst.msk [vmem:[#allocation2 + $0x18] sm:$0xff] %vm28_vm1, %v148_v35  ;;  %v146_v37 = vadd.f32 %v133_v36, %v70_v34 }
  0xd7   :  { %151 = vst.msk [vmem:[#allocation2 + $0x8] sm:$0xff] %vm28_vm1, %v146_v37 }
  0xd8   :  { %v159_v39 = vld [vmem:[#allocation2 + $0x10] sm:$0xff] }
  0xd9   :  { %v170_v41 = vmul.f32 %v218_v38, %v159_v39 }
  0xda   :  { %v157_v42 = vld [vmem:[#allocation2] sm:$0xff] }
  0xdb   :  { %v181_v43 = vadd.f32 %v219_v40, %v170_v41  ;;  %v168_v44 = vmul.f32 %v218_v38, %v157_v42 }
  0xdc   :  { %v160_v45 = vld [vmem:[#allocation2 + $0x18] sm:$0xff] }
  0xdd   :  { %v185_v46 = vmax.f32 %v181_v43, 0.0  ;;  %v179_v47 = vadd.f32 %v219_v40, %v168_v44  ;;  %v171_v48 = vmul.f32 %v218_v38, %v160_v45 }
  0xde   :  { %v158_v49 = vld [vmem:[#allocation2 + $0x8] sm:$0xff] }
  0xdf   :  { %v226_v50 = vpack.c.bf16 %v185_v46, %v185_v46  ;;  %v183_v51 = vmax.f32 %v179_v47, 0.0  ;;  %v182_v52 = vadd.f32 %v219_v40, %v171_v48  ;;  %v169_v53 = vmul.f32 %v218_v38, %v158_v49 }
  0xe1   :  { %206 = vst.msk [vmem:[%s339_s6 + $0x8] sm:$0xf] %vm203_vm3, %v226_v50  ;;  %v224_v54 = vpack.c.bf16 %v183_v51, %v183_v51  ;;  %v186_v55 = vmax.f32 %v182_v52, 0.0  ;;  %v180_v56 = vadd.f32 %v219_v40, %v169_v53 }
  0xe3   :  { %204 = vst.msk [vmem:[%s339_s6] sm:$0xf] %vm203_vm3, %v224_v54  ;;  %v227_v57 = vpack.c.bf16 %v186_v55, %v186_v55  ;;  %v184_v58 = vmax.f32 %v180_v56, 0.0 }
  0xe5   :  { %207 = vst.msk [vmem:[%s339_s6 + $0xc] sm:$0xf] %vm203_vm3, %v227_v57  ;;  %v225_v59 = vpack.c.bf16 %v184_v58, %v184_v58 }
  0xe7   :  { %205 = vst.msk [vmem:[%s339_s6 + $0x4] sm:$0xf] %vm203_vm3, %v225_v59 }

// kernel: densenet_classifier_forward.34
= control target key start
LH: loop header
LB: loop body
LE: loop exit
PB: predicated region body
PF: predicated region fallthrough
CT: control target
= control target key end

     0   :  { %s820_s9 = smov 0   ;;  %s822_s10 = smov 0   ;;  %s927_s0 = inlined_call_operand.vmem [shape: bf16[32,512], index: 0, kind: input, shape index: {}]   ;;  %s928_s1 = inlined_call_operand.vmem [shape: bf16[512,8], index: 1, kind: input, shape index: {}]   ;;  %s929_s2 = inlined_call_operand.vmem [shape: bf16[32,8], index: 2, kind: output, shape index: {}]  }
   0x1   :  { %s824_s11 = smov 0   ;;  %s826_s12 = smov 0  }
   0x2   :  { %s828_s13 = smov 0  }
   0x3 LB: > { %s24_s14 = sadd.s32 1, %s798_s12  ;;  %p47_p1 = scmp.ne.s32.totalorder %s790_s10, %s786_s9  ;;  %s802_s13 = sphi %s828_s13, %s12_s13   ;;  %s798_s12 = sphi %s826_s12, %s933_s12   ;;  %s794_s11 = sphi %s824_s11, %s932_s11   ;;  %s790_s10 = sphi %s822_s10, %s931_s10   ;;  %s786_s9 = sphi %s820_s9, %s930_s9  }
   0x4   : > { %p25_p0 = scmp.ge.s32.totalorder %s24_s14, 2  ;;  %p48_p2 = scmp.eq.s32.totalorder %s802_s13, 0 }
   0x5   : > { %s40_s16 = sadd.s32 1, %s790_s10  ;;  %p614_p5 = scmp.ge.s32.totalorder %s802_s13, 2 }
   0x6   : > { %s935_s14 = smov (%p25_p0, %s24_s14), 0  ;;  %p49_p3 = por %p48_p2, %p47_p1 }
   0x7   : > { %s36_s15 = ssub.s32 %s798_s12, %s935_s14  ;;  %129 = sbr.rel (%p614_p5) target bundleno = 18 (0x12), region = 16 }
   0x8   : > { %p38_p4 = scmp.eq.s32.totalorder %s36_s15, 0 }
   0xa   : > { %s855_s17 = scalar_select %p38_p4, %s790_s10, %s40_s16  }
   0xc   : > { %132 = sbr.rel (!%p49_p3) target bundleno = 18 (0x12), region = 20  ;;  %s134_s18 = sand.u32 (%p49_p3), 1, %s790_s10  }
   0xd   : > { %s652_s19 = sshll.u32 (%p49_p3), %s798_s12, 3  ;;  %s615_s20 = sshll.u32 (%p49_p3), %s134_s18, 5 }
   0xe   : > { %s142_s23 = scalar_lea.vmem (%p49_p3), %s927_s0, %s652_s19  ;;  %s136_s24 = scalar_lea.vmem (%p49_p3), [#allocation3], %s615_s20 }
   0xf   : > { %v177_v0 = vld [vmem:[%s142_s23] sm:$0xff] (%p49_p3)  ;;  %v179_v1 = vld [vmem:[%s142_s23 + $0x10] sm:$0xff] (%p49_p3) }
  0x10   : > { %v181_v2 = vld [vmem:[%s142_s23 + $0x20] sm:$0xff] (%p49_p3)  ;;  %178 = vst [vmem:[%s136_s24] sm:$0xff] (%p49_p3), %v177_v0  ;;  %180 = vst [vmem:[%s136_s24 + $0x8] sm:$0xff] (%p49_p3), %v179_v1  ;;  %v183_v3 = vld [vmem:[%s142_s23 + $0x30] sm:$0xff] (%p49_p3) }
  0x11   : > { %182 = vst [vmem:[%s136_s24 + $0x10] sm:$0xff] %v181_v2  ;;  %184 = vst [vmem:[%s136_s24 + $0x18] sm:$0xff] %v183_v3 }
  0x12 PF: > { %p618_p6 = scmp.ge.s32.totalorder %s802_s13, 1  ;;  %p201_p7 = scmp.lt.s32.totalorder %s802_s13, 3 }
  0x14   : > { %p202_p8 = pnand %p618_p6, %p201_p7 }
  0x15   : > { %s208_s25 = sand.u32 (!%p202_p8), 1, %s786_s9   ;;  %s620_s26 = sshll.u32 (!%p202_p8), %s794_s11, 5 }
  0x16   : > { %205 = sbr.rel (%p202_p8) target bundleno = 282 (0x11a), region = 62  ;;  %s619_s27 = sshll.u32 (!%p202_p8), %s208_s25, 5 }
  0x17   : > { %p243_p9 = scmp.lt.s32.totalorder (!%p202_p8), %s620_s26, 63  ;;  %s872_s4 = scalar_lea.vmem (!%p202_p8), [#allocation3], %s619_s27 }
  0x18   : > { %p622_p10 = scmp.ne.s32.totalorder (!%p202_p8), %s794_s11, 0 }
  0x1b   : > { %s937_s26 = smov (!%p243_p9, %s620_s26), 63  ;;  %264 = sbr.rel (%p622_p10) target bundleno = 35 (0x23), region = 70 }
  0x1c   : > { %s621_s28 = sshll.u32 %s937_s26, 2 }
  0x1d   : > { %s870_s3 = scalar_lea.vmem %s928_s1, %s621_s28 }
  0x20   : > { %vm265_vm0 = vcmask 64512   ;;  %v804_v4 = vmov 0.0  }
  0x21   : > { %266 = vst.msk [vmem:[#allocation2] sm:$0xff] %vm265_vm0, %v804_v4  ;;  %267 = vst.msk [vmem:[#allocation2 + $0x8] sm:$0xff] %vm265_vm0, %v804_v4 }
  0x22   : > { %268 = vst.msk [vmem:[#allocation2 + $0x10] sm:$0xff] %vm265_vm0, %v804_v4  ;;  %269 = vst.msk [vmem:[#allocation2 + $0x18] sm:$0xff] %vm265_vm0, %v804_v4 }
  0x23 PF: > { %v742_v5 = vld [vmem:[%s870_s3 + $0x78] sm:$0xff]   ;;  %v744_v7 = vld [vmem:[%s870_s3 + $0x70] sm:$0xff]   ;;  %v746_v9 = vld [vmem:[%s870_s3 + $0x68] sm:$0xff]   ;;  %vm479_vm1 = vcmask 64512   ;;  %p643_p11 = scmp.ne.s32.totalorder %s794_s11, 1 }
  0x24   : > { %v743_v6 = vld [vmem:[%s870_s3 + $0x38] sm:$0xff]   ;;  %657 = vmatprep.subr.bf16.mxu0 %v742_v5  ;;  %685 = vmatprep.subr.bf16.mxu1 %v742_v5  ;;  %v745_v8 = vld [vmem:[%s870_s3 + $0x30] sm:$0xff]   ;;  %v747_v10 = vld [vmem:[%s870_s3 + $0x28] sm:$0xff]  }
  0x25   : > { %658 = vmatpush3.bf16.msra.mxu0 %v743_v6  ;;  %693 = vmatpush3.bf16.msra.mxu1 %v743_v6  ;;  %v748_v11 = vld [vmem:[%s870_s3 + $0x60] sm:$0xff]   ;;  %v750_v13 = vld [vmem:[%s870_s3 + $0x58] sm:$0xff]   ;;  %v752_v15 = vld [vmem:[%s870_s3 + $0x50] sm:$0xff]  }
  0x26   : > { %659 = vmatprep.subr.bf16.mxu0 %v744_v7  ;;  %686 = vmatprep.subr.bf16.mxu1 %v744_v7  ;;  %v749_v12 = vld [vmem:[%s870_s3 + $0x20] sm:$0xff]   ;;  %v751_v14 = vld [vmem:[%s870_s3 + $0x18] sm:$0xff]   ;;  %v753_v18 = vld [vmem:[%s870_s3 + $0x10] sm:$0xff]  }
  0x27   : > { %v760_v16 = vld [vmem:[%s872_s4 + $0x4] ss:$8 sps:$4 sm:$0xff]   ;;  %v763_v17 = vld [vmem:[%s872_s4 + $0x14] ss:$8 sps:$4 sm:$0xff]   ;;  %v758_v23 = vld [vmem:[%s872_s4] ss:$8 sps:$4 sm:$0xff]  }
  0x28   : > { %v754_v19 = vld [vmem:[%s870_s3 + $0x48] sm:$0xff]   ;;  %458 = vmatprep.mubr.bf16.mxu0 %v760_v16  ;;  %466 = vmatprep.mubr.bf16.mxu1 %v763_v17  ;;  %v756_v21 = vld [vmem:[%s870_s3 + $0x40] sm:$0xff]   ;;  %v761_v24 = vld [vmem:[%s872_s4 + $0x10] ss:$8 sps:$4 sm:$0xff]  }
  0x29   : > { %660 = vmatpush3.bf16.msra.mxu0 %v745_v8  ;;  %694 = vmatpush3.bf16.msra.mxu1 %v745_v8  ;;  %v755_v20 = vld [vmem:[%s870_s3 + $0x8] sm:$0xff]   ;;  %v757_v22 = vld [vmem:[%s870_s3] sm:$0xff]   ;;  %v276_v29 = vld [vmem:[#allocation2 + $0x10] sm:$0xff] }
  0x2a   : > { %661 = vmatprep.subr.bf16.mxu0 %v746_v9  ;;  %687 = vmatprep.subr.bf16.mxu1 %v746_v9  ;;  %v274_v27 = vld [vmem:[#allocation2] sm:$0xff]  ;;  %v275_v37 = vld [vmem:[#allocation2 + $0x8] sm:$0xff]  ;;  %v277_v39 = vld [vmem:[#allocation2 + $0x18] sm:$0xff] }
  0x2d   : > { %662 = vmatpush3.bf16.msra.mxu0 %v747_v10  ;;  %695 = vmatpush3.bf16.msra.mxu1 %v747_v10 }
  0x2e   : > { %663 = vmatprep.subr.bf16.mxu0 %v748_v11  ;;  %688 = vmatprep.subr.bf16.mxu1 %v748_v11 }
  0x31   : > { %664 = vmatpush3.bf16.msra.mxu0 %v749_v12  ;;  %696 = vmatpush3.bf16.msra.mxu1 %v749_v12 }
  0x32   : > { %665 = vmatprep.subr.bf16.mxu0 %v750_v13  ;;  %689 = vmatprep.subr.bf16.mxu1 %v750_v13 }
  0x35   : > { %666 = vmatpush3.bf16.msra.mxu0 %v751_v14  ;;  %697 = vmatpush3.bf16.msra.mxu1 %v751_v14 }
  0x36   : > { %667 = vmatprep.subr.bf16.mxu0 %v752_v15  ;;  %690 = vmatprep.subr.bf16.mxu1 %v752_v15 }
  0x39   : > { %668 = vmatpush3.bf16.msra.mxu0 %v753_v18  ;;  %698 = vmatpush3.bf16.msra.mxu1 %v753_v18 }
  0x3a   : > { %669 = vmatprep.subr.bf16.mxu0 %v754_v19  ;;  %691 = vmatprep.subr.bf16.mxu1 %v754_v19 }
  0x3d   : > { %670 = vmatpush3.bf16.msra.mxu0 %v755_v20  ;;  %699 = vmatpush3.bf16.msra.mxu1 %v755_v20 }
  0x3e   : > { %671 = vmatprep.subr.bf16.mxu0 %v756_v21  ;;  %692 = vmatprep.subr.bf16.mxu1 %v756_v21 }
  0x41   : > { %672 = vmatpush3.bf16.msra.mxu0 %v757_v22  ;;  %700 = vmatpush3.bf16.msra.mxu1 %v757_v22 }
  0x44   : > { %459 = vmatmul.mubr.bf16.vlgmr.msra.gmra.mxu0 %v758_v23  ;;  %467 = vmatmul.mubr.bf16.vlgmr.msra.gmra.mxu1 %v761_v24 }
 0x104   : > { %v673_v25 = vpop.f32.mrf.mxu0  ;;  %v679_v26 = vpop.f32.mrf.mxu1 }
 0x106   : > { %v674_v28 = vpop.f32.mrf.mxu0  ;;  %v680_v30 = vpop.f32.mrf.mxu1 }
 0x107   : > { %v675_v31 = vadd.f32 %v674_v28, %v673_v25  ;;  %v681_v32 = vadd.f32 %v680_v30, %v679_v26 }
 0x108   : > { %v676_v33 = vpop.f32.mrf.mxu0  ;;  %v682_v34 = vpop.f32.mrf.mxu1 }
 0x109   : > { %v475_v35 = vadd.f32 %v675_v31, %v274_v27  ;;  %v477_v36 = vadd.f32 %v681_v32, %v276_v29 }
 0x10a   : > { %v677_v38 = vpop.f32.mrf.mxu0  ;;  %v683_v40 = vpop.f32.mrf.mxu1 }
 0x10b   : > { %480 = vst.msk [vmem:[#allocation2] sm:$0xff] %vm479_vm1, %v475_v35  ;;  %482 = vst.msk [vmem:[#allocation2 + $0x10] sm:$0xff] %vm479_vm1, %v477_v36  ;;  %v678_v41 = vadd.f32 %v677_v38, %v676_v33  ;;  %v684_v42 = vadd.f32 %v683_v40, %v682_v34  ;;  %487 = sbr.rel (%p643_p11) target bundleno = 282 (0x11a), region = 74 }
 0x10d   : > { %v476_v43 = vadd.f32 %v678_v41, %v275_v37  ;;  %v478_v44 = vadd.f32 %v684_v42, %v277_v39 }
 0x10f   : > { %481 = vst.msk [vmem:[#allocation2 + $0x8] sm:$0xff] %vm479_vm1, %v476_v43  ;;  %483 = vst.msk [vmem:[#allocation2 + $0x18] sm:$0xff] %vm479_vm1, %v478_v44 }
 0x110   : > { %vm508_vm2 = vcmask 60416  }
 0x112   : > { %v488_v45 = vld [vmem:[#allocation2] sm:$0xff]  ;;  %v490_v47 = vld [vmem:[#allocation2 + $0x10] sm:$0xff] }
 0x113   : > { %v653_v48 = vpack.c.bf16 %v488_v45, %v488_v45  ;;  %v655_v50 = vpack.c.bf16 %v490_v47, %v490_v47 }
 0x115   : > { %509 = vst.msk [vmem:[%s929_s2] sm:$0xf] %vm508_vm2, %v653_v48  ;;  %511 = vst.msk [vmem:[%s929_s2 + $0x8] sm:$0xf] %vm508_vm2, %v655_v50 }
 0x116   : > { %v489_v46 = vld [vmem:[#allocation2 + $0x8] sm:$0xff]  ;;  %v491_v51 = vld [vmem:[#allocation2 + $0x18] sm:$0xff] }
 0x117   : > { %v654_v49 = vpack.c.bf16 %v489_v46, %v489_v46  ;;  %v656_v52 = vpack.c.bf16 %v491_v51, %v491_v51 }
 0x119   : > { %510 = vst.msk [vmem:[%s929_s2 + $0x4] sm:$0xf] %vm508_vm2, %v654_v49  ;;  %512 = vst.msk [vmem:[%s929_s2 + $0xc] sm:$0xf] %vm508_vm2, %v656_v52 }
 0x11a PF: > { %s12_s13 = sadd.s32 1, %s802_s13   ;;  %s930_s9 = smov %s790_s10 }
 0x11b   : > { %p9_p12 = scmp.ge.s32.totalorder %s12_s13, 4   ;;  %s931_s10 = smov %s855_s17 }
 0x11c   : > { %s932_s11 = smov %s798_s12  ;;  %s933_s12 = smov %s935_s14 }
 0x11d   :  { %11 = sbr.rel (!%p9_p12) target bundleno = 3 (0x3), region = 112 }

// kernel: densenet_classifier_forward.37
= control target key start
LH: loop header
LB: loop body
LE: loop exit
PB: predicated region body
PF: predicated region fallthrough
CT: control target
= control target key end

     0   :  { %vm22_vm0 = vcmask 130048   ;;  %v218_v1 = vmov 0.0   ;;  %vm83_vm1 = vcmask 261120   ;;  %vm171_vm2 = vcmask 125952   ;;  %s282_s1 = inlined_call_operand.vmem [shape: bf16[32,16], index: 1, kind: input, shape index: {}]   ;;  %s283_s0 = inlined_call_operand.vmem [shape: bf16[32,32], index: 0, kind: input, shape index: {}]   ;;  %s284_s2 = inlined_call_operand.vmem [shape: f32[1,32], index: 2, kind: input, shape index: {}]   ;;  %s285_s3 = inlined_call_operand.vmem [shape: f32[1,32], index: 3, kind: input, shape index: {}]   ;;  %s286_s4 = inlined_call_operand.vmem [shape: bf16[32,16], index: 4, kind: output, shape index: {}]  }
   0x1   :  { %v216_v0 = vld [vmem:[%s282_s1 + $0x8] sm:$0xff]   ;;  %25 = vst.msk [vmem:[#allocation2 + $0x10] sm:$0xff] %vm22_vm0, %v218_v1  ;;  %23 = vst.msk [vmem:[#allocation2] sm:$0xff] %vm22_vm0, %v218_v1  ;;  %v217_v2 = vld [vmem:[%s282_s1] sm:$0xff]  }
   0x2   :  { %24 = vst.msk [vmem:[#allocation2 + $0x8] sm:$0xff] %vm22_vm0, %v218_v1  ;;  %26 = vst.msk [vmem:[#allocation2 + $0x18] sm:$0xff] %vm22_vm0, %v218_v1  ;;  %207 = vmatprep.subr.bf16.mxu0 %v216_v0  ;;  %v195_v3 = vld [vmem:[%s283_s0] sm:$0xff]   ;;  %v202_v4 = vld [vmem:[%s283_s0 + $0x8] sm:$0xff]  }
   0x3   :  { %v180_v5 = vld [vmem:[%s284_s2] ss:$0 sm:$0xff]  ;;  %208 = vmatpush3.bf16.msra.mxu0 %v216_v0  ;;  %v196_v6 = vunpack.c.l.bf16 %v195_v3  ;;  %v197_v7 = vunpack.c.h.bf16 %v195_v3  ;;  %v200_v8 = vunpack.c.l.bf16 %v202_v4  ;;  %v201_v9 = vunpack.c.h.bf16 %v202_v4 }
   0x4   :  { %209 = vmatprep.subr.bf16.mxu0 %v217_v2  ;;  %v181_v10 = vld [vmem:[%s285_s3] ss:$0 sm:$0xff] }
   0x5   :  { %v42_v11 = vmul.f32 %v196_v6, %v180_v5  ;;  %v43_v12 = vmul.f32 %v197_v7, %v180_v5  ;;  %v44_v13 = vmul.f32 %v200_v8, %v180_v5  ;;  %v45_v14 = vmul.f32 %v201_v9, %v180_v5 }
   0x7   :  { %210 = vmatpush3.bf16.msra.mxu0 %v217_v2  ;;  %v53_v15 = vadd.f32 %v181_v10, %v42_v11  ;;  %v54_v16 = vadd.f32 %v181_v10, %v43_v12  ;;  %v55_v17 = vadd.f32 %v181_v10, %v44_v13  ;;  %v56_v18 = vadd.f32 %v181_v10, %v45_v14 }
   0x8   :  { %v65_v25 = vld [vmem:[#allocation2 + $0x10] sm:$0xff]  ;;  %v63_v27 = vld [vmem:[#allocation2] sm:$0xff] }
   0x9   :  { %v57_v19 = vmax.f32 %v53_v15, 0.0  ;;  %v58_v20 = vmax.f32 %v54_v16, 0.0  ;;  %v59_v21 = vmax.f32 %v55_v17, 0.0  ;;  %v60_v22 = vmax.f32 %v56_v18, 0.0  ;;  %v66_v30 = vld [vmem:[#allocation2 + $0x18] sm:$0xff]  ;;  %v64_v33 = vld [vmem:[#allocation2 + $0x8] sm:$0xff] }
   0xb   :  { %v61_v23 = vpack.c.bf16 %v58_v20, %v57_v19  ;;  %v62_v24 = vpack.c.bf16 %v60_v22, %v59_v21 }
   0xd   :  { %211 = vmatprep.mubr.msk.bf16.mxu0 %vm83_vm1, %v61_v23 }
   0xe   :  { %212 = vmatmul.mubr.msk.bf16.vlgmr.msra.gmra.mxu0 %vm83_vm1, %v62_v24 }
  0xce   :  { %v213_v26 = vpop.f32.mrf.mxu0 }
  0xcf   :  { %v141_v28 = vadd.f32 %v213_v26, %v65_v25 }
  0xd0   :  { %v124_v29 = vpop.f32.mrf.mxu0 }
  0xd1   :  { %146 = vst.msk [vmem:[#allocation2 + $0x10] sm:$0xff] %vm22_vm0, %v141_v28  ;;  %v139_v31 = vadd.f32 %v124_v29, %v63_v27 }
  0xd2   :  { %v214_v32 = vpop.f32.mrf.mxu0 }
  0xd3   :  { %144 = vst.msk [vmem:[#allocation2] sm:$0xff] %vm22_vm0, %v139_v31  ;;  %v142_v34 = vadd.f32 %v214_v32, %v66_v30 }
  0xd4   :  { %v127_v35 = vpop.f32.mrf.mxu0 }
  0xd5   :  { %147 = vst.msk [vmem:[#allocation2 + $0x18] sm:$0xff] %vm22_vm0, %v142_v34  ;;  %v140_v36 = vadd.f32 %v127_v35, %v64_v33 }
  0xd7   :  { %145 = vst.msk [vmem:[#allocation2 + $0x8] sm:$0xff] %vm22_vm0, %v140_v36 }
  0xd8   :  { %v153_v37 = vld [vmem:[#allocation2 + $0x10] sm:$0xff] }
  0xd9   :  { %v192_v38 = vpack.c.bf16 %v153_v37, %v153_v37 }
  0xda   :  { %v151_v39 = vld [vmem:[#allocation2] sm:$0xff] }
  0xdb   :  { %174 = vst.msk [vmem:[%s286_s4 + $0x8] sm:$0xf] %vm171_vm2, %v192_v38  ;;  %v190_v40 = vpack.c.bf16 %v151_v39, %v151_v39 }
  0xdc   :  { %v154_v41 = vld [vmem:[#allocation2 + $0x18] sm:$0xff] }
  0xdd   :  { %172 = vst.msk [vmem:[%s286_s4] sm:$0xf] %vm171_vm2, %v190_v40  ;;  %v193_v42 = vpack.c.bf16 %v154_v41, %v154_v41 }
  0xde   :  { %v152_v43 = vld [vmem:[#allocation2 + $0x8] sm:$0xff] }
  0xdf   :  { %175 = vst.msk [vmem:[%s286_s4 + $0xc] sm:$0xf] %vm171_vm2, %v193_v42  ;;  %v191_v44 = vpack.c.bf16 %v152_v43, %v152_v43 }
  0xe1   :  { %173 = vst.msk [vmem:[%s286_s4 + $0x4] sm:$0xf] %vm171_vm2, %v191_v44 }

// kernel: densenet_classifier_forward.38
= control target key start
LH: loop header
LB: loop body
LE: loop exit
PB: predicated region body
PF: predicated region fallthrough
CT: control target
= control target key end

     0   :  { %vm16_vm0 = vcmask 130048   ;;  %vm26_vm1 = vcmask 125952   ;;  %s60_s0 = inlined_call_operand.vmem [shape: bf16[4,8,16], index: 0, kind: input, shape index: {}]   ;;  %s61_s1 = inlined_call_operand.vmem [shape: bf16[8,16], index: 1, kind: output, shape index: {}]  }
   0x1   :  { %v33_v0 = vld [vmem:[%s60_s0] sm:$0xff]   ;;  %v40_v1 = vld [vmem:[%s60_s0 + $0x8] sm:$0xff]  }
   0x2   :  { %v34_v2 = vunpack.c.l.bf16 %v33_v0  ;;  %v35_v3 = vunpack.c.h.bf16 %v33_v0  ;;  %v38_v4 = vunpack.c.l.bf16 %v40_v1  ;;  %v39_v5 = vunpack.c.h.bf16 %v40_v1 }
   0x4   :  { %v17_v6 = vsel %vm16_vm0, %v34_v2, 0.0  ;;  %v18_v7 = vsel %vm16_vm0, %v35_v3, 0.0  ;;  %v20_v8 = vsel %vm16_vm0, %v38_v4, 0.0  ;;  %v22_v10 = vsel %vm16_vm0, %v39_v5, 0.0 }
   0x5   :  { %v19_v9 = vadd.f32 %v18_v7, %v17_v6 }
   0x7   :  { %v21_v11 = vadd.f32 %v20_v8, %v19_v9 }
   0x9   :  { %v23_v12 = vadd.f32 %v22_v10, %v21_v11 }
   0xb   :  { %v24_v13 = vmul.f32 0.25, %v23_v12 }
   0xd   :  { %v25_v14 = vpack.c.bf16 %v24_v13, %v24_v13 }
   0xf   :  { %27 = vst.msk [vmem:[%s61_s1] sm:$0xf] %vm26_vm1, %v25_v14 }

// kernel: densenet_classifier_forward.39
= control target key start
LH: loop header
LB: loop body
LE: loop exit
PB: predicated region body
PF: predicated region fallthrough
CT: control target
= control target key end

     0   :  { %vm28_vm0 = vcmask 261120   ;;  %v151_v0 = vmov 0.0   ;;  %vm152_vm1 = vmmov 0   ;;  %vm59_vm2 = vcmask 130048   ;;  %s211_s1 = inlined_call_operand.vmem [shape: bf16[16,32], index: 1, kind: input, shape index: {}]   ;;  %s212_s0 = inlined_call_operand.vmem [shape: bf16[8,16], index: 0, kind: input, shape index: {}]   ;;  %s213_s2 = inlined_call_operand.vmem [shape: f32[1,16], index: 2, kind: input, shape index: {}]   ;;  %s214_s3 = inlined_call_operand.vmem [shape: f32[1,16], index: 3, kind: input, shape index: {}]   ;;  %s215_s4 = inlined_call_operand.vmem [shape: f32[1,32], index: 4, kind: input, shape index: {}]   ;;  %s216_s5 = inlined_call_operand.vmem [shape: f32[1,32], index: 5, kind: input, shape index: {}]   ;;  %s217_s6 = inlined_call_operand.vmem [shape: bf16[8,32], index: 6, kind: output, shape index: {}]  }
   0x1   :  { %29 = vst.msk [vmem:[#allocation2] sm:$0xff] %vm28_vm0, %v151_v0  ;;  %142 = vmatprep.subr.bf16.mxu0 %v151_v0  ;;  %v150_v1 = vld [vmem:[%s211_s1] sm:$0xff]   ;;  %144 = vmatprep.mubr.msk.bf16.mxu0 %vm152_vm1, %v151_v0  ;;  %vm128_vm3 = vcmask 257024  }
   0x2   :  { %v30_v2 = vld [vmem:[%s212_s0] sm:$0xf]  ;;  %143 = vmatpush3.bf16.msra.mxu0 %v150_v1 }
   0x3   :  { %v134_v3 = vld [vmem:[%s213_s2] ss:$0 sm:$0xff]  ;;  %v31_v4 = vunpack.c.l.bf16 %v30_v2 }
   0x4   :  { %v135_v5 = vld [vmem:[%s214_s3] ss:$0 sm:$0xff] }
   0x5   :  { %v39_v6 = vmul.f32 %v134_v3, %v31_v4  ;;  %v138_v16 = vld [vmem:[%s215_s4] ss:$0 sm:$0xff] }
   0x6   :  { %v139_v18 = vld [vmem:[%s216_s5] ss:$0 sm:$0xff] }
   0x7   :  { %v47_v7 = vadd.f32 %v135_v5, %v39_v6 }
   0x8   :  { %v50_v10 = vld [vmem:[#allocation2] sm:$0xff] }
   0x9   :  { %v48_v8 = vmax.f32 %v47_v7, 0.0 }
   0xb   :  { %v49_v9 = vpack.c.bf16 %v48_v8, %v48_v8 }
   0xd   :  { %145 = vmatmul.mubr.msk.bf16.vlgmr.msra.gmra.mxu0 %vm59_vm2, %v49_v9 }
  0xcd   :  { %v97_v11 = vpop.f32.mrf.mxu0 }
  0xce   :  { %v103_v12 = vadd.f32 %v97_v11, %v50_v10 }
  0xcf   :  { %v146_v13 = vpop.f32.mrf.mxu0 }
  0xd0   :  { %105 = vst.msk [vmem:[#allocation2] sm:$0xff] %vm28_vm0, %v103_v12 }
  0xd1   :  { %v100_v14 = vpop.f32.mrf.mxu0 }
  0xd3   :  { %v147_v15 = vpop.f32.mrf.mxu0 }
  0xd7   :  { %v109_v17 = vld [vmem:[#allocation2] sm:$0xff] }
  0xd8   :  { %v117_v19 = vmul.f32 %v138_v16, %v109_v17 }
  0xda   :  { %v125_v20 = vadd.f32 %v139_v18, %v117_v19 }
  0xdc   :  { %v126_v21 = vmax.f32 %v125_v20, 0.0 }
  0xde   :  { %v127_v22 = vpack.c.bf16 %v126_v21, %v126_v21 }
  0xe0   :  { %129 = vst.msk [vmem:[%s217_s6] sm:$0xf] %vm128_vm3, %v127_v22 }

// kernel: densenet_classifier_forward.40
= control target key start
LH: loop header
LB: loop body
LE: loop exit
PB: predicated region body
PF: predicated region fallthrough
CT: control target
= control target key end

     0   :  { %s642_s9 = smov 0   ;;  %s644_s10 = smov 0   ;;  %s702_s0 = inlined_call_operand.vmem [shape: bf16[8,512], index: 0, kind: input, shape index: {}]   ;;  %s703_s1 = inlined_call_operand.vmem [shape: bf16[512,8], index: 1, kind: input, shape index: {}]   ;;  %s704_s2 = inlined_call_operand.vmem [shape: bf16[8,8], index: 2, kind: output, shape index: {}]  }
   0x1   :  { %s646_s11 = smov 0  }
   0x2 LB: > { %s24_s12 = sadd.s32 1, %s620_s10  ;;  %p509_p0 = scmp.ge.s32.totalorder %s624_s11, 1  ;;  %s624_s11 = sphi %s646_s11, %s12_s11   ;;  %s620_s10 = sphi %s644_s10, %s706_s10   ;;  %s616_s9 = sphi %s642_s9, %s705_s9  }
   0x3   : > { %p25_p1 = scmp.ge.s32.totalorder %s24_s12, 2  ;;  %p156_p2 = scmp.lt.s32.totalorder %s624_s11, 3 }
   0x5   : > { %s708_s12 = smov (%p25_p1, %s24_s12), 0  ;;  %p157_p3 = pnand %p509_p0, %p156_p2 }
   0x6   : > { %s510_s13 = sshll.u32 (!%p157_p3), %s616_s9, 1  ;;  %s512_s14 = sshll.u32 (!%p157_p3), %s616_s9, 5 }
   0x7   : > { %160 = sbr.rel (%p157_p3) target bundleno = 265 (0x109), region = 28  ;;  %p195_p4 = scmp.lt.s32.totalorder (!%p157_p3), %s510_s13, 3 }
   0x8   : > { %p203_p5 = scmp.lt.s32.totalorder (!%p157_p3), %s512_s14, 63  ;;  %p514_p6 = scmp.ne.s32.totalorder (!%p157_p3), %s616_s9, 0 }
   0xc   : > { %s710_s13 = smov (!%p195_p4, %s510_s13), 3  ;;  %s712_s14 = smov (!%p203_p5, %s512_s14), 63 }
   0xd   : > { %s511_s15 = sshll.u32 %s710_s13, 2  ;;  %s513_s19 = sshll.u32 %s712_s14, 2 }
   0xe   : > { %s200_s18 = scalar_lea.vmem %s702_s0, %s511_s15  ;;  %s670_s22 = scalar_lea.vmem %s703_s1, %s513_s19 }
   0xf   : > { %222 = sbr.rel (%p514_p6) target bundleno = 22 (0x16), region = 32 }
  0x14   : > { %vm223_vm0 = vcmask 64512   ;;  %v626_v0 = vmov 0.0  }
  0x15   : > { %224 = vst.msk [vmem:[#allocation2] sm:$0xff] %vm223_vm0, %v626_v0 }
  0x16 PF: > { %v584_v1 = vld [vmem:[%s670_s22 + $0x78] sm:$0xff]   ;;  %v586_v3 = vld [vmem:[%s670_s22 + $0x70] sm:$0xff]   ;;  %v588_v5 = vld [vmem:[%s670_s22 + $0x68] sm:$0xff]   ;;  %vm403_vm1 = vcmask 64512   ;;  %p533_p7 = scmp.ne.s32.totalorder %s616_s9, 1 }
  0x17   : > { %v585_v2 = vld [vmem:[%s670_s22 + $0x38] sm:$0xff]   ;;  %537 = vmatprep.subr.bf16.mxu0 %v584_v1  ;;  %v587_v4 = vld [vmem:[%s670_s22 + $0x30] sm:$0xff]   ;;  %v589_v6 = vld [vmem:[%s670_s22 + $0x28] sm:$0xff]  }
  0x18   : > { %538 = vmatpush3.bf16.msra.mxu0 %v585_v2  ;;  %v590_v7 = vld [vmem:[%s670_s22 + $0x60] sm:$0xff]   ;;  %v592_v9 = vld [vmem:[%s670_s22 + $0x58] sm:$0xff]   ;;  %v594_v11 = vld [vmem:[%s670_s22 + $0x50] sm:$0xff]  }
  0x19   : > { %539 = vmatprep.subr.bf16.mxu0 %v586_v3  ;;  %v591_v8 = vld [vmem:[%s670_s22 + $0x20] sm:$0xff]   ;;  %v593_v10 = vld [vmem:[%s670_s22 + $0x18] sm:$0xff]   ;;  %v595_v14 = vld [vmem:[%s670_s22 + $0x10] sm:$0xff]  }
  0x1a   : > { %v225_v12 = vld [vmem:[%s200_s18] sm:$0xff]  ;;  %v596_v15 = vld [vmem:[%s670_s22 + $0x48] sm:$0xff]  }
  0x1b   : > { %v516_v13 = vcombine.high %v225_v12, %v225_v12  ;;  %v597_v16 = vld [vmem:[%s670_s22 + $0x8] sm:$0xff]   ;;  %v598_v17 = vld [vmem:[%s670_s22 + $0x40] sm:$0xff]   ;;  %v515_v19 = vcombine.low %v225_v12, %v225_v12 }
  0x1c   : > { %540 = vmatpush3.bf16.msra.mxu0 %v587_v4  ;;  %v599_v18 = vld [vmem:[%s670_s22] sm:$0xff]  }
  0x1d   : > { %541 = vmatprep.subr.bf16.mxu0 %v588_v5  ;;  %394 = vmatprep.mubr.bf16.mxu0 %v516_v13  ;;  %v226_v21 = vld [vmem:[#allocation2] sm:$0xff] }
  0x20   : > { %542 = vmatpush3.bf16.msra.mxu0 %v589_v6 }
  0x21   : > { %543 = vmatprep.subr.bf16.mxu0 %v590_v7 }
  0x24   : > { %544 = vmatpush3.bf16.msra.mxu0 %v591_v8 }
  0x25   : > { %545 = vmatprep.subr.bf16.mxu0 %v592_v9 }
  0x28   : > { %546 = vmatpush3.bf16.msra.mxu0 %v593_v10 }
  0x29   : > { %547 = vmatprep.subr.bf16.mxu0 %v594_v11 }
  0x2c   : > { %548 = vmatpush3.bf16.msra.mxu0 %v595_v14 }
  0x2d   : > { %549 = vmatprep.subr.bf16.mxu0 %v596_v15 }
  0x30   : > { %550 = vmatpush3.bf16.msra.mxu0 %v597_v16 }
  0x31   : > { %551 = vmatprep.subr.bf16.mxu0 %v598_v17 }
  0x34   : > { %552 = vmatpush3.bf16.msra.mxu0 %v599_v18 }
  0x37   : > { %395 = vmatmul.mubr.bf16.vlgmr.msra.gmra.mxu0 %v515_v19 }
  0xf7   : > { %v553_v20 = vpop.f32.mrf.mxu0 }
  0xf9   : > { %v554_v22 = vpop.f32.mrf.mxu0 }
  0xfa   : > { %v555_v23 = vadd.f32 %v554_v22, %v553_v20  ;;  %408 = sbr.rel (%p533_p7) target bundleno = 265 (0x109), region = 36 }
  0xfb   : > { %v556_v24 = vpop.f32.mrf.mxu0 }
  0xfc   : > { %v402_v25 = vadd.f32 %v555_v23, %v226_v21 }
  0xfd   : > { %v557_v26 = vpop.f32.mrf.mxu0 }
  0xfe   : > { %404 = vst.msk [vmem:[#allocation2] sm:$0xff] %vm403_vm1, %v402_v25 }
  0xff   : > { %vm411_vm2 = vcmask 60416  }
 0x105   : > { %v409_v27 = vld [vmem:[#allocation2] sm:$0xff] }
 0x106   : > { %v410_v28 = vpack.c.bf16 %v409_v27, %v409_v27 }
 0x108   : > { %412 = vst.msk [vmem:[%s704_s2] sm:$0xf] %vm411_vm2, %v410_v28 }
 0x109 PF: > { %s12_s11 = sadd.s32 1, %s624_s11   ;;  %s705_s9 = smov %s620_s10 }
 0x10a   : > { %p9_p8 = scmp.ge.s32.totalorder %s12_s11, 4   ;;  %s706_s10 = smov %s708_s12 }
 0x10c   :  { %11 = sbr.rel (!%p9_p8) target bundleno = 2 (0x2), region = 69 }

// kernel: densenet_classifier_forward.41
= control target key start
LH: loop header
LB: loop body
LE: loop exit
PB: predicated region body
PF: predicated region fallthrough
CT: control target
= control target key end

     0   :  { %vm28_vm0 = vcmask 261120   ;;  %vm67_vm1 = vcmask 1043456   ;;  %v164_v0 = vmov 0.0   ;;  %vm165_vm2 = vmmov 0   ;;  %s227_s1 = inlined_call_operand.vmem [shape: bf16[24,32], index: 1, kind: input, shape index: {}]   ;;  %s228_s0 = inlined_call_operand.vmem [shape: bf16[8,24], index: 0, kind: input, shape index: {}]   ;;  %s229_s2 = inlined_call_operand.vmem [shape: f32[1,24], index: 2, kind: input, shape index: {}]   ;;  %s230_s3 = inlined_call_operand.vmem [shape: f32[1,24], index: 3, kind: input, shape index: {}]   ;;  %s231_s4 = inlined_call_operand.vmem [shape: f32[1,32], index: 4, kind: input, shape index: {}]   ;;  %s232_s5 = inlined_call_operand.vmem [shape: f32[1,32], index: 5, kind: input, shape index: {}]   ;;  %s233_s6 = inlined_call_operand.vmem [shape: bf16[8,32], index: 6, kind: output, shape index: {}]  }
   0x1   :  { %29 = vst.msk [vmem:[#allocation2] sm:$0xff] %vm28_vm0, %v164_v0  ;;  %152 = vmatprep.subr.bf16.mxu0 %v164_v0  ;;  %v162_v1 = vld [vmem:[%s227_s1 + $0x8] ss:$0 sps:$4 sm:$0xff]   ;;  %156 = vmatprep.mubr.msk.bf16.mxu0 %vm165_vm2, %v164_v0  ;;  %v30_v2 = vld [vmem:[%s228_s0] sm:$0xf]  ;;  %vm63_vm3 = vcmask 195584  }
   0x2   :  { %v69_v3 = vsel %vm67_vm1, %v162_v1, 0  ;;  %v31_v4 = vunpack.c.l.bf16 %v30_v2  ;;  %v142_v5 = vld [vmem:[%s229_s2] ss:$0 sm:$0xff]  ;;  %vm136_vm4 = vcmask 257024  }
   0x3   :  { %153 = vmatpush3.bf16.msra.mxu0 %v69_v3  ;;  %v163_v6 = vld [vmem:[%s227_s1] sm:$0xff]  }
   0x4   :  { %v143_v7 = vld [vmem:[%s230_s3] ss:$0 sm:$0xff]  ;;  %154 = vmatprep.subr.bf16.mxu0 %v164_v0  ;;  %v39_v8 = vmul.f32 %v142_v5, %v31_v4 }
   0x5   :  { %v147_v18 = vld [vmem:[%s231_s4] ss:$0 sm:$0xff] }
   0x6   :  { %v47_v9 = vadd.f32 %v143_v7, %v39_v8  ;;  %v148_v20 = vld [vmem:[%s232_s5] ss:$0 sm:$0xff] }
   0x7   :  { %155 = vmatpush3.bf16.msra.mxu0 %v163_v6 }
   0x8   :  { %v48_v10 = vmax.f32 %v47_v9, 0.0  ;;  %v50_v12 = vld [vmem:[#allocation2] sm:$0xff] }
   0xa   :  { %v49_v11 = vpack.c.bf16 %v48_v10, %v48_v10 }
   0xc   :  { %157 = vmatmul.mubr.msk.bf16.vlgmr.msra.gmra.mxu0 %vm63_vm3, %v49_v11 }
  0xcc   :  { %v105_v13 = vpop.f32.mrf.mxu0 }
  0xcd   :  { %v111_v14 = vadd.f32 %v105_v13, %v50_v12 }
  0xce   :  { %v158_v15 = vpop.f32.mrf.mxu0 }
  0xcf   :  { %113 = vst.msk [vmem:[#allocation2] sm:$0xff] %vm28_vm0, %v111_v14 }
  0xd0   :  { %v108_v16 = vpop.f32.mrf.mxu0 }
  0xd2   :  { %v159_v17 = vpop.f32.mrf.mxu0 }
  0xd6   :  { %v117_v19 = vld [vmem:[#allocation2] sm:$0xff] }
  0xd7   :  { %v125_v21 = vmul.f32 %v147_v18, %v117_v19 }
  0xd9   :  { %v133_v22 = vadd.f32 %v148_v20, %v125_v21 }
  0xdb   :  { %v134_v23 = vmax.f32 %v133_v22, 0.0 }
  0xdd   :  { %v135_v24 = vpack.c.bf16 %v134_v23, %v134_v23 }
  0xdf   :  { %137 = vst.msk [vmem:[%s233_s6] sm:$0xf] %vm136_vm4, %v135_v24 }

// kernel: densenet_classifier_forward.43
= control target key start
LH: loop header
LB: loop body
LE: loop exit
PB: predicated region body
PF: predicated region fallthrough
CT: control target
= control target key end

     0   :  { %vm22_vm0 = vcmask 130048   ;;  %v139_v0 = vmov 0.0   ;;  %vm140_vm1 = vmmov 0   ;;  %vm61_vm2 = vcmask 261120   ;;  %s186_s1 = inlined_call_operand.vmem [shape: bf16[32,16], index: 1, kind: input, shape index: {}]   ;;  %s187_s0 = inlined_call_operand.vmem [shape: bf16[8,32], index: 0, kind: input, shape index: {}]   ;;  %s188_s2 = inlined_call_operand.vmem [shape: f32[1,32], index: 2, kind: input, shape index: {}]   ;;  %s189_s3 = inlined_call_operand.vmem [shape: f32[1,32], index: 3, kind: input, shape index: {}]   ;;  %s190_s4 = inlined_call_operand.vmem [shape: bf16[8,16], index: 4, kind: output, shape index: {}]  }
   0x1   :  { %23 = vst.msk [vmem:[#allocation2] sm:$0xff] %vm22_vm0, %v139_v0  ;;  %127 = vmatprep.subr.bf16.mxu0 %v139_v0  ;;  %v137_v1 = vld [vmem:[%s186_s1 + $0x8] sm:$0xff]   ;;  %131 = vmatprep.mubr.msk.bf16.mxu0 %vm140_vm1, %v139_v0  ;;  %v138_v2 = vld [vmem:[%s186_s1] sm:$0xff]   ;;  %vm113_vm3 = vcmask 125952  }
   0x2   :  { %128 = vmatpush3.bf16.msra.mxu0 %v137_v1  ;;  %v24_v3 = vld [vmem:[%s187_s0] sm:$0xf] }
   0x3   :  { %v119_v4 = vld [vmem:[%s188_s2] ss:$0 sm:$0xff]  ;;  %129 = vmatprep.subr.bf16.mxu0 %v139_v0  ;;  %v25_v5 = vunpack.c.l.bf16 %v24_v3 }
   0x4   :  { %v120_v6 = vld [vmem:[%s189_s3] ss:$0 sm:$0xff] }
   0x5   :  { %v33_v7 = vmul.f32 %v119_v4, %v25_v5 }
   0x6   :  { %130 = vmatpush3.bf16.msra.mxu0 %v138_v2 }
   0x7   :  { %v41_v8 = vadd.f32 %v120_v6, %v33_v7 }
   0x8   :  { %v44_v11 = vld [vmem:[#allocation2] sm:$0xff] }
   0x9   :  { %v42_v9 = vmax.f32 %v41_v8, 0.0 }
   0xb   :  { %v43_v10 = vpack.c.bf16 %v42_v9, %v42_v9 }
   0xd   :  { %132 = vmatmul.mubr.msk.bf16.vlgmr.msra.gmra.mxu0 %vm61_vm2, %v43_v10 }
  0xcd   :  { %v99_v12 = vpop.f32.mrf.mxu0 }
  0xce   :  { %v105_v13 = vadd.f32 %v99_v12, %v44_v11 }
  0xcf   :  { %v133_v14 = vpop.f32.mrf.mxu0 }
  0xd0   :  { %107 = vst.msk [vmem:[#allocation2] sm:$0xff] %vm22_vm0, %v105_v13 }
  0xd1   :  { %v102_v15 = vpop.f32.mrf.mxu0 }
  0xd3   :  { %v134_v16 = vpop.f32.mrf.mxu0 }
  0xd7   :  { %v111_v17 = vld [vmem:[#allocation2] sm:$0xff] }
  0xd8   :  { %v112_v18 = vpack.c.bf16 %v111_v17, %v111_v17 }
  0xda   :  { %114 = vst.msk [vmem:[%s190_s4] sm:$0xf] %vm113_vm3, %v112_v18 }

// kernel: densenet_classifier_forward.49
= control target key start
LH: loop header
LB: loop body
LE: loop exit
PB: predicated region body
PF: predicated region fallthrough
CT: control target
= control target key end

     0   :  { %v47_v0 = vlaneseq  ;;  %v155_v1 = vmov 0.0   ;;  %vm156_vm0 = vmmov 0   ;;  %vm55_vm1 = vcmask 1041409   ;;  %s217_s3 = inlined_call_operand.vmem [shape: f32[32,128], index: 3, kind: input, shape index: {}]   ;;  %s218_s0 = inlined_call_operand.vmem [shape: bf16[2,1,32], index: 0, kind: input, shape index: {}]   ;;  %s219_s1 = inlined_call_operand.vmem [shape: f32[1,1,32], index: 1, kind: input, shape index: {}]   ;;  %s220_s2 = inlined_call_operand.vmem [shape: f32[1,1,32], index: 2, kind: input, shape index: {}]   ;;  %s221_s4 = inlined_call_operand.vmem [shape: f32[1,128], index: 4, kind: input, shape index: {}]   ;;  %s222_s5 = inlined_call_operand.vmem [shape: f32[2,128], index: 5, kind: output, shape index: {}]  }
   0x1   :  { %142 = vmatprep.subr.mxu0 %v155_v1  ;;  %v37_v2 = vld [vmem:[%s217_s3 + $0x18] sm:$0xff]  ;;  %v36_v3 = vld [vmem:[%s217_s3 + $0x10] sm:$0xff]  ;;  %150 = vmatprep.mubr.msk.f32.mxu0 %vm156_vm0, %v155_v1  ;;  %v20_v4 = vld [vmem:[%s218_s0] sm:$0x1]  ;;  %vm57_vm2 = vcmask 261120  }
   0x2   :  { %143 = vmatpush3.msra.mxu0 %v37_v2  ;;  %v21_v5 = vld [vmem:[%s218_s0 + $0x1] sm:$0x1]  ;;  %v35_v6 = vld [vmem:[%s217_s3 + $0x8] sm:$0xff]  ;;  %v22_v7 = vunpack.c.l.bf16 %v20_v4  ;;  %v24_v9 = vld [vmem:[%s219_s1] sm:$0x1]  ;;  %v48_v10 = vshrl.u32 %v47_v0, 7 }
   0x3   :  { %144 = vmatprep.subr.mxu0 %v155_v1  ;;  %v23_v8 = vunpack.c.l.bf16 %v21_v5  ;;  %v27_v11 = vld [vmem:[%s220_s2] sm:$0x1] }
   0x4   :  { %145 = vmatpush3.msra.mxu0 %v36_v3  ;;  %v34_v12 = vld [vmem:[%s217_s3] sm:$0xff]  ;;  %v25_v13 = vmul.f32 %v24_v9, %v22_v7  ;;  %v49_v17 = vsub.s32 0, %v48_v10 }
   0x5   :  { %146 = vmatprep.subr.mxu0 %v155_v1  ;;  %v26_v14 = vmul.f32 %v24_v9, %v23_v8  ;;  %v135_v23 = vld [vmem:[%s221_s4] ss:$0 sm:$0xff] }
   0x6   :  { %147 = vmatpush3.msra.mxu0 %v35_v6  ;;  %v28_v15 = vadd.f32 %v27_v11, %v25_v13 }
   0x7   :  { %148 = vmatprep.subr.mxu0 %v155_v1  ;;  %v29_v16 = vadd.f32 %v27_v11, %v26_v14 }
   0x8   :  { %149 = vmatpush3.msra.mxu0 %v34_v12  ;;  %v30_v18 = vmax.f32 %v28_v15, 0.0 }
   0x9   :  { %v31_v19 = vmax.f32 %v29_v16, 0.0 }
   0xa   :  { %v50_v20 = vrot.slane %v30_v18, %v49_v17 }
   0xb   :  { %v54_v21 = vrot.slane %v31_v19, %v49_v17 }
   0xd   :  { %v56_v22 = vsel %vm55_vm1, %v54_v21, %v50_v20 }
   0xe   :  { %151 = vmatmul.mubr.msk.f32.vlgmr.msra.gmra.mxu0 %vm57_vm2, %v56_v22 }
  0xce   :  { %v126_v24 = vpop.f32.mrf.mxu0 }
  0xcf   :  { %v127_v25 = vadd.f32 %v135_v23, %v126_v24 }
  0xd0   :  { %v152_v26 = vpop.f32.mrf.mxu0 }
  0xd1   :  { %130 = vst [vmem:[%s222_s5] sm:$0x3] %v127_v25 }

</bundles_post_ra>
